<compile_context>
chip_gen: v6e
topology: v6e:2x2x1
jax: 0.10.0
libtpu: 0.0.40
codegen_flags: <defaults>
</compile_context>

<pallas_src>
import jax
import jax.numpy as jnp
from jax import lax
from jax.experimental import pallas as pl
from jax.experimental.pallas import tpu as pltpu

_EPS = 1e-5


# --------------------------- small in-kernel helpers ---------------------------

def _fold_groups(v, groups, c):
    """(1, groups*c) -> (1, c): sum the `groups` channel groups (channel-minor)."""
    out = v[:, 0:c]
    for g in range(1, groups):
        out = out + v[:, g * c:(g + 1) * c]
    return out


def _tile_groups(v, groups):
    """(1, c) -> (1, groups*c): repeat per-channel vector across the tap groups."""
    if groups == 1:
        return v
    return jnp.concatenate([v] * groups, axis=1)


# ------------------------------- Pallas kernels -------------------------------

def _make_conv_bn_relu_kernel(groups, cout, count, eps):
    """Single-block kernel: GEMM + masked batch-stat BatchNorm + ReLU + crop zeroing."""
    inv_cnt = 1.0 / float(count)

    def kernel(a_ref, b_ref, mask_ref, gamma_ref, beta_ref, o_ref):
        # MXU matmul: bf16 operands, fp32 accumulation.
        y = jnp.dot(a_ref[...].astype(jnp.bfloat16), b_ref[...],
                    preferred_element_type=jnp.float32)            # (M, groups*cout)
        m = mask_ref[...]                                           # 0 on cropped border
        # Per-channel batch stats over the *kept* (cropped) output only (fp32, two-pass).
        mean = _fold_groups(jnp.sum(y * m, axis=0, keepdims=True),
                            groups, cout) * inv_cnt                 # (1, cout)
        cent = (y - _tile_groups(mean, groups)) * m
        var = _fold_groups(jnp.sum(cent * cent, axis=0, keepdims=True),
                           groups, cout) * inv_cnt                  # (1, cout)
        scale = gamma_ref[...] * lax.rsqrt(var + eps)
        shift = beta_ref[...] - mean * scale
        act = jnp.maximum(y * _tile_groups(scale, groups)
                          + _tile_groups(shift, groups), 0.0)
        # Zero the cropped border so this tensor doubles as the next layer's
        # zero-padded input (structural zeros must stay zero after BN+ReLU).
        o_ref[...] = (act * m).astype(o_ref.dtype)

    return kernel


def _conv_tanh_kernel(a_ref, b_ref, o_ref):
    y = jnp.dot(a_ref[...].astype(jnp.bfloat16), b_ref[...],
                preferred_element_type=jnp.float32)
    o_ref[...] = jnp.tanh(y)                                        # EUP; free in epilogue


def _full_block(shape):
    nd = len(shape)
    return pl.BlockSpec(shape, lambda i, _n=nd: (0,) * _n)


def _conv_bn_relu(a, b, mask, gamma, beta, *, groups, count, eps=_EPS):
    m_rows = a.shape[0]
    kn = b.shape[1]
    cout = kn // groups
    kernel = _make_conv_bn_relu_kernel(groups, cout, count, eps)
    return pl.pallas_call(
        kernel,
        out_shape=jax.ShapeDtypeStruct((m_rows, kn), jnp.bfloat16),
        grid_spec=pltpu.PrefetchScalarGridSpec(
            num_scalar_prefetch=0,
            grid=(1,),                    # whole problem in one resident block
            in_specs=[_full_block(a.shape), _full_block(b.shape),
                      _full_block(mask.shape), _full_block(gamma.shape),
                      _full_block(beta.shape)],
            out_specs=_full_block((m_rows, kn))),
        compiler_params=pltpu.CompilerParams(
            dimension_semantics=("arbitrary",)),
    )(a, b, mask, gamma, beta)


def _conv_tanh(a, b):
    m_rows = a.shape[0]
    kn = b.shape[1]
    return pl.pallas_call(
        _conv_tanh_kernel,
        out_shape=jax.ShapeDtypeStruct((m_rows, kn), jnp.float32),
        grid_spec=pltpu.PrefetchScalarGridSpec(
            num_scalar_prefetch=0,
            grid=(1,),
            in_specs=[_full_block(a.shape), _full_block(b.shape)],
            out_specs=_full_block((m_rows, kn))),
        compiler_params=pltpu.CompilerParams(
            dimension_semantics=("arbitrary",)),
    )(a, b)


# ---------------------- one-time (outside-jit) parameter prep ----------------------

def _pack_stride1_w(w):
    """(Cin, Cout, 4, 4) -> bf16 (Cin, 16*Cout), columns ordered (ky, kx, co)."""
    cin, cout, kh, kw = w.shape
    return jnp.transpose(w, (0, 2, 3, 1)).reshape(cin, kh * kw * cout).astype(jnp.bfloat16)


def _pack_stride2_w(w):
    """(Cin, Cout, 4, 4) -> bf16 (4*Cin, 4*Cout) parity-class (sub-pixel) packing.

    Row (dy, dx, ci), col (ry, rx, co) holds W[ci, co, ry + 2*(1-dy), rx + 2*(1-dx)],
    so  out_full[n, 2p+ry, 2q+rx, co] = sum_{dy,dx,ci} x_pad[n, p+dy, q+dx, ci] * B[...].
    """
    cin, cout, kh, kw = w.shape
    assert kh == 4 and kw == 4, "DCGAN transposed convs use 4x4 kernels"
    wt = jnp.transpose(w, (2, 3, 0, 1))              # (ky, kx, ci, co)
    row_blocks = []
    for dy in (0, 1):
        for dx in (0, 1):
            taps = []
            for ry in (0, 1):
                for rx in (0, 1):
                    taps.append(wt[ry + 2 * (1 - dy), rx + 2 * (1 - dx)])  # (ci, co)
            row_blocks.append(jnp.concatenate(taps, axis=1))               # (ci, 4*co)
    return jnp.concatenate(row_blocks, axis=0).astype(jnp.bfloat16)        # (4ci, 4co)


def _crop_mask(n, h_in, cout):
    """1/0 mask over parity-layout GEMM output rows (n,p,q) x cols (ry,rx,co):
    zero exactly on the transposed-conv border that padding=1 crops away."""
    p = h_in + 1
    v = jnp.ones((p, 2), jnp.float32).at[0, 0].set(0.0).at[p - 1, 1].set(0.0)
    m = v[:, None, :, None] * v[None, :, None, :]                    # (p, p, 2, 2)
    m = jnp.broadcast_to(m[None, :, :, :, :, None], (n, p, p, 2, 2, cout))
    return m.reshape(n * p * p, 4 * cout)


def pack_params(raw, batch):
    """Hoisted out of the jitted forward: bf16 packed GEMM weights, (1, C) BN
    params and static crop masks (per perf review: no per-forward weight prep)."""
    c1 = raw["w1"].shape[1]
    packed = {
        "wp1": _pack_stride1_w(raw["w1"]),
        "wp2": _pack_stride2_w(raw["w2"]),
        "wp3": _pack_stride2_w(raw["w3"]),
        "wp4": _pack_stride2_w(raw["w4"]),
        "wp5": _pack_stride2_w(raw["w5"]),
        "mk1": jnp.ones((batch, 16 * c1), jnp.float32),              # layer 1: no crop
        "mk2": _crop_mask(batch, 4, raw["w2"].shape[1]),
        "mk3": _crop_mask(batch, 8, raw["w3"].shape[1]),
        "mk4": _crop_mask(batch, 16, raw["w4"].shape[1]),
    }
    for i in (1, 2, 3, 4):
        packed[f"g{i}"] = raw[f"g{i}"].reshape(1, -1).astype(jnp.float32)
        packed[f"bt{i}"] = raw[f"b{i}"].reshape(1, -1).astype(jnp.float32)
    return packed


# ------------------------------ forward (jitted) ------------------------------

def _im2col_2x2(xp):
    """Zero-padded activation (N, S, S, C) -> (N*(S-1)^2, 4*C): 2x2 super-pixel
    neighbourhoods, column order (dy, dx, ci)."""
    n, s, _, c = xp.shape
    m = s - 1
    cols = [xp[:, dy:dy + m, dx:dx + m, :] for dy in (0, 1) for dx in (0, 1)]
    return jnp.stack(cols, axis=3).reshape(n * m * m, 4 * c)


def _planes_to_spatial(y, n, p, c):
    """Parity-planes GEMM output (N*P*P, 4*C) -> spatial (N, 2P, 2P, C)."""
    t = y.reshape(n, p, p, 2, 2, c)
    t = jnp.transpose(t, (0, 1, 3, 2, 4, 5))
    return t.reshape(n, 2 * p, 2 * p, c)


def generator_forward(packed, z_nchw):
    n = z_nchw.shape[0]
    z2 = z_nchw.reshape(n, -1).astype(jnp.float32)                   # (N, nz); 1x1 spatial

    # Layer 1: ConvT(nz -> 8*ngf, k4, s1, p0) + BN + ReLU   (1x1 -> 4x4)
    c1 = packed["g1"].shape[1]
    y = _conv_bn_relu(z2, packed["wp1"], packed["mk1"], packed["g1"], packed["bt1"],
                      groups=16, count=n * 16)                       # (N, 16*c1) bf16
    xp = jnp.pad(y.reshape(n, 4, 4, c1), ((0, 0), (1, 1), (1, 1), (0, 0)))

    # Layers 2-4: ConvT(k4, s2, p1) + BN + ReLU  (each doubles the spatial size)
    # TODO(synk): the inter-layer pixel-shuffle + 2x2 im2col re-indexing is pure
    # data movement; it is left to (fusible) XLA glue instead of in-kernel
    # lane-crossing relayouts, which Mosaic handles poorly.
    for i in (2, 3, 4):
        h_in = xp.shape[1] - 2
        ci = packed[f"g{i}"].shape[1]
        a = _im2col_2x2(xp)
        y = _conv_bn_relu(a, packed[f"wp{i}"], packed[f"mk{i}"],
                          packed[f"g{i}"], packed[f"bt{i}"],
                          groups=4, count=n * (2 * h_in) * (2 * h_in))
        # crop-zeroed un-cropped output == next layer's zero-padded input
        xp = _planes_to_spatial(y, n, h_in + 1, ci)

    # Layer 5: ConvT(ngf -> nc, k4, s2, p1) + tanh (fused into the kernel epilogue)
    h_in = xp.shape[1] - 2
    nc_out = packed["wp5"].shape[1] // 4
    y = _conv_tanh(_im2col_2x2(xp), packed["wp5"])
    full = _planes_to_spatial(y, n, h_in + 1, nc_out)                # (N, 2H+2, 2H+2, nc)
    out = full[:, 1:1 + 2 * h_in, 1:1 + 2 * h_in, :]                 # crop (padding=1)
    return jnp.transpose(out, (0, 3, 1, 2))                          # NHWC -> NCHW


# ------------------------------ pure-JAX references ------------------------------

def _ref_conv_transpose(x_nhwc, w_pt, stride, pad, cast_bf16=False):
    k = w_pt.shape[2]
    q = k - 1 - pad
    w_eff = jnp.transpose(w_pt[:, :, ::-1, ::-1], (2, 3, 0, 1))      # HWIO, flipped
    if cast_bf16:
        x_nhwc = x_nhwc.astype(jnp.bfloat16)
        w_eff = w_eff.astype(jnp.bfloat16)
    return lax.conv_general_dilated(
        x_nhwc, w_eff, window_strides=(1, 1),
        padding=[(q, q), (q, q)], lhs_dilation=(stride, stride),
        dimension_numbers=("NHWC", "HWIO", "NHWC"),
        preferred_element_type=jnp.float32)


def _ref_bn_relu(x, gamma, beta, eps=_EPS):
    mean = jnp.mean(x, axis=(0, 1, 2))
    var = jnp.mean((x - mean) ** 2, axis=(0, 1, 2))
    return jnp.maximum((x - mean) / jnp.sqrt(var + eps) * gamma + beta, 0.0)


def _ref_forward(params, z_nchw, cast_bf16=False):
    cb = cast_bf16
    x = jnp.transpose(z_nchw, (0, 2, 3, 1))
    x = _ref_bn_relu(_ref_conv_transpose(x, params["w1"], 1, 0, cb),
                     params["g1"], params["b1"])
    x = _ref_bn_relu(_ref_conv_transpose(x, params["w2"], 2, 1, cb),
                     params["g2"], params["b2"])
    x = _ref_bn_relu(_ref_conv_transpose(x, params["w3"], 2, 1, cb),
                     params["g3"], params["b3"])
    x = _ref_bn_relu(_ref_conv_transpose(x, params["w4"], 2, 1, cb),
                     params["g4"], params["b4"])
    x = jnp.tanh(_ref_conv_transpose(x, params["w5"], 2, 1, cb))
    return jnp.transpose(x, (0, 3, 1, 2))


# ---------------------------------- main ----------------------------------

if __name__ == "__main__":
    nz, ngf, nc, batch = 8, 8, 3, 2

    key = jax.random.PRNGKey(0)
    keys = jax.random.split(key, 12)

    def wn(k, shape):          # DCGAN conv init: N(0, 0.02)
        return 0.02 * jax.random.normal(k, shape, jnp.float32)

    def gn(k, c):              # DCGAN BN gamma init: N(1, 0.02)
        return 1.0 + 0.02 * jax.random.normal(k, (c,), jnp.float32)

    raw = {
        # ConvTranspose2d weights, PyTorch layout (Cin, Cout, KH, KW)
        "w1": wn(keys[0], (nz,       ngf * 8, 4, 4)),
        "w2": wn(keys[1], (ngf * 8,  ngf * 4, 4, 4)),
        "w3": wn(keys[2], (ngf * 4,  ngf * 2, 4, 4)),
        "w4": wn(keys[3], (ngf * 2,  ngf,     4, 4)),
        "w5": wn(keys[4], (ngf,      nc,      4, 4)),
        "g1": gn(keys[5], ngf * 8), "b1": jnp.zeros((ngf * 8,), jnp.float32),
        "g2": gn(keys[6], ngf * 4), "b2": jnp.zeros((ngf * 4,), jnp.float32),
        "g3": gn(keys[7], ngf * 2), "b3": jnp.zeros((ngf * 2,), jnp.float32),
        "g4": gn(keys[8], ngf),     "b4": jnp.zeros((ngf,),     jnp.float32),
    }

    z = jax.random.normal(keys[9], (batch, nz, 1, 1), jnp.float32)

    packed = pack_params(raw, batch)                 # one-time prep, outside jit

    fwd = jax.jit(generator_forward)
    out = jax.block_until_ready(fwd(packed, z))
    assert out.shape == (batch, nc, 64, 64), out.shape
    assert bool(jnp.all(jnp.isfinite(out)))

    # Structural check: reference with matching bf16 MXU operands (tight tol).
    ref_bf16 = jax.block_until_ready(_ref_forward(raw, z, cast_bf16=True))
    err_bf16 = float(jnp.max(jnp.abs(out - ref_bf16)))
    assert err_bf16 < 2e-2, f"mismatch vs bf16-matched reference: {err_bf16}"

    # End-to-end check vs full-fp32 reference (loose tol: bf16 MXU operands).
    ref_f32 = jax.block_until_ready(_ref_forward(raw, z, cast_bf16=False))
    err_f32 = float(jnp.max(jnp.abs(out - ref_f32)))
    assert err_f32 < 1.5e-1, f"mismatch vs fp32 reference: {err_f32}"

    print("KERNEL_OK")
</pallas_src>

<mosaic_0001>
module attributes {stable_mosaic.version = 11 : i64} {
  func.func @kernel(%arg0: i32, %arg1: memref<2x8xf32, #tpu.memory_space<vmem>>, %arg2: memref<8x1024xbf16, #tpu.memory_space<vmem>>, %arg3: memref<2x1024xf32, #tpu.memory_space<vmem>>, %arg4: memref<1x64xf32, #tpu.memory_space<vmem>>, %arg5: memref<1x64xf32, #tpu.memory_space<vmem>>, %arg6: memref<2x1024xbf16, #tpu.memory_space<vmem>>) attributes {dimension_semantics = [#tpu.dimension_semantics<arbitrary>], iteration_bounds = array<i64: 1>, scalar_prefetch = 0 : i64, scratch_operands = 0 : i64, tpu.core_type = #tpu.core_type<tc>, window_params = [{pipeline_mode = #tpu.pipeline_mode<synchronous>, transform_indices = @transform_0, window_bounds = array<i64: 2, 8>}, {pipeline_mode = #tpu.pipeline_mode<synchronous>, transform_indices = @transform_1, window_bounds = array<i64: 8, 1024>}, {pipeline_mode = #tpu.pipeline_mode<synchronous>, transform_indices = @transform_2, window_bounds = array<i64: 2, 1024>}, {pipeline_mode = #tpu.pipeline_mode<synchronous>, transform_indices = @transform_3, window_bounds = array<i64: 1, 64>}, {pipeline_mode = #tpu.pipeline_mode<synchronous>, transform_indices = @transform_4, window_bounds = array<i64: 1, 64>}, {pipeline_mode = #tpu.pipeline_mode<synchronous>, transform_indices = @transform_5, window_bounds = array<i64: 2, 1024>}]} {
    %c0 = arith.constant 0 : index
    %c0_0 = arith.constant 0 : index
    %0 = vector.load %arg1[%c0, %c0_0] : memref<2x8xf32, #tpu.memory_space<vmem>>, vector<2x8xf32>
    %1 = arith.truncf %0 : vector<2x8xf32> to vector<2x8xbf16>
    %c0_1 = arith.constant 0 : index
    %c0_2 = arith.constant 0 : index
    %2 = vector.load %arg2[%c0_1, %c0_2] : memref<8x1024xbf16, #tpu.memory_space<vmem>>, vector<8x1024xbf16>
    %cst = arith.constant dense<0.000000e+00> : vector<2x1024xf32>
    %3 = tpu.matmul %1, %2, %cst {dimension_numbers = #tpu.dot_dimension_numbers<[1], [0], [0], [1], [0, 0, 1, 1], [], []>} : vector<2x8xbf16>, vector<8x1024xbf16>, vector<2x1024xf32> -> vector<2x1024xf32>
    %c0_3 = arith.constant 0 : index
    %c0_4 = arith.constant 0 : index
    %4 = vector.load %arg3[%c0_3, %c0_4] : memref<2x1024xf32, #tpu.memory_space<vmem>>, vector<2x1024xf32>
    %5 = arith.mulf %3, %4 : vector<2x1024xf32>
    %cst_5 = arith.constant dense<0.000000e+00> : vector<1024xf32>
    %6 = vector.multi_reduction <add>, %5, %cst_5 [0] : vector<2x1024xf32> to vector<1024xf32>
    %7 = vector.shape_cast %6 : vector<1024xf32> to vector<1x1024xf32>
    %8 = vector.extract_strided_slice %7 {offsets = [0, 0], sizes = [1, 64], strides = [1, 1]} : vector<1x1024xf32> to vector<1x64xf32>
    %9 = vector.extract_strided_slice %7 {offsets = [0, 64], sizes = [1, 64], strides = [1, 1]} : vector<1x1024xf32> to vector<1x64xf32>
    %10 = arith.addf %8, %9 : vector<1x64xf32>
    %11 = vector.extract_strided_slice %7 {offsets = [0, 128], sizes = [1, 64], strides = [1, 1]} : vector<1x1024xf32> to vector<1x64xf32>
    %12 = arith.addf %10, %11 : vector<1x64xf32>
    %13 = vector.extract_strided_slice %7 {offsets = [0, 192], sizes = [1, 64], strides = [1, 1]} : vector<1x1024xf32> to vector<1x64xf32>
    %14 = arith.addf %12, %13 : vector<1x64xf32>
    %15 = vector.extract_strided_slice %7 {offsets = [0, 256], sizes = [1, 64], strides = [1, 1]} : vector<1x1024xf32> to vector<1x64xf32>
    %16 = arith.addf %14, %15 : vector<1x64xf32>
    %17 = vector.extract_strided_slice %7 {offsets = [0, 320], sizes = [1, 64], strides = [1, 1]} : vector<1x1024xf32> to vector<1x64xf32>
    %18 = arith.addf %16, %17 : vector<1x64xf32>
    %19 = vector.extract_strided_slice %7 {offsets = [0, 384], sizes = [1, 64], strides = [1, 1]} : vector<1x1024xf32> to vector<1x64xf32>
    %20 = arith.addf %18, %19 : vector<1x64xf32>
    %21 = vector.extract_strided_slice %7 {offsets = [0, 448], sizes = [1, 64], strides = [1, 1]} : vector<1x1024xf32> to vector<1x64xf32>
    %22 = arith.addf %20, %21 : vector<1x64xf32>
    %23 = vector.extract_strided_slice %7 {offsets = [0, 512], sizes = [1, 64], strides = [1, 1]} : vector<1x1024xf32> to vector<1x64xf32>
    %24 = arith.addf %22, %23 : vector<1x64xf32>
    %25 = vector.extract_strided_slice %7 {offsets = [0, 576], sizes = [1, 64], strides = [1, 1]} : vector<1x1024xf32> to vector<1x64xf32>
    %26 = arith.addf %24, %25 : vector<1x64xf32>
    %27 = vector.extract_strided_slice %7 {offsets = [0, 640], sizes = [1, 64], strides = [1, 1]} : vector<1x1024xf32> to vector<1x64xf32>
    %28 = arith.addf %26, %27 : vector<1x64xf32>
    %29 = vector.extract_strided_slice %7 {offsets = [0, 704], sizes = [1, 64], strides = [1, 1]} : vector<1x1024xf32> to vector<1x64xf32>
    %30 = arith.addf %28, %29 : vector<1x64xf32>
    %31 = vector.extract_strided_slice %7 {offsets = [0, 768], sizes = [1, 64], strides = [1, 1]} : vector<1x1024xf32> to vector<1x64xf32>
    %32 = arith.addf %30, %31 : vector<1x64xf32>
    %33 = vector.extract_strided_slice %7 {offsets = [0, 832], sizes = [1, 64], strides = [1, 1]} : vector<1x1024xf32> to vector<1x64xf32>
    %34 = arith.addf %32, %33 : vector<1x64xf32>
    %35 = vector.extract_strided_slice %7 {offsets = [0, 896], sizes = [1, 64], strides = [1, 1]} : vector<1x1024xf32> to vector<1x64xf32>
    %36 = arith.addf %34, %35 : vector<1x64xf32>
    %37 = vector.extract_strided_slice %7 {offsets = [0, 960], sizes = [1, 64], strides = [1, 1]} : vector<1x1024xf32> to vector<1x64xf32>
    %38 = arith.addf %36, %37 : vector<1x64xf32>
    %cst_6 = arith.constant 3.125000e-02 : f32
    %39 = vector.broadcast %cst_6 : f32 to vector<1x64xf32>
    %40 = arith.mulf %38, %39 : vector<1x64xf32>
    %41 = tpu.concatenate %40, %40, %40, %40, %40, %40, %40, %40, %40, %40, %40, %40, %40, %40, %40, %40 in 1 : vector<1x64xf32>, vector<1x64xf32>, vector<1x64xf32>, vector<1x64xf32>, vector<1x64xf32>, vector<1x64xf32>, vector<1x64xf32>, vector<1x64xf32>, vector<1x64xf32>, vector<1x64xf32>, vector<1x64xf32>, vector<1x64xf32>, vector<1x64xf32>, vector<1x64xf32>, vector<1x64xf32>, vector<1x64xf32> -> vector<1x1024xf32>
    %42 = vector.broadcast %41 : vector<1x1024xf32> to vector<2x1024xf32>
    %43 = arith.subf %3, %42 : vector<2x1024xf32>
    %44 = arith.mulf %43, %4 : vector<2x1024xf32>
    %45 = arith.mulf %44, %44 : vector<2x1024xf32>
    %cst_7 = arith.constant dense<0.000000e+00> : vector<1024xf32>
    %46 = vector.multi_reduction <add>, %45, %cst_7 [0] : vector<2x1024xf32> to vector<1024xf32>
    %47 = vector.shape_cast %46 : vector<1024xf32> to vector<1x1024xf32>
    %48 = vector.extract_strided_slice %47 {offsets = [0, 0], sizes = [1, 64], strides = [1, 1]} : vector<1x1024xf32> to vector<1x64xf32>
    %49 = vector.extract_strided_slice %47 {offsets = [0, 64], sizes = [1, 64], strides = [1, 1]} : vector<1x1024xf32> to vector<1x64xf32>
    %50 = arith.addf %48, %49 : vector<1x64xf32>
    %51 = vector.extract_strided_slice %47 {offsets = [0, 128], sizes = [1, 64], strides = [1, 1]} : vector<1x1024xf32> to vector<1x64xf32>
    %52 = arith.addf %50, %51 : vector<1x64xf32>
    %53 = vector.extract_strided_slice %47 {offsets = [0, 192], sizes = [1, 64], strides = [1, 1]} : vector<1x1024xf32> to vector<1x64xf32>
    %54 = arith.addf %52, %53 : vector<1x64xf32>
    %55 = vector.extract_strided_slice %47 {offsets = [0, 256], sizes = [1, 64], strides = [1, 1]} : vector<1x1024xf32> to vector<1x64xf32>
    %56 = arith.addf %54, %55 : vector<1x64xf32>
    %57 = vector.extract_strided_slice %47 {offsets = [0, 320], sizes = [1, 64], strides = [1, 1]} : vector<1x1024xf32> to vector<1x64xf32>
    %58 = arith.addf %56, %57 : vector<1x64xf32>
    %59 = vector.extract_strided_slice %47 {offsets = [0, 384], sizes = [1, 64], strides = [1, 1]} : vector<1x1024xf32> to vector<1x64xf32>
    %60 = arith.addf %58, %59 : vector<1x64xf32>
    %61 = vector.extract_strided_slice %47 {offsets = [0, 448], sizes = [1, 64], strides = [1, 1]} : vector<1x1024xf32> to vector<1x64xf32>
    %62 = arith.addf %60, %61 : vector<1x64xf32>
    %63 = vector.extract_strided_slice %47 {offsets = [0, 512], sizes = [1, 64], strides = [1, 1]} : vector<1x1024xf32> to vector<1x64xf32>
    %64 = arith.addf %62, %63 : vector<1x64xf32>
    %65 = vector.extract_strided_slice %47 {offsets = [0, 576], sizes = [1, 64], strides = [1, 1]} : vector<1x1024xf32> to vector<1x64xf32>
    %66 = arith.addf %64, %65 : vector<1x64xf32>
    %67 = vector.extract_strided_slice %47 {offsets = [0, 640], sizes = [1, 64], strides = [1, 1]} : vector<1x1024xf32> to vector<1x64xf32>
    %68 = arith.addf %66, %67 : vector<1x64xf32>
    %69 = vector.extract_strided_slice %47 {offsets = [0, 704], sizes = [1, 64], strides = [1, 1]} : vector<1x1024xf32> to vector<1x64xf32>
    %70 = arith.addf %68, %69 : vector<1x64xf32>
    %71 = vector.extract_strided_slice %47 {offsets = [0, 768], sizes = [1, 64], strides = [1, 1]} : vector<1x1024xf32> to vector<1x64xf32>
    %72 = arith.addf %70, %71 : vector<1x64xf32>
    %73 = vector.extract_strided_slice %47 {offsets = [0, 832], sizes = [1, 64], strides = [1, 1]} : vector<1x1024xf32> to vector<1x64xf32>
    %74 = arith.addf %72, %73 : vector<1x64xf32>
    %75 = vector.extract_strided_slice %47 {offsets = [0, 896], sizes = [1, 64], strides = [1, 1]} : vector<1x1024xf32> to vector<1x64xf32>
    %76 = arith.addf %74, %75 : vector<1x64xf32>
    %77 = vector.extract_strided_slice %47 {offsets = [0, 960], sizes = [1, 64], strides = [1, 1]} : vector<1x1024xf32> to vector<1x64xf32>
    %78 = arith.addf %76, %77 : vector<1x64xf32>
    %cst_8 = arith.constant 3.125000e-02 : f32
    %79 = vector.broadcast %cst_8 : f32 to vector<1x64xf32>
    %80 = arith.mulf %78, %79 : vector<1x64xf32>
    %c0_9 = arith.constant 0 : index
    %c0_10 = arith.constant 0 : index
    %81 = vector.load %arg4[%c0_9, %c0_10] : memref<1x64xf32, #tpu.memory_space<vmem>>, vector<1x64xf32>
    %cst_11 = arith.constant 9.99999974E-6 : f32
    %82 = vector.broadcast %cst_11 : f32 to vector<1x64xf32>
    %83 = arith.addf %80, %82 : vector<1x64xf32>
    %84 = math.rsqrt %83 : vector<1x64xf32>
    %85 = arith.mulf %81, %84 : vector<1x64xf32>
    %c0_12 = arith.constant 0 : index
    %c0_13 = arith.constant 0 : index
    %86 = vector.load %arg5[%c0_12, %c0_13] : memref<1x64xf32, #tpu.memory_space<vmem>>, vector<1x64xf32>
    %87 = arith.mulf %40, %85 : vector<1x64xf32>
    %88 = arith.subf %86, %87 : vector<1x64xf32>
    %89 = tpu.concatenate %85, %85, %85, %85, %85, %85, %85, %85, %85, %85, %85, %85, %85, %85, %85, %85 in 1 : vector<1x64xf32>, vector<1x64xf32>, vector<1x64xf32>, vector<1x64xf32>, vector<1x64xf32>, vector<1x64xf32>, vector<1x64xf32>, vector<1x64xf32>, vector<1x64xf32>, vector<1x64xf32>, vector<1x64xf32>, vector<1x64xf32>, vector<1x64xf32>, vector<1x64xf32>, vector<1x64xf32>, vector<1x64xf32> -> vector<1x1024xf32>
    %90 = vector.broadcast %89 : vector<1x1024xf32> to vector<2x1024xf32>
    %91 = arith.mulf %3, %90 : vector<2x1024xf32>
    %92 = tpu.concatenate %88, %88, %88, %88, %88, %88, %88, %88, %88, %88, %88, %88, %88, %88, %88, %88 in 1 : vector<1x64xf32>, vector<1x64xf32>, vector<1x64xf32>, vector<1x64xf32>, vector<1x64xf32>, vector<1x64xf32>, vector<1x64xf32>, vector<1x64xf32>, vector<1x64xf32>, vector<1x64xf32>, vector<1x64xf32>, vector<1x64xf32>, vector<1x64xf32>, vector<1x64xf32>, vector<1x64xf32>, vector<1x64xf32> -> vector<1x1024xf32>
    %93 = vector.broadcast %92 : vector<1x1024xf32> to vector<2x1024xf32>
    %94 = arith.addf %91, %93 : vector<2x1024xf32>
    %cst_14 = arith.constant 0.000000e+00 : f32
    %95 = vector.broadcast %cst_14 : f32 to vector<2x1024xf32>
    %96 = arith.maximumf %94, %95 : vector<2x1024xf32>
    %97 = arith.mulf %96, %4 : vector<2x1024xf32>
    %98 = arith.truncf %97 : vector<2x1024xf32> to vector<2x1024xbf16>
    %c0_15 = arith.constant 0 : index
    %c0_16 = arith.constant 0 : index
    %99 = vector.load %arg6[%c0_15, %c0_16] : memref<2x1024xbf16, #tpu.memory_space<vmem>>, vector<2x1024xbf16>
    tpu.vector_store %arg6[%c0_15, %c0_16], %98 {strides = array<i32>} : memref<2x1024xbf16, #tpu.memory_space<vmem>>, vector<2x1024xbf16>,
    return
  }
  func.func @transform_0(%arg0: i32) -> (i32, i32) {
    %c0_i32 = arith.constant 0 : i32
    %c0_i32_0 = arith.constant 0 : i32
    %c0_i32_1 = arith.constant 0 : i32
    return %c0_i32, %c0_i32_0 : i32, i32
  }
  func.func @transform_1(%arg0: i32) -> (i32, i32) {
    %c0_i32 = arith.constant 0 : i32
    %c0_i32_0 = arith.constant 0 : i32
    %c0_i32_1 = arith.constant 0 : i32
    return %c0_i32, %c0_i32_0 : i32, i32
  }
  func.func @transform_2(%arg0: i32) -> (i32, i32) {
    %c0_i32 = arith.constant 0 : i32
    %c0_i32_0 = arith.constant 0 : i32
    %c0_i32_1 = arith.constant 0 : i32
    return %c0_i32, %c0_i32_0 : i32, i32
  }
  func.func @transform_3(%arg0: i32) -> (i32, i32) {
    %c0_i32 = arith.constant 0 : i32
    %c0_i32_0 = arith.constant 0 : i32
    %c0_i32_1 = arith.constant 0 : i32
    return %c0_i32, %c0_i32_0 : i32, i32
  }
  func.func @transform_4(%arg0: i32) -> (i32, i32) {
    %c0_i32 = arith.constant 0 : i32
    %c0_i32_0 = arith.constant 0 : i32
    %c0_i32_1 = arith.constant 0 : i32
    return %c0_i32, %c0_i32_0 : i32, i32
  }
  func.func @transform_5(%arg0: i32) -> (i32, i32) {
    %c0_i32 = arith.constant 0 : i32
    %c0_i32_0 = arith.constant 0 : i32
    %c0_i32_1 = arith.constant 0 : i32
    return %c0_i32, %c0_i32_0 : i32, i32
  }
}

module attributes {stable_mosaic.version = 11 : i64} {
  func.func @kernel(%arg0: i32, %arg1: memref<50x256xbf16, #tpu.memory_space<vmem>>, %arg2: memref<256x128xbf16, #tpu.memory_space<vmem>>, %arg3: memref<50x128xf32, #tpu.memory_space<vmem>>, %arg4: memref<1x32xf32, #tpu.memory_space<vmem>>, %arg5: memref<1x32xf32, #tpu.memory_space<vmem>>, %arg6: memref<50x128xbf16, #tpu.memory_space<vmem>>) attributes {dimension_semantics = [#tpu.dimension_semantics<arbitrary>], iteration_bounds = array<i64: 1>, scalar_prefetch = 0 : i64, scratch_operands = 0 : i64, tpu.core_type = #tpu.core_type<tc>, window_params = [{pipeline_mode = #tpu.pipeline_mode<synchronous>, transform_indices = @transform_0, window_bounds = array<i64: 50, 256>}, {pipeline_mode = #tpu.pipeline_mode<synchronous>, transform_indices = @transform_1, window_bounds = array<i64: 256, 128>}, {pipeline_mode = #tpu.pipeline_mode<synchronous>, transform_indices = @transform_2, window_bounds = array<i64: 50, 128>}, {pipeline_mode = #tpu.pipeline_mode<synchronous>, transform_indices = @transform_3, window_bounds = array<i64: 1, 32>}, {pipeline_mode = #tpu.pipeline_mode<synchronous>, transform_indices = @transform_4, window_bounds = array<i64: 1, 32>}, {pipeline_mode = #tpu.pipeline_mode<synchronous>, transform_indices = @transform_5, window_bounds = array<i64: 50, 128>}]} {
    %c0 = arith.constant 0 : index
    %c0_0 = arith.constant 0 : index
    %0 = vector.load %arg1[%c0, %c0_0] : memref<50x256xbf16, #tpu.memory_space<vmem>>, vector<50x256xbf16>
    %c0_1 = arith.constant 0 : index
    %c0_2 = arith.constant 0 : index
    %1 = vector.load %arg2[%c0_1, %c0_2] : memref<256x128xbf16, #tpu.memory_space<vmem>>, vector<256x128xbf16>
    %cst = arith.constant dense<0.000000e+00> : vector<50x128xf32>
    %2 = tpu.matmul %0, %1, %cst {dimension_numbers = #tpu.dot_dimension_numbers<[1], [0], [0], [1], [0, 0, 1, 1], [], []>} : vector<50x256xbf16>, vector<256x128xbf16>, vector<50x128xf32> -> vector<50x128xf32>
    %c0_3 = arith.constant 0 : index
    %c0_4 = arith.constant 0 : index
    %3 = vector.load %arg3[%c0_3, %c0_4] : memref<50x128xf32, #tpu.memory_space<vmem>>, vector<50x128xf32>
    %4 = arith.mulf %2, %3 : vector<50x128xf32>
    %cst_5 = arith.constant dense<0.000000e+00> : vector<128xf32>
    %5 = vector.multi_reduction <add>, %4, %cst_5 [0] : vector<50x128xf32> to vector<128xf32>
    %6 = vector.shape_cast %5 : vector<128xf32> to vector<1x128xf32>
    %7 = vector.extract_strided_slice %6 {offsets = [0, 0], sizes = [1, 32], strides = [1, 1]} : vector<1x128xf32> to vector<1x32xf32>
    %8 = vector.extract_strided_slice %6 {offsets = [0, 32], sizes = [1, 32], strides = [1, 1]} : vector<1x128xf32> to vector<1x32xf32>
    %9 = arith.addf %7, %8 : vector<1x32xf32>
    %10 = vector.extract_strided_slice %6 {offsets = [0, 64], sizes = [1, 32], strides = [1, 1]} : vector<1x128xf32> to vector<1x32xf32>
    %11 = arith.addf %9, %10 : vector<1x32xf32>
    %12 = vector.extract_strided_slice %6 {offsets = [0, 96], sizes = [1, 32], strides = [1, 1]} : vector<1x128xf32> to vector<1x32xf32>
    %13 = arith.addf %11, %12 : vector<1x32xf32>
    %cst_6 = arith.constant 7.812500e-03 : f32
    %14 = vector.broadcast %cst_6 : f32 to vector<1x32xf32>
    %15 = arith.mulf %13, %14 : vector<1x32xf32>
    %16 = tpu.concatenate %15, %15, %15, %15 in 1 : vector<1x32xf32>, vector<1x32xf32>, vector<1x32xf32>, vector<1x32xf32> -> vector<1x128xf32>
    %17 = vector.broadcast %16 : vector<1x128xf32> to vector<50x128xf32>
    %18 = arith.subf %2, %17 : vector<50x128xf32>
    %19 = arith.mulf %18, %3 : vector<50x128xf32>
    %20 = arith.mulf %19, %19 : vector<50x128xf32>
    %cst_7 = arith.constant dense<0.000000e+00> : vector<128xf32>
    %21 = vector.multi_reduction <add>, %20, %cst_7 [0] : vector<50x128xf32> to vector<128xf32>
    %22 = vector.shape_cast %21 : vector<128xf32> to vector<1x128xf32>
    %23 = vector.extract_strided_slice %22 {offsets = [0, 0], sizes = [1, 32], strides = [1, 1]} : vector<1x128xf32> to vector<1x32xf32>
    %24 = vector.extract_strided_slice %22 {offsets = [0, 32], sizes = [1, 32], strides = [1, 1]} : vector<1x128xf32> to vector<1x32xf32>
    %25 = arith.addf %23, %24 : vector<1x32xf32>
    %26 = vector.extract_strided_slice %22 {offsets = [0, 64], sizes = [1, 32], strides = [1, 1]} : vector<1x128xf32> to vector<1x32xf32>
    %27 = arith.addf %25, %26 : vector<1x32xf32>
    %28 = vector.extract_strided_slice %22 {offsets = [0, 96], sizes = [1, 32], strides = [1, 1]} : vector<1x128xf32> to vector<1x32xf32>
    %29 = arith.addf %27, %28 : vector<1x32xf32>
    %cst_8 = arith.constant 7.812500e-03 : f32
    %30 = vector.broadcast %cst_8 : f32 to vector<1x32xf32>
    %31 = arith.mulf %29, %30 : vector<1x32xf32>
    %c0_9 = arith.constant 0 : index
    %c0_10 = arith.constant 0 : index
    %32 = vector.load %arg4[%c0_9, %c0_10] : memref<1x32xf32, #tpu.memory_space<vmem>>, vector<1x32xf32>
    %cst_11 = arith.constant 9.99999974E-6 : f32
    %33 = vector.broadcast %cst_11 : f32 to vector<1x32xf32>
    %34 = arith.addf %31, %33 : vector<1x32xf32>
    %35 = math.rsqrt %34 : vector<1x32xf32>
    %36 = arith.mulf %32, %35 : vector<1x32xf32>
    %c0_12 = arith.constant 0 : index
    %c0_13 = arith.constant 0 : index
    %37 = vector.load %arg5[%c0_12, %c0_13] : memref<1x32xf32, #tpu.memory_space<vmem>>, vector<1x32xf32>
    %38 = arith.mulf %15, %36 : vector<1x32xf32>
    %39 = arith.subf %37, %38 : vector<1x32xf32>
    %40 = tpu.concatenate %36, %36, %36, %36 in 1 : vector<1x32xf32>, vector<1x32xf32>, vector<1x32xf32>, vector<1x32xf32> -> vector<1x128xf32>
    %41 = vector.broadcast %40 : vector<1x128xf32> to vector<50x128xf32>
    %42 = arith.mulf %2, %41 : vector<50x128xf32>
    %43 = tpu.concatenate %39, %39, %39, %39 in 1 : vector<1x32xf32>, vector<1x32xf32>, vector<1x32xf32>, vector<1x32xf32> -> vector<1x128xf32>
    %44 = vector.broadcast %43 : vector<1x128xf32> to vector<50x128xf32>
    %45 = arith.addf %42, %44 : vector<50x128xf32>
    %cst_14 = arith.constant 0.000000e+00 : f32
    %46 = vector.broadcast %cst_14 : f32 to vector<50x128xf32>
    %47 = arith.maximumf %45, %46 : vector<50x128xf32>
    %48 = arith.mulf %47, %3 : vector<50x128xf32>
    %49 = arith.truncf %48 : vector<50x128xf32> to vector<50x128xbf16>
    %c0_15 = arith.constant 0 : index
    %c0_16 = arith.constant 0 : index
    %50 = vector.load %arg6[%c0_15, %c0_16] : memref<50x128xbf16, #tpu.memory_space<vmem>>, vector<50x128xbf16>
    tpu.vector_store %arg6[%c0_15, %c0_16], %49 {strides = array<i32>} : memref<50x128xbf16, #tpu.memory_space<vmem>>, vector<50x128xbf16>,
    return
  }
  func.func @transform_0(%arg0: i32) -> (i32, i32) {
    %c0_i32 = arith.constant 0 : i32
    %c0_i32_0 = arith.constant 0 : i32
    %c0_i32_1 = arith.constant 0 : i32
    return %c0_i32, %c0_i32_0 : i32, i32
  }
  func.func @transform_1(%arg0: i32) -> (i32, i32) {
    %c0_i32 = arith.constant 0 : i32
    %c0_i32_0 = arith.constant 0 : i32
    %c0_i32_1 = arith.constant 0 : i32
    return %c0_i32, %c0_i32_0 : i32, i32
  }
  func.func @transform_2(%arg0: i32) -> (i32, i32) {
    %c0_i32 = arith.constant 0 : i32
    %c0_i32_0 = arith.constant 0 : i32
    %c0_i32_1 = arith.constant 0 : i32
    return %c0_i32, %c0_i32_0 : i32, i32
  }
  func.func @transform_3(%arg0: i32) -> (i32, i32) {
    %c0_i32 = arith.constant 0 : i32
    %c0_i32_0 = arith.constant 0 : i32
    %c0_i32_1 = arith.constant 0 : i32
    return %c0_i32, %c0_i32_0 : i32, i32
  }
  func.func @transform_4(%arg0: i32) -> (i32, i32) {
    %c0_i32 = arith.constant 0 : i32
    %c0_i32_0 = arith.constant 0 : i32
    %c0_i32_1 = arith.constant 0 : i32
    return %c0_i32, %c0_i32_0 : i32, i32
  }
  func.func @transform_5(%arg0: i32) -> (i32, i32) {
    %c0_i32 = arith.constant 0 : i32
    %c0_i32_0 = arith.constant 0 : i32
    %c0_i32_1 = arith.constant 0 : i32
    return %c0_i32, %c0_i32_0 : i32, i32
  }
}

module attributes {stable_mosaic.version = 11 : i64} {
  func.func @kernel(%arg0: i32, %arg1: memref<162x128xbf16, #tpu.memory_space<vmem>>, %arg2: memref<128x64xbf16, #tpu.memory_space<vmem>>, %arg3: memref<162x64xf32, #tpu.memory_space<vmem>>, %arg4: memref<1x16xf32, #tpu.memory_space<vmem>>, %arg5: memref<1x16xf32, #tpu.memory_space<vmem>>, %arg6: memref<162x64xbf16, #tpu.memory_space<vmem>>) attributes {dimension_semantics = [#tpu.dimension_semantics<arbitrary>], iteration_bounds = array<i64: 1>, scalar_prefetch = 0 : i64, scratch_operands = 0 : i64, tpu.core_type = #tpu.core_type<tc>, window_params = [{pipeline_mode = #tpu.pipeline_mode<synchronous>, transform_indices = @transform_0, window_bounds = array<i64: 162, 128>}, {pipeline_mode = #tpu.pipeline_mode<synchronous>, transform_indices = @transform_1, window_bounds = array<i64: 128, 64>}, {pipeline_mode = #tpu.pipeline_mode<synchronous>, transform_indices = @transform_2, window_bounds = array<i64: 162, 64>}, {pipeline_mode = #tpu.pipeline_mode<synchronous>, transform_indices = @transform_3, window_bounds = array<i64: 1, 16>}, {pipeline_mode = #tpu.pipeline_mode<synchronous>, transform_indices = @transform_4, window_bounds = array<i64: 1, 16>}, {pipeline_mode = #tpu.pipeline_mode<synchronous>, transform_indices = @transform_5, window_bounds = array<i64: 162, 64>}]} {
    %c0 = arith.constant 0 : index
    %c0_0 = arith.constant 0 : index
    %0 = vector.load %arg1[%c0, %c0_0] : memref<162x128xbf16, #tpu.memory_space<vmem>>, vector<162x128xbf16>
    %c0_1 = arith.constant 0 : index
    %c0_2 = arith.constant 0 : index
    %1 = vector.load %arg2[%c0_1, %c0_2] : memref<128x64xbf16, #tpu.memory_space<vmem>>, vector<128x64xbf16>
    %cst = arith.constant dense<0.000000e+00> : vector<162x64xf32>
    %2 = tpu.matmul %0, %1, %cst {dimension_numbers = #tpu.dot_dimension_numbers<[1], [0], [0], [1], [0, 0, 1, 1], [], []>} : vector<162x128xbf16>, vector<128x64xbf16>, vector<162x64xf32> -> vector<162x64xf32>
    %c0_3 = arith.constant 0 : index
    %c0_4 = arith.constant 0 : index
    %3 = vector.load %arg3[%c0_3, %c0_4] : memref<162x64xf32, #tpu.memory_space<vmem>>, vector<162x64xf32>
    %4 = arith.mulf %2, %3 : vector<162x64xf32>
    %cst_5 = arith.constant dense<0.000000e+00> : vector<64xf32>
    %5 = vector.multi_reduction <add>, %4, %cst_5 [0] : vector<162x64xf32> to vector<64xf32>
    %6 = vector.shape_cast %5 : vector<64xf32> to vector<1x64xf32>
    %7 = vector.extract_strided_slice %6 {offsets = [0, 0], sizes = [1, 16], strides = [1, 1]} : vector<1x64xf32> to vector<1x16xf32>
    %8 = vector.extract_strided_slice %6 {offsets = [0, 16], sizes = [1, 16], strides = [1, 1]} : vector<1x64xf32> to vector<1x16xf32>
    %9 = arith.addf %7, %8 : vector<1x16xf32>
    %10 = vector.extract_strided_slice %6 {offsets = [0, 32], sizes = [1, 16], strides = [1, 1]} : vector<1x64xf32> to vector<1x16xf32>
    %11 = arith.addf %9, %10 : vector<1x16xf32>
    %12 = vector.extract_strided_slice %6 {offsets = [0, 48], sizes = [1, 16], strides = [1, 1]} : vector<1x64xf32> to vector<1x16xf32>
    %13 = arith.addf %11, %12 : vector<1x16xf32>
    %cst_6 = arith.constant 0.001953125 : f32
    %14 = vector.broadcast %cst_6 : f32 to vector<1x16xf32>
    %15 = arith.mulf %13, %14 : vector<1x16xf32>
    %16 = tpu.concatenate %15, %15, %15, %15 in 1 : vector<1x16xf32>, vector<1x16xf32>, vector<1x16xf32>, vector<1x16xf32> -> vector<1x64xf32>
    %17 = vector.broadcast %16 : vector<1x64xf32> to vector<162x64xf32>
    %18 = arith.subf %2, %17 : vector<162x64xf32>
    %19 = arith.mulf %18, %3 : vector<162x64xf32>
    %20 = arith.mulf %19, %19 : vector<162x64xf32>
    %cst_7 = arith.constant dense<0.000000e+00> : vector<64xf32>
    %21 = vector.multi_reduction <add>, %20, %cst_7 [0] : vector<162x64xf32> to vector<64xf32>
    %22 = vector.shape_cast %21 : vector<64xf32> to vector<1x64xf32>
    %23 = vector.extract_strided_slice %22 {offsets = [0, 0], sizes = [1, 16], strides = [1, 1]} : vector<1x64xf32> to vector<1x16xf32>
    %24 = vector.extract_strided_slice %22 {offsets = [0, 16], sizes = [1, 16], strides = [1, 1]} : vector<1x64xf32> to vector<1x16xf32>
    %25 = arith.addf %23, %24 : vector<1x16xf32>
    %26 = vector.extract_strided_slice %22 {offsets = [0, 32], sizes = [1, 16], strides = [1, 1]} : vector<1x64xf32> to vector<1x16xf32>
    %27 = arith.addf %25, %26 : vector<1x16xf32>
    %28 = vector.extract_strided_slice %22 {offsets = [0, 48], sizes = [1, 16], strides = [1, 1]} : vector<1x64xf32> to vector<1x16xf32>
    %29 = arith.addf %27, %28 : vector<1x16xf32>
    %cst_8 = arith.constant 0.001953125 : f32
    %30 = vector.broadcast %cst_8 : f32 to vector<1x16xf32>
    %31 = arith.mulf %29, %30 : vector<1x16xf32>
    %c0_9 = arith.constant 0 : index
    %c0_10 = arith.constant 0 : index
    %32 = vector.load %arg4[%c0_9, %c0_10] : memref<1x16xf32, #tpu.memory_space<vmem>>, vector<1x16xf32>
    %cst_11 = arith.constant 9.99999974E-6 : f32
    %33 = vector.broadcast %cst_11 : f32 to vector<1x16xf32>
    %34 = arith.addf %31, %33 : vector<1x16xf32>
    %35 = math.rsqrt %34 : vector<1x16xf32>
    %36 = arith.mulf %32, %35 : vector<1x16xf32>
    %c0_12 = arith.constant 0 : index
    %c0_13 = arith.constant 0 : index
    %37 = vector.load %arg5[%c0_12, %c0_13] : memref<1x16xf32, #tpu.memory_space<vmem>>, vector<1x16xf32>
    %38 = arith.mulf %15, %36 : vector<1x16xf32>
    %39 = arith.subf %37, %38 : vector<1x16xf32>
    %40 = tpu.concatenate %36, %36, %36, %36 in 1 : vector<1x16xf32>, vector<1x16xf32>, vector<1x16xf32>, vector<1x16xf32> -> vector<1x64xf32>
    %41 = vector.broadcast %40 : vector<1x64xf32> to vector<162x64xf32>
    %42 = arith.mulf %2, %41 : vector<162x64xf32>
    %43 = tpu.concatenate %39, %39, %39, %39 in 1 : vector<1x16xf32>, vector<1x16xf32>, vector<1x16xf32>, vector<1x16xf32> -> vector<1x64xf32>
    %44 = vector.broadcast %43 : vector<1x64xf32> to vector<162x64xf32>
    %45 = arith.addf %42, %44 : vector<162x64xf32>
    %cst_14 = arith.constant 0.000000e+00 : f32
    %46 = vector.broadcast %cst_14 : f32 to vector<162x64xf32>
    %47 = arith.maximumf %45, %46 : vector<162x64xf32>
    %48 = arith.mulf %47, %3 : vector<162x64xf32>
    %49 = arith.truncf %48 : vector<162x64xf32> to vector<162x64xbf16>
    %c0_15 = arith.constant 0 : index
    %c0_16 = arith.constant 0 : index
    %50 = vector.load %arg6[%c0_15, %c0_16] : memref<162x64xbf16, #tpu.memory_space<vmem>>, vector<162x64xbf16>
    tpu.vector_store %arg6[%c0_15, %c0_16], %49 {strides = array<i32>} : memref<162x64xbf16, #tpu.memory_space<vmem>>, vector<162x64xbf16>,
    return
  }
  func.func @transform_0(%arg0: i32) -> (i32, i32) {
    %c0_i32 = arith.constant 0 : i32
    %c0_i32_0 = arith.constant 0 : i32
    %c0_i32_1 = arith.constant 0 : i32
    return %c0_i32, %c0_i32_0 : i32, i32
  }
  func.func @transform_1(%arg0: i32) -> (i32, i32) {
    %c0_i32 = arith.constant 0 : i32
    %c0_i32_0 = arith.constant 0 : i32
    %c0_i32_1 = arith.constant 0 : i32
    return %c0_i32, %c0_i32_0 : i32, i32
  }
  func.func @transform_2(%arg0: i32) -> (i32, i32) {
    %c0_i32 = arith.constant 0 : i32
    %c0_i32_0 = arith.constant 0 : i32
    %c0_i32_1 = arith.constant 0 : i32
    return %c0_i32, %c0_i32_0 : i32, i32
  }
  func.func @transform_3(%arg0: i32) -> (i32, i32) {
    %c0_i32 = arith.constant 0 : i32
    %c0_i32_0 = arith.constant 0 : i32
    %c0_i32_1 = arith.constant 0 : i32
    return %c0_i32, %c0_i32_0 : i32, i32
  }
  func.func @transform_4(%arg0: i32) -> (i32, i32) {
    %c0_i32 = arith.constant 0 : i32
    %c0_i32_0 = arith.constant 0 : i32
    %c0_i32_1 = arith.constant 0 : i32
    return %c0_i32, %c0_i32_0 : i32, i32
  }
  func.func @transform_5(%arg0: i32) -> (i32, i32) {
    %c0_i32 = arith.constant 0 : i32
    %c0_i32_0 = arith.constant 0 : i32
    %c0_i32_1 = arith.constant 0 : i32
    return %c0_i32, %c0_i32_0 : i32, i32
  }
}

module attributes {stable_mosaic.version = 11 : i64} {
  func.func @kernel(%arg0: i32, %arg1: memref<578x64xbf16, #tpu.memory_space<vmem>>, %arg2: memref<64x32xbf16, #tpu.memory_space<vmem>>, %arg3: memref<578x32xf32, #tpu.memory_space<vmem>>, %arg4: memref<1x8xf32, #tpu.memory_space<vmem>>, %arg5: memref<1x8xf32, #tpu.memory_space<vmem>>, %arg6: memref<578x32xbf16, #tpu.memory_space<vmem>>) attributes {dimension_semantics = [#tpu.dimension_semantics<arbitrary>], iteration_bounds = array<i64: 1>, scalar_prefetch = 0 : i64, scratch_operands = 0 : i64, tpu.core_type = #tpu.core_type<tc>, window_params = [{pipeline_mode = #tpu.pipeline_mode<synchronous>, transform_indices = @transform_0, window_bounds = array<i64: 578, 64>}, {pipeline_mode = #tpu.pipeline_mode<synchronous>, transform_indices = @transform_1, window_bounds = array<i64: 64, 32>}, {pipeline_mode = #tpu.pipeline_mode<synchronous>, transform_indices = @transform_2, window_bounds = array<i64: 578, 32>}, {pipeline_mode = #tpu.pipeline_mode<synchronous>, transform_indices = @transform_3, window_bounds = array<i64: 1, 8>}, {pipeline_mode = #tpu.pipeline_mode<synchronous>, transform_indices = @transform_4, window_bounds = array<i64: 1, 8>}, {pipeline_mode = #tpu.pipeline_mode<synchronous>, transform_indices = @transform_5, window_bounds = array<i64: 578, 32>}]} {
    %c0 = arith.constant 0 : index
    %c0_0 = arith.constant 0 : index
    %0 = vector.load %arg1[%c0, %c0_0] : memref<578x64xbf16, #tpu.memory_space<vmem>>, vector<578x64xbf16>
    %c0_1 = arith.constant 0 : index
    %c0_2 = arith.constant 0 : index
    %1 = vector.load %arg2[%c0_1, %c0_2] : memref<64x32xbf16, #tpu.memory_space<vmem>>, vector<64x32xbf16>
    %cst = arith.constant dense<0.000000e+00> : vector<578x32xf32>
    %2 = tpu.matmul %0, %1, %cst {dimension_numbers = #tpu.dot_dimension_numbers<[1], [0], [0], [1], [0, 0, 1, 1], [], []>} : vector<578x64xbf16>, vector<64x32xbf16>, vector<578x32xf32> -> vector<578x32xf32>
    %c0_3 = arith.constant 0 : index
    %c0_4 = arith.constant 0 : index
    %3 = vector.load %arg3[%c0_3, %c0_4] : memref<578x32xf32, #tpu.memory_space<vmem>>, vector<578x32xf32>
    %4 = arith.mulf %2, %3 : vector<578x32xf32>
    %cst_5 = arith.constant dense<0.000000e+00> : vector<32xf32>
    %5 = vector.multi_reduction <add>, %4, %cst_5 [0] : vector<578x32xf32> to vector<32xf32>
    %6 = vector.shape_cast %5 : vector<32xf32> to vector<1x32xf32>
    %7 = vector.extract_strided_slice %6 {offsets = [0, 0], sizes = [1, 8], strides = [1, 1]} : vector<1x32xf32> to vector<1x8xf32>
    %8 = vector.extract_strided_slice %6 {offsets = [0, 8], sizes = [1, 8], strides = [1, 1]} : vector<1x32xf32> to vector<1x8xf32>
    %9 = arith.addf %7, %8 : vector<1x8xf32>
    %10 = vector.extract_strided_slice %6 {offsets = [0, 16], sizes = [1, 8], strides = [1, 1]} : vector<1x32xf32> to vector<1x8xf32>
    %11 = arith.addf %9, %10 : vector<1x8xf32>
    %12 = vector.extract_strided_slice %6 {offsets = [0, 24], sizes = [1, 8], strides = [1, 1]} : vector<1x32xf32> to vector<1x8xf32>
    %13 = arith.addf %11, %12 : vector<1x8xf32>
    %cst_6 = arith.constant 4.8828125E-4 : f32
    %14 = vector.broadcast %cst_6 : f32 to vector<1x8xf32>
    %15 = arith.mulf %13, %14 : vector<1x8xf32>
    %16 = tpu.concatenate %15, %15, %15, %15 in 1 : vector<1x8xf32>, vector<1x8xf32>, vector<1x8xf32>, vector<1x8xf32> -> vector<1x32xf32>
    %17 = vector.broadcast %16 : vector<1x32xf32> to vector<578x32xf32>
    %18 = arith.subf %2, %17 : vector<578x32xf32>
    %19 = arith.mulf %18, %3 : vector<578x32xf32>
    %20 = arith.mulf %19, %19 : vector<578x32xf32>
    %cst_7 = arith.constant dense<0.000000e+00> : vector<32xf32>
    %21 = vector.multi_reduction <add>, %20, %cst_7 [0] : vector<578x32xf32> to vector<32xf32>
    %22 = vector.shape_cast %21 : vector<32xf32> to vector<1x32xf32>
    %23 = vector.extract_strided_slice %22 {offsets = [0, 0], sizes = [1, 8], strides = [1, 1]} : vector<1x32xf32> to vector<1x8xf32>
    %24 = vector.extract_strided_slice %22 {offsets = [0, 8], sizes = [1, 8], strides = [1, 1]} : vector<1x32xf32> to vector<1x8xf32>
    %25 = arith.addf %23, %24 : vector<1x8xf32>
    %26 = vector.extract_strided_slice %22 {offsets = [0, 16], sizes = [1, 8], strides = [1, 1]} : vector<1x32xf32> to vector<1x8xf32>
    %27 = arith.addf %25, %26 : vector<1x8xf32>
    %28 = vector.extract_strided_slice %22 {offsets = [0, 24], sizes = [1, 8], strides = [1, 1]} : vector<1x32xf32> to vector<1x8xf32>
    %29 = arith.addf %27, %28 : vector<1x8xf32>
    %cst_8 = arith.constant 4.8828125E-4 : f32
    %30 = vector.broadcast %cst_8 : f32 to vector<1x8xf32>
    %31 = arith.mulf %29, %30 : vector<1x8xf32>
    %c0_9 = arith.constant 0 : index
    %c0_10 = arith.constant 0 : index
    %32 = vector.load %arg4[%c0_9, %c0_10] : memref<1x8xf32, #tpu.memory_space<vmem>>, vector<1x8xf32>
    %cst_11 = arith.constant 9.99999974E-6 : f32
    %33 = vector.broadcast %cst_11 : f32 to vector<1x8xf32>
    %34 = arith.addf %31, %33 : vector<1x8xf32>
    %35 = math.rsqrt %34 : vector<1x8xf32>
    %36 = arith.mulf %32, %35 : vector<1x8xf32>
    %c0_12 = arith.constant 0 : index
    %c0_13 = arith.constant 0 : index
    %37 = vector.load %arg5[%c0_12, %c0_13] : memref<1x8xf32, #tpu.memory_space<vmem>>, vector<1x8xf32>
    %38 = arith.mulf %15, %36 : vector<1x8xf32>
    %39 = arith.subf %37, %38 : vector<1x8xf32>
    %40 = tpu.concatenate %36, %36, %36, %36 in 1 : vector<1x8xf32>, vector<1x8xf32>, vector<1x8xf32>, vector<1x8xf32> -> vector<1x32xf32>
    %41 = vector.broadcast %40 : vector<1x32xf32> to vector<578x32xf32>
    %42 = arith.mulf %2, %41 : vector<578x32xf32>
    %43 = tpu.concatenate %39, %39, %39, %39 in 1 : vector<1x8xf32>, vector<1x8xf32>, vector<1x8xf32>, vector<1x8xf32> -> vector<1x32xf32>
    %44 = vector.broadcast %43 : vector<1x32xf32> to vector<578x32xf32>
    %45 = arith.addf %42, %44 : vector<578x32xf32>
    %cst_14 = arith.constant 0.000000e+00 : f32
    %46 = vector.broadcast %cst_14 : f32 to vector<578x32xf32>
    %47 = arith.maximumf %45, %46 : vector<578x32xf32>
    %48 = arith.mulf %47, %3 : vector<578x32xf32>
    %49 = arith.truncf %48 : vector<578x32xf32> to vector<578x32xbf16>
    %c0_15 = arith.constant 0 : index
    %c0_16 = arith.constant 0 : index
    %50 = vector.load %arg6[%c0_15, %c0_16] : memref<578x32xbf16, #tpu.memory_space<vmem>>, vector<578x32xbf16>
    tpu.vector_store %arg6[%c0_15, %c0_16], %49 {strides = array<i32>} : memref<578x32xbf16, #tpu.memory_space<vmem>>, vector<578x32xbf16>,
    return
  }
  func.func @transform_0(%arg0: i32) -> (i32, i32) {
    %c0_i32 = arith.constant 0 : i32
    %c0_i32_0 = arith.constant 0 : i32
    %c0_i32_1 = arith.constant 0 : i32
    return %c0_i32, %c0_i32_0 : i32, i32
  }
  func.func @transform_1(%arg0: i32) -> (i32, i32) {
    %c0_i32 = arith.constant 0 : i32
    %c0_i32_0 = arith.constant 0 : i32
    %c0_i32_1 = arith.constant 0 : i32
    return %c0_i32, %c0_i32_0 : i32, i32
  }
  func.func @transform_2(%arg0: i32) -> (i32, i32) {
    %c0_i32 = arith.constant 0 : i32
    %c0_i32_0 = arith.constant 0 : i32
    %c0_i32_1 = arith.constant 0 : i32
    return %c0_i32, %c0_i32_0 : i32, i32
  }
  func.func @transform_3(%arg0: i32) -> (i32, i32) {
    %c0_i32 = arith.constant 0 : i32
    %c0_i32_0 = arith.constant 0 : i32
    %c0_i32_1 = arith.constant 0 : i32
    return %c0_i32, %c0_i32_0 : i32, i32
  }
  func.func @transform_4(%arg0: i32) -> (i32, i32) {
    %c0_i32 = arith.constant 0 : i32
    %c0_i32_0 = arith.constant 0 : i32
    %c0_i32_1 = arith.constant 0 : i32
    return %c0_i32, %c0_i32_0 : i32, i32
  }
  func.func @transform_5(%arg0: i32) -> (i32, i32) {
    %c0_i32 = arith.constant 0 : i32
    %c0_i32_0 = arith.constant 0 : i32
    %c0_i32_1 = arith.constant 0 : i32
    return %c0_i32, %c0_i32_0 : i32, i32
  }
}

module attributes {stable_mosaic.version = 11 : i64} {
  func.func @_conv_tanh_kernel(%arg0: i32, %arg1: memref<2178x32xbf16, #tpu.memory_space<vmem>>, %arg2: memref<32x12xbf16, #tpu.memory_space<vmem>>, %arg3: memref<2178x12xf32, #tpu.memory_space<vmem>>) attributes {dimension_semantics = [#tpu.dimension_semantics<arbitrary>], iteration_bounds = array<i64: 1>, scalar_prefetch = 0 : i64, scratch_operands = 0 : i64, tpu.core_type = #tpu.core_type<tc>, window_params = [{pipeline_mode = #tpu.pipeline_mode<synchronous>, transform_indices = @transform_0, window_bounds = array<i64: 2178, 32>}, {pipeline_mode = #tpu.pipeline_mode<synchronous>, transform_indices = @transform_1, window_bounds = array<i64: 32, 12>}, {pipeline_mode = #tpu.pipeline_mode<synchronous>, transform_indices = @transform_2, window_bounds = array<i64: 2178, 12>}]} {
    %c0 = arith.constant 0 : index
    %c0_0 = arith.constant 0 : index
    %0 = vector.load %arg1[%c0, %c0_0] : memref<2178x32xbf16, #tpu.memory_space<vmem>>, vector<2178x32xbf16>
    %c0_1 = arith.constant 0 : index
    %c0_2 = arith.constant 0 : index
    %1 = vector.load %arg2[%c0_1, %c0_2] : memref<32x12xbf16, #tpu.memory_space<vmem>>, vector<32x12xbf16>
    %cst = arith.constant dense<0.000000e+00> : vector<2178x12xf32>
    %2 = tpu.matmul %0, %1, %cst {dimension_numbers = #tpu.dot_dimension_numbers<[1], [0], [0], [1], [0, 0, 1, 1], [], []>} : vector<2178x32xbf16>, vector<32x12xbf16>, vector<2178x12xf32> -> vector<2178x12xf32>
    %3 = math.tanh %2 : vector<2178x12xf32>
    %c0_3 = arith.constant 0 : index
    %c0_4 = arith.constant 0 : index
    %4 = vector.load %arg3[%c0_3, %c0_4] : memref<2178x12xf32, #tpu.memory_space<vmem>>, vector<2178x12xf32>
    tpu.vector_store %arg3[%c0_3, %c0_4], %3 {strides = array<i32>} : memref<2178x12xf32, #tpu.memory_space<vmem>>, vector<2178x12xf32>,
    return
  }
  func.func @transform_0(%arg0: i32) -> (i32, i32) {
    %c0_i32 = arith.constant 0 : i32
    %c0_i32_0 = arith.constant 0 : i32
    %c0_i32_1 = arith.constant 0 : i32
    return %c0_i32, %c0_i32_0 : i32, i32
  }
  func.func @transform_1(%arg0: i32) -> (i32, i32) {
    %c0_i32 = arith.constant 0 : i32
    %c0_i32_0 = arith.constant 0 : i32
    %c0_i32_1 = arith.constant 0 : i32
    return %c0_i32, %c0_i32_0 : i32, i32
  }
  func.func @transform_2(%arg0: i32) -> (i32, i32) {
    %c0_i32 = arith.constant 0 : i32
    %c0_i32_0 = arith.constant 0 : i32
    %c0_i32_1 = arith.constant 0 : i32
    return %c0_i32, %c0_i32_0 : i32, i32
  }
}

</mosaic_0001>

<bundles_post_ra>
// kernel: generator_forward.5
= control target key start
LH: loop header
LB: loop body
LE: loop exit
PB: predicated region body
PF: predicated region fallthrough
CT: control target
= control target key end

     0   :  { %10 = vsyncpa [#allocation3], 0  ;;  %s1089_s0 = inlined_call_operand.hbm [shape: f32[2,8], index: 0, kind: input, shape index: {}]   ;;  %s1090_s1 = inlined_call_operand.hbm [shape: bf16[8,1024], index: 1, kind: input, shape index: {}]   ;;  %s1091_s2 = inlined_call_operand.hbm [shape: f32[2,1024], index: 2, kind: input, shape index: {}]   ;;  %s1092_s3 = inlined_call_operand.hbm [shape: f32[1,64], index: 3, kind: input, shape index: {}]   ;;  %s1093_s4 = inlined_call_operand.hbm [shape: f32[1,64], index: 4, kind: input, shape index: {}]   ;;  %s1094_s5 = inlined_call_operand.vmem [shape: bf16[2,1024], index: 5, kind: output, shape index: {}]  }
   0x1   :  { %11 = vsyncpa [#allocation5], 0 }
   0x2   :  { %12 = vsyncpa [#allocation8], 0  ;;  %s881_s18 = smov [#allocation4]   ;;  %s882_s20 = smov [#allocation7]  }
   0x3   :  { %s29_s19 = sshll.u32 %s881_s18, 4  ;;  %s49_s21 = sshll.u32 %s882_s20, 4  ;;  %s30_s19 = int_to_ptr.vmem [resolvable:$true] %s29_s19  ;;  %s50_s21 = int_to_ptr.vmem [resolvable:$true] %s49_s21 }
   0x4   :  { %s783_s22 = scalar_lea.vmem %s30_s19, 512  ;;  %p788_p1 = scmp.lt.s32.totalorder %s30_s19, %s30_s19 }
   0x5   :  { %p784_p0 = scmp.ne.s32.totalorder %s30_s19, %s783_s22  ;;  %p789_p2 = scmp.lt.s32.totalorder %s783_s22, %s783_s22 }
   0x7   :  { %p790_p3 = por %p789_p2, %p788_p1 }
   0x9   :  { %p791_p4 = pnand %p790_p3, %p784_p0 }
   0xb   :  { %794 = shalt.err (!%p791_p4)
}
   0xc   :  { %32 = dma.hbm_to_vmem [thread:$0]  %s1090_s1, 512, %s30_s19, [#allocation5]  }
   0xd   :  { %s803_s25 = scalar_lea.vmem %s50_s21, 16  ;;  %s807_s26 = scalar_lea.vmem %s50_s21, 32 }
   0xe   :  { %p804_p5 = scmp.ne.s32.totalorder %s50_s21, %s803_s25  ;;  %p808_p6 = scmp.lt.s32.totalorder %s50_s21, %s50_s21 }
   0xf   :  { %p809_p7 = scmp.lt.s32.totalorder %s807_s26, %s803_s25 }
  0x11   :  { %p810_p8 = por %p809_p7, %p808_p6 }
  0x13   :  { %p811_p9 = pnand %p810_p8, %p804_p5 }
  0x15   :  { %814 = shalt.err (!%p811_p9)
}
  0x16   :  { %52 = dma.hbm_to_vmem [thread:$0]  %s1092_s3, 16, %s50_s21, [#allocation8]  }
  0x17   :  { %s883_s29 = smov [#allocation2]   ;;  %s884_s6 = smov [#allocation6]  }
  0x18   :  { %s19_s30 = sshll.u32 %s883_s29, 4  ;;  %s39_s7 = sshll.u32 %s884_s6, 4  ;;  %s20_s30 = int_to_ptr.vmem [resolvable:$true] %s19_s30  ;;  %s40_s7 = int_to_ptr.vmem [resolvable:$true] %s39_s7 }
  0x19   :  { %s823_s8 = scalar_lea.vmem %s20_s30, 32  ;;  %p828_p11 = scmp.lt.s32.totalorder %s20_s30, %s20_s30 }
  0x1a   :  { %p824_p10 = scmp.ne.s32.totalorder %s20_s30, %s823_s8  ;;  %p829_p12 = scmp.lt.s32.totalorder %s823_s8, %s823_s8 }
  0x1c   :  { %p830_p13 = por %p829_p12, %p828_p11 }
  0x1e   :  { %p831_p0 = pnand %p830_p13, %p824_p10 }
  0x20   :  { %834 = shalt.err (!%p831_p0)
}
  0x21   :  { %22 = dma.hbm_to_vmem [thread:$0]  %s1089_s0, 32, %s20_s30, [#allocation3]  }
  0x22   :  { %s843_s10 = scalar_lea.vmem %s40_s7, 256  ;;  %p848_p2 = scmp.lt.s32.totalorder %s40_s7, %s40_s7 }
  0x23   :  { %p844_p1 = scmp.ne.s32.totalorder %s40_s7, %s843_s10  ;;  %p849_p3 = scmp.lt.s32.totalorder %s843_s10, %s843_s10 }
  0x25   :  { %p850_p4 = por %p849_p3, %p848_p2 }
  0x27   :  { %p851_p5 = pnand %p850_p4, %p844_p1 }
  0x29   :  { %854 = shalt.err (!%p851_p5)
}
  0x2a   :  { %42 = dma.hbm_to_vmem [thread:$0]  %s1091_s2, 256, %s40_s7, [#allocation5]  }
  0x2b   :  { %s885_s12 = smov [#allocation9]  }
  0x2c   :  { %s59_s13 = sshll.u32 %s885_s12, 4  ;;  %s60_s13 = int_to_ptr.vmem [resolvable:$true] %s59_s13 }
  0x2d   :  { %s863_s14 = scalar_lea.vmem %s60_s13, 16  ;;  %s867_s15 = scalar_lea.vmem %s60_s13, 32 }
  0x2e   :  { %p864_p6 = scmp.ne.s32.totalorder %s60_s13, %s863_s14  ;;  %p868_p7 = scmp.lt.s32.totalorder %s60_s13, %s60_s13 }
  0x2f   :  { %p869_p8 = scmp.lt.s32.totalorder %s867_s15, %s863_s14 }
  0x31   :  { %p870_p9 = por %p869_p8, %p868_p7 }
  0x33   :  { %p871_p10 = pnand %p870_p9, %p864_p6 }
  0x35   :  { %874 = shalt.err (!%p871_p10)
}
  0x36   :  { %62 = dma.hbm_to_vmem [thread:$0]  %s1093_s4, 16, %s60_s13, [#allocation8]  }
  0x37   :  { %875 = dma.done.wait [#allocation3], 32  }
  0x38   :  { %876 = vsyncadd [#allocation3], 4294967264 }
  0x39   :  { %877 = dma.done.wait [#allocation5], 768  }
  0x3a   :  { %878 = vsyncadd [#allocation5], 4294966528 }
  0x3b   :  { %879 = dma.done.wait [#allocation8], 32  }
  0x3c   :  { %880 = vsyncadd [#allocation8], 4294967264  ;;  %v886_v0 = vmov 0   ;;  %v81_v1 = vld [vmem:[#allocation4] sm:$0xff]  ;;  %vm109_vm0 = vcmask 1043456   ;;  %v82_v2 = vld [vmem:[#allocation4 + $0x8] sm:$0xff]  ;;  %v306_v21 = vlaneseq }
  0x3d   :  { %166 = vmatprep.mubr.bf16.mxu0 %v886_v0  ;;  %207 = vmatprep.mubr.bf16.mxu1 %v886_v0  ;;  %v79_v3 = vld [vmem:[#allocation2] sm:$0x3]  ;;  %v735_v4 = vcombine.high %v81_v1, %v81_v1  ;;  %v737_v5 = vcombine.high %v82_v2, %v82_v2  ;;  %v734_v6 = vcombine.low %v81_v1, %v81_v1  ;;  %v83_v8 = vld [vmem:[#allocation4 + $0x10] sm:$0xff]  ;;  %vm105_vm1 = vcmask 64512   ;;  %v298_v24 = vld [vmem:[#allocation6] sm:$0xff]  ;;  %s888_s2 = smov 64  }
  0x3e   :  { %v736_v7 = vcombine.low %v82_v2, %v82_v2  ;;  %v84_v9 = vld [vmem:[#allocation4 + $0x18] sm:$0xff]  ;;  %v739_v10 = vcombine.high %v83_v8, %v83_v8  ;;  %v738_v11 = vcombine.low %v83_v8, %v83_v8  ;;  %v80_v15 = vpack.c.bf16 %v79_v3, %v79_v3  ;;  %v299_v29 = vld [vmem:[#allocation6 + $0x8] sm:$0xff] }
  0x3f   :  { %v741_v12 = vcombine.high %v84_v9, %v84_v9  ;;  %742 = vmatprep.subr.msk.bf16.mxu0 %vm109_vm0, %v735_v4  ;;  %744 = vmatprep.subr.msk.bf16.mxu1 %vm109_vm0, %v737_v5  ;;  %v111_v13 = vsel %vm109_vm0, %v734_v6, 0  ;;  %v740_v16 = vcombine.low %v84_v9, %v84_v9  ;;  %v887_v19 = vmov 1983009808  }
  0x40   :  { %v117_v14 = vsel %vm109_vm0, %v736_v7, 0  ;;  %149 = vmatpush1.bf16.msra.mxu0 %v111_v13  ;;  %v123_v17 = vsel %vm109_vm0, %v738_v11, 0  ;;  %v304_v20 = vunpack.c.l.s4 %v887_v19  ;;  %v943_v23 = vshrl.u32 %v306_v21, 7 }
  0x41   :  { %190 = vmatpush1.bf16.msra.mxu1 %v117_v14  ;;  %746 = vmatprep.subr.msk.bf16.mxu0 %vm109_vm0, %v739_v10  ;;  %v129_v18 = vsel %vm109_vm0, %v740_v16, 0  ;;  %v302_v26 = vcombine.high %v298_v24, %v298_v24  ;;  %v319_v30 = vcombine.high %v299_v29, %v299_v29  ;;  %vm352_vm2 = vcmask 1041408  }
  0x42   :  { %748 = vmatprep.subr.msk.bf16.mxu1 %vm109_vm0, %v741_v12  ;;  %v305_v22 = vunpack.c.0.s8 %v304_v20  ;;  %vm461_vm3 = vcmask 523264  }
  0x43   :  { %743 = vmatmul.mubr.msk.bf16.vlgmr.msra.gmra.mxu0 %vm105_vm1, %v80_v15 }
  0x44   :  { %745 = vmatmul.mubr.msk.bf16.vlgmr.msra.gmra.mxu1 %vm105_vm1, %v80_v15  ;;  %231 = vmatpush1.bf16.msra.mxu0 %v123_v17  ;;  %v308_v25 = vsub.s32 %v305_v22, %v943_v23 }
  0x45   :  { %248 = vmatprep.mubr.bf16.mxu0 %v886_v0  ;;  %272 = vmatpush1.bf16.msra.mxu1 %v129_v18 }
  0x46   :  { %289 = vmatprep.mubr.bf16.mxu1 %v886_v0  ;;  %v946_v27 = vrot.slane %v298_v24, %v308_v25  ;;  %v948_v28 = vrot.slane %v302_v26, %v308_v25  ;;  %v970_v39 = vrot.slane %v299_v29, %v308_v25  ;;  %v972_v40 = vrot.slane %v319_v30, %v308_v25 }
  0x48   :  { %v952_v31 = vcombine.high %v946_v27, %v946_v27  ;;  %v956_v32 = vcombine.high %v948_v28, %v948_v28  ;;  %v984_v57 = vcombine.high %v970_v39, %v970_v39  ;;  %v988_v58 = vcombine.high %v972_v40, %v972_v40 }
  0x4b   :  { %747 = vmatmul.mubr.msk.bf16.vlgmr.msra.gmra.mxu0 %vm105_vm1, %v80_v15 }
  0x4c   :  { %749 = vmatmul.mubr.msk.bf16.vlgmr.msra.gmra.mxu1 %vm105_vm1, %v80_v15 }
 0x103   :  { %v958_v33 = vpop.f32.mrf.mxu0 }
 0x104   :  { %v960_v34 = vpop.f32.mrf.mxu1  ;;  %v344_v35 = vmul.f32 %v946_v27, %v958_v33 }
 0x105   :  { %v346_v36 = vmul.f32 %v948_v28, %v960_v34  ;;  %v966_v37 = vpop.f32.mrf.mxu0 }
 0x106   :  { %v968_v38 = vpop.f32.mrf.mxu1  ;;  %v353_v41 = vsel %vm352_vm2, %v344_v35, 0.0  ;;  %v345_v43 = vmul.f32 %v952_v31, %v966_v37 }
 0x107   :  { %v367_v42 = vsel %vm352_vm2, %v346_v36, 0.0  ;;  %v347_v44 = vmul.f32 %v956_v32, %v968_v38  ;;  %v354_v45 = vrot.slane %v353_v41, 4  ;;  %v172_v47 = vpop.f32.mrf.mxu0 }
 0x108   :  { %v368_v46 = vrot.slane %v367_v42, 4  ;;  %v213_v48 = vpop.f32.mrf.mxu1  ;;  %v360_v49 = vsel %vm352_vm2, %v345_v43, 0.0 }
 0x109   :  { %v374_v50 = vsel %vm352_vm2, %v347_v44, 0.0  ;;  %v361_v51 = vrot.slane %v360_v49, 4  ;;  %v173_v53 = vpop.f32.mrf.mxu0  ;;  %v355_v56 = vadd.f32 %v354_v45, %v353_v41 }
 0x10a   :  { %v375_v52 = vrot.slane %v374_v50, 4  ;;  %v214_v54 = vpop.f32.mrf.mxu1  ;;  %v369_v55 = vadd.f32 %v368_v46, %v367_v42 }
 0x10b   :  { %v362_v59 = vadd.f32 %v361_v51, %v360_v49  ;;  %v990_v61 = vpop.f32.mrf.mxu0  ;;  %v356_v0 = vrot.slane %v355_v56, 2 }
 0x10c   :  { %v376_v60 = vadd.f32 %v375_v52, %v374_v50  ;;  %v370_v62 = vrot.slane %v369_v55, 2  ;;  %v992_v63 = vpop.f32.mrf.mxu1  ;;  %v348_v1 = vmul.f32 %v970_v39, %v990_v61 }
 0x10d   :  { %v350_v2 = vmul.f32 %v972_v40, %v992_v63  ;;  %v998_v3 = vpop.f32.mrf.mxu0  ;;  %v357_v5 = vadd.f32 %v356_v0, %v355_v56  ;;  %v363_v8 = vrot.slane %v362_v59, 2 }
 0x10e   :  { %v371_v4 = vadd.f32 %v370_v62, %v369_v55  ;;  %v1000_v6 = vpop.f32.mrf.mxu1  ;;  %v377_v7 = vrot.slane %v376_v60, 2  ;;  %v381_v9 = vsel %vm352_vm2, %v348_v1, 0.0  ;;  %v349_v10 = vmul.f32 %v984_v57, %v998_v3 }
 0x10f   :  { %v395_v11 = vsel %vm352_vm2, %v350_v2, 0.0  ;;  %v351_v12 = vmul.f32 %v988_v58, %v1000_v6  ;;  %v382_v13 = vrot.slane %v381_v9, 4  ;;  %v254_v14 = vpop.f32.mrf.mxu0  ;;  %v358_v17 = vrot.slane %v357_v5, 1 }
 0x110   :  { %v372_v15 = vrot.slane %v371_v4, 1  ;;  %v396_v16 = vrot.slane %v395_v11, 4  ;;  %v295_v18 = vpop.f32.mrf.mxu1  ;;  %v388_v19 = vsel %vm352_vm2, %v349_v10, 0.0  ;;  %v378_v21 = vadd.f32 %v377_v7, %v376_v60 }
 0x111   :  { %v402_v20 = vsel %vm352_vm2, %v351_v12, 0.0  ;;  %v364_v22 = vadd.f32 %v363_v8, %v362_v59  ;;  %v383_v24 = vadd.f32 %v382_v13, %v381_v9  ;;  %v389_v25 = vrot.slane %v388_v19, 4  ;;  %v255_v30 = vpop.f32.mrf.mxu0 }
 0x112   :  { %v373_v26 = vadd.f32 %v372_v15, %v371_v4  ;;  %v397_v29 = vadd.f32 %v396_v16, %v395_v11  ;;  %v296_v35 = vpop.f32.mrf.mxu1  ;;  %v359_v36 = vadd.f32 %v358_v17, %v357_v5  ;;  %v403_v41 = vrot.slane %v402_v20, 4 }
 0x113   :  { %v379_v42 = vrot.slane %v378_v21, 1  ;;  %v365_v43 = vrot.slane %v364_v22, 1  ;;  %v390_v44 = vadd.f32 %v389_v25, %v388_v19  ;;  %v384_v45 = vrot.slane %v383_v24, 2 }
 0x114   :  { %422 = vrot.lane.b32.xlu1 %v373_v26, %s888_s2  ;;  %v398_v46 = vrot.slane %v397_v29, 2  ;;  %410 = vrot.lane.b32.xlu0 %v359_v36, %s888_s2  ;;  %v404_v47 = vadd.f32 %v403_v41, %v402_v20 }
 0x115   :  { %v380_v48 = vadd.f32 %v379_v42, %v378_v21  ;;  %v385_v49 = vadd.f32 %v384_v45, %v383_v24  ;;  %v391_v50 = vrot.slane %v390_v44, 2  ;;  %v366_v52 = vadd.f32 %v365_v43, %v364_v22 }
 0x116   :  { %v399_v51 = vadd.f32 %v398_v46, %v397_v29  ;;  %v405_v53 = vrot.slane %v404_v47, 2 }
 0x117   :  { %v386_v54 = vrot.slane %v385_v49, 1  ;;  %v392_v55 = vadd.f32 %v391_v50, %v390_v44 }
 0x118   :  { %428 = vrot.lane.b32.xlu1 %v380_v48, %s888_s2  ;;  %416 = vrot.lane.b32.xlu0 %v366_v52, %s888_s2  ;;  %v400_v56 = vrot.slane %v399_v51, 1  ;;  %v406_v59 = vadd.f32 %v405_v53, %v404_v47 }
 0x119   :  { %v387_v60 = vadd.f32 %v386_v54, %v385_v49  ;;  %v393_v62 = vrot.slane %v392_v55, 1 }
 0x11a   :  { %v407_v0 = vrot.slane %v406_v59, 1  ;;  %v401_v2 = vadd.f32 %v400_v56, %v399_v51 }
 0x11b   :  { %v394_v1 = vadd.f32 %v393_v62, %v392_v55 }
 0x11c   :  { %434 = vrot.lane.b32.xlu0 %v387_v60, %s888_s2  ;;  %v408_v4 = vadd.f32 %v407_v0, %v406_v59 }
 0x11d   :  { %440 = vrot.lane.b32.xlu1 %v394_v1, %s888_s2 }
 0x120   :  { %446 = vrot.lane.b32.xlu0 %v401_v2, %s888_s2 }
 0x121   :  { %452 = vrot.lane.b32.xlu1 %v408_v4, %s888_s2 }
 0x186   :  { %v411_v5 = vpop.permute.xlu0 %410  ;;  %v423_v11 = vpop.permute.xlu1 %422 }
 0x187   :  { %v413_v7 = vadd.f32 %v411_v5, %v359_v36 }
 0x189   :  { %v414_v8 = vadd.f32 %v413_v7, %v366_v52 }
 0x18a   :  { %v417_v9 = vpop.permute.xlu0 %416  ;;  %v429_v15 = vpop.permute.xlu1 %428 }
 0x18b   :  { %v419_v10 = vadd.f32 %v417_v9, %v414_v8 }
 0x18d   :  { %v420_v12 = vadd.f32 %v419_v10, %v373_v26  ;;  %v1023_v26 = vsub.s32 0, %v943_v23 }
 0x18e   :  { %v435_v18 = vpop.permute.xlu0 %434 }
 0x18f   :  { %v425_v13 = vadd.f32 %v423_v11, %v420_v12  ;;  %v441_v21 = vpop.permute.xlu1 %440 }
 0x191   :  { %v426_v14 = vadd.f32 %v425_v13, %v380_v48 }
 0x192   :  { %v447_v25 = vpop.permute.xlu0 %446 }
 0x193   :  { %v431_v16 = vadd.f32 %v429_v15, %v426_v14  ;;  %v453_v35 = vpop.permute.xlu1 %452 }
 0x195   :  { %v432_v17 = vadd.f32 %v431_v16, %v387_v60 }
 0x197   :  { %v437_v19 = vadd.f32 %v435_v18, %v432_v17 }
 0x199   :  { %v438_v20 = vadd.f32 %v437_v19, %v394_v1 }
 0x19b   :  { %v443_v22 = vadd.f32 %v441_v21, %v438_v20 }
 0x19d   :  { %v444_v24 = vadd.f32 %v443_v22, %v401_v2 }
 0x19f   :  { %v449_v29 = vadd.f32 %v447_v25, %v444_v24 }
 0x1a1   :  { %v450_v30 = vadd.f32 %v449_v29, %v408_v4 }
 0x1a3   :  { %v455_v36 = vadd.f32 %v453_v35, %v450_v30 }
 0x1a5   :  { %v1018_v41 = vmul.f32 0.03125, %v455_v36 }
 0x1a7   :  { %458 = vrot.lane.b32.xlu0 %v1018_v41, %s888_s2 }
 0x219   :  { %v459_v42 = vpop.permute.xlu0 %458 }
 0x21a   :  { %v462_v43 = vsel %vm461_vm3, %v1018_v41, %v459_v42 }
 0x21b   :  { %v466_v44 = vrot.slane %v462_v43, %v1023_v26 }
 0x21d   :  { %v468_v45 = vsub.f32 %v966_v37, %v466_v44  ;;  %v467_v46 = vsub.f32 %v958_v33, %v466_v44  ;;  %v470_v47 = vsub.f32 %v968_v38, %v466_v44  ;;  %v469_v48 = vsub.f32 %v960_v34, %v466_v44 }
 0x21e   :  { %v472_v49 = vsub.f32 %v998_v3, %v466_v44  ;;  %v471_v50 = vsub.f32 %v990_v61, %v466_v44  ;;  %v474_v51 = vsub.f32 %v1000_v6, %v466_v44  ;;  %v473_v52 = vsub.f32 %v992_v63, %v466_v44 }
 0x21f   :  { %v476_v53 = vmul.f32 %v468_v45, %v952_v31  ;;  %v475_v54 = vmul.f32 %v467_v46, %v946_v27  ;;  %v478_v55 = vmul.f32 %v470_v47, %v956_v32  ;;  %v477_v56 = vmul.f32 %v469_v48, %v948_v28 }
 0x220   :  { %v480_v59 = vmul.f32 %v472_v49, %v984_v57  ;;  %v479_v60 = vmul.f32 %v471_v50, %v970_v39  ;;  %v482_v62 = vmul.f32 %v474_v51, %v988_v58  ;;  %v481_v0 = vmul.f32 %v473_v52, %v972_v40 }
 0x221   :  { %v484_v1 = vmul.f32 %v476_v53, %v476_v53  ;;  %v483_v2 = vmul.f32 %v475_v54, %v475_v54  ;;  %v486_v4 = vmul.f32 %v478_v55, %v478_v55  ;;  %v485_v5 = vmul.f32 %v477_v56, %v477_v56 }
 0x222   :  { %v488_v7 = vmul.f32 %v480_v59, %v480_v59  ;;  %v487_v8 = vmul.f32 %v479_v60, %v479_v60  ;;  %v490_v9 = vmul.f32 %v482_v62, %v482_v62  ;;  %v489_v10 = vmul.f32 %v481_v0, %v481_v0 }
 0x223   :  { %v498_v11 = vsel %vm352_vm2, %v484_v1, 0.0  ;;  %v491_v12 = vsel %vm352_vm2, %v483_v2, 0.0  ;;  %v512_v13 = vsel %vm352_vm2, %v486_v4, 0.0  ;;  %v505_v14 = vsel %vm352_vm2, %v485_v5, 0.0 }
 0x224   :  { %v499_v15 = vrot.slane %v498_v11, 4  ;;  %v492_v16 = vrot.slane %v491_v12, 4  ;;  %v513_v17 = vrot.slane %v512_v13, 4  ;;  %v506_v18 = vrot.slane %v505_v14, 4 }
 0x225   :  { %v526_v19 = vsel %vm352_vm2, %v488_v7, 0.0  ;;  %v519_v20 = vsel %vm352_vm2, %v487_v8, 0.0  ;;  %v540_v21 = vsel %vm352_vm2, %v490_v9, 0.0  ;;  %v533_v22 = vsel %vm352_vm2, %v489_v10, 0.0 }
 0x226   :  { %v500_v24 = vadd.f32 %v499_v15, %v498_v11  ;;  %v493_v25 = vadd.f32 %v492_v16, %v491_v12  ;;  %v514_v29 = vadd.f32 %v513_v17, %v512_v13  ;;  %v507_v30 = vadd.f32 %v506_v18, %v505_v14 }
 0x227   :  { %v527_v35 = vrot.slane %v526_v19, 4  ;;  %v520_v36 = vrot.slane %v519_v20, 4  ;;  %v541_v42 = vrot.slane %v540_v21, 4  ;;  %v534_v43 = vrot.slane %v533_v22, 4 }
 0x228   :  { %v501_v44 = vrot.slane %v500_v24, 2  ;;  %v494_v45 = vrot.slane %v493_v25, 2  ;;  %v515_v46 = vrot.slane %v514_v29, 2  ;;  %v508_v47 = vrot.slane %v507_v30, 2 }
 0x229   :  { %v528_v48 = vadd.f32 %v527_v35, %v526_v19  ;;  %v521_v49 = vadd.f32 %v520_v36, %v519_v20  ;;  %v542_v50 = vadd.f32 %v541_v42, %v540_v21  ;;  %v535_v51 = vadd.f32 %v534_v43, %v533_v22 }
 0x22a   :  { %v502_v52 = vadd.f32 %v501_v44, %v500_v24  ;;  %v495_v53 = vadd.f32 %v494_v45, %v493_v25  ;;  %v516_v54 = vadd.f32 %v515_v46, %v514_v29  ;;  %v509_v55 = vadd.f32 %v508_v47, %v507_v30 }
 0x22b   :  { %v529_v56 = vrot.slane %v528_v48, 2  ;;  %v522_v59 = vrot.slane %v521_v49, 2  ;;  %v543_v2 = vrot.slane %v542_v50, 2  ;;  %v536_v4 = vrot.slane %v535_v51, 2 }
 0x22c   :  { %v503_v60 = vrot.slane %v502_v52, 1  ;;  %v496_v62 = vrot.slane %v495_v53, 1  ;;  %v517_v0 = vrot.slane %v516_v54, 1  ;;  %v510_v1 = vrot.slane %v509_v55, 1 }
 0x22d   :  { %v530_v8 = vadd.f32 %v529_v56, %v528_v48  ;;  %v523_v9 = vadd.f32 %v522_v59, %v521_v49  ;;  %v544_v10 = vadd.f32 %v543_v2, %v542_v50  ;;  %v537_v11 = vadd.f32 %v536_v4, %v535_v51  ;;  %v599_v4 = vld [vmem:[#allocation9] sm:$0x1] }
 0x22e   :  { %v504_v5 = vadd.f32 %v503_v60, %v502_v52  ;;  %v497_v7 = vadd.f32 %v496_v62, %v495_v53  ;;  %v518_v12 = vadd.f32 %v517_v0, %v516_v54  ;;  %v511_v13 = vadd.f32 %v510_v1, %v509_v55  ;;  %v595_v0 = vld [vmem:[#allocation7] sm:$0x1] }
 0x22f   :  { %v531_v14 = vrot.slane %v530_v8, 1  ;;  %v524_v15 = vrot.slane %v523_v9, 1  ;;  %v545_v18 = vrot.slane %v544_v10, 1  ;;  %v538_v19 = vrot.slane %v537_v11, 1 }
 0x230   :  { %554 = vrot.lane.b32.xlu0 %v504_v5, %s888_s2  ;;  %548 = vrot.lane.b32.xlu1 %v497_v7, %s888_s2 }
 0x231   :  { %v532_v16 = vadd.f32 %v531_v14, %v530_v8  ;;  %v525_v17 = vadd.f32 %v524_v15, %v523_v9  ;;  %v546_v20 = vadd.f32 %v545_v18, %v544_v10  ;;  %v539_v21 = vadd.f32 %v538_v19, %v537_v11 }
 0x232   :  { %v889_v10 = vmov 1966171168  }
 0x233   :  { %v681_v11 = vunpack.c.l.s4 %v889_v10 }
 0x234   :  { %566 = vrot.lane.b32.xlu0 %v518_v12, %s888_s2  ;;  %560 = vrot.lane.b32.xlu1 %v511_v13, %s888_s2 }
 0x235   :  { %v682_v14 = vunpack.c.0.s8 %v681_v11 }
 0x238   :  { %578 = vrot.lane.b32.xlu0 %v532_v16, %s888_s2  ;;  %572 = vrot.lane.b32.xlu1 %v525_v17, %s888_s2 }
 0x23c   :  { %590 = vrot.lane.b32.xlu0 %v546_v20, %s888_s2  ;;  %584 = vrot.lane.b32.xlu1 %v539_v21, %s888_s2 }
 0x2a2   :  { %v549_v22 = vpop.permute.xlu1 %548  ;;  %v555_v29 = vpop.permute.xlu0 %554 }
 0x2a3   :  { %v551_v24 = vadd.f32 %v549_v22, %v497_v7 }
 0x2a5   :  { %v552_v25 = vadd.f32 %v551_v24, %v504_v5 }
 0x2a6   :  { %v561_v36 = vpop.permute.xlu1 %560  ;;  %v567_v44 = vpop.permute.xlu0 %566 }
 0x2a7   :  { %v557_v30 = vadd.f32 %v555_v29, %v552_v25 }
 0x2a9   :  { %v558_v35 = vadd.f32 %v557_v30, %v511_v13 }
 0x2aa   :  { %v573_v47 = vpop.permute.xlu1 %572  ;;  %v579_v50 = vpop.permute.xlu0 %578 }
 0x2ab   :  { %v563_v42 = vadd.f32 %v561_v36, %v558_v35 }
 0x2ad   :  { %v564_v43 = vadd.f32 %v563_v42, %v518_v12 }
 0x2ae   :  { %v585_v53 = vpop.permute.xlu1 %584  ;;  %v591_v56 = vpop.permute.xlu0 %590 }
 0x2af   :  { %v569_v45 = vadd.f32 %v567_v44, %v564_v43 }
 0x2b1   :  { %v570_v46 = vadd.f32 %v569_v45, %v525_v17  ;;  %v685_v17 = vsub.s32 %v682_v14, %v943_v23 }
 0x2b3   :  { %v575_v48 = vadd.f32 %v573_v47, %v570_v46 }
 0x2b5   :  { %v576_v49 = vadd.f32 %v575_v48, %v532_v16 }
 0x2b7   :  { %v581_v51 = vadd.f32 %v579_v50, %v576_v49 }
 0x2b9   :  { %v582_v52 = vadd.f32 %v581_v51, %v539_v21 }
 0x2bb   :  { %v587_v54 = vadd.f32 %v585_v53, %v582_v52 }
 0x2bd   :  { %v588_v55 = vadd.f32 %v587_v54, %v546_v20 }
 0x2bf   :  { %v593_v59 = vadd.f32 %v591_v56, %v588_v55 }
 0x2c1   :  { %v594_v60 = vmul.f32 0.03125, %v593_v59 }
 0x2c3   :  { %v596_v62 = vadd.f32 1e-05, %v594_v60 }
 0x2c5   :  { %773 = vrsqrt.f32 %v596_v62 }
 0x2d2   :  { %v774_v1 = vpop.eup %773 }
 0x2d3   :  { %v598_v2 = vmul.f32 %v774_v1, %v595_v0 }
 0x2d5   :  { %v606_v5 = vrot.slane %v598_v2, %v1023_v26  ;;  %v600_v7 = vmul.f32 %v598_v2, %v1018_v41 }
 0x2d7   :  { %607 = vrot.lane.b32.xlu1 %v606_v5, %s888_s2  ;;  %v601_v8 = vsub.f32 %v599_v4, %v600_v7 }
 0x2d9   :  { %v627_v9 = vrot.slane %v601_v8, %v1023_v26 }
 0x2db   :  { %628 = vrot.lane.b32.xlu0 %v627_v9, %s888_s2 }
 0x349   :  { %v608_v12 = vpop.permute.xlu1 %607 }
 0x34a   :  { %v610_v13 = vsel %vm461_vm3, %v598_v2, %v608_v12 }
 0x34b   :  { %v614_v15 = vrot.slane %v610_v13, %v1023_v26 }
 0x34d   :  { %v629_v16 = vpop.permute.xlu0 %628  ;;  %v615_v41 = vmul.f32 %v614_v15, %v958_v33  ;;  %v616_v19 = vmul.f32 %v614_v15, %v966_v37  ;;  %v617_v20 = vmul.f32 %v614_v15, %v960_v34  ;;  %v618_v21 = vmul.f32 %v614_v15, %v968_v38 }
 0x34e   :  { %v631_v18 = vsel %vm461_vm3, %v601_v8, %v629_v16  ;;  %v619_v24 = vmul.f32 %v614_v15, %v990_v61  ;;  %v620_v25 = vmul.f32 %v614_v15, %v998_v3  ;;  %v621_v29 = vmul.f32 %v614_v15, %v992_v63 }
 0x34f   :  { %v635_v22 = vrot.slane %v631_v18, %v1023_v26  ;;  %v622_v23 = vmul.f32 %v614_v15, %v1000_v6 }
 0x351   :  { %v636_v30 = vadd.f32 %v635_v22, %v615_v41  ;;  %v637_v33 = vadd.f32 %v635_v22, %v616_v19  ;;  %v638_v35 = vadd.f32 %v635_v22, %v617_v20  ;;  %v639_v36 = vadd.f32 %v635_v22, %v618_v21 }
 0x352   :  { %v640_v42 = vadd.f32 %v635_v22, %v619_v24  ;;  %v641_v37 = vadd.f32 %v635_v22, %v620_v25  ;;  %v642_v43 = vadd.f32 %v635_v22, %v621_v29  ;;  %v643_v34 = vadd.f32 %v635_v22, %v622_v23 }
 0x353   :  { %v644_v44 = vmax.f32 %v636_v30, 0.0  ;;  %v645_v38 = vmax.f32 %v637_v33, 0.0  ;;  %v646_v45 = vmax.f32 %v638_v35, 0.0  ;;  %v647_v26 = vmax.f32 %v639_v36, 0.0 }
 0x354   :  { %v648_v46 = vmax.f32 %v640_v42, 0.0  ;;  %v649_v61 = vmax.f32 %v641_v37, 0.0  ;;  %v650_v47 = vmax.f32 %v642_v43, 0.0  ;;  %v651_v3 = vmax.f32 %v643_v34, 0.0 }
 0x355   :  { %v652_v63 = vmul.f32 %v644_v44, %v946_v27  ;;  %v653_v6 = vmul.f32 %v645_v38, %v952_v31  ;;  %v654_v48 = vmul.f32 %v646_v45, %v948_v28  ;;  %v655_v49 = vmul.f32 %v647_v26, %v956_v32 }
 0x356   :  { %v656_v50 = vmul.f32 %v648_v46, %v970_v39  ;;  %v657_v51 = vmul.f32 %v649_v61, %v984_v57  ;;  %v658_v52 = vmul.f32 %v650_v47, %v972_v40  ;;  %v659_v53 = vmul.f32 %v651_v3, %v988_v58 }
 0x357   :  { %v750_v54 = vpack.c.bf16 %v653_v6, %v652_v63  ;;  %v751_v55 = vpack.c.bf16 %v655_v49, %v654_v48 }
 0x358   :  { %v752_v56 = vpack.c.bf16 %v657_v51, %v656_v50  ;;  %v753_v59 = vpack.c.bf16 %v659_v53, %v658_v52 }
 0x359   :  { %v686_v60 = vrot.slane %v750_v54, %v685_v17  ;;  %v693_v27 = vrot.slane %v751_v55, %v685_v17 }
 0x35a   :  { %v700_v62 = vrot.slane %v752_v56, %v685_v17  ;;  %v707_v31 = vrot.slane %v753_v59, %v685_v17 }
 0x35b   :  { %v708_v0 = vcombine.low %v686_v60, %v693_v27 }
 0x35c   :  { %v709_v28 = vcombine.low %v700_v62, %v707_v31 }
 0x35d   :  { %v716_v1 = vrot.slane %v708_v0, %v685_v17 }
 0x35e   :  { %v723_v32 = vrot.slane %v709_v28, %v685_v17 }
 0x360   :  { %v724_v2 = vcombine.low %v716_v1, %v723_v32 }
 0x362   :  { %726 = vst [vmem:[%s1094_s5] sm:$0xff] %v724_v2 }
 0x363   :  { %731 = vsyncpa [#allocation3], 1 }
 0x364   :  { %732 = vsyncpa [#allocation5], 1 }
 0x365   :  { %733 = vsyncpa [#allocation8], 1 }

// kernel: generator_forward.6
= control target key start
LH: loop header
LB: loop body
LE: loop exit
PB: predicated region body
PF: predicated region fallthrough
CT: control target
= control target key end

     0   :  { %10 = vsyncpa [#allocation3], 0  ;;  %s971_s0 = inlined_call_operand.vmem [shape: bf16[50,256], index: 0, kind: input, shape index: {}]   ;;  %s972_s1 = inlined_call_operand.hbm [shape: bf16[256,128], index: 1, kind: input, shape index: {}]   ;;  %s973_s2 = inlined_call_operand.hbm [shape: f32[50,128], index: 2, kind: input, shape index: {}]   ;;  %s974_s3 = inlined_call_operand.hbm [shape: f32[1,32], index: 3, kind: input, shape index: {}]   ;;  %s975_s4 = inlined_call_operand.hbm [shape: f32[1,32], index: 4, kind: input, shape index: {}]   ;;  %s976_s5 = inlined_call_operand.vmem [shape: bf16[50,128], index: 5, kind: output, shape index: {}]  }
   0x1   :  { %11 = vsyncpa [#allocation5], 0 }
   0x2   :  { %12 = vsyncpa [#allocation8], 0  ;;  %s774_s18 = smov [#allocation4]  }
   0x3   :  { %s32_s19 = sshll.u32 %s774_s18, 4  ;;  %s33_s19 = int_to_ptr.vmem [resolvable:$true] %s32_s19 }
   0x4   :  { %s696_s20 = scalar_lea.vmem %s33_s19, 896  ;;  %p701_p1 = scmp.lt.s32.totalorder %s33_s19, %s33_s19 }
   0x5   :  { %p697_p0 = scmp.ne.s32.totalorder %s33_s19, %s696_s20  ;;  %p702_p2 = scmp.lt.s32.totalorder %s696_s20, %s696_s20 }
   0x7   :  { %p703_p3 = por %p702_p2, %p701_p1 }
   0x9   :  { %p704_p4 = pnand %p703_p3, %p697_p0 }
   0xb   :  { %707 = shalt.err (!%p704_p4)
}
   0xc   :  { %s775_s21 = smov 128   ;;  %s776_s22 = smov 8  }
   0xd   :  { %38 = dma.hbm_to_vmem [thread:$0]  %s973_s2, 896, %s33_s19, [#allocation5], %s775_s21, %s775_s21, %s776_s22  }
   0xe   :  { %s777_s25 = smov [#allocation2]  }
   0xf   :  { %s20_s26 = sshll.u32 %s777_s25, 4  ;;  %s21_s26 = int_to_ptr.vmem [resolvable:$true] %s20_s26 }
  0x10   :  { %s716_s27 = scalar_lea.vmem %s21_s26, 2048  ;;  %p721_p6 = scmp.lt.s32.totalorder %s21_s26, %s21_s26 }
  0x11   :  { %p717_p5 = scmp.ne.s32.totalorder %s21_s26, %s716_s27  ;;  %p722_p7 = scmp.lt.s32.totalorder %s716_s27, %s716_s27 }
  0x13   :  { %p723_p8 = por %p722_p7, %p721_p6 }
  0x15   :  { %p724_p9 = pnand %p723_p8, %p717_p5 }
  0x17   :  { %727 = shalt.err (!%p724_p9)
}
  0x18   :  { %s778_s28 = smov 64   ;;  %s779_s29 = smov 4  }
  0x19   :  { %26 = dma.hbm_to_vmem [thread:$0]  %s972_s1, 2048, %s21_s26, [#allocation3], %s778_s28, %s778_s28, %s779_s29  }
  0x1a   :  { %s780_s7 = smov [#allocation6]   ;;  %s781_s8 = smov [#allocation7]  }
  0x1b   :  { %s45_s2 = sshll.u32 %s780_s7, 4  ;;  %s55_s9 = sshll.u32 %s781_s8, 4  ;;  %s46_s2 = int_to_ptr.vmem [resolvable:$true] %s45_s2  ;;  %s56_s9 = int_to_ptr.vmem [resolvable:$true] %s55_s9 }
  0x1c   :  { %s736_s10 = scalar_lea.vmem %s46_s2, 16  ;;  %s740_s11 = scalar_lea.vmem %s46_s2, 32 }
  0x1d   :  { %p737_p10 = scmp.ne.s32.totalorder %s46_s2, %s736_s10  ;;  %p741_p11 = scmp.lt.s32.totalorder %s46_s2, %s46_s2 }
  0x1e   :  { %p742_p12 = scmp.lt.s32.totalorder %s740_s11, %s736_s10 }
  0x20   :  { %p743_p13 = por %p742_p12, %p741_p11 }
  0x22   :  { %p744_p0 = pnand %p743_p13, %p737_p10 }
  0x24   :  { %747 = shalt.err (!%p744_p0)
}
  0x25   :  { %48 = dma.hbm_to_vmem [thread:$0]  %s974_s3, 16, %s46_s2, [#allocation5]  }
  0x26   :  { %s756_s14 = scalar_lea.vmem %s56_s9, 16  ;;  %s760_s1 = scalar_lea.vmem %s56_s9, 32 }
  0x27   :  { %p757_p1 = scmp.ne.s32.totalorder %s56_s9, %s756_s14  ;;  %p761_p2 = scmp.lt.s32.totalorder %s56_s9, %s56_s9 }
  0x28   :  { %p762_p3 = scmp.lt.s32.totalorder %s760_s1, %s756_s14 }
  0x2a   :  { %p763_p4 = por %p762_p3, %p761_p2 }
  0x2c   :  { %p764_p5 = pnand %p763_p4, %p757_p1 }
  0x2e   :  { %767 = shalt.err (!%p764_p5)
}
  0x2f   :  { %58 = dma.hbm_to_vmem [thread:$0]  %s975_s4, 16, %s56_s9, [#allocation8]  }
  0x30   :  { %768 = dma.done.wait [#allocation3], 2048  }
  0x31   :  { %769 = vsyncadd [#allocation3], 4294965248 }
  0x32   :  { %770 = dma.done.wait [#allocation5], 912  }
  0x33   :  { %771 = vsyncadd [#allocation5], 4294966384 }
  0x34   :  { %772 = dma.done.wait [#allocation8], 16  }
  0x35   :  { %773 = vsyncadd [#allocation8], 4294967280  ;;  %v659_v0 = vld [vmem:[#allocation2 + $0x78] sm:$0xff]   ;;  %v661_v2 = vld [vmem:[#allocation2 + $0x70] sm:$0xff]   ;;  %vm327_vm0 = vcmask 1041408   ;;  %s783_s30 = smov 96  }
  0x36   :  { %v660_v1 = vld [vmem:[#allocation2 + $0x38] sm:$0xff]   ;;  %593 = vmatprep.subr.bf16.mxu0 %v659_v0  ;;  %633 = vmatprep.subr.bf16.mxu1 %v659_v0  ;;  %v662_v3 = vld [vmem:[#allocation2 + $0x30] sm:$0xff]   ;;  %v663_v4 = vld [vmem:[#allocation2 + $0x68] sm:$0xff]   ;;  %vm360_vm1 = vcmask 261120   ;;  %vm362_vm2 = vcmask 523264   ;;  %vm364_vm3 = vcmask 785408  }
  0x37   :  { %594 = vmatpush3.bf16.msra.mxu0 %v660_v1  ;;  %641 = vmatpush3.bf16.msra.mxu1 %v660_v1  ;;  %v664_v5 = vld [vmem:[#allocation2 + $0x28] sm:$0xff]   ;;  %v665_v6 = vld [vmem:[#allocation2 + $0x60] sm:$0xff]   ;;  %v667_v8 = vld [vmem:[#allocation2 + $0x58] sm:$0xff]  }
  0x38   :  { %595 = vmatprep.subr.bf16.mxu0 %v661_v2  ;;  %634 = vmatprep.subr.bf16.mxu1 %v661_v2  ;;  %v666_v7 = vld [vmem:[#allocation2 + $0x20] sm:$0xff]   ;;  %v668_v9 = vld [vmem:[#allocation2 + $0x18] sm:$0xff]   ;;  %v669_v10 = vld [vmem:[#allocation2 + $0x50] sm:$0xff]  }
  0x39   :  { %v677_v11 = vld [vmem:[%s971_s0 + $0x4] ss:$8 sps:$4 sm:$0xff]   ;;  %v670_v13 = vld [vmem:[#allocation2 + $0x10] sm:$0xff]   ;;  %v675_v19 = vld [vmem:[%s971_s0] ss:$8 sps:$4 sm:$0xff]  }
  0x3a   :  { %v680_v12 = vld [vmem:[%s971_s0 + $0x24] ss:$8 sps:$4 sm:$0xff]   ;;  %276 = vmatprep.mubr.bf16.mxu0 %v677_v11  ;;  %v78_v18 = vld [vmem:[%s971_s0 + $0x30] sm:$0x11]  ;;  %v678_v20 = vld [vmem:[%s971_s0 + $0x20] ss:$8 sps:$4 sm:$0xff]  }
  0x3b   :  { %596 = vmatpush3.bf16.msra.mxu0 %v662_v3  ;;  %642 = vmatpush3.bf16.msra.mxu1 %v662_v3  ;;  %v671_v14 = vld [vmem:[#allocation2 + $0x48] sm:$0xff]   ;;  %v673_v16 = vld [vmem:[#allocation2 + $0x40] sm:$0xff]   ;;  %v681_v21 = vld [vmem:[%s971_s0 + $0x14] ss:$8 sps:$4 sm:$0xff]   ;;  %v545_v22 = vcombine.high %v78_v18, %v78_v18  ;;  %v544_v24 = vcombine.low %v78_v18, %v78_v18  ;;  %v366_v18 = vlaneseq }
  0x3c   :  { %597 = vmatprep.subr.bf16.mxu0 %v663_v4  ;;  %635 = vmatprep.subr.bf16.mxu1 %v663_v4  ;;  %v672_v15 = vld [vmem:[#allocation2 + $0x8] sm:$0xff]   ;;  %v674_v17 = vld [vmem:[#allocation2] sm:$0xff]   ;;  %v683_v23 = vld [vmem:[%s971_s0 + $0x10] ss:$8 sps:$4 sm:$0xff]   ;;  %s782_s0 = smov 32  }
  0x3d   :  { %292 = vmatprep.mubr.bf16.mxu1 %v680_v12  ;;  %v851_v34 = vld [vmem:[#allocation4 + $0x8] sm:$0xff]  ;;  %v855_v38 = vld [vmem:[#allocation4] sm:$0xff]  ;;  %v857_v40 = vld [vmem:[#allocation4 + $0x10] sm:$0xff] }
  0x3e   :  { %v867_v49 = vld [vmem:[#allocation4 + $0x18] sm:$0xff]  ;;  %v873_v54 = vld [vmem:[#allocation4 + $0x20] sm:$0xff]  ;;  %v879_v58 = vld [vmem:[#allocation4 + $0x30] sm:$0x3] }
  0x3f   :  { %598 = vmatpush3.bf16.msra.mxu0 %v664_v5  ;;  %643 = vmatpush3.bf16.msra.mxu1 %v664_v5  ;;  %v883_v60 = vld [vmem:[#allocation4 + $0x28] sm:$0xff] }
  0x40   :  { %599 = vmatprep.subr.bf16.mxu0 %v665_v6  ;;  %636 = vmatprep.subr.bf16.mxu1 %v665_v6 }
  0x43   :  { %600 = vmatpush3.bf16.msra.mxu0 %v666_v7  ;;  %644 = vmatpush3.bf16.msra.mxu1 %v666_v7 }
  0x44   :  { %601 = vmatprep.subr.bf16.mxu0 %v667_v8  ;;  %637 = vmatprep.subr.bf16.mxu1 %v667_v8 }
  0x47   :  { %602 = vmatpush3.bf16.msra.mxu0 %v668_v9  ;;  %645 = vmatpush3.bf16.msra.mxu1 %v668_v9 }
  0x48   :  { %603 = vmatprep.subr.bf16.mxu0 %v669_v10  ;;  %638 = vmatprep.subr.bf16.mxu1 %v669_v10 }
  0x4b   :  { %604 = vmatpush3.bf16.msra.mxu0 %v670_v13  ;;  %646 = vmatpush3.bf16.msra.mxu1 %v670_v13 }
  0x4c   :  { %605 = vmatprep.subr.bf16.mxu0 %v671_v14  ;;  %639 = vmatprep.subr.bf16.mxu1 %v671_v14 }
  0x4f   :  { %606 = vmatpush3.bf16.msra.mxu0 %v672_v15  ;;  %647 = vmatpush3.bf16.msra.mxu1 %v672_v15 }
  0x50   :  { %607 = vmatprep.subr.bf16.mxu0 %v673_v16  ;;  %640 = vmatprep.subr.bf16.mxu1 %v673_v16 }
  0x53   :  { %608 = vmatpush3.bf16.msra.mxu0 %v674_v17  ;;  %648 = vmatpush3.bf16.msra.mxu1 %v674_v17 }
  0x56   :  { %277 = vmatmul.mubr.bf16.vlgmr.msra.gmra.mxu0 %v675_v19  ;;  %293 = vmatmul.mubr.bf16.vlgmr.msra.gmra.mxu1 %v678_v20  ;;  %v367_v19 = vshrl.u32 %v366_v18, 7 }
  0x57   :  { %284 = vmatprep.mubr.bf16.mxu0 %v681_v21  ;;  %300 = vmatprep.mubr.bf16.mxu1 %v545_v22 }
  0x5e   :  { %285 = vmatmul.mubr.bf16.gmra.mxu0 %v683_v23  ;;  %301 = vmatmul.mubr.bf16.gmra.mxu1 %v544_v24  ;;  %v905_v23 = vsub.s32 0, %v367_v19 }
 0x116   :  { %v609_v25 = vpop.f32.mrf.mxu0  ;;  %v621_v26 = vpop.f32.mrf.mxu1 }
 0x118   :  { %v610_v27 = vpop.f32.mrf.mxu0  ;;  %v622_v28 = vpop.f32.mrf.mxu1 }
 0x119   :  { %v853_v37 = vadd.f32 %v610_v27, %v609_v25  ;;  %v869_v51 = vadd.f32 %v622_v28, %v621_v26 }
 0x11a   :  { %v612_v29 = vpop.f32.mrf.mxu0  ;;  %v624_v30 = vpop.f32.mrf.mxu1 }
 0x11b   :  { %v315_v46 = vmul.f32 %v853_v37, %v855_v38  ;;  %v319_v61 = vmul.f32 %v869_v51, %v873_v54 }
 0x11c   :  { %v613_v31 = vpop.f32.mrf.mxu0  ;;  %v625_v32 = vpop.f32.mrf.mxu1 }
 0x11d   :  { %v849_v33 = vadd.f32 %v613_v31, %v612_v29  ;;  %v877_v56 = vadd.f32 %v625_v32, %v624_v30 }
 0x11e   :  { %v615_v35 = vpop.f32.mrf.mxu0  ;;  %v627_v36 = vpop.f32.mrf.mxu1 }
 0x11f   :  { %v316_v42 = vmul.f32 %v849_v33, %v851_v34  ;;  %v320_v0 = vmul.f32 %v877_v56, %v883_v60 }
 0x120   :  { %v616_v39 = vpop.f32.mrf.mxu0  ;;  %v628_v41 = vpop.f32.mrf.mxu1 }
 0x121   :  { %v861_v43 = vadd.f32 %v616_v39, %v615_v35  ;;  %v322_v52 = vadd.f32 %v316_v42, %v315_v46  ;;  %v875_v55 = vadd.f32 %v628_v41, %v627_v36 }
 0x122   :  { %v618_v44 = vpop.f32.mrf.mxu0  ;;  %v630_v45 = vpop.f32.mrf.mxu1 }
 0x123   :  { %v317_v47 = vmul.f32 %v861_v43, %v857_v40  ;;  %v321_v63 = vmul.f32 %v875_v55, %v879_v58 }
 0x124   :  { %v619_v48 = vpop.f32.mrf.mxu0  ;;  %v631_v50 = vpop.f32.mrf.mxu1 }
 0x125   :  { %v871_v53 = vadd.f32 %v619_v48, %v618_v44  ;;  %v323_v57 = vadd.f32 %v322_v52, %v317_v47  ;;  %v328_v3 = vsel %vm327_vm0, %v321_v63, 0.0 }
 0x127   :  { %v318_v59 = vmul.f32 %v871_v53, %v867_v49 }
 0x129   :  { %v324_v62 = vadd.f32 %v323_v57, %v318_v59 }
 0x12b   :  { %v325_v1 = vadd.f32 %v324_v62, %v319_v61 }
 0x12d   :  { %v326_v2 = vadd.f32 %v325_v1, %v320_v0 }
 0x12f   :  { %v329_v4 = vadd.f32 %v328_v3, %v326_v2 }
 0x131   :  { %v330_v5 = vrot.slane %v329_v4, 4 }
 0x133   :  { %v331_v6 = vadd.f32 %v330_v5, %v329_v4 }
 0x135   :  { %v332_v7 = vrot.slane %v331_v6, 2 }
 0x137   :  { %v333_v8 = vadd.f32 %v332_v7, %v331_v6 }
 0x139   :  { %v334_v9 = vrot.slane %v333_v8, 1 }
 0x13b   :  { %v335_v10 = vadd.f32 %v334_v9, %v333_v8 }
 0x13d   :  { %345 = vrot.lane.b32.xlu1 %v335_v10, %s782_s0  ;;  %337 = vrot.lane.b32.xlu0 %v335_v10, %s783_s30 }
 0x141   :  { %341 = vrot.lane.b32.xlu0 %v335_v10, %s778_s28 }
 0x1af   :  { %v338_v11 = vpop.permute.xlu0 %337  ;;  %v346_v15 = vpop.permute.xlu1 %345 }
 0x1b0   :  { %v340_v12 = vadd.f32 %v338_v11, %v335_v10 }
 0x1b3   :  { %v342_v13 = vpop.permute.xlu0 %341 }
 0x1b4   :  { %v344_v14 = vadd.f32 %v342_v13, %v340_v12 }
 0x1b6   :  { %v348_v16 = vadd.f32 %v346_v15, %v344_v14 }
 0x1b8   :  { %v895_v17 = vmul.f32 0.0078125, %v348_v16 }
 0x1ba   :  { %354 = vrot.lane.b32.xlu0 %v895_v17, %s778_s28  ;;  %351 = vrot.lane.b32.xlu1 %v895_v17, %s782_s0 }
 0x1be   :  { %357 = vrot.lane.b32.xlu1 %v895_v17, %s783_s30 }
 0x22c   :  { %v352_v20 = vpop.permute.xlu1 %351  ;;  %v355_v21 = vpop.permute.xlu0 %354 }
 0x22d   :  { %v361_v22 = vsel %vm360_vm1, %v895_v17, %v352_v20 }
 0x22e   :  { %v363_v24 = vsel %vm362_vm2, %v361_v22, %v355_v21  ;;  %v418_v21 = vld [vmem:[#allocation6] sm:$0x1] }
 0x230   :  { %v358_v25 = vpop.permute.xlu1 %357 }
 0x231   :  { %v365_v26 = vsel %vm364_vm3, %v363_v24, %v358_v25  ;;  %v422_v25 = vld [vmem:[#allocation7] sm:$0x1] }
 0x232   :  { %v369_v27 = vrot.slane %v365_v26, %v905_v23 }
 0x234   :  { %v370_v28 = vsub.f32 %v853_v37, %v369_v27  ;;  %v371_v29 = vsub.f32 %v849_v33, %v369_v27  ;;  %v372_v30 = vsub.f32 %v861_v43, %v369_v27  ;;  %v373_v31 = vsub.f32 %v871_v53, %v369_v27 }
 0x235   :  { %v374_v32 = vsub.f32 %v869_v51, %v369_v27  ;;  %v376_v41 = vsub.f32 %v875_v55, %v369_v27  ;;  %v375_v42 = vsub.f32 %v877_v56, %v369_v27 }
 0x236   :  { %v377_v35 = vmul.f32 %v370_v28, %v855_v38  ;;  %v378_v36 = vmul.f32 %v371_v29, %v851_v34  ;;  %v379_v39 = vmul.f32 %v372_v30, %v857_v40  ;;  %v380_v44 = vmul.f32 %v373_v31, %v867_v49 }
 0x237   :  { %v381_v47 = vmul.f32 %v374_v32, %v873_v54  ;;  %v383_v52 = vmul.f32 %v376_v41, %v879_v58  ;;  %v382_v57 = vmul.f32 %v375_v42, %v883_v60 }
 0x238   :  { %v384_v45 = vmul.f32 %v377_v35, %v377_v35  ;;  %v385_v46 = vmul.f32 %v378_v36, %v378_v36  ;;  %v386_v48 = vmul.f32 %v379_v39, %v379_v39  ;;  %v387_v59 = vmul.f32 %v380_v44, %v380_v44 }
 0x239   :  { %v388_v62 = vmul.f32 %v381_v47, %v381_v47  ;;  %v390_v0 = vmul.f32 %v383_v52, %v383_v52  ;;  %v389_v1 = vmul.f32 %v382_v57, %v382_v57 }
 0x23a   :  { %v391_v50 = vadd.f32 %v385_v46, %v384_v45 }
 0x23b   :  { %v396_v4 = vsel %vm327_vm0, %v390_v0, 0.0 }
 0x23c   :  { %v392_v61 = vadd.f32 %v391_v50, %v386_v48 }
 0x23e   :  { %v393_v63 = vadd.f32 %v392_v61, %v387_v59 }
 0x240   :  { %v394_v2 = vadd.f32 %v393_v63, %v388_v62 }
 0x242   :  { %v395_v3 = vadd.f32 %v394_v2, %v389_v1 }
 0x244   :  { %v397_v5 = vadd.f32 %v396_v4, %v395_v3 }
 0x246   :  { %v398_v6 = vrot.slane %v397_v5, 4 }
 0x248   :  { %v399_v7 = vadd.f32 %v398_v6, %v397_v5 }
 0x24a   :  { %v400_v8 = vrot.slane %v399_v7, 2 }
 0x24c   :  { %v401_v9 = vadd.f32 %v400_v8, %v399_v7 }
 0x24e   :  { %v402_v10 = vrot.slane %v401_v9, 1 }
 0x250   :  { %v403_v11 = vadd.f32 %v402_v10, %v401_v9 }
 0x252   :  { %409 = vrot.lane.b32.xlu1 %v403_v11, %s778_s28  ;;  %405 = vrot.lane.b32.xlu0 %v403_v11, %s783_s30 }
 0x256   :  { %413 = vrot.lane.b32.xlu0 %v403_v11, %s782_s0 }
 0x2c4   :  { %v406_v12 = vpop.permute.xlu0 %405  ;;  %v410_v14 = vpop.permute.xlu1 %409 }
 0x2c5   :  { %v408_v13 = vadd.f32 %v406_v12, %v403_v11 }
 0x2c7   :  { %v412_v15 = vadd.f32 %v410_v14, %v408_v13 }
 0x2c8   :  { %v414_v16 = vpop.permute.xlu0 %413 }
 0x2c9   :  { %v416_v18 = vadd.f32 %v414_v16, %v412_v15 }
 0x2cb   :  { %v417_v19 = vmul.f32 0.0078125, %v416_v18 }
 0x2cd   :  { %v419_v20 = vadd.f32 1e-05, %v417_v19 }
 0x2cf   :  { %686 = vrsqrt.f32 %v419_v20 }
 0x2dc   :  { %v687_v22 = vpop.eup %686 }
 0x2dd   :  { %v421_v24 = vmul.f32 %v687_v22, %v418_v21 }
 0x2df   :  { %v429_v26 = vrot.slane %v421_v24, %v905_v23  ;;  %v423_v27 = vmul.f32 %v421_v24, %v895_v17 }
 0x2e1   :  { %433 = vrot.lane.b32.xlu0 %v429_v26, %s778_s28  ;;  %430 = vrot.lane.b32.xlu1 %v429_v26, %s782_s0  ;;  %v424_v28 = vsub.f32 %v422_v25, %v423_v27 }
 0x2e3   :  { %v457_v29 = vrot.slane %v424_v28, %v905_v23 }
 0x2e5   :  { %436 = vrot.lane.b32.xlu1 %v429_v26, %s783_s30  ;;  %458 = vrot.lane.b32.xlu0 %v457_v29, %s782_s0 }
 0x2e9   :  { %461 = vrot.lane.b32.xlu1 %v457_v29, %s778_s28  ;;  %464 = vrot.lane.b32.xlu0 %v457_v29, %s783_s30 }
 0x353   :  { %v434_v30 = vpop.permute.xlu0 %433  ;;  %v431_v31 = vpop.permute.xlu1 %430 }
 0x354   :  { %v439_v32 = vsel %vm360_vm1, %v421_v24, %v431_v31 }
 0x355   :  { %v440_v17 = vsel %vm362_vm2, %v439_v32, %v434_v30 }
 0x357   :  { %v437_v35 = vpop.permute.xlu1 %436  ;;  %v459_v36 = vpop.permute.xlu0 %458 }
 0x358   :  { %v441_v39 = vsel %vm364_vm3, %v440_v17, %v437_v35  ;;  %v467_v42 = vsel %vm360_vm1, %v424_v28, %v459_v36 }
 0x359   :  { %v445_v41 = vrot.slane %v441_v39, %v905_v23 }
 0x35b   :  { %v462_v44 = vpop.permute.xlu1 %461  ;;  %v465_v45 = vpop.permute.xlu0 %464  ;;  %v446_v47 = vmul.f32 %v853_v37, %v445_v41  ;;  %v447_v50 = vmul.f32 %v849_v33, %v445_v41  ;;  %v448_v52 = vmul.f32 %v861_v43, %v445_v41  ;;  %v449_v57 = vmul.f32 %v871_v53, %v445_v41 }
 0x35c   :  { %v468_v46 = vsel %vm362_vm2, %v467_v42, %v462_v44  ;;  %v450_v61 = vmul.f32 %v869_v51, %v445_v41  ;;  %v451_v62 = vmul.f32 %v877_v56, %v445_v41  ;;  %v452_v63 = vmul.f32 %v875_v55, %v445_v41 }
 0x35d   :  { %v469_v48 = vsel %vm364_vm3, %v468_v46, %v465_v45 }
 0x35e   :  { %v473_v59 = vrot.slane %v469_v48, %v905_v23 }
 0x360   :  { %v474_v0 = vadd.f32 %v473_v59, %v446_v47  ;;  %v475_v1 = vadd.f32 %v473_v59, %v447_v50  ;;  %v476_v2 = vadd.f32 %v473_v59, %v448_v52  ;;  %v477_v37 = vadd.f32 %v473_v59, %v449_v57 }
 0x361   :  { %v478_v3 = vadd.f32 %v473_v59, %v450_v61  ;;  %v479_v4 = vadd.f32 %v473_v59, %v451_v62  ;;  %v480_v5 = vadd.f32 %v473_v59, %v452_v63 }
 0x362   :  { %v481_v33 = vmax.f32 %v474_v0, 0.0  ;;  %v482_v6 = vmax.f32 %v475_v1, 0.0  ;;  %v483_v43 = vmax.f32 %v476_v2, 0.0  ;;  %v484_v7 = vmax.f32 %v477_v37, 0.0 }
 0x363   :  { %v485_v53 = vmax.f32 %v478_v3, 0.0  ;;  %v486_v8 = vmax.f32 %v479_v4, 0.0  ;;  %v487_v23 = vmax.f32 %v480_v5, 0.0 }
 0x364   :  { %v488_v51 = vmul.f32 %v481_v33, %v855_v38  ;;  %v489_v56 = vmul.f32 %v482_v6, %v851_v34  ;;  %v490_v55 = vmul.f32 %v483_v43, %v857_v40  ;;  %v491_v9 = vmul.f32 %v484_v7, %v867_v49 }
 0x365   :  { %v492_v10 = vmul.f32 %v485_v53, %v873_v54  ;;  %v493_v11 = vmul.f32 %v486_v8, %v883_v60  ;;  %v494_v12 = vmul.f32 %v487_v23, %v879_v58 }
 0x366   :  { %v579_v13 = vpack.c.bf16 %v489_v56, %v488_v51  ;;  %v584_v14 = vpack.c.bf16 %v491_v9, %v490_v55 }
 0x367   :  { %v575_v15 = vpack.c.bf16 %v494_v12, %v494_v12  ;;  %v589_v16 = vpack.c.bf16 %v493_v11, %v492_v10 }
 0x368   :  { %580 = vst [vmem:[%s976_s5] sm:$0xff] %v579_v13   ;;  %591 = vst [vmem:[%s976_s5 + $0x8] sm:$0xff] %v584_v14  }
 0x369   :  { %592 = vst [vmem:[%s976_s5 + $0x10] sm:$0xff] %v589_v16   ;;  %530 = vst [vmem:[%s976_s5 + $0x18] sm:$0x1] %v575_v15 }
 0x36a   :  { %535 = vsyncpa [#allocation3], 1 }
 0x36b   :  { %536 = vsyncpa [#allocation5], 1 }
 0x36c   :  { %537 = vsyncpa [#allocation8], 1 }

// kernel: generator_forward.7
= control target key start
LH: loop header
LB: loop body
LE: loop exit
PB: predicated region body
PF: predicated region fallthrough
CT: control target
= control target key end

     0   :  { %10 = vsyncpa [#allocation3], 0  ;;  %s1642_s0 = inlined_call_operand.vmem [shape: bf16[162,128], index: 0, kind: input, shape index: {}]   ;;  %s1643_s1 = inlined_call_operand.vmem [shape: bf16[128,64], index: 1, kind: input, shape index: {}]   ;;  %s1644_s2 = inlined_call_operand.vmem [shape: f32[162,64], index: 2, kind: input, shape index: {}]   ;;  %s1645_s3 = inlined_call_operand.hbm [shape: f32[1,16], index: 3, kind: input, shape index: {}]   ;;  %s1646_s4 = inlined_call_operand.hbm [shape: f32[1,16], index: 4, kind: input, shape index: {}]   ;;  %s1647_s5 = inlined_call_operand.vmem [shape: bf16[162,64], index: 5, kind: output, shape index: {}]  }
   0x1   :  { %11 = vsyncpa [#allocation5], 0  ;;  %s1041_s18 = smov [#allocation2]   ;;  %s1042_s20 = smov [#allocation4]  }
   0x2   :  { %s24_s19 = sshll.u32 %s1041_s18, 4  ;;  %s34_s21 = sshll.u32 %s1042_s20, 4  ;;  %s25_s19 = int_to_ptr.vmem [resolvable:$true] %s24_s19  ;;  %s35_s21 = int_to_ptr.vmem [resolvable:$true] %s34_s21 }
   0x3   :  { %s1005_s22 = scalar_lea.vmem %s25_s19, 16  ;;  %s1009_s23 = scalar_lea.vmem %s25_s19, 32 }
   0x4   :  { %p1006_p0 = scmp.ne.s32.totalorder %s25_s19, %s1005_s22  ;;  %p1010_p1 = scmp.lt.s32.totalorder %s25_s19, %s25_s19 }
   0x5   :  { %p1011_p2 = scmp.lt.s32.totalorder %s1009_s23, %s1005_s22 }
   0x7   :  { %p1012_p3 = por %p1011_p2, %p1010_p1 }
   0x9   :  { %p1013_p4 = pnand %p1012_p3, %p1006_p0 }
   0xb   :  { %1016 = shalt.err (!%p1013_p4)
}
   0xc   :  { %27 = dma.hbm_to_vmem [thread:$0]  %s1645_s3, 16, %s25_s19, [#allocation3]  }
   0xd   :  { %s1025_s26 = scalar_lea.vmem %s35_s21, 16  ;;  %s1029_s27 = scalar_lea.vmem %s35_s21, 32 }
   0xe   :  { %p1026_p5 = scmp.ne.s32.totalorder %s35_s21, %s1025_s26  ;;  %p1030_p6 = scmp.lt.s32.totalorder %s35_s21, %s35_s21 }
   0xf   :  { %p1031_p7 = scmp.lt.s32.totalorder %s1029_s27, %s1025_s26 }
  0x11   :  { %p1032_p8 = por %p1031_p7, %p1030_p6 }
  0x13   :  { %p1033_p9 = pnand %p1032_p8, %p1026_p5 }
  0x15   :  { %1036 = shalt.err (!%p1033_p9)
}
  0x16   :  { %37 = dma.hbm_to_vmem [thread:$0]  %s1646_s4, 16, %s35_s21, [#allocation5]  }
  0x17   :  { %1037 = dma.done.wait [#allocation3], 16  }
  0x18   :  { %1038 = vsyncadd [#allocation3], 4294967280 }
  0x19   :  { %1039 = dma.done.wait [#allocation5], 16  }
  0x1a   :  { %1040 = vsyncadd [#allocation5], 4294967280  ;;  %v1043_v0 = vmov 0.0   ;;  %vm1044_vm0 = vmmov 0   ;;  %v976_v1 = vld [vmem:[%s1643_s1 + $0x38] sm:$0xff]   ;;  %v977_v2 = vld [vmem:[%s1643_s1 + $0x30] sm:$0xff]  }
  0x1b   :  { %890 = vmatprep.subr.bf16.mxu0 %v1043_v0  ;;  %950 = vmatprep.subr.bf16.mxu1 %v1043_v0  ;;  %v978_v3 = vld [vmem:[%s1643_s1 + $0x28] sm:$0xff]   ;;  %v979_v4 = vld [vmem:[%s1643_s1 + $0x20] sm:$0xff]   ;;  %v980_v5 = vld [vmem:[%s1643_s1 + $0x18] sm:$0xff]   ;;  %vm356_vm1 = vcmask 523264   ;;  %vm396_vm2 = vcmask 517120   ;;  %s1046_s24 = smov 112  }
  0x1c   :  { %906 = vmatprep.mubr.msk.bf16.mxu0 %vm1044_vm0, %v1043_v0  ;;  %930 = vmatprep.mubr.msk.bf16.mxu1 %vm1044_vm0, %v1043_v0  ;;  %v981_v6 = vld [vmem:[%s1643_s1 + $0x10] sm:$0xff]   ;;  %v982_v7 = vld [vmem:[%s1643_s1 + $0x8] sm:$0xff]   ;;  %v983_v8 = vld [vmem:[%s1643_s1] sm:$0xff]   ;;  %s1047_s25 = smov 96   ;;  %s1048_s26 = smov 32   ;;  %vm429_vm3 = vcmask 130048  }
  0x1d   :  { %891 = vmatpush3.bf16.msra.mxu0 %v976_v1  ;;  %958 = vmatpush3.bf16.msra.mxu1 %v976_v1  ;;  %v984_v9 = vld [vmem:[%s1642_s0] sm:$0xff]   ;;  %v988_v10 = vld [vmem:[%s1642_s0 + $0x30] sm:$0xff]   ;;  %v985_v11 = vld [vmem:[%s1642_s0 + $0x8] sm:$0xff]   ;;  %s1049_s27 = smov 16   ;;  %s1050_s28 = smov 48   ;;  %vm431_vm4 = vcmask 261120  }
  0x1e   :  { %892 = vmatprep.subr.bf16.mxu0 %v1043_v0  ;;  %951 = vmatprep.subr.bf16.mxu1 %v1043_v0  ;;  %v990_v12 = vld [vmem:[%s1642_s0 + $0x38] sm:$0xff]   ;;  %v986_v13 = vld [vmem:[%s1642_s0 + $0x10] sm:$0xff]   ;;  %v992_v14 = vld [vmem:[%s1642_s0 + $0x40] sm:$0xff]   ;;  %vm433_vm5 = vcmask 392192   ;;  %vm781_vm6 = vcmask 519168   ;;  %vm802_vm7 = vcmask 516096  }
  0x1f   :  { %v987_v15 = vld [vmem:[%s1642_s0 + $0x18] sm:$0xff]   ;;  %v993_v16 = vld [vmem:[%s1642_s0 + $0x48] sm:$0xff]   ;;  %v989_v17 = vld [vmem:[%s1642_s0 + $0x20] sm:$0xff]  }
  0x20   :  { %v994_v18 = vld [vmem:[%s1642_s0 + $0x50] ss:$0 sps:$4 sm:$0x11]   ;;  %v991_v19 = vld [vmem:[%s1642_s0 + $0x28] sm:$0xff]   ;;  %v1210_v41 = vld [vmem:[%s1644_s2] sm:$0xff] }
  0x21   :  { %893 = vmatpush3.bf16.msra.mxu0 %v977_v2  ;;  %959 = vmatpush3.bf16.msra.mxu1 %v977_v2  ;;  %v1205_v38 = vld [vmem:[%s1644_s2 + $0x8] sm:$0xff]  ;;  %v1215_v42 = vld [vmem:[%s1644_s2 + $0x10] sm:$0xff]  ;;  %v1226_v46 = vld [vmem:[%s1644_s2 + $0x18] sm:$0xff] }
  0x22   :  { %894 = vmatprep.subr.bf16.mxu0 %v1043_v0  ;;  %952 = vmatprep.subr.bf16.mxu1 %v1043_v0  ;;  %v1235_v51 = vld [vmem:[%s1644_s2 + $0x20] sm:$0xff]  ;;  %v1247_v56 = vld [vmem:[%s1644_s2 + $0x28] sm:$0xff]  ;;  %v1256_v63 = vld [vmem:[%s1644_s2 + $0x30] sm:$0xff] }
  0x23   :  { %1650 = vst [vmem:[#allocation8_spill] sm:$0xff] %v1235_v51 }
  0x25   :  { %895 = vmatpush3.bf16.msra.mxu0 %v978_v3  ;;  %960 = vmatpush3.bf16.msra.mxu1 %v978_v3 }
  0x26   :  { %896 = vmatprep.subr.bf16.mxu0 %v1043_v0  ;;  %953 = vmatprep.subr.bf16.mxu1 %v1043_v0 }
  0x29   :  { %897 = vmatpush3.bf16.msra.mxu0 %v979_v4  ;;  %961 = vmatpush3.bf16.msra.mxu1 %v979_v4 }
  0x2a   :  { %898 = vmatprep.subr.bf16.mxu0 %v1043_v0  ;;  %954 = vmatprep.subr.bf16.mxu1 %v1043_v0 }
  0x2d   :  { %899 = vmatpush3.bf16.msra.mxu0 %v980_v5  ;;  %962 = vmatpush3.bf16.msra.mxu1 %v980_v5  ;;  %v1268_v5 = vld [vmem:[%s1644_s2 + $0x38] sm:$0xff] }
  0x2e   :  { %900 = vmatprep.subr.bf16.mxu0 %v1043_v0  ;;  %955 = vmatprep.subr.bf16.mxu1 %v1043_v0 }
  0x31   :  { %901 = vmatpush3.bf16.msra.mxu0 %v981_v6  ;;  %963 = vmatpush3.bf16.msra.mxu1 %v981_v6 }
  0x32   :  { %902 = vmatprep.subr.bf16.mxu0 %v1043_v0  ;;  %956 = vmatprep.subr.bf16.mxu1 %v1043_v0 }
  0x35   :  { %903 = vmatpush3.bf16.msra.mxu0 %v982_v7  ;;  %964 = vmatpush3.bf16.msra.mxu1 %v982_v7 }
  0x36   :  { %904 = vmatprep.subr.bf16.mxu0 %v1043_v0  ;;  %957 = vmatprep.subr.bf16.mxu1 %v1043_v0 }
  0x39   :  { %905 = vmatpush3.bf16.msra.mxu0 %v983_v8  ;;  %965 = vmatpush3.bf16.msra.mxu1 %v983_v8 }
  0x3c   :  { %907 = vmatmul.mubr.bf16.vlgmr.msra.gmra.mxu0 %v984_v9  ;;  %931 = vmatmul.mubr.bf16.vlgmr.msra.gmra.mxu1 %v988_v10 }
  0x3d   :  { %910 = vmatprep.mubr.msk.bf16.mxu0 %vm1044_vm0, %v1043_v0  ;;  %934 = vmatprep.mubr.msk.bf16.mxu1 %vm1044_vm0, %v1043_v0 }
  0x44   :  { %911 = vmatmul.mubr.bf16.gmra.mxu0 %v985_v11  ;;  %935 = vmatmul.mubr.bf16.gmra.mxu1 %v990_v12  ;;  %v1278_v12 = vld [vmem:[%s1644_s2 + $0x40] sm:$0xff] }
  0x45   :  { %914 = vmatprep.mubr.msk.bf16.mxu0 %vm1044_vm0, %v1043_v0  ;;  %938 = vmatprep.mubr.msk.bf16.mxu1 %vm1044_vm0, %v1043_v0 }
  0x4c   :  { %915 = vmatmul.mubr.bf16.gmra.mxu0 %v986_v13  ;;  %939 = vmatmul.mubr.bf16.gmra.mxu1 %v992_v14 }
  0x4d   :  { %918 = vmatprep.mubr.msk.bf16.mxu0 %vm1044_vm0, %v1043_v0  ;;  %942 = vmatprep.mubr.msk.bf16.mxu1 %vm1044_vm0, %v1043_v0 }
  0x54   :  { %919 = vmatmul.mubr.bf16.gmra.mxu0 %v987_v15  ;;  %943 = vmatmul.mubr.bf16.gmra.mxu1 %v993_v16 }
  0x55   :  { %922 = vmatprep.mubr.msk.bf16.mxu0 %vm1044_vm0, %v1043_v0  ;;  %946 = vmatprep.mubr.msk.bf16.mxu1 %vm1044_vm0, %v1043_v0 }
  0x5c   :  { %923 = vmatmul.mubr.bf16.gmra.mxu0 %v989_v17  ;;  %947 = vmatmul.mubr.bf16.gmra.mxu1 %v994_v18  ;;  %v1288_v18 = vld [vmem:[%s1644_s2 + $0x48] sm:$0xff] }
  0x5d   :  { %926 = vmatprep.mubr.msk.bf16.mxu0 %vm1044_vm0, %v1043_v0 }
  0x64   :  { %927 = vmatmul.mubr.bf16.gmra.mxu0 %v991_v19 }
  0xfc   :  { %v1182_v20 = vpop.f32.mrf.mxu0  ;;  %v1184_v21 = vpop.f32.mrf.mxu1 }
  0xfd   :  { %v335_v49 = vmul.f32 %v1210_v41, %v1182_v20 }
  0xfe   :  { %v908_v22 = vpop.f32.mrf.mxu0  ;;  %v932_v23 = vpop.f32.mrf.mxu1 }
  0xff   :  { %v357_v59 = vsel %vm356_vm1, %v335_v49, 0.0 }
 0x100   :  { %v1186_v24 = vpop.f32.mrf.mxu0  ;;  %v1188_v25 = vpop.f32.mrf.mxu1 }
 0x101   :  { %v336_v45 = vmul.f32 %v1205_v38, %v1186_v24 }
 0x102   :  { %v909_v26 = vpop.f32.mrf.mxu0  ;;  %v933_v27 = vpop.f32.mrf.mxu1 }
 0x103   :  { %v358_v54 = vsel %vm356_vm1, %v336_v45, 0.0 }
 0x104   :  { %v1190_v28 = vpop.f32.mrf.mxu0  ;;  %v1192_v29 = vpop.f32.mrf.mxu1  ;;  %v359_v62 = vadd.f32 %v358_v54, %v357_v59  ;;  %v1317_v59 = vld [vmem:[%s1644_s2 + $0x58] sm:$0xff] }
 0x105   :  { %v337_v50 = vmul.f32 %v1215_v42, %v1190_v28 }
 0x106   :  { %v912_v30 = vpop.f32.mrf.mxu0  ;;  %v936_v31 = vpop.f32.mrf.mxu1 }
 0x107   :  { %v360_v60 = vsel %vm356_vm1, %v337_v50, 0.0 }
 0x108   :  { %v1194_v32 = vpop.f32.mrf.mxu0  ;;  %v1196_v33 = vpop.f32.mrf.mxu1  ;;  %v361_v4 = vadd.f32 %v360_v60, %v359_v62 }
 0x109   :  { %v338_v55 = vmul.f32 %v1226_v46, %v1194_v32 }
 0x10a   :  { %v913_v34 = vpop.f32.mrf.mxu0  ;;  %v937_v35 = vpop.f32.mrf.mxu1 }
 0x10b   :  { %v362_v2 = vsel %vm356_vm1, %v338_v55, 0.0  ;;  %v1312_v55 = vld [vmem:[%s1644_s2 + $0x60] sm:$0xff] }
 0x10c   :  { %v1198_v36 = vpop.f32.mrf.mxu0  ;;  %v1200_v37 = vpop.f32.mrf.mxu1  ;;  %v363_v10 = vadd.f32 %v362_v2, %v361_v4 }
 0x10d   :  { %v339_v61 = vmul.f32 %v1235_v51, %v1198_v36 }
 0x10e   :  { %v916_v39 = vpop.f32.mrf.mxu0  ;;  %v940_v40 = vpop.f32.mrf.mxu1 }
 0x10f   :  { %v364_v8 = vsel %vm356_vm1, %v339_v61, 0.0  ;;  %v1301_v40 = vld [vmem:[%s1644_s2 + $0x50] sm:$0xff]  ;;  %v1323_v61 = vld [vmem:[%s1644_s2 + $0x68] sm:$0xff] }
 0x110   :  { %v1217_v43 = vpop.f32.mrf.mxu0  ;;  %v1219_v44 = vpop.f32.mrf.mxu1  ;;  %v365_v16 = vadd.f32 %v364_v8, %v363_v10 }
 0x111   :  { %v340_v3 = vmul.f32 %v1247_v56, %v1217_v43 }
 0x112   :  { %v917_v47 = vpop.f32.mrf.mxu0  ;;  %v941_v48 = vpop.f32.mrf.mxu1 }
 0x113   :  { %v366_v14 = vsel %vm356_vm1, %v340_v3, 0.0  ;;  %v347_v3 = vmul.f32 %v1312_v55, %v1184_v21 }
 0x114   :  { %v1237_v52 = vpop.f32.mrf.mxu0  ;;  %v1239_v53 = vpop.f32.mrf.mxu1  ;;  %v367_v26 = vadd.f32 %v366_v14, %v365_v16  ;;  %v1342_v14 = vld [vmem:[%s1644_s2 + $0x78] sm:$0xff] }
 0x115   :  { %v341_v9 = vmul.f32 %v1256_v63, %v1237_v52  ;;  %v380_v16 = vsel %vm356_vm1, %v347_v3, 0.0 }
 0x116   :  { %v920_v57 = vpop.f32.mrf.mxu0  ;;  %v944_v58 = vpop.f32.mrf.mxu1 }
 0x117   :  { %v368_v22 = vsel %vm356_vm1, %v341_v9, 0.0  ;;  %v348_v9 = vmul.f32 %v1323_v61, %v1188_v25 }
 0x118   :  { %v1258_v0 = vpop.f32.mrf.mxu0  ;;  %v1260_v1 = vpop.f32.mrf.mxu1  ;;  %v369_v35 = vadd.f32 %v368_v22, %v367_v26  ;;  %v350_v26 = vmul.f32 %v1342_v14, %v1196_v33 }
 0x119   :  { %v342_v15 = vmul.f32 %v1268_v5, %v1258_v0 }
 0x11a   :  { %v921_v6 = vpop.f32.mrf.mxu0  ;;  %v945_v7 = vpop.f32.mrf.mxu1 }
 0x11b   :  { %v370_v31 = vsel %vm356_vm1, %v342_v15, 0.0  ;;  %v1334_v6 = vld [vmem:[%s1644_s2 + $0x70] sm:$0xff] }
 0x11c   :  { %v1273_v11 = vpop.f32.mrf.mxu0  ;;  %v1280_v13 = vpop.f32.mrf.mxu1  ;;  %v371_v48 = vadd.f32 %v370_v31, %v369_v35  ;;  %v1358_v31 = vld [vmem:[%s1644_s2 + $0x88] sm:$0xff] }
 0x11d   :  { %v343_v23 = vmul.f32 %v1278_v12, %v1273_v11 }
 0x11e   :  { %v924_v17 = vpop.f32.mrf.mxu0  ;;  %v948_v19 = vpop.f32.mrf.mxu1 }
 0x11f   :  { %v372_v47 = vsel %vm356_vm1, %v343_v23, 0.0  ;;  %v349_v17 = vmul.f32 %v1334_v6, %v1192_v29  ;;  %v1350_v19 = vld [vmem:[%s1644_s2 + $0x80] sm:$0xff]  ;;  %v382_v23 = vsel %vm356_vm1, %v348_v9, 0.0 }
 0x120   :  { %v1293_v27 = vpop.f32.mrf.mxu0  ;;  %v311_v30 = vpop.f32.mrf.mxu1  ;;  %v373_v57 = vadd.f32 %v372_v47, %v371_v48  ;;  %1651 = vst [vmem:[#allocation9_spill] sm:$0xff] %v1350_v19  ;;  %v351_v35 = vmul.f32 %v1350_v19, %v1200_v37  ;;  %v386_v47 = vsel %vm356_vm1, %v350_v26, 0.0  ;;  %v352_v48 = vmul.f32 %v1358_v31, %v1219_v44 }
 0x121   :  { %v344_v34 = vmul.f32 %v1288_v18, %v1293_v27 }
 0x122   :  { %v925_v39 = vpop.f32.mrf.mxu0  ;;  %v949_v45 = vpop.f32.mrf.mxu1  ;;  %v390_v3 = vsel %vm356_vm1, %v352_v48, 0.0 }
 0x123   :  { %v374_v50 = vsel %vm356_vm1, %v344_v34, 0.0  ;;  %v384_v34 = vsel %vm356_vm1, %v349_v17, 0.0  ;;  %v1366_v45 = vld [vmem:[%s1644_s2 + $0x90] sm:$0xff] }
 0x124   :  { %v1304_v49 = vpop.f32.mrf.mxu0  ;;  %v375_v62 = vadd.f32 %v374_v50, %v373_v57  ;;  %v1379_v57 = vld [vmem:[%s1644_s2 + $0xa0] sm:$0x3] }
 0x125   :  { %v345_v54 = vmul.f32 %v1301_v40, %v1304_v49 }
 0x126   :  { %v928_v58 = vpop.f32.mrf.mxu0 }
 0x127   :  { %v376_v60 = vsel %vm356_vm1, %v345_v54, 0.0  ;;  %v1374_v54 = vld [vmem:[%s1644_s2 + $0x98] sm:$0xff]  ;;  %v388_v58 = vsel %vm356_vm1, %v351_v35, 0.0  ;;  %s1045_s2 = smov 80  }
 0x128   :  { %v1325_v2 = vpop.f32.mrf.mxu0  ;;  %v377_v7 = vadd.f32 %v376_v60, %v375_v62  ;;  %v353_v60 = vmul.f32 %v1366_v45, %v1239_v53 }
 0x129   :  { %v346_v4 = vmul.f32 %v1317_v59, %v1325_v2 }
 0x12a   :  { %v929_v8 = vpop.f32.mrf.mxu0  ;;  %v392_v9 = vsel %vm356_vm1, %v353_v60, 0.0 }
 0x12b   :  { %v378_v10 = vsel %vm356_vm1, %v346_v4, 0.0  ;;  %v354_v4 = vmul.f32 %v1374_v54, %v1260_v1 }
 0x12c   :  { %v379_v15 = vadd.f32 %v378_v10, %v377_v7  ;;  %v355_v7 = vmul.f32 %v1379_v57, %v1280_v13 }
 0x12e   :  { %v381_v22 = vadd.f32 %v380_v16, %v379_v15  ;;  %v394_v15 = vsel %vm356_vm1, %v354_v4, 0.0  ;;  %v397_v16 = vsel %vm396_vm2, %v355_v7, 0.0  ;;  %v435_v4 = vlaneseq }
 0x130   :  { %v383_v30 = vadd.f32 %v382_v23, %v381_v22  ;;  %v436_v7 = vshrl.u32 %v435_v4, 7 }
 0x132   :  { %v385_v39 = vadd.f32 %v384_v34, %v383_v30 }
 0x134   :  { %v387_v50 = vadd.f32 %v386_v47, %v385_v39 }
 0x136   :  { %v389_v62 = vadd.f32 %v388_v58, %v387_v50 }
 0x138   :  { %v391_v8 = vadd.f32 %v390_v3, %v389_v62 }
 0x13a   :  { %v393_v10 = vadd.f32 %v392_v9, %v391_v8 }
 0x13c   :  { %v395_v17 = vadd.f32 %v394_v15, %v393_v10  ;;  %v1405_v15 = vsub.s32 0, %v436_v7 }
 0x13e   :  { %v398_v22 = vadd.f32 %v397_v16, %v395_v17 }
 0x140   :  { %v399_v23 = vrot.slane %v398_v22, 4 }
 0x142   :  { %v400_v26 = vadd.f32 %v399_v23, %v398_v22 }
 0x144   :  { %v401_v30 = vrot.slane %v400_v26, 2 }
 0x146   :  { %v402_v34 = vadd.f32 %v401_v30, %v400_v26 }
 0x148   :  { %v403_v35 = vrot.slane %v402_v34, 1 }
 0x14a   :  { %v404_v39 = vadd.f32 %v403_v35, %v402_v34 }
 0x14c   :  { %414 = vrot.lane.b32.xlu1 %v404_v39, %s1045_s2  ;;  %406 = vrot.lane.b32.xlu0 %v404_v39, %s1046_s24 }
 0x150   :  { %410 = vrot.lane.b32.xlu0 %v404_v39, %s1047_s25 }
 0x1be   :  { %v407_v47 = vpop.permute.xlu0 %406  ;;  %v415_v60 = vpop.permute.xlu1 %414 }
 0x1bf   :  { %v409_v48 = vadd.f32 %v407_v47, %v404_v39 }
 0x1c2   :  { %v411_v50 = vpop.permute.xlu0 %410 }
 0x1c3   :  { %v413_v58 = vadd.f32 %v411_v50, %v409_v48 }
 0x1c5   :  { %v417_v62 = vadd.f32 %v415_v60, %v413_v58 }
 0x1c7   :  { %v1395_v3 = vmul.f32 0.001953125, %v417_v62 }
 0x1c9   :  { %423 = vrot.lane.b32.xlu0 %v1395_v3, %s1048_s26  ;;  %420 = vrot.lane.b32.xlu1 %v1395_v3, %s1049_s27 }
 0x1cd   :  { %426 = vrot.lane.b32.xlu1 %v1395_v3, %s1050_s28 }
 0x23b   :  { %v421_v8 = vpop.permute.xlu1 %420  ;;  %v424_v9 = vpop.permute.xlu0 %423 }
 0x23c   :  { %v430_v10 = vsel %vm429_vm3, %v1395_v3, %v421_v8 }
 0x23d   :  { %v432_v16 = vsel %vm431_vm4, %v430_v10, %v424_v9 }
 0x23f   :  { %v427_v17 = vpop.permute.xlu1 %426 }
 0x240   :  { %v434_v22 = vsel %vm433_vm5, %v432_v16, %v427_v17 }
 0x241   :  { %v1410_v23 = vrot.slane %v434_v22, %v1405_v15 }
 0x243   :  { %v439_v26 = vsub.f32 %v1182_v20, %v1410_v23  ;;  %v440_v30 = vsub.f32 %v1186_v24, %v1410_v23  ;;  %v441_v34 = vsub.f32 %v1190_v28, %v1410_v23  ;;  %v442_v39 = vsub.f32 %v1194_v32, %v1410_v23 }
 0x244   :  { %v443_v48 = vsub.f32 %v1198_v36, %v1410_v23  ;;  %v444_v60 = vsub.f32 %v1217_v43, %v1410_v23  ;;  %v445_v7 = vsub.f32 %v1237_v52, %v1410_v23  ;;  %v446_v16 = vsub.f32 %v1258_v0, %v1410_v23 }
 0x245   :  { %v460_v35 = vmul.f32 %v439_v26, %v1210_v41  ;;  %v461_v47 = vmul.f32 %v440_v30, %v1205_v38  ;;  %v462_v50 = vmul.f32 %v441_v34, %v1215_v42  ;;  %v463_v62 = vmul.f32 %v442_v39, %v1226_v46 }
 0x246   :  { %v464_v8 = vmul.f32 %v443_v48, %v1235_v51  ;;  %v465_v17 = vmul.f32 %v444_v60, %v1247_v56  ;;  %v447_v34 = vsub.f32 %v1273_v11, %v1410_v23 }
 0x247   :  { %v481_v58 = vmul.f32 %v460_v35, %v460_v35  ;;  %v482_v4 = vmul.f32 %v461_v47, %v461_v47  ;;  %v483_v9 = vmul.f32 %v462_v50, %v462_v50  ;;  %v484_v22 = vmul.f32 %v463_v62, %v463_v62 }
 0x248   :  { %v466_v35 = vmul.f32 %v445_v7, %v1256_v63  ;;  %v485_v39 = vmul.f32 %v464_v8, %v464_v8  ;;  %v448_v50 = vsub.f32 %v1293_v27, %v1410_v23  ;;  %v486_v51 = vmul.f32 %v465_v17, %v465_v17 }
 0x249   :  { %v502_v10 = vsel %vm356_vm1, %v481_v58, 0.0  ;;  %v503_v26 = vsel %vm356_vm1, %v482_v4, 0.0  ;;  %v505_v47 = vsel %vm356_vm1, %v483_v9, 0.0  ;;  %v467_v58 = vmul.f32 %v446_v16, %v1268_v5 }
 0x24a   :  { %v504_v30 = vadd.f32 %v503_v26, %v502_v10  ;;  %v507_v60 = vsel %vm356_vm1, %v484_v22, 0.0  ;;  %v449_v4 = vsub.f32 %v1304_v49, %v1410_v23  ;;  %v468_v10 = vmul.f32 %v447_v34, %v1278_v12 }
 0x24b   :  { %v487_v26 = vmul.f32 %v466_v35, %v466_v35  ;;  %v509_v7 = vsel %vm356_vm1, %v485_v39, 0.0  ;;  %v450_v9 = vsub.f32 %v1325_v2, %v1410_v23  ;;  %v511_v16 = vsel %vm356_vm1, %v486_v51, 0.0 }
 0x24c   :  { %v506_v48 = vadd.f32 %v505_v47, %v504_v30  ;;  %v469_v30 = vmul.f32 %v448_v50, %v1288_v18  ;;  %v488_v47 = vmul.f32 %v467_v58, %v467_v58  ;;  %v451_v22 = vsub.f32 %v1184_v21, %v1410_v23 }
 0x24d   :  { %v513_v34 = vsel %vm356_vm1, %v487_v26, 0.0  ;;  %v452_v39 = vsub.f32 %v1188_v25, %v1410_v23  ;;  %v453_v51 = vsub.f32 %v1192_v29, %v1410_v23  ;;  %v454_v26 = vsub.f32 %v1196_v33, %v1410_v23 }
 0x24e   :  { %v508_v62 = vadd.f32 %v507_v60, %v506_v48  ;;  %v470_v48 = vmul.f32 %v449_v4, %v1301_v40  ;;  %v489_v60 = vmul.f32 %v468_v10, %v468_v10  ;;  %v515_v50 = vsel %vm356_vm1, %v488_v47, 0.0 }
 0x24f   :  { %v455_v47 = vsub.f32 %v1200_v37, %v1410_v23 }
 0x250   :  { %v510_v8 = vadd.f32 %v509_v7, %v508_v62  ;;  %v471_v62 = vmul.f32 %v450_v9, %v1317_v59  ;;  %v490_v7 = vmul.f32 %v469_v30, %v469_v30  ;;  %v517_v4 = vsel %vm356_vm1, %v489_v60, 0.0 }
 0x251   :  { %v456_v60 = vsub.f32 %v1219_v44, %v1410_v23 }
 0x252   :  { %v512_v17 = vadd.f32 %v511_v16, %v510_v8  ;;  %v472_v8 = vmul.f32 %v451_v22, %v1312_v55  ;;  %v491_v16 = vmul.f32 %v470_v48, %v470_v48  ;;  %v519_v9 = vsel %vm356_vm1, %v490_v7, 0.0 }
 0x253   :  { %v457_v7 = vsub.f32 %v1239_v53, %v1410_v23 }
 0x254   :  { %v514_v35 = vadd.f32 %v513_v34, %v512_v17  ;;  %v473_v17 = vmul.f32 %v452_v39, %v1323_v61  ;;  %v492_v34 = vmul.f32 %v471_v62, %v471_v62  ;;  %v521_v22 = vsel %vm356_vm1, %v491_v16, 0.0 }
 0x255   :  { %v458_v16 = vsub.f32 %v1260_v1, %v1410_v23 }
 0x256   :  { %v516_v58 = vadd.f32 %v515_v50, %v514_v35  ;;  %v474_v35 = vmul.f32 %v453_v51, %v1334_v6  ;;  %v493_v50 = vmul.f32 %v472_v8, %v472_v8  ;;  %v523_v39 = vsel %vm356_vm1, %v492_v34, 0.0 }
 0x257   :  { %v459_v34 = vsub.f32 %v1280_v13, %v1410_v23 }
 0x258   :  { %v518_v10 = vadd.f32 %v517_v4, %v516_v58  ;;  %v475_v58 = vmul.f32 %v454_v26, %v1342_v14  ;;  %v494_v4 = vmul.f32 %v473_v17, %v473_v17  ;;  %v525_v51 = vsel %vm356_vm1, %v493_v50, 0.0 }
 0x259   :  { %v479_v50 = vmul.f32 %v458_v16, %v1374_v54 }
 0x25a   :  { %v520_v30 = vadd.f32 %v519_v9, %v518_v10  ;;  %v476_v10 = vmul.f32 %v455_v47, %v1350_v19  ;;  %v495_v9 = vmul.f32 %v474_v35, %v474_v35  ;;  %v527_v26 = vsel %vm356_vm1, %v494_v4, 0.0 }
 0x25c   :  { %v522_v48 = vadd.f32 %v521_v22, %v520_v30  ;;  %v477_v30 = vmul.f32 %v456_v60, %v1358_v31  ;;  %v496_v22 = vmul.f32 %v475_v58, %v475_v58  ;;  %v529_v47 = vsel %vm356_vm1, %v495_v9, 0.0 }
 0x25d   :  { %v480_v60 = vmul.f32 %v459_v34, %v1379_v57 }
 0x25e   :  { %v524_v62 = vadd.f32 %v523_v39, %v522_v48  ;;  %v478_v48 = vmul.f32 %v457_v7, %v1366_v45  ;;  %v497_v39 = vmul.f32 %v476_v10, %v476_v10 }
 0x25f   :  { %v501_v10 = vmul.f32 %v480_v60, %v480_v60 }
 0x260   :  { %v526_v8 = vadd.f32 %v525_v51, %v524_v62  ;;  %v498_v62 = vmul.f32 %v477_v30, %v477_v30  ;;  %v531_v51 = vsel %vm356_vm1, %v496_v22, 0.0  ;;  %v499_v58 = vmul.f32 %v478_v48, %v478_v48 }
 0x261   :  { %v533_v4 = vsel %vm356_vm1, %v497_v39, 0.0  ;;  %v541_v22 = vsel %vm396_vm2, %v501_v10, 0.0 }
 0x262   :  { %v528_v17 = vadd.f32 %v527_v26, %v526_v8  ;;  %v500_v26 = vmul.f32 %v479_v50, %v479_v50  ;;  %v535_v23 = vsel %vm356_vm1, %v498_v62, 0.0  ;;  %v537_v9 = vsel %vm356_vm1, %v499_v58, 0.0 }
 0x264   :  { %v530_v35 = vadd.f32 %v529_v47, %v528_v17  ;;  %v539_v16 = vsel %vm356_vm1, %v500_v26, 0.0 }
 0x266   :  { %v532_v19 = vadd.f32 %v531_v51, %v530_v35 }
 0x268   :  { %v534_v8 = vadd.f32 %v533_v4, %v532_v19 }
 0x26a   :  { %v536_v7 = vadd.f32 %v535_v23, %v534_v8 }
 0x26c   :  { %v538_v17 = vadd.f32 %v537_v9, %v536_v7  ;;  %v563_v7 = vld [vmem:[#allocation2] sm:$0x1] }
 0x26e   :  { %v540_v30 = vadd.f32 %v539_v16, %v538_v17  ;;  %v567_v17 = vld [vmem:[#allocation4] sm:$0x1] }
 0x270   :  { %v542_v47 = vadd.f32 %v541_v22, %v540_v30 }
 0x272   :  { %v543_v35 = vrot.slane %v542_v47, 4 }
 0x274   :  { %v544_v34 = vadd.f32 %v543_v35, %v542_v47 }
 0x276   :  { %v545_v48 = vrot.slane %v544_v34, 2 }
 0x278   :  { %v546_v51 = vadd.f32 %v545_v48, %v544_v34 }
 0x27a   :  { %v547_v39 = vrot.slane %v546_v51, 1 }
 0x27c   :  { %v548_v19 = vadd.f32 %v547_v39, %v546_v51 }
 0x27e   :  { %554 = vrot.lane.b32.xlu1 %v548_v19, %s1047_s25  ;;  %550 = vrot.lane.b32.xlu0 %v548_v19, %s1046_s24 }
 0x282   :  { %558 = vrot.lane.b32.xlu0 %v548_v19, %s1045_s2 }
 0x2f0   :  { %v551_v50 = vpop.permute.xlu0 %550  ;;  %v555_v60 = vpop.permute.xlu1 %554 }
 0x2f1   :  { %v553_v62 = vadd.f32 %v551_v50, %v548_v19 }
 0x2f3   :  { %v557_v58 = vadd.f32 %v555_v60, %v553_v62 }
 0x2f4   :  { %v559_v4 = vpop.permute.xlu0 %558 }
 0x2f5   :  { %v561_v8 = vadd.f32 %v559_v4, %v557_v58 }
 0x2f7   :  { %v562_v26 = vmul.f32 0.001953125, %v561_v8 }
 0x2f9   :  { %v564_v23 = vadd.f32 1e-05, %v562_v26 }
 0x2fb   :  { %995 = vrsqrt.f32 %v564_v23 }
 0x308   :  { %v996_v10 = vpop.eup %995 }
 0x309   :  { %v566_v9 = vmul.f32 %v996_v10, %v563_v7 }
 0x30b   :  { %v574_v16 = vrot.slane %v566_v9, %v1405_v15  ;;  %v568_v30 = vmul.f32 %v566_v9, %v1395_v3 }
 0x30d   :  { %578 = vrot.lane.b32.xlu0 %v574_v16, %s1048_s26  ;;  %575 = vrot.lane.b32.xlu1 %v574_v16, %s1049_s27  ;;  %v569_v22 = vsub.f32 %v567_v17, %v568_v30 }
 0x30f   :  { %v616_v47 = vrot.slane %v569_v22, %v1405_v15 }
 0x311   :  { %581 = vrot.lane.b32.xlu1 %v574_v16, %s1050_s28  ;;  %617 = vrot.lane.b32.xlu0 %v616_v47, %s1049_s27 }
 0x315   :  { %620 = vrot.lane.b32.xlu1 %v616_v47, %s1048_s26  ;;  %623 = vrot.lane.b32.xlu0 %v616_v47, %s1050_s28 }
 0x37f   :  { %v579_v35 = vpop.permute.xlu0 %578  ;;  %v576_v34 = vpop.permute.xlu1 %575 }
 0x380   :  { %v584_v48 = vsel %vm429_vm3, %v566_v9, %v576_v34 }
 0x381   :  { %v585_v3 = vsel %vm431_vm4, %v584_v48, %v579_v35 }
 0x383   :  { %v582_v51 = vpop.permute.xlu1 %581  ;;  %v618_v19 = vpop.permute.xlu0 %617 }
 0x384   :  { %v586_v39 = vsel %vm433_vm5, %v585_v3, %v582_v51  ;;  %v626_v62 = vsel %vm429_vm3, %v569_v22, %v618_v19 }
 0x385   :  { %v590_v50 = vrot.slane %v586_v39, %v1405_v15 }
 0x387   :  { %v621_v60 = vpop.permute.xlu1 %620  ;;  %v591_v58 = vmul.f32 %v590_v50, %v1182_v20  ;;  %v592_v4 = vmul.f32 %v590_v50, %v1186_v24  ;;  %v593_v8 = vmul.f32 %v590_v50, %v1190_v28  ;;  %v594_v26 = vmul.f32 %v590_v50, %v1194_v32  ;;  %v624_v23 = vpop.permute.xlu0 %623 }
 0x388   :  { %v595_v7 = vmul.f32 %v590_v50, %v1198_v36  ;;  %v596_v10 = vmul.f32 %v590_v50, %v1217_v43  ;;  %v597_v9 = vmul.f32 %v590_v50, %v1237_v52  ;;  %v598_v17 = vmul.f32 %v590_v50, %v1258_v0 }
 0x389   :  { %v599_v16 = vmul.f32 %v590_v50, %v1273_v11  ;;  %v600_v30 = vmul.f32 %v590_v50, %v1293_v27  ;;  %v601_v20 = vmul.f32 %v590_v50, %v1304_v49  ;;  %v627_v24 = vsel %vm431_vm4, %v626_v62, %v621_v60 }
 0x38a   :  { %v602_v28 = vmul.f32 %v590_v50, %v1325_v2  ;;  %v603_v32 = vmul.f32 %v590_v50, %v1184_v21  ;;  %v604_v36 = vmul.f32 %v590_v50, %v1188_v25  ;;  %v628_v43 = vsel %vm433_vm5, %v627_v24, %v624_v23 }
 0x38b   :  { %v605_v52 = vmul.f32 %v590_v50, %v1192_v29  ;;  %v606_v0 = vmul.f32 %v590_v50, %v1196_v33  ;;  %v607_v11 = vmul.f32 %v590_v50, %v1200_v37  ;;  %v632_v27 = vrot.slane %v628_v43, %v1405_v15 }
 0x38c   :  { %v608_v49 = vmul.f32 %v590_v50, %v1219_v44  ;;  %v609_v22 = vmul.f32 %v590_v50, %v1239_v53  ;;  %v610_v2 = vmul.f32 %v590_v50, %v1260_v1  ;;  %v611_v21 = vmul.f32 %v590_v50, %v1280_v13 }
 0x38d   :  { %v633_v47 = vadd.f32 %v632_v27, %v591_v58  ;;  %v634_v25 = vadd.f32 %v632_v27, %v592_v4  ;;  %v635_v35 = vadd.f32 %v632_v27, %v593_v8  ;;  %v636_v34 = vadd.f32 %v632_v27, %v594_v26 }
 0x38e   :  { %v637_v48 = vadd.f32 %v632_v27, %v595_v7  ;;  %v638_v29 = vadd.f32 %v632_v27, %v596_v10  ;;  %v639_v3 = vadd.f32 %v632_v27, %v597_v9  ;;  %v640_v33 = vadd.f32 %v632_v27, %v598_v17 }
 0x38f   :  { %v641_v51 = vadd.f32 %v632_v27, %v599_v16  ;;  %v642_v37 = vadd.f32 %v632_v27, %v600_v30  ;;  %v643_v39 = vadd.f32 %v632_v27, %v601_v20  ;;  %v644_v15 = vadd.f32 %v632_v27, %v602_v28 }
 0x390   :  { %v645_v19 = vadd.f32 %v632_v27, %v603_v32  ;;  %v646_v44 = vadd.f32 %v632_v27, %v604_v36  ;;  %v647_v62 = vadd.f32 %v632_v27, %v605_v52  ;;  %v648_v53 = vadd.f32 %v632_v27, %v606_v0 }
 0x391   :  { %v649_v60 = vadd.f32 %v632_v27, %v607_v11  ;;  %v650_v1 = vadd.f32 %v632_v27, %v608_v49  ;;  %v651_v23 = vadd.f32 %v632_v27, %v609_v22  ;;  %v652_v13 = vadd.f32 %v632_v27, %v610_v2 }
 0x392   :  { %v653_v50 = vadd.f32 %v632_v27, %v611_v21  ;;  %v654_v58 = vmax.f32 %v633_v47, 0.0  ;;  %v655_v4 = vmax.f32 %v634_v25, 0.0  ;;  %v656_v8 = vmax.f32 %v635_v35, 0.0  ;;  %v1652_v25 = vld [vmem:[#allocation8_spill] sm:$0xff] }
 0x393   :  { %v657_v26 = vmax.f32 %v636_v34, 0.0  ;;  %v658_v7 = vmax.f32 %v637_v48, 0.0  ;;  %v659_v10 = vmax.f32 %v638_v29, 0.0  ;;  %v660_v9 = vmax.f32 %v639_v3, 0.0 }
 0x394   :  { %v661_v17 = vmax.f32 %v640_v33, 0.0  ;;  %v662_v16 = vmax.f32 %v641_v51, 0.0  ;;  %v663_v30 = vmax.f32 %v642_v37, 0.0  ;;  %v664_v20 = vmax.f32 %v643_v39, 0.0  ;;  %v1653_v37 = vld [vmem:[#allocation9_spill] sm:$0xff] }
 0x395   :  { %v665_v24 = vmax.f32 %v644_v15, 0.0  ;;  %v666_v28 = vmax.f32 %v645_v19, 0.0  ;;  %v667_v32 = vmax.f32 %v646_v44, 0.0  ;;  %v668_v36 = vmax.f32 %v647_v62, 0.0 }
 0x396   :  { %v669_v43 = vmax.f32 %v648_v53, 0.0  ;;  %v670_v52 = vmax.f32 %v649_v60, 0.0  ;;  %v671_v0 = vmax.f32 %v650_v1, 0.0  ;;  %v672_v11 = vmax.f32 %v651_v23, 0.0 }
 0x397   :  { %v673_v27 = vmax.f32 %v652_v13, 0.0  ;;  %v674_v49 = vmax.f32 %v653_v50, 0.0  ;;  %v675_v22 = vmul.f32 %v654_v58, %v1210_v41  ;;  %v676_v2 = vmul.f32 %v655_v4, %v1205_v38 }
 0x398   :  { %v677_v21 = vmul.f32 %v656_v8, %v1215_v42  ;;  %v678_v47 = vmul.f32 %v657_v26, %v1226_v46  ;;  %v679_v35 = vmul.f32 %v658_v7, %v1652_v25  ;;  %v680_v34 = vmul.f32 %v659_v10, %v1247_v56 }
 0x399   :  { %v681_v48 = vmul.f32 %v660_v9, %v1256_v63  ;;  %v682_v29 = vmul.f32 %v661_v17, %v1268_v5  ;;  %v683_v3 = vmul.f32 %v662_v16, %v1278_v12  ;;  %v684_v33 = vmul.f32 %v663_v30, %v1288_v18 }
 0x39a   :  { %v685_v41 = vmul.f32 %v664_v20, %v1301_v40  ;;  %v686_v38 = vmul.f32 %v665_v24, %v1317_v59  ;;  %v687_v42 = vmul.f32 %v666_v28, %v1312_v55  ;;  %v688_v46 = vmul.f32 %v667_v32, %v1323_v61 }
 0x39b   :  { %v689_v51 = vmul.f32 %v668_v36, %v1334_v6  ;;  %v690_v56 = vmul.f32 %v669_v43, %v1342_v14  ;;  %v691_v63 = vmul.f32 %v670_v52, %v1653_v37  ;;  %v692_v5 = vmul.f32 %v671_v0, %v1358_v31 }
 0x39c   :  { %v693_v12 = vmul.f32 %v672_v11, %v1366_v45  ;;  %v694_v18 = vmul.f32 %v673_v27, %v1374_v54  ;;  %v695_v40 = vmul.f32 %v674_v49, %v1379_v57  ;;  %v850_v39 = vpack.c.bf16 %v675_v22, %v675_v22 }
 0x39d   :  { %v851_v59 = vpack.c.bf16 %v676_v2, %v676_v2  ;;  %v852_v15 = vpack.c.bf16 %v677_v21, %v677_v21  ;;  %v853_v55 = vpack.c.bf16 %v678_v47, %v678_v47  ;;  %v854_v19 = vpack.c.bf16 %v679_v35, %v679_v35 }
 0x39e   :  { %v855_v61 = vpack.c.bf16 %v680_v34, %v680_v34  ;;  %v856_v44 = vpack.c.bf16 %v681_v48, %v681_v48  ;;  %v857_v6 = vpack.c.bf16 %v682_v29, %v682_v29  ;;  %v858_v62 = vpack.c.bf16 %v683_v3, %v683_v3  ;;  %782 = vst.msk [vmem:[%s1647_s5] sm:$0xf] %vm781_vm6, %v850_v39 }
 0x39f   :  { %v859_v14 = vpack.c.bf16 %v684_v33, %v684_v33  ;;  %v860_v31 = vpack.c.bf16 %v685_v41, %v685_v41  ;;  %v861_v45 = vpack.c.bf16 %v686_v38, %v686_v38  ;;  %v862_v54 = vpack.c.bf16 %v687_v42, %v687_v42  ;;  %783 = vst.msk [vmem:[%s1647_s5 + $0x4] sm:$0xf] %vm781_vm6, %v851_v59 }
 0x3a0   :  { %784 = vst.msk [vmem:[%s1647_s5 + $0x8] sm:$0xf] %vm781_vm6, %v852_v15  ;;  %785 = vst.msk [vmem:[%s1647_s5 + $0xc] sm:$0xf] %vm781_vm6, %v853_v55  ;;  %v863_v57 = vpack.c.bf16 %v688_v46, %v688_v46  ;;  %v864_v53 = vpack.c.bf16 %v689_v51, %v689_v51  ;;  %v865_v60 = vpack.c.bf16 %v690_v56, %v690_v56 }
 0x3a1   :  { %786 = vst.msk [vmem:[%s1647_s5 + $0x10] sm:$0xf] %vm781_vm6, %v854_v19  ;;  %v866_v1 = vpack.c.bf16 %v691_v63, %v691_v63  ;;  %787 = vst.msk [vmem:[%s1647_s5 + $0x14] sm:$0xf] %vm781_vm6, %v855_v61  ;;  %v867_v23 = vpack.c.bf16 %v692_v5, %v692_v5  ;;  %v868_v13 = vpack.c.bf16 %v693_v12, %v693_v12 }
 0x3a2   :  { %788 = vst.msk [vmem:[%s1647_s5 + $0x18] sm:$0xf] %vm781_vm6, %v856_v44  ;;  %789 = vst.msk [vmem:[%s1647_s5 + $0x1c] sm:$0xf] %vm781_vm6, %v857_v6  ;;  %v869_v50 = vpack.c.bf16 %v694_v18, %v694_v18  ;;  %v870_v58 = vpack.c.bf16 %v695_v40, %v695_v40 }
 0x3a3   :  { %790 = vst.msk [vmem:[%s1647_s5 + $0x20] sm:$0xf] %vm781_vm6, %v858_v62  ;;  %791 = vst.msk [vmem:[%s1647_s5 + $0x24] sm:$0xf] %vm781_vm6, %v859_v14 }
 0x3a4   :  { %792 = vst.msk [vmem:[%s1647_s5 + $0x28] sm:$0xf] %vm781_vm6, %v860_v31  ;;  %793 = vst.msk [vmem:[%s1647_s5 + $0x2c] sm:$0xf] %vm781_vm6, %v861_v45 }
 0x3a5   :  { %794 = vst.msk [vmem:[%s1647_s5 + $0x30] sm:$0xf] %vm781_vm6, %v862_v54  ;;  %795 = vst.msk [vmem:[%s1647_s5 + $0x34] sm:$0xf] %vm781_vm6, %v863_v57 }
 0x3a6   :  { %796 = vst.msk [vmem:[%s1647_s5 + $0x38] sm:$0xf] %vm781_vm6, %v864_v53  ;;  %797 = vst.msk [vmem:[%s1647_s5 + $0x3c] sm:$0xf] %vm781_vm6, %v865_v60 }
 0x3a7   :  { %798 = vst.msk [vmem:[%s1647_s5 + $0x40] sm:$0xf] %vm781_vm6, %v866_v1  ;;  %799 = vst.msk [vmem:[%s1647_s5 + $0x44] sm:$0xf] %vm781_vm6, %v867_v23 }
 0x3a8   :  { %800 = vst.msk [vmem:[%s1647_s5 + $0x48] sm:$0xf] %vm781_vm6, %v868_v13  ;;  %801 = vst.msk [vmem:[%s1647_s5 + $0x4c] sm:$0xf] %vm781_vm6, %v869_v50 }
 0x3a9   :  { %803 = vst.msk [vmem:[%s1647_s5 + $0x50] sm:$0x1] %vm802_vm7, %v870_v58 }
 0x3aa   :  { %808 = vsyncpa [#allocation3], 1 }
 0x3ab   :  { %809 = vsyncpa [#allocation5], 1 }

// kernel: generator_forward.8
= control target key start
LH: loop header
LB: loop body
LE: loop exit
PB: predicated region body
PF: predicated region fallthrough
CT: control target
= control target key end

     0   :  { %v2732_v0 = vmov 0.0   ;;  %vm2733_vm0 = vmmov 0   ;;  %vm309_vm1 = vcmask 523264   ;;  %vm895_vm2 = vcmask 261120   ;;  %s2734_s6 = smov 104   ;;  %s2735_s7 = smov 120   ;;  %s5693_s1 = inlined_call_operand.vmem [shape: bf16[64,32], index: 1, kind: input, shape index: {}]   ;;  %s5694_s0 = inlined_call_operand.vmem [shape: bf16[578,64], index: 0, kind: input, shape index: {}]   ;;  %s5695_s2 = inlined_call_operand.vmem [shape: f32[578,32], index: 2, kind: input, shape index: {}]   ;;  %s5696_s3 = inlined_call_operand.vmem [shape: f32[1,8], index: 3, kind: input, shape index: {}]   ;;  %s5697_s4 = inlined_call_operand.vmem [shape: f32[1,8], index: 4, kind: input, shape index: {}]   ;;  %s5698_s5 = inlined_call_operand.vmem [shape: bf16[578,32], index: 5, kind: output, shape index: {}]  }
   0x1   :  { %2444 = vmatprep.subr.bf16.mxu0 %v2732_v0  ;;  %v2616_v1 = vld [vmem:[%s5693_s1 + $0x18] sm:$0xff]   ;;  %2452 = vmatprep.mubr.msk.bf16.mxu0 %vm2733_vm0, %v2732_v0  ;;  %v2617_v2 = vld [vmem:[%s5693_s1 + $0x10] sm:$0xff]   ;;  %v2618_v3 = vld [vmem:[%s5693_s1 + $0x8] sm:$0xff]   ;;  %vm1039_vm3 = vcmask 254976   ;;  %s2736_s8 = smov 112   ;;  %s2737_s9 = smov 16  }
   0x2   :  { %2600 = vmatprep.subr.bf16.mxu1 %v2732_v0  ;;  %2528 = vmatprep.mubr.msk.bf16.mxu1 %vm2733_vm0, %v2732_v0  ;;  %v2619_v4 = vld [vmem:[%s5693_s1] sm:$0xff]   ;;  %v2630_v6 = vld [vmem:[%s5694_s0 + $0x98] sm:$0xff]   ;;  %v2621_v7 = vld [vmem:[%s5694_s0 + $0x8] sm:$0xff]   ;;  %s2738_s10 = smov 8   ;;  %s2739_s11 = smov 24   ;;  %vm1072_vm4 = vcmask 64512  }
   0x3   :  { %2445 = vmatpush3.bf16.msra.mxu0 %v2616_v1  ;;  %2604 = vmatpush3.bf16.msra.mxu1 %v2616_v1  ;;  %v2620_v5 = vld [vmem:[%s5694_s0] sm:$0xff]   ;;  %v2622_v9 = vld [vmem:[%s5694_s0 + $0x10] sm:$0xff]   ;;  %v2634_v10 = vld [vmem:[%s5694_s0 + $0xa8] sm:$0xff]   ;;  %vm1074_vm5 = vcmask 130048   ;;  %vm1076_vm6 = vcmask 195584   ;;  %vm2100_vm7 = vcmask 257024  }
   0x4   :  { %2446 = vmatprep.subr.bf16.mxu0 %v2732_v0  ;;  %2601 = vmatprep.subr.bf16.mxu1 %v2732_v0  ;;  %v2632_v8 = vld [vmem:[%s5694_s0 + $0xa0] sm:$0xff]   ;;  %v2623_v11 = vld [vmem:[%s5694_s0 + $0x18] sm:$0xff]   ;;  %v2636_v12 = vld [vmem:[%s5694_s0 + $0xb0] sm:$0xff]   ;;  %vm2173_vm8 = vcmask 253952  }
   0x5   :  { %v2624_v13 = vld [vmem:[%s5694_s0 + $0x20] sm:$0xff]   ;;  %v2638_v14 = vld [vmem:[%s5694_s0 + $0xb8] sm:$0xff]   ;;  %v2625_v15 = vld [vmem:[%s5694_s0 + $0x28] sm:$0xff]  }
   0x6   :  { %v2640_v16 = vld [vmem:[%s5694_s0 + $0xc0] sm:$0xff]   ;;  %v2626_v17 = vld [vmem:[%s5694_s0 + $0x30] sm:$0xff]   ;;  %v2642_v18 = vld [vmem:[%s5694_s0 + $0xc8] sm:$0xff]  }
   0x7   :  { %2447 = vmatpush3.bf16.msra.mxu0 %v2617_v2  ;;  %2605 = vmatpush3.bf16.msra.mxu1 %v2617_v2  ;;  %v2627_v19 = vld [vmem:[%s5694_s0 + $0x38] sm:$0xff]   ;;  %v2644_v20 = vld [vmem:[%s5694_s0 + $0xd0] sm:$0xff]   ;;  %v2628_v21 = vld [vmem:[%s5694_s0 + $0x40] sm:$0xff]  }
   0x8   :  { %2448 = vmatprep.subr.bf16.mxu0 %v2732_v0  ;;  %2602 = vmatprep.subr.bf16.mxu1 %v2732_v0  ;;  %v2646_v22 = vld [vmem:[%s5694_s0 + $0xd8] sm:$0xff]   ;;  %v2629_v23 = vld [vmem:[%s5694_s0 + $0x48] sm:$0xff]   ;;  %v2648_v24 = vld [vmem:[%s5694_s0 + $0xe0] sm:$0xff]  }
   0x9   :  { %v2631_v25 = vld [vmem:[%s5694_s0 + $0x50] sm:$0xff]   ;;  %v2649_v26 = vld [vmem:[%s5694_s0 + $0xe8] sm:$0xff]   ;;  %v2633_v27 = vld [vmem:[%s5694_s0 + $0x58] sm:$0xff]  }
   0xa   :  { %v2650_v28 = vld [vmem:[%s5694_s0 + $0xf0] sm:$0xff]   ;;  %v2635_v29 = vld [vmem:[%s5694_s0 + $0x60] sm:$0xff]   ;;  %v2651_v30 = vld [vmem:[%s5694_s0 + $0xf8] sm:$0xff]  }
   0xb   :  { %2449 = vmatpush3.bf16.msra.mxu0 %v2618_v3  ;;  %2606 = vmatpush3.bf16.msra.mxu1 %v2618_v3  ;;  %v2637_v31 = vld [vmem:[%s5694_s0 + $0x68] sm:$0xff]   ;;  %v2652_v32 = vld [vmem:[%s5694_s0 + $0x100] sm:$0xff]   ;;  %v2639_v33 = vld [vmem:[%s5694_s0 + $0x70] sm:$0xff]  }
   0xc   :  { %2450 = vmatprep.subr.bf16.mxu0 %v2732_v0  ;;  %2603 = vmatprep.subr.bf16.mxu1 %v2732_v0  ;;  %v2653_v34 = vld [vmem:[%s5694_s0 + $0x108] sm:$0xff]   ;;  %v2641_v35 = vld [vmem:[%s5694_s0 + $0x78] sm:$0xff]   ;;  %v2654_v36 = vld [vmem:[%s5694_s0 + $0x110] sm:$0xff]  }
   0xd   :  { %v2643_v37 = vld [vmem:[%s5694_s0 + $0x80] sm:$0xff]   ;;  %v2655_v38 = vld [vmem:[%s5694_s0 + $0x118] sm:$0xff]   ;;  %v2645_v39 = vld [vmem:[%s5694_s0 + $0x88] sm:$0xff]  }
   0xe   :  { %v2656_v40 = vld [vmem:[%s5694_s0 + $0x120] ss:$0 sps:$4 sm:$0x11]   ;;  %v2647_v41 = vld [vmem:[%s5694_s0 + $0x90] sm:$0xff]  }
   0xf   :  { %2451 = vmatpush3.bf16.msra.mxu0 %v2619_v4  ;;  %2607 = vmatpush3.bf16.msra.mxu1 %v2619_v4 }
  0x12   :  { %2453 = vmatmul.mubr.msk.bf16.vlgmr.msra.gmra.mxu0 %vm309_vm1, %v2620_v5  ;;  %2529 = vmatmul.mubr.msk.bf16.vlgmr.msra.gmra.mxu1 %vm309_vm1, %v2630_v6 }
  0x13   :  { %2456 = vmatprep.mubr.msk.bf16.mxu0 %vm2733_vm0, %v2732_v0  ;;  %2532 = vmatprep.mubr.msk.bf16.mxu1 %vm2733_vm0, %v2732_v0 }
  0x1a   :  { %2457 = vmatmul.mubr.msk.bf16.gmra.mxu0 %vm309_vm1, %v2621_v7  ;;  %2533 = vmatmul.mubr.msk.bf16.gmra.mxu1 %vm309_vm1, %v2632_v8 }
  0x1b   :  { %2460 = vmatprep.mubr.msk.bf16.mxu0 %vm2733_vm0, %v2732_v0  ;;  %2536 = vmatprep.mubr.msk.bf16.mxu1 %vm2733_vm0, %v2732_v0 }
  0x22   :  { %2461 = vmatmul.mubr.msk.bf16.gmra.mxu0 %vm309_vm1, %v2622_v9  ;;  %2537 = vmatmul.mubr.msk.bf16.gmra.mxu1 %vm309_vm1, %v2634_v10 }
  0x23   :  { %2464 = vmatprep.mubr.msk.bf16.mxu0 %vm2733_vm0, %v2732_v0  ;;  %2540 = vmatprep.mubr.msk.bf16.mxu1 %vm2733_vm0, %v2732_v0 }
  0x2a   :  { %2465 = vmatmul.mubr.msk.bf16.gmra.mxu0 %vm309_vm1, %v2623_v11  ;;  %2541 = vmatmul.mubr.msk.bf16.gmra.mxu1 %vm309_vm1, %v2636_v12 }
  0x2b   :  { %2468 = vmatprep.mubr.msk.bf16.mxu0 %vm2733_vm0, %v2732_v0  ;;  %2544 = vmatprep.mubr.msk.bf16.mxu1 %vm2733_vm0, %v2732_v0 }
  0x32   :  { %2469 = vmatmul.mubr.msk.bf16.gmra.mxu0 %vm309_vm1, %v2624_v13  ;;  %2545 = vmatmul.mubr.msk.bf16.gmra.mxu1 %vm309_vm1, %v2638_v14 }
  0x33   :  { %2472 = vmatprep.mubr.msk.bf16.mxu0 %vm2733_vm0, %v2732_v0  ;;  %2548 = vmatprep.mubr.msk.bf16.mxu1 %vm2733_vm0, %v2732_v0 }
  0x3a   :  { %2473 = vmatmul.mubr.msk.bf16.gmra.mxu0 %vm309_vm1, %v2625_v15  ;;  %2549 = vmatmul.mubr.msk.bf16.gmra.mxu1 %vm309_vm1, %v2640_v16 }
  0x3b   :  { %2476 = vmatprep.mubr.msk.bf16.mxu0 %vm2733_vm0, %v2732_v0  ;;  %2552 = vmatprep.mubr.msk.bf16.mxu1 %vm2733_vm0, %v2732_v0 }
  0x42   :  { %2477 = vmatmul.mubr.msk.bf16.gmra.mxu0 %vm309_vm1, %v2626_v17  ;;  %2553 = vmatmul.mubr.msk.bf16.gmra.mxu1 %vm309_vm1, %v2642_v18 }
  0x43   :  { %2480 = vmatprep.mubr.msk.bf16.mxu0 %vm2733_vm0, %v2732_v0  ;;  %2556 = vmatprep.mubr.msk.bf16.mxu1 %vm2733_vm0, %v2732_v0 }
  0x4a   :  { %2481 = vmatmul.mubr.msk.bf16.gmra.mxu0 %vm309_vm1, %v2627_v19  ;;  %2557 = vmatmul.mubr.msk.bf16.gmra.mxu1 %vm309_vm1, %v2644_v20 }
  0x4b   :  { %2484 = vmatprep.mubr.msk.bf16.mxu0 %vm2733_vm0, %v2732_v0  ;;  %2560 = vmatprep.mubr.msk.bf16.mxu1 %vm2733_vm0, %v2732_v0 }
  0x52   :  { %2485 = vmatmul.mubr.msk.bf16.gmra.mxu0 %vm309_vm1, %v2628_v21  ;;  %2561 = vmatmul.mubr.msk.bf16.gmra.mxu1 %vm309_vm1, %v2646_v22 }
  0x53   :  { %2488 = vmatprep.mubr.msk.bf16.mxu0 %vm2733_vm0, %v2732_v0  ;;  %2564 = vmatprep.mubr.msk.bf16.mxu1 %vm2733_vm0, %v2732_v0 }
  0x5a   :  { %2489 = vmatmul.mubr.msk.bf16.gmra.mxu0 %vm309_vm1, %v2629_v23  ;;  %2565 = vmatmul.mubr.msk.bf16.gmra.mxu1 %vm309_vm1, %v2648_v24 }
  0x5b   :  { %2492 = vmatprep.mubr.msk.bf16.mxu0 %vm2733_vm0, %v2732_v0  ;;  %2568 = vmatprep.mubr.msk.bf16.mxu1 %vm2733_vm0, %v2732_v0 }
  0x62   :  { %2493 = vmatmul.mubr.msk.bf16.gmra.mxu0 %vm309_vm1, %v2631_v25  ;;  %2569 = vmatmul.mubr.msk.bf16.gmra.mxu1 %vm309_vm1, %v2649_v26 }
  0x63   :  { %2496 = vmatprep.mubr.msk.bf16.mxu0 %vm2733_vm0, %v2732_v0  ;;  %2572 = vmatprep.mubr.msk.bf16.mxu1 %vm2733_vm0, %v2732_v0 }
  0x6a   :  { %2497 = vmatmul.mubr.msk.bf16.gmra.mxu0 %vm309_vm1, %v2633_v27  ;;  %2573 = vmatmul.mubr.msk.bf16.gmra.mxu1 %vm309_vm1, %v2650_v28 }
  0x6b   :  { %2500 = vmatprep.mubr.msk.bf16.mxu0 %vm2733_vm0, %v2732_v0  ;;  %2576 = vmatprep.mubr.msk.bf16.mxu1 %vm2733_vm0, %v2732_v0 }
  0x72   :  { %2501 = vmatmul.mubr.msk.bf16.gmra.mxu0 %vm309_vm1, %v2635_v29  ;;  %2577 = vmatmul.mubr.msk.bf16.gmra.mxu1 %vm309_vm1, %v2651_v30 }
  0x73   :  { %2504 = vmatprep.mubr.msk.bf16.mxu0 %vm2733_vm0, %v2732_v0  ;;  %2580 = vmatprep.mubr.msk.bf16.mxu1 %vm2733_vm0, %v2732_v0 }
  0x7a   :  { %2505 = vmatmul.mubr.msk.bf16.gmra.mxu0 %vm309_vm1, %v2637_v31  ;;  %2581 = vmatmul.mubr.msk.bf16.gmra.mxu1 %vm309_vm1, %v2652_v32 }
  0x7b   :  { %2508 = vmatprep.mubr.msk.bf16.mxu0 %vm2733_vm0, %v2732_v0  ;;  %2584 = vmatprep.mubr.msk.bf16.mxu1 %vm2733_vm0, %v2732_v0 }
  0x82   :  { %2509 = vmatmul.mubr.msk.bf16.gmra.mxu0 %vm309_vm1, %v2639_v33  ;;  %2585 = vmatmul.mubr.msk.bf16.gmra.mxu1 %vm309_vm1, %v2653_v34 }
  0x83   :  { %2512 = vmatprep.mubr.msk.bf16.mxu0 %vm2733_vm0, %v2732_v0  ;;  %2588 = vmatprep.mubr.msk.bf16.mxu1 %vm2733_vm0, %v2732_v0 }
  0x8a   :  { %2513 = vmatmul.mubr.msk.bf16.gmra.mxu0 %vm309_vm1, %v2641_v35  ;;  %2589 = vmatmul.mubr.msk.bf16.gmra.mxu1 %vm309_vm1, %v2654_v36 }
  0x8b   :  { %2516 = vmatprep.mubr.msk.bf16.mxu0 %vm2733_vm0, %v2732_v0  ;;  %2592 = vmatprep.mubr.msk.bf16.mxu1 %vm2733_vm0, %v2732_v0 }
  0x92   :  { %2517 = vmatmul.mubr.msk.bf16.gmra.mxu0 %vm309_vm1, %v2643_v37  ;;  %2593 = vmatmul.mubr.msk.bf16.gmra.mxu1 %vm309_vm1, %v2655_v38 }
  0x93   :  { %2520 = vmatprep.mubr.msk.bf16.mxu0 %vm2733_vm0, %v2732_v0  ;;  %2596 = vmatprep.mubr.msk.bf16.mxu1 %vm2733_vm0, %v2732_v0 }
  0x9a   :  { %2521 = vmatmul.mubr.msk.bf16.gmra.mxu0 %vm309_vm1, %v2645_v39  ;;  %2597 = vmatmul.mubr.msk.bf16.gmra.mxu1 %vm309_vm1, %v2656_v40 }
  0x9b   :  { %2524 = vmatprep.mubr.msk.bf16.mxu0 %vm2733_vm0, %v2732_v0 }
  0xa2   :  { %2525 = vmatmul.mubr.msk.bf16.gmra.mxu0 %vm309_vm1, %v2647_v41 }
  0xd2   :  { %v3012_v42 = vpop.f32.mrf.mxu0  ;;  %v3014_v43 = vpop.f32.mrf.mxu1 }
  0xd3   :  { %5880 = vst [vmem:[#allocation2_spill] sm:$0xff] %v3012_v42  ;;  %5881 = vst [vmem:[#allocation3_spill] sm:$0xff] %v3014_v43 }
  0xd4   :  { %v2454_v44 = vpop.f32.mrf.mxu0  ;;  %v2530_v45 = vpop.f32.mrf.mxu1 }
  0xd6   :  { %v3016_v46 = vpop.f32.mrf.mxu0  ;;  %v3018_v47 = vpop.f32.mrf.mxu1 }
  0xd7   :  { %5882 = vst [vmem:[#allocation4_spill] sm:$0xff] %v3016_v46 }
  0xd8   :  { %v2455_v48 = vpop.f32.mrf.mxu0  ;;  %v2531_v49 = vpop.f32.mrf.mxu1 }
  0xda   :  { %v3020_v50 = vpop.f32.mrf.mxu0  ;;  %v3022_v51 = vpop.f32.mrf.mxu1 }
  0xdb   :  { %5883 = vst [vmem:[#allocation5_spill] sm:$0xff] %v3020_v50 }
  0xdc   :  { %v2458_v52 = vpop.f32.mrf.mxu0  ;;  %v2534_v53 = vpop.f32.mrf.mxu1 }
  0xde   :  { %v3024_v54 = vpop.f32.mrf.mxu0  ;;  %v3026_v55 = vpop.f32.mrf.mxu1 }
  0xdf   :  { %5884 = vst [vmem:[#allocation6_spill] sm:$0xff] %v3024_v54 }
  0xe0   :  { %v2459_v56 = vpop.f32.mrf.mxu0  ;;  %v2535_v57 = vpop.f32.mrf.mxu1 }
  0xe1   :  { %v3087_v56 = vld [vmem:[%s5695_s2 + $0x8] sm:$0xff] }
  0xe2   :  { %v3028_v58 = vpop.f32.mrf.mxu0  ;;  %v3030_v59 = vpop.f32.mrf.mxu1 }
  0xe3   :  { %5885 = vst [vmem:[#allocation7_spill] sm:$0xff] %v3028_v58 }
  0xe4   :  { %v2462_v60 = vpop.f32.mrf.mxu0  ;;  %v2538_v61 = vpop.f32.mrf.mxu1 }
  0xe5   :  { %v3092_v61 = vld [vmem:[%s5695_s2] sm:$0xff] }
  0xe6   :  { %v3032_v62 = vpop.f32.mrf.mxu0  ;;  %v3034_v63 = vpop.f32.mrf.mxu1 }
  0xe7   :  { %5886 = vst [vmem:[#allocation8_spill] sm:$0xff] %v3032_v62 }
  0xe8   :  { %v2463_v0 = vpop.f32.mrf.mxu0  ;;  %v2539_v1 = vpop.f32.mrf.mxu1 }
  0xe9   :  { %v3097_v0 = vld [vmem:[%s5695_s2 + $0x10] sm:$0xff] }
  0xea   :  { %v3036_v2 = vpop.f32.mrf.mxu0  ;;  %v3038_v3 = vpop.f32.mrf.mxu1 }
  0xeb   :  { %5887 = vst [vmem:[#allocation9_spill] sm:$0xff] %v3036_v2 }
  0xec   :  { %v2466_v4 = vpop.f32.mrf.mxu0  ;;  %v2542_v5 = vpop.f32.mrf.mxu1 }
  0xed   :  { %v823_v5 = vmul.f32 %v3087_v56, %v3016_v46 }
  0xee   :  { %v3040_v6 = vpop.f32.mrf.mxu0  ;;  %v3042_v7 = vpop.f32.mrf.mxu1 }
  0xef   :  { %5888 = vst [vmem:[#allocation10_spill] sm:$0xff] %v3040_v6 }
  0xf0   :  { %v2467_v8 = vpop.f32.mrf.mxu0  ;;  %v2543_v9 = vpop.f32.mrf.mxu1 }
  0xf1   :  { %v3108_v8 = vld [vmem:[%s5695_s2 + $0x18] sm:$0xff] }
  0xf2   :  { %v3044_v10 = vpop.f32.mrf.mxu0  ;;  %v3046_v11 = vpop.f32.mrf.mxu1 }
  0xf3   :  { %5889 = vst [vmem:[#allocation11_spill] sm:$0xff] %v3044_v10 }
  0xf4   :  { %v2470_v12 = vpop.f32.mrf.mxu0  ;;  %v2546_v13 = vpop.f32.mrf.mxu1 }
  0xf5   :  { %v822_v13 = vmul.f32 %v3092_v61, %v3012_v42 }
  0xf6   :  { %v3048_v14 = vpop.f32.mrf.mxu0  ;;  %v3050_v15 = vpop.f32.mrf.mxu1 }
  0xf7   :  { %5890 = vst [vmem:[#allocation12_spill] sm:$0xff] %v3048_v14 }
  0xf8   :  { %v2471_v16 = vpop.f32.mrf.mxu0  ;;  %v2547_v17 = vpop.f32.mrf.mxu1 }
  0xf9   :  { %v824_v16 = vmul.f32 %v3097_v0, %v3020_v50  ;;  %v3117_v17 = vld [vmem:[%s5695_s2 + $0x20] sm:$0xff] }
  0xfa   :  { %v3052_v18 = vpop.f32.mrf.mxu0  ;;  %v3054_v19 = vpop.f32.mrf.mxu1  ;;  %5901 = vst [vmem:[#allocation23_spill] sm:$0xff] %v3117_v17 }
  0xfb   :  { %5891 = vst [vmem:[#allocation13_spill] sm:$0xff] %v3052_v18 }
  0xfc   :  { %v2474_v20 = vpop.f32.mrf.mxu0  ;;  %v2550_v21 = vpop.f32.mrf.mxu1 }
  0xfe   :  { %v3056_v22 = vpop.f32.mrf.mxu0  ;;  %v3058_v23 = vpop.f32.mrf.mxu1 }
  0xff   :  { %5892 = vst [vmem:[#allocation14_spill] sm:$0xff] %v3056_v22 }
 0x100   :  { %v2475_v24 = vpop.f32.mrf.mxu0  ;;  %v2551_v25 = vpop.f32.mrf.mxu1 }
 0x101   :  { %v897_v24 = vsel %vm895_vm2, %v823_v5, 0.0  ;;  %v825_v25 = vmul.f32 %v3108_v8, %v3024_v54 }
 0x102   :  { %v3060_v26 = vpop.f32.mrf.mxu0  ;;  %v3062_v27 = vpop.f32.mrf.mxu1 }
 0x103   :  { %5893 = vst [vmem:[#allocation15_spill] sm:$0xff] %v3060_v26 }
 0x104   :  { %v2478_v28 = vpop.f32.mrf.mxu0  ;;  %v2554_v29 = vpop.f32.mrf.mxu1 }
 0x105   :  { %v3129_v28 = vld [vmem:[%s5695_s2 + $0x28] sm:$0xff] }
 0x106   :  { %v3064_v30 = vpop.f32.mrf.mxu0  ;;  %v3066_v31 = vpop.f32.mrf.mxu1  ;;  %5903 = vst [vmem:[#allocation25_spill] sm:$0xff] %v3129_v28 }
 0x107   :  { %5894 = vst [vmem:[#allocation16_spill] sm:$0xff] %v3064_v30 }
 0x108   :  { %v2479_v32 = vpop.f32.mrf.mxu0  ;;  %v2555_v33 = vpop.f32.mrf.mxu1 }
 0x109   :  { %v896_v33 = vsel %vm895_vm2, %v822_v13, 0.0 }
 0x10a   :  { %v3068_v34 = vpop.f32.mrf.mxu0  ;;  %v3070_v35 = vpop.f32.mrf.mxu1 }
 0x10b   :  { %5895 = vst [vmem:[#allocation17_spill] sm:$0xff] %v3068_v34 }
 0x10c   :  { %v2482_v36 = vpop.f32.mrf.mxu0  ;;  %v2558_v37 = vpop.f32.mrf.mxu1 }
 0x10d   :  { %v899_v36 = vsel %vm895_vm2, %v824_v16, 0.0  ;;  %v826_v37 = vmul.f32 %v3117_v17, %v3028_v58 }
 0x10e   :  { %v3072_v38 = vpop.f32.mrf.mxu0  ;;  %v3074_v39 = vpop.f32.mrf.mxu1 }
 0x10f   :  { %5896 = vst [vmem:[#allocation18_spill] sm:$0xff] %v3072_v38  ;;  %5897 = vst [vmem:[#allocation19_spill] sm:$0xff] %v3074_v39  ;;  %v903_v16 = vsel %vm895_vm2, %v826_v37, 0.0  ;;  %v3170_v37 = vld [vmem:[%s5695_s2 + $0x48] sm:$0xff] }
 0x110   :  { %v2483_v40 = vpop.f32.mrf.mxu0  ;;  %v2559_v41 = vpop.f32.mrf.mxu1  ;;  %5909 = vst [vmem:[#allocation31_spill] sm:$0xff] %v3170_v37 }
 0x111   :  { %v898_v40 = vadd.f32 %v897_v24, %v896_v33  ;;  %v3138_v41 = vld [vmem:[%s5695_s2 + $0x30] sm:$0xff] }
 0x112   :  { %v3076_v44 = vpop.f32.mrf.mxu0  ;;  %v3078_v45 = vpop.f32.mrf.mxu1  ;;  %5904 = vst [vmem:[#allocation26_spill] sm:$0xff] %v3138_v41  ;;  %v828_v24 = vmul.f32 %v3138_v41, %v3036_v2 }
 0x113   :  { %5898 = vst [vmem:[#allocation20_spill] sm:$0xff] %v3076_v44  ;;  %v900_v5 = vadd.f32 %v899_v36, %v898_v40 }
 0x114   :  { %v2486_v48 = vpop.f32.mrf.mxu0  ;;  %v2562_v49 = vpop.f32.mrf.mxu1 }
 0x116   :  { %v3080_v52 = vpop.f32.mrf.mxu0  ;;  %v3082_v53 = vpop.f32.mrf.mxu1 }
 0x117   :  { %5899 = vst [vmem:[#allocation21_spill] sm:$0xff] %v3080_v52 }
 0x118   :  { %v2487_v57 = vpop.f32.mrf.mxu0  ;;  %v2563_v60 = vpop.f32.mrf.mxu1 }
 0x119   :  { %v901_v57 = vsel %vm895_vm2, %v825_v25, 0.0  ;;  %v827_v60 = vmul.f32 %v3129_v28, %v3032_v62  ;;  %v3158_v25 = vld [vmem:[%s5695_s2 + $0x40] sm:$0xff] }
 0x11a   :  { %v3099_v1 = vpop.f32.mrf.mxu0  ;;  %v3101_v4 = vpop.f32.mrf.mxu1  ;;  %5907 = vst [vmem:[#allocation29_spill] sm:$0xff] %v3158_v25  ;;  %v830_v41 = vmul.f32 %v3158_v25, %v3044_v10 }
 0x11b   :  { %5900 = vst [vmem:[#allocation22_spill] sm:$0xff] %v3099_v1  ;;  %v905_v36 = vsel %vm895_vm2, %v827_v60, 0.0  ;;  %v3178_v60 = vld [vmem:[%s5695_s2 + $0x50] sm:$0xff] }
 0x11c   :  { %v2490_v9 = vpop.f32.mrf.mxu0  ;;  %v2566_v12 = vpop.f32.mrf.mxu1  ;;  %5910 = vst [vmem:[#allocation32_spill] sm:$0xff] %v3178_v60  ;;  %v911_v25 = vsel %vm895_vm2, %v830_v41, 0.0  ;;  %v832_v10 = vmul.f32 %v3178_v60, %v3052_v18  ;;  %v3210_v41 = vld [vmem:[%s5695_s2 + $0x68] sm:$0xff] }
 0x11d   :  { %v3150_v9 = vld [vmem:[%s5695_s2 + $0x38] sm:$0xff]  ;;  %5915 = vst [vmem:[#allocation37_spill] sm:$0xff] %v3210_v41 }
 0x11e   :  { %v3119_v20 = vpop.f32.mrf.mxu0  ;;  %v3121_v21 = vpop.f32.mrf.mxu1  ;;  %5906 = vst [vmem:[#allocation28_spill] sm:$0xff] %v3150_v9  ;;  %v829_v40 = vmul.f32 %v3150_v9, %v3040_v6  ;;  %v915_v60 = vsel %vm895_vm2, %v832_v10, 0.0  ;;  %v3230_v10 = vld [vmem:[%s5695_s2 + $0x78] sm:$0xff] }
 0x11f   :  { %5902 = vst [vmem:[#allocation24_spill] sm:$0xff] %v3119_v20  ;;  %5918 = vst [vmem:[#allocation40_spill] sm:$0xff] %v3230_v10 }
 0x120   :  { %v2491_v29 = vpop.f32.mrf.mxu0  ;;  %v2567_v32 = vpop.f32.mrf.mxu1 }
 0x121   :  { %v902_v29 = vadd.f32 %v901_v57, %v900_v5 }
 0x122   :  { %v3140_v48 = vpop.f32.mrf.mxu0  ;;  %v3142_v49 = vpop.f32.mrf.mxu1 }
 0x123   :  { %5905 = vst [vmem:[#allocation27_spill] sm:$0xff] %v3140_v48 }
 0x124   :  { %v2494_v12 = vpop.f32.mrf.mxu0  ;;  %v2570_v13 = vpop.f32.mrf.mxu1 }
 0x125   :  { %v904_v12 = vadd.f32 %v903_v16, %v902_v29  ;;  %v907_v13 = vsel %vm895_vm2, %v828_v24, 0.0  ;;  %v909_v29 = vsel %vm895_vm2, %v829_v40, 0.0  ;;  %v3190_v24 = vld [vmem:[%s5695_s2 + $0x58] sm:$0xff]  ;;  %v3198_v40 = vld [vmem:[%s5695_s2 + $0x60] sm:$0xff] }
 0x126   :  { %v3160_v32 = vpop.f32.mrf.mxu0  ;;  %v3162_v33 = vpop.f32.mrf.mxu1  ;;  %5912 = vst [vmem:[#allocation34_spill] sm:$0xff] %v3190_v24  ;;  %5913 = vst [vmem:[#allocation35_spill] sm:$0xff] %v3198_v40  ;;  %v834_v18 = vmul.f32 %v3198_v40, %v3060_v26 }
 0x127   :  { %5908 = vst [vmem:[#allocation30_spill] sm:$0xff] %v3160_v32  ;;  %v906_v28 = vadd.f32 %v905_v36, %v904_v12 }
 0x128   :  { %v2495_v57 = vpop.f32.mrf.mxu0  ;;  %v2571_v5 = vpop.f32.mrf.mxu1  ;;  %v919_v40 = vsel %vm895_vm2, %v834_v18, 0.0  ;;  %v3250_v18 = vld [vmem:[%s5695_s2 + $0x88] sm:$0xff] }
 0x129   :  { %v831_v57 = vmul.f32 %v3170_v37, %v3048_v14  ;;  %v908_v5 = vadd.f32 %v907_v13, %v906_v28  ;;  %5921 = vst [vmem:[#allocation43_spill] sm:$0xff] %v3250_v18 }
 0x12a   :  { %v3180_v9 = vpop.f32.mrf.mxu0  ;;  %v3182_v16 = vpop.f32.mrf.mxu1 }
 0x12b   :  { %5911 = vst [vmem:[#allocation33_spill] sm:$0xff] %v3180_v9  ;;  %v910_v6 = vadd.f32 %v909_v29, %v908_v5  ;;  %v913_v13 = vsel %vm895_vm2, %v831_v57, 0.0  ;;  %v3218_v57 = vld [vmem:[%s5695_s2 + $0x70] sm:$0xff] }
 0x12c   :  { %v2498_v36 = vpop.f32.mrf.mxu0  ;;  %v2574_v12 = vpop.f32.mrf.mxu1  ;;  %5916 = vst [vmem:[#allocation38_spill] sm:$0xff] %v3218_v57  ;;  %v836_v26 = vmul.f32 %v3218_v57, %v3068_v34 }
 0x12d   :  { %v833_v36 = vmul.f32 %v3190_v24, %v3056_v22  ;;  %v912_v12 = vadd.f32 %v911_v25, %v910_v6 }
 0x12e   :  { %v3200_v37 = vpop.f32.mrf.mxu0  ;;  %v3202_v28 = vpop.f32.mrf.mxu1  ;;  %v923_v57 = vsel %vm895_vm2, %v836_v26, 0.0  ;;  %v3270_v26 = vld [vmem:[%s5695_s2 + $0x98] sm:$0xff] }
 0x12f   :  { %5914 = vst [vmem:[#allocation36_spill] sm:$0xff] %v3200_v37  ;;  %v914_v14 = vadd.f32 %v913_v13, %v912_v12  ;;  %v917_v25 = vsel %vm895_vm2, %v833_v36, 0.0  ;;  %v3238_v36 = vld [vmem:[%s5695_s2 + $0x80] sm:$0xff]  ;;  %5925 = vst [vmem:[#allocation47_spill] sm:$0xff] %v3270_v26 }
 0x130   :  { %v2499_v29 = vpop.f32.mrf.mxu0  ;;  %v2575_v5 = vpop.f32.mrf.mxu1  ;;  %5919 = vst [vmem:[#allocation41_spill] sm:$0xff] %v3238_v36  ;;  %v838_v34 = vmul.f32 %v3238_v36, %v3076_v44 }
 0x131   :  { %v835_v29 = vmul.f32 %v3210_v41, %v3064_v30  ;;  %v916_v5 = vadd.f32 %v915_v60, %v914_v14 }
 0x132   :  { %v3220_v24 = vpop.f32.mrf.mxu0  ;;  %v3222_v6 = vpop.f32.mrf.mxu1  ;;  %v927_v36 = vsel %vm895_vm2, %v838_v34, 0.0  ;;  %v3290_v34 = vld [vmem:[%s5695_s2 + $0xa8] sm:$0xff] }
 0x133   :  { %5917 = vst [vmem:[#allocation39_spill] sm:$0xff] %v3220_v24  ;;  %v918_v22 = vadd.f32 %v917_v25, %v916_v5  ;;  %v921_v60 = vsel %vm895_vm2, %v835_v29, 0.0  ;;  %v3258_v29 = vld [vmem:[%s5695_s2 + $0x90] sm:$0xff]  ;;  %5929 = vst [vmem:[#allocation51_spill] sm:$0xff] %v3290_v34 }
 0x134   :  { %v2502_v13 = vpop.f32.mrf.mxu0  ;;  %v2578_v12 = vpop.f32.mrf.mxu1  ;;  %5922 = vst [vmem:[#allocation44_spill] sm:$0xff] %v3258_v29  ;;  %v840_v44 = vmul.f32 %v3258_v29, %v3099_v1 }
 0x135   :  { %v837_v13 = vmul.f32 %v3230_v10, %v3072_v38  ;;  %v920_v12 = vadd.f32 %v919_v40, %v918_v22 }
 0x136   :  { %v3240_v41 = vpop.f32.mrf.mxu0  ;;  %v3242_v14 = vpop.f32.mrf.mxu1  ;;  %v931_v29 = vsel %vm895_vm2, %v840_v44, 0.0  ;;  %v3310_v44 = vld [vmem:[%s5695_s2 + $0xb8] sm:$0xff] }
 0x137   :  { %5920 = vst [vmem:[#allocation42_spill] sm:$0xff] %v3240_v41  ;;  %v922_v30 = vadd.f32 %v921_v60, %v920_v12  ;;  %v925_v40 = vsel %vm895_vm2, %v837_v13, 0.0  ;;  %v3278_v13 = vld [vmem:[%s5695_s2 + $0xa0] sm:$0xff]  ;;  %5933 = vst [vmem:[#allocation55_spill] sm:$0xff] %v3310_v44 }
 0x138   :  { %v2503_v25 = vpop.f32.mrf.mxu0  ;;  %v2579_v5 = vpop.f32.mrf.mxu1  ;;  %5926 = vst [vmem:[#allocation48_spill] sm:$0xff] %v3278_v13  ;;  %v842_v1 = vmul.f32 %v3278_v13, %v3140_v48 }
 0x139   :  { %v839_v25 = vmul.f32 %v3250_v18, %v3080_v52  ;;  %v924_v5 = vadd.f32 %v923_v57, %v922_v30 }
 0x13a   :  { %v3260_v10 = vpop.f32.mrf.mxu0  ;;  %v3262_v22 = vpop.f32.mrf.mxu1  ;;  %v935_v13 = vsel %vm895_vm2, %v842_v1, 0.0  ;;  %v3330_v1 = vld [vmem:[%s5695_s2 + $0xc8] sm:$0xff] }
 0x13b   :  { %5923 = vst [vmem:[#allocation45_spill] sm:$0xff] %v3260_v10  ;;  %5924 = vst [vmem:[#allocation46_spill] sm:$0xff] %v3262_v22  ;;  %v926_v38 = vadd.f32 %v925_v40, %v924_v5  ;;  %v929_v57 = vsel %vm895_vm2, %v839_v25, 0.0  ;;  %v3298_v25 = vld [vmem:[%s5695_s2 + $0xb0] sm:$0xff] }
 0x13c   :  { %v2506_v60 = vpop.f32.mrf.mxu0  ;;  %v2582_v12 = vpop.f32.mrf.mxu1  ;;  %5930 = vst [vmem:[#allocation52_spill] sm:$0xff] %v3298_v25  ;;  %v844_v48 = vmul.f32 %v3298_v25, %v3180_v9  ;;  %5937 = vst [vmem:[#allocation59_spill] sm:$0xff] %v3330_v1 }
 0x13d   :  { %v841_v60 = vmul.f32 %v3270_v26, %v3119_v20  ;;  %v928_v12 = vadd.f32 %v927_v36, %v926_v38 }
 0x13e   :  { %v3280_v18 = vpop.f32.mrf.mxu0  ;;  %v3282_v30 = vpop.f32.mrf.mxu1  ;;  %v939_v25 = vsel %vm895_vm2, %v844_v48, 0.0  ;;  %v3350_v48 = vld [vmem:[%s5695_s2 + $0xd8] sm:$0xff] }
 0x13f   :  { %5927 = vst [vmem:[#allocation49_spill] sm:$0xff] %v3280_v18  ;;  %5928 = vst [vmem:[#allocation50_spill] sm:$0xff] %v3282_v30  ;;  %v930_v52 = vadd.f32 %v929_v57, %v928_v12  ;;  %v933_v36 = vsel %vm895_vm2, %v841_v60, 0.0  ;;  %v3318_v60 = vld [vmem:[%s5695_s2 + $0xc0] sm:$0xff] }
 0x140   :  { %v2507_v40 = vpop.f32.mrf.mxu0  ;;  %v2583_v5 = vpop.f32.mrf.mxu1  ;;  %5934 = vst [vmem:[#allocation56_spill] sm:$0xff] %v3318_v60  ;;  %v846_v9 = vmul.f32 %v3318_v60, %v3220_v24  ;;  %5941 = vst [vmem:[#allocation63_spill] sm:$0xff] %v3350_v48 }
 0x141   :  { %v843_v40 = vmul.f32 %v3290_v34, %v3160_v32  ;;  %v932_v5 = vadd.f32 %v931_v29, %v930_v52 }
 0x142   :  { %v3300_v26 = vpop.f32.mrf.mxu0  ;;  %v3302_v38 = vpop.f32.mrf.mxu1  ;;  %v943_v60 = vsel %vm895_vm2, %v846_v9, 0.0  ;;  %v3370_v9 = vld [vmem:[%s5695_s2 + $0xe8] sm:$0xff] }
 0x143   :  { %5931 = vst [vmem:[#allocation53_spill] sm:$0xff] %v3300_v26  ;;  %5932 = vst [vmem:[#allocation54_spill] sm:$0xff] %v3302_v38  ;;  %v934_v20 = vadd.f32 %v933_v36, %v932_v5  ;;  %v937_v29 = vsel %vm895_vm2, %v843_v40, 0.0  ;;  %v3338_v40 = vld [vmem:[%s5695_s2 + $0xd0] sm:$0xff] }
 0x144   :  { %v2510_v57 = vpop.f32.mrf.mxu0  ;;  %v2586_v12 = vpop.f32.mrf.mxu1  ;;  %5938 = vst [vmem:[#allocation60_spill] sm:$0xff] %v3338_v40  ;;  %v848_v24 = vmul.f32 %v3338_v40, %v3260_v10  ;;  %5945 = vst [vmem:[#allocation67_spill] sm:$0xff] %v3370_v9 }
 0x145   :  { %v845_v57 = vmul.f32 %v3310_v44, %v3200_v37  ;;  %v936_v12 = vadd.f32 %v935_v13, %v934_v20 }
 0x146   :  { %v3320_v34 = vpop.f32.mrf.mxu0  ;;  %v3322_v52 = vpop.f32.mrf.mxu1  ;;  %v947_v40 = vsel %vm895_vm2, %v848_v24, 0.0  ;;  %v3390_v24 = vld [vmem:[%s5695_s2 + $0xf8] sm:$0xff] }
 0x147   :  { %5935 = vst [vmem:[#allocation57_spill] sm:$0xff] %v3320_v34  ;;  %5936 = vst [vmem:[#allocation58_spill] sm:$0xff] %v3322_v52  ;;  %v938_v32 = vadd.f32 %v937_v29, %v936_v12  ;;  %v941_v13 = vsel %vm895_vm2, %v845_v57, 0.0  ;;  %v3358_v57 = vld [vmem:[%s5695_s2 + $0xe0] sm:$0xff] }
 0x148   :  { %v2511_v36 = vpop.f32.mrf.mxu0  ;;  %v2587_v5 = vpop.f32.mrf.mxu1  ;;  %5942 = vst [vmem:[#allocation64_spill] sm:$0xff] %v3358_v57  ;;  %v850_v10 = vmul.f32 %v3358_v57, %v3300_v26  ;;  %5949 = vst [vmem:[#allocation71_spill] sm:$0xff] %v3390_v24 }
 0x149   :  { %v847_v36 = vmul.f32 %v3330_v1, %v3240_v41  ;;  %v940_v5 = vadd.f32 %v939_v25, %v938_v32 }
 0x14a   :  { %v3340_v44 = vpop.f32.mrf.mxu0  ;;  %v3342_v20 = vpop.f32.mrf.mxu1  ;;  %v951_v57 = vsel %vm895_vm2, %v850_v10, 0.0  ;;  %v3410_v10 = vld [vmem:[%s5695_s2 + $0x108] sm:$0xff] }
 0x14b   :  { %5939 = vst [vmem:[#allocation61_spill] sm:$0xff] %v3340_v44  ;;  %5940 = vst [vmem:[#allocation62_spill] sm:$0xff] %v3342_v20  ;;  %v942_v37 = vadd.f32 %v941_v13, %v940_v5  ;;  %v945_v25 = vsel %vm895_vm2, %v847_v36, 0.0  ;;  %v3378_v36 = vld [vmem:[%s5695_s2 + $0xf0] sm:$0xff] }
 0x14c   :  { %v2514_v29 = vpop.f32.mrf.mxu0  ;;  %v2590_v12 = vpop.f32.mrf.mxu1  ;;  %5946 = vst [vmem:[#allocation68_spill] sm:$0xff] %v3378_v36  ;;  %v852_v26 = vmul.f32 %v3378_v36, %v3340_v44  ;;  %5952 = vst [vmem:[#allocation74_spill] sm:$0xff] %v3410_v10 }
 0x14d   :  { %v849_v29 = vmul.f32 %v3350_v48, %v3280_v18  ;;  %v944_v12 = vadd.f32 %v943_v60, %v942_v37 }
 0x14e   :  { %v3360_v1 = vpop.f32.mrf.mxu0  ;;  %v3362_v32 = vpop.f32.mrf.mxu1  ;;  %v955_v36 = vsel %vm895_vm2, %v852_v26, 0.0 }
 0x14f   :  { %5943 = vst [vmem:[#allocation65_spill] sm:$0xff] %v3360_v1  ;;  %5944 = vst [vmem:[#allocation66_spill] sm:$0xff] %v3362_v32  ;;  %v946_v41 = vadd.f32 %v945_v25, %v944_v12  ;;  %v949_v60 = vsel %vm895_vm2, %v849_v29, 0.0  ;;  %v3398_v29 = vld [vmem:[%s5695_s2 + $0x100] sm:$0xff] }
 0x150   :  { %v2515_v13 = vpop.f32.mrf.mxu0  ;;  %v2591_v5 = vpop.f32.mrf.mxu1  ;;  %5950 = vst [vmem:[#allocation72_spill] sm:$0xff] %v3398_v29 }
 0x151   :  { %v851_v13 = vmul.f32 %v3370_v9, %v3320_v34  ;;  %v948_v5 = vadd.f32 %v947_v40, %v946_v41 }
 0x152   :  { %v3380_v48 = vpop.f32.mrf.mxu0  ;;  %v3382_v37 = vpop.f32.mrf.mxu1 }
 0x153   :  { %5947 = vst [vmem:[#allocation69_spill] sm:$0xff] %v3380_v48  ;;  %5948 = vst [vmem:[#allocation70_spill] sm:$0xff] %v3382_v37  ;;  %v950_v18 = vadd.f32 %v949_v60, %v948_v5  ;;  %v953_v40 = vsel %vm895_vm2, %v851_v13, 0.0  ;;  %v854_v44 = vmul.f32 %v3398_v29, %v3380_v48  ;;  %v3420_v13 = vld [vmem:[%s5695_s2 + $0x110] sm:$0xff] }
 0x154   :  { %v2518_v25 = vpop.f32.mrf.mxu0  ;;  %v2594_v12 = vpop.f32.mrf.mxu1  ;;  %5953 = vst [vmem:[#allocation75_spill] sm:$0xff] %v3420_v13 }
 0x155   :  { %v853_v25 = vmul.f32 %v3390_v24, %v3360_v1  ;;  %v952_v12 = vadd.f32 %v951_v57, %v950_v18  ;;  %v959_v29 = vsel %vm895_vm2, %v854_v44, 0.0 }
 0x156   :  { %v3400_v9 = vpop.f32.mrf.mxu0  ;;  %v3402_v41 = vpop.f32.mrf.mxu1 }
 0x157   :  { %5951 = vst [vmem:[#allocation73_spill] sm:$0xff] %v3402_v41  ;;  %v954_v34 = vadd.f32 %v953_v40, %v952_v12  ;;  %v957_v57 = vsel %vm895_vm2, %v853_v25, 0.0  ;;  %v3430_v40 = vld [vmem:[%s5695_s2 + $0x118] sm:$0xff] }
 0x158   :  { %v2519_v60 = vpop.f32.mrf.mxu0  ;;  %v2595_v5 = vpop.f32.mrf.mxu1 }
 0x159   :  { %v855_v60 = vmul.f32 %v3410_v10, %v3400_v9  ;;  %v956_v5 = vadd.f32 %v955_v36, %v954_v34 }
 0x15a   :  { %v3415_v17 = vpop.f32.mrf.mxu0  ;;  %v3422_v18 = vpop.f32.mrf.mxu1 }
 0x15b   :  { %v856_v24 = vmul.f32 %v3420_v13, %v3415_v17  ;;  %v958_v48 = vadd.f32 %v957_v57, %v956_v5  ;;  %v961_v2 = vsel %vm895_vm2, %v855_v60, 0.0 }
 0x15c   :  { %v2522_v26 = vpop.f32.mrf.mxu0  ;;  %v2598_v12 = vpop.f32.mrf.mxu1 }
 0x15d   :  { %v960_v36 = vadd.f32 %v959_v29, %v958_v48  ;;  %v3443_v12 = vld [vmem:[%s5695_s2 + $0x120] sm:$0xff]  ;;  %v963_v10 = vsel %vm895_vm2, %v856_v24, 0.0  ;;  %v3454_v48 = vld [vmem:[%s5695_s2 + $0x130] sm:$0xff]  ;;  %v3465_v24 = vld [vmem:[%s5695_s2 + $0x138] sm:$0xff] }
 0x15e   :  { %v3435_v1 = vpop.f32.mrf.mxu0  ;;  %v746_v25 = vpop.f32.mrf.mxu1  ;;  %5954 = vst [vmem:[#allocation76_spill] sm:$0xff] %v3443_v12  ;;  %5955 = vst [vmem:[#allocation77_spill] sm:$0xff] %v3454_v48 }
 0x15f   :  { %v857_v34 = vmul.f32 %v3430_v40, %v3435_v1  ;;  %v962_v13 = vadd.f32 %v961_v2, %v960_v36 }
 0x160   :  { %v2523_v26 = vpop.f32.mrf.mxu0  ;;  %v2599_v44 = vpop.f32.mrf.mxu1 }
 0x161   :  { %v965_v5 = vsel %vm895_vm2, %v857_v34, 0.0  ;;  %v964_v29 = vadd.f32 %v963_v10, %v962_v13  ;;  %v3459_v26 = vld [vmem:[%s5695_s2 + $0x128] sm:$0xff]  ;;  %v860_v44 = vmul.f32 %v3454_v48, %v3014_v43  ;;  %v3476_v13 = vld [vmem:[%s5695_s2 + $0x140] sm:$0xff] }
 0x162   :  { %v3446_v57 = vpop.f32.mrf.mxu0  ;;  %5956 = vst [vmem:[#allocation78_spill] sm:$0xff] %v3459_v26  ;;  %5957 = vst [vmem:[#allocation79_spill] sm:$0xff] %v3476_v13  ;;  %v862_v43 = vmul.f32 %v3476_v13, %v3022_v51 }
 0x163   :  { %v858_v60 = vmul.f32 %v3443_v12, %v3446_v57  ;;  %v966_v34 = vadd.f32 %v965_v5, %v964_v29  ;;  %v861_v12 = vmul.f32 %v3465_v24, %v3018_v47  ;;  %v3484_v29 = vld [vmem:[%s5695_s2 + $0x148] sm:$0xff] }
 0x164   :  { %v2526_v25 = vpop.f32.mrf.mxu0  ;;  %5958 = vst [vmem:[#allocation80_spill] sm:$0xff] %v3484_v29 }
 0x165   :  { %v967_v2 = vsel %vm895_vm2, %v858_v60, 0.0 }
 0x166   :  { %v3467_v36 = vpop.f32.mrf.mxu0  ;;  %v968_v60 = vadd.f32 %v967_v2, %v966_v34  ;;  %v3492_v2 = vld [vmem:[%s5695_s2 + $0x150] sm:$0xff] }
 0x167   :  { %v859_v10 = vmul.f32 %v3459_v26, %v3467_v36  ;;  %v971_v26 = vsel %vm895_vm2, %v860_v44, 0.0  ;;  %5959 = vst [vmem:[#allocation81_spill] sm:$0xff] %v3492_v2  ;;  %v864_v13 = vmul.f32 %v3492_v2, %v3030_v59 }
 0x168   :  { %v2527_v25 = vpop.f32.mrf.mxu0 }
 0x169   :  { %v969_v5 = vsel %vm895_vm2, %v859_v10, 0.0  ;;  %v973_v25 = vsel %vm895_vm2, %v861_v12, 0.0  ;;  %v863_v10 = vmul.f32 %v3484_v29, %v3026_v55 }
 0x16a   :  { %v970_v48 = vadd.f32 %v969_v5, %v968_v60  ;;  %v3500_v60 = vld [vmem:[%s5695_s2 + $0x158] sm:$0xff]  ;;  %v975_v5 = vsel %vm895_vm2, %v862_v43, 0.0 }
 0x16b   :  { %5960 = vst [vmem:[#allocation82_spill] sm:$0xff] %v3500_v60  ;;  %v865_v29 = vmul.f32 %v3500_v60, %v3034_v63 }
 0x16c   :  { %v972_v34 = vadd.f32 %v971_v26, %v970_v48  ;;  %v3508_v48 = vld [vmem:[%s5695_s2 + $0x160] sm:$0xff]  ;;  %v977_v26 = vsel %vm895_vm2, %v863_v10, 0.0 }
 0x16d   :  { %5961 = vst [vmem:[#allocation83_spill] sm:$0xff] %v3508_v48  ;;  %v866_v2 = vmul.f32 %v3508_v48, %v3038_v3 }
 0x16e   :  { %v974_v44 = vadd.f32 %v973_v25, %v972_v34  ;;  %v3516_v34 = vld [vmem:[%s5695_s2 + $0x168] sm:$0xff]  ;;  %v979_v25 = vsel %vm895_vm2, %v864_v13, 0.0 }
 0x16f   :  { %5962 = vst [vmem:[#allocation84_spill] sm:$0xff] %v3516_v34  ;;  %v867_v60 = vmul.f32 %v3516_v34, %v3042_v7 }
 0x170   :  { %v976_v12 = vadd.f32 %v975_v5, %v974_v44  ;;  %v3524_v44 = vld [vmem:[%s5695_s2 + $0x170] sm:$0xff]  ;;  %v981_v5 = vsel %vm895_vm2, %v865_v29, 0.0 }
 0x171   :  { %5963 = vst [vmem:[#allocation85_spill] sm:$0xff] %v3524_v44  ;;  %v868_v48 = vmul.f32 %v3524_v44, %v3046_v11 }
 0x172   :  { %v978_v43 = vadd.f32 %v977_v26, %v976_v12  ;;  %v3532_v12 = vld [vmem:[%s5695_s2 + $0x178] sm:$0xff]  ;;  %v983_v26 = vsel %vm895_vm2, %v866_v2, 0.0 }
 0x173   :  { %5964 = vst [vmem:[#allocation86_spill] sm:$0xff] %v3532_v12  ;;  %v869_v34 = vmul.f32 %v3532_v12, %v3050_v15 }
 0x174   :  { %v980_v10 = vadd.f32 %v979_v25, %v978_v43  ;;  %v3540_v43 = vld [vmem:[%s5695_s2 + $0x180] sm:$0xff]  ;;  %v985_v25 = vsel %vm895_vm2, %v867_v60, 0.0 }
 0x175   :  { %5965 = vst [vmem:[#allocation87_spill] sm:$0xff] %v3540_v43  ;;  %v870_v44 = vmul.f32 %v3540_v43, %v3054_v19 }
 0x176   :  { %v982_v13 = vadd.f32 %v981_v5, %v980_v10  ;;  %v3548_v10 = vld [vmem:[%s5695_s2 + $0x188] sm:$0xff]  ;;  %v987_v5 = vsel %vm895_vm2, %v868_v48, 0.0 }
 0x177   :  { %5966 = vst [vmem:[#allocation88_spill] sm:$0xff] %v3548_v10  ;;  %v871_v12 = vmul.f32 %v3548_v10, %v3058_v23 }
 0x178   :  { %v984_v29 = vadd.f32 %v983_v26, %v982_v13  ;;  %v3556_v13 = vld [vmem:[%s5695_s2 + $0x190] sm:$0xff]  ;;  %v989_v26 = vsel %vm895_vm2, %v869_v34, 0.0 }
 0x179   :  { %5967 = vst [vmem:[#allocation89_spill] sm:$0xff] %v3556_v13  ;;  %v872_v43 = vmul.f32 %v3556_v13, %v3062_v27 }
 0x17a   :  { %v986_v2 = vadd.f32 %v985_v25, %v984_v29  ;;  %v3564_v29 = vld [vmem:[%s5695_s2 + $0x198] sm:$0xff]  ;;  %v991_v25 = vsel %vm895_vm2, %v870_v44, 0.0 }
 0x17b   :  { %5968 = vst [vmem:[#allocation90_spill] sm:$0xff] %v3564_v29  ;;  %v873_v10 = vmul.f32 %v3564_v29, %v3066_v31 }
 0x17c   :  { %v988_v60 = vadd.f32 %v987_v5, %v986_v2  ;;  %v3572_v2 = vld [vmem:[%s5695_s2 + $0x1a0] sm:$0xff]  ;;  %v993_v5 = vsel %vm895_vm2, %v871_v12, 0.0 }
 0x17d   :  { %5969 = vst [vmem:[#allocation91_spill] sm:$0xff] %v3572_v2  ;;  %v874_v13 = vmul.f32 %v3572_v2, %v3070_v35 }
 0x17e   :  { %v990_v48 = vadd.f32 %v989_v26, %v988_v60  ;;  %v3580_v60 = vld [vmem:[%s5695_s2 + $0x1a8] sm:$0xff]  ;;  %v995_v26 = vsel %vm895_vm2, %v872_v43, 0.0 }
 0x17f   :  { %5970 = vst [vmem:[#allocation92_spill] sm:$0xff] %v3580_v60  ;;  %v875_v29 = vmul.f32 %v3580_v60, %v3074_v39 }
 0x180   :  { %v992_v34 = vadd.f32 %v991_v25, %v990_v48  ;;  %v3588_v48 = vld [vmem:[%s5695_s2 + $0x1b0] sm:$0xff]  ;;  %v997_v25 = vsel %vm895_vm2, %v873_v10, 0.0 }
 0x181   :  { %5971 = vst [vmem:[#allocation93_spill] sm:$0xff] %v3588_v48  ;;  %v876_v2 = vmul.f32 %v3588_v48, %v3078_v45 }
 0x182   :  { %v994_v44 = vadd.f32 %v993_v5, %v992_v34  ;;  %v3596_v34 = vld [vmem:[%s5695_s2 + $0x1b8] sm:$0xff]  ;;  %v999_v5 = vsel %vm895_vm2, %v874_v13, 0.0 }
 0x183   :  { %v877_v60 = vmul.f32 %v3596_v34, %v3082_v53  ;;  %v1003_v13 = vsel %vm895_vm2, %v876_v2, 0.0 }
 0x184   :  { %v996_v12 = vadd.f32 %v995_v26, %v994_v44  ;;  %v3604_v44 = vld [vmem:[%s5695_s2 + $0x1c0] sm:$0xff]  ;;  %v1001_v26 = vsel %vm895_vm2, %v875_v29, 0.0 }
 0x185   :  { %5972 = vst [vmem:[#allocation94_spill] sm:$0xff] %v3604_v44  ;;  %v1005_v29 = vsel %vm895_vm2, %v877_v60, 0.0 }
 0x186   :  { %v998_v43 = vadd.f32 %v997_v25, %v996_v12  ;;  %v3612_v12 = vld [vmem:[%s5695_s2 + $0x1c8] sm:$0xff]  ;;  %v878_v25 = vmul.f32 %v3604_v44, %v3101_v4  ;;  %v3636_v44 = vld [vmem:[%s5695_s2 + $0x1e0] sm:$0xff] }
 0x187   :  { %5973 = vst [vmem:[#allocation95_spill] sm:$0xff] %v3612_v12  ;;  %5976 = vst [vmem:[#allocation98_spill] sm:$0xff] %v3636_v44 }
 0x188   :  { %v1000_v10 = vadd.f32 %v999_v5, %v998_v43  ;;  %v3620_v43 = vld [vmem:[%s5695_s2 + $0x1d0] sm:$0xff]  ;;  %v879_v5 = vmul.f32 %v3612_v12, %v3121_v21  ;;  %v1007_v2 = vsel %vm895_vm2, %v878_v25, 0.0  ;;  %v3644_v12 = vld [vmem:[%s5695_s2 + $0x1e8] sm:$0xff] }
 0x189   :  { %5974 = vst [vmem:[#allocation96_spill] sm:$0xff] %v3620_v43  ;;  %5977 = vst [vmem:[#allocation99_spill] sm:$0xff] %v3644_v12 }
 0x18a   :  { %v1002_v39 = vadd.f32 %v1001_v26, %v1000_v10  ;;  %v3628_v26 = vld [vmem:[%s5695_s2 + $0x1d8] sm:$0xff]  ;;  %v1009_v60 = vsel %vm895_vm2, %v879_v5, 0.0 }
 0x18b   :  { %5975 = vst [vmem:[#allocation97_spill] sm:$0xff] %v3628_v26 }
 0x18c   :  { %v1004_v48 = vadd.f32 %v1003_v13, %v1002_v39  ;;  %v880_v39 = vmul.f32 %v3620_v43, %v3142_v49  ;;  %v3652_v43 = vld [vmem:[%s5695_s2 + $0x1f0] sm:$0xff] }
 0x18d   :  { %5978 = vst [vmem:[#allocation100_spill] sm:$0xff] %v3652_v43 }
 0x18e   :  { %v1006_v10 = vadd.f32 %v1005_v29, %v1004_v48  ;;  %v881_v48 = vmul.f32 %v3628_v26, %v3162_v33  ;;  %v1011_v25 = vsel %vm895_vm2, %v880_v39, 0.0  ;;  %v3660_v26 = vld [vmem:[%s5695_s2 + $0x1f8] sm:$0xff] }
 0x18f   :  { %5979 = vst [vmem:[#allocation101_spill] sm:$0xff] %v3660_v26 }
 0x190   :  { %v1008_v13 = vadd.f32 %v1007_v2, %v1006_v10  ;;  %v882_v10 = vmul.f32 %v3636_v44, %v3182_v16  ;;  %v1013_v5 = vsel %vm895_vm2, %v881_v48, 0.0  ;;  %v3668_v44 = vld [vmem:[%s5695_s2 + $0x200] sm:$0xff] }
 0x191   :  { %5980 = vst [vmem:[#allocation102_spill] sm:$0xff] %v3668_v44 }
 0x192   :  { %v1010_v29 = vadd.f32 %v1009_v60, %v1008_v13  ;;  %v883_v13 = vmul.f32 %v3644_v12, %v3202_v28  ;;  %v1015_v39 = vsel %vm895_vm2, %v882_v10, 0.0  ;;  %v3676_v12 = vld [vmem:[%s5695_s2 + $0x208] sm:$0xff] }
 0x193   :  { %5981 = vst [vmem:[#allocation103_spill] sm:$0xff] %v3676_v12 }
 0x194   :  { %v1012_v2 = vadd.f32 %v1011_v25, %v1010_v29  ;;  %v884_v29 = vmul.f32 %v3652_v43, %v3222_v6  ;;  %v1017_v48 = vsel %vm895_vm2, %v883_v13, 0.0  ;;  %v3684_v43 = vld [vmem:[%s5695_s2 + $0x210] sm:$0xff] }
 0x195   :  { %5982 = vst [vmem:[#allocation104_spill] sm:$0xff] %v3684_v43 }
 0x196   :  { %v1014_v60 = vadd.f32 %v1013_v5, %v1012_v2  ;;  %v885_v2 = vmul.f32 %v3660_v26, %v3242_v14  ;;  %v1019_v10 = vsel %vm895_vm2, %v884_v29, 0.0  ;;  %v3692_v26 = vld [vmem:[%s5695_s2 + $0x218] sm:$0xff] }
 0x197   :  { %5983 = vst [vmem:[#allocation105_spill] sm:$0xff] %v3692_v26 }
 0x198   :  { %v1016_v25 = vadd.f32 %v1015_v39, %v1014_v60  ;;  %v886_v60 = vmul.f32 %v3668_v44, %v3262_v22  ;;  %v1021_v13 = vsel %vm895_vm2, %v885_v2, 0.0  ;;  %v3700_v44 = vld [vmem:[%s5695_s2 + $0x220] sm:$0xff] }
 0x199   :  { %5984 = vst [vmem:[#allocation106_spill] sm:$0xff] %v3700_v44 }
 0x19a   :  { %v1018_v5 = vadd.f32 %v1017_v48, %v1016_v25  ;;  %v887_v25 = vmul.f32 %v3676_v12, %v3282_v30  ;;  %v1023_v29 = vsel %vm895_vm2, %v886_v60, 0.0  ;;  %v3708_v12 = vld [vmem:[%s5695_s2 + $0x228] sm:$0xff] }
 0x19b   :  { %5985 = vst [vmem:[#allocation107_spill] sm:$0xff] %v3708_v12 }
 0x19c   :  { %v1020_v39 = vadd.f32 %v1019_v10, %v1018_v5  ;;  %v888_v5 = vmul.f32 %v3684_v43, %v3302_v38  ;;  %v1025_v2 = vsel %vm895_vm2, %v887_v25, 0.0  ;;  %v3716_v43 = vld [vmem:[%s5695_s2 + $0x230] sm:$0xff] }
 0x19d   :  { %5986 = vst [vmem:[#allocation108_spill] sm:$0xff] %v3716_v43 }
 0x19e   :  { %v1022_v48 = vadd.f32 %v1021_v13, %v1020_v39  ;;  %v889_v39 = vmul.f32 %v3692_v26, %v3322_v52  ;;  %v1027_v60 = vsel %vm895_vm2, %v888_v5, 0.0  ;;  %v3724_v26 = vld [vmem:[%s5695_s2 + $0x238] sm:$0xff]  ;;  %v3729_v5 = vld [vmem:[%s5695_s2 + $0x240] sm:$0x3] }
 0x19f   :  { %5987 = vst [vmem:[#allocation109_spill] sm:$0xff] %v3724_v26 }
 0x1a0   :  { %v1024_v10 = vadd.f32 %v1023_v29, %v1022_v48  ;;  %v890_v48 = vmul.f32 %v3700_v44, %v3342_v20  ;;  %v1029_v25 = vsel %vm895_vm2, %v889_v39, 0.0 }
 0x1a2   :  { %v1026_v13 = vadd.f32 %v1025_v2, %v1024_v10  ;;  %v891_v10 = vmul.f32 %v3708_v12, %v3362_v32 }
 0x1a4   :  { %v1028_v29 = vadd.f32 %v1027_v60, %v1026_v13  ;;  %v1031_v13 = vsel %vm895_vm2, %v890_v48, 0.0  ;;  %v892_v60 = vmul.f32 %v3716_v43, %v3382_v37  ;;  %v1033_v44 = vsel %vm895_vm2, %v891_v10, 0.0 }
 0x1a6   :  { %v1030_v2 = vadd.f32 %v1029_v25, %v1028_v29  ;;  %v893_v29 = vmul.f32 %v3724_v26, %v3402_v41  ;;  %v894_v25 = vmul.f32 %v3729_v5, %v3422_v18  ;;  %v1035_v32 = vsel %vm895_vm2, %v892_v60, 0.0 }
 0x1a8   :  { %v1032_v39 = vadd.f32 %v1031_v13, %v1030_v2  ;;  %v1037_v52 = vsel %vm895_vm2, %v893_v29, 0.0  ;;  %v1040_v48 = vsel %vm1039_vm3, %v894_v25, 0.0 }
 0x1aa   :  { %v1034_v12 = vadd.f32 %v1033_v44, %v1032_v39 }
 0x1ac   :  { %v1036_v20 = vadd.f32 %v1035_v32, %v1034_v12 }
 0x1ae   :  { %v1038_v38 = vadd.f32 %v1037_v52, %v1036_v20 }
 0x1b0   :  { %v1041_v43 = vadd.f32 %v1040_v48, %v1038_v38 }
 0x1b2   :  { %v1042_v2 = vrot.slane %v1041_v43, 4 }
 0x1b4   :  { %v1043_v13 = vadd.f32 %v1042_v2, %v1041_v43 }
 0x1b6   :  { %v1044_v10 = vrot.slane %v1043_v13, 2 }
 0x1b8   :  { %v1045_v37 = vadd.f32 %v1044_v10, %v1043_v13 }
 0x1ba   :  { %v1046_v30 = vrot.slane %v1045_v37, 1 }
 0x1bc   :  { %v1047_v26 = vadd.f32 %v1046_v30, %v1045_v37  ;;  %v1078_v37 = vlaneseq }
 0x1be   :  { %1057 = vrot.lane.b32.xlu1 %v1047_v26, %s2734_s6  ;;  %1049 = vrot.lane.b32.xlu0 %v1047_v26, %s2735_s7 }
 0x1c2   :  { %1053 = vrot.lane.b32.xlu0 %v1047_v26, %s2736_s8 }
 0x230   :  { %v1050_v32 = vpop.permute.xlu0 %1049  ;;  %v1058_v38 = vpop.permute.xlu1 %1057 }
 0x231   :  { %v1052_v44 = vadd.f32 %v1050_v32, %v1047_v26  ;;  %v1079_v26 = vshrl.u32 %v1078_v37, 7 }
 0x233   :  { %v3756_v48 = vsub.s32 0, %v1079_v26 }
 0x234   :  { %v1054_v12 = vpop.permute.xlu0 %1053 }
 0x235   :  { %v1056_v52 = vadd.f32 %v1054_v12, %v1052_v44 }
 0x237   :  { %v1060_v20 = vadd.f32 %v1058_v38, %v1056_v52 }
 0x239   :  { %v3745_v43 = vmul.f32 0.00048828125, %v1060_v20 }
 0x23b   :  { %1066 = vrot.lane.b32.xlu0 %v3745_v43, %s2737_s9  ;;  %1063 = vrot.lane.b32.xlu1 %v3745_v43, %s2738_s10 }
 0x23f   :  { %1069 = vrot.lane.b32.xlu1 %v3745_v43, %s2739_s11 }
 0x2ad   :  { %v1064_v30 = vpop.permute.xlu1 %1063  ;;  %v1067_v60 = vpop.permute.xlu0 %1066 }
 0x2ae   :  { %v1073_v39 = vsel %vm1072_vm4, %v3745_v43, %v1064_v30 }
 0x2af   :  { %v1075_v25 = vsel %vm1074_vm5, %v1073_v39, %v1067_v60 }
 0x2b1   :  { %v1070_v29 = vpop.permute.xlu1 %1069 }
 0x2b2   :  { %v1077_v2 = vsel %vm1076_vm6, %v1075_v25, %v1070_v29  ;;  %v5988_v29 = vld [vmem:[#allocation9_spill] sm:$0xff]  ;;  %v5989_v25 = vld [vmem:[#allocation23_spill] sm:$0xff] }
 0x2b3   :  { %v3760_v13 = vrot.slane %v1077_v2, %v3756_v48 }
 0x2b5   :  { %v1082_v10 = vsub.f32 %v3012_v42, %v3760_v13  ;;  %v1083_v32 = vsub.f32 %v3016_v46, %v3760_v13  ;;  %v1084_v44 = vsub.f32 %v3020_v50, %v3760_v13  ;;  %v1085_v52 = vsub.f32 %v3024_v54, %v3760_v13  ;;  %v5991_v54 = vld [vmem:[#allocation25_spill] sm:$0xff]  ;;  %v5995_v46 = vld [vmem:[#allocation28_spill] sm:$0xff] }
 0x2b6   :  { %v1086_v20 = vsub.f32 %v3028_v58, %v3760_v13  ;;  %v1087_v26 = vsub.f32 %v3032_v62, %v3760_v13 }
 0x2b7   :  { %v1155_v12 = vmul.f32 %v1082_v10, %v3092_v61  ;;  %v1156_v38 = vmul.f32 %v1083_v32, %v3087_v56  ;;  %v1157_v30 = vmul.f32 %v1084_v44, %v3097_v0  ;;  %v1158_v60 = vmul.f32 %v1085_v52, %v3108_v8  ;;  %v5990_v32 = vld [vmem:[#allocation10_spill] sm:$0xff]  ;;  %v5992_v8 = vld [vmem:[#allocation11_spill] sm:$0xff] }
 0x2b8   :  { %v1088_v61 = vsub.f32 %v5988_v29, %v3760_v13  ;;  %v1159_v2 = vmul.f32 %v1086_v20, %v5989_v25  ;;  %v1089_v58 = vsub.f32 %v5990_v32, %v3760_v13  ;;  %v1160_v0 = vmul.f32 %v1087_v26, %v5991_v54 }
 0x2b9   :  { %v1228_v37 = vmul.f32 %v1155_v12, %v1155_v12  ;;  %v1229_v39 = vmul.f32 %v1156_v38, %v1156_v38  ;;  %v1230_v10 = vmul.f32 %v1157_v30, %v1157_v30  ;;  %v1231_v44 = vmul.f32 %v1158_v60, %v1158_v60  ;;  %v5993_v38 = vld [vmem:[#allocation26_spill] sm:$0xff]  ;;  %v5996_v60 = vld [vmem:[#allocation13_spill] sm:$0xff] }
 0x2ba   :  { %v1090_v52 = vsub.f32 %v5992_v8, %v3760_v13  ;;  %v1161_v50 = vmul.f32 %v1088_v61, %v5993_v38  ;;  %v1232_v29 = vmul.f32 %v1159_v2, %v1159_v2  ;;  %v1162_v32 = vmul.f32 %v1089_v58, %v5995_v46  ;;  %v5999_v38 = vld [vmem:[#allocation31_spill] sm:$0xff] }
 0x2bb   :  { %v1301_v56 = vsel %vm895_vm2, %v1228_v37, 0.0  ;;  %v1302_v12 = vsel %vm895_vm2, %v1229_v39, 0.0  ;;  %v1304_v20 = vsel %vm895_vm2, %v1230_v10, 0.0  ;;  %v5994_v37 = vld [vmem:[#allocation12_spill] sm:$0xff]  ;;  %v1233_v42 = vmul.f32 %v1160_v0, %v1160_v0  ;;  %v6000_v0 = vld [vmem:[#allocation15_spill] sm:$0xff] }
 0x2bc   :  { %v1303_v62 = vadd.f32 %v1302_v12, %v1301_v56  ;;  %v1091_v25 = vsub.f32 %v5994_v37, %v3760_v13  ;;  %v1306_v54 = vsel %vm895_vm2, %v1231_v44, 0.0  ;;  %v1092_v39 = vsub.f32 %v5996_v60, %v3760_v13  ;;  %v5997_v56 = vld [vmem:[#allocation29_spill] sm:$0xff] }
 0x2bd   :  { %v1163_v12 = vmul.f32 %v1090_v52, %v5997_v56  ;;  %v1234_v8 = vmul.f32 %v1161_v50, %v1161_v50  ;;  %v1308_v61 = vsel %vm895_vm2, %v1232_v29, 0.0  ;;  %v1235_v37 = vmul.f32 %v1162_v32, %v1162_v32  ;;  %v6002_v29 = vld [vmem:[#allocation16_spill] sm:$0xff]  ;;  %v6003_v56 = vld [vmem:[#allocation34_spill] sm:$0xff] }
 0x2be   :  { %v1305_v30 = vadd.f32 %v1304_v20, %v1303_v62  ;;  %v5998_v62 = vld [vmem:[#allocation14_spill] sm:$0xff]  ;;  %v1164_v20 = vmul.f32 %v1091_v25, %v5999_v38  ;;  %v1310_v46 = vsel %vm895_vm2, %v1233_v42, 0.0  ;;  %v1094_v44 = vsub.f32 %v6000_v0, %v3760_v13  ;;  %v6004_v42 = vld [vmem:[#allocation17_spill] sm:$0xff]  ;;  %v6005_v38 = vld [vmem:[#allocation35_spill] sm:$0xff] }
 0x2bf   :  { %v1093_v10 = vsub.f32 %v5998_v62, %v3760_v13  ;;  %v1236_v60 = vmul.f32 %v1163_v12, %v1163_v12  ;;  %v1312_v50 = vsel %vm895_vm2, %v1234_v8, 0.0  ;;  %v1314_v32 = vsel %vm895_vm2, %v1235_v37, 0.0  ;;  %v6006_v8 = vld [vmem:[#allocation18_spill] sm:$0xff]  ;;  %v6008_v37 = vld [vmem:[#allocation20_spill] sm:$0xff] }
 0x2c0   :  { %v1307_v26 = vadd.f32 %v1306_v54, %v1305_v30  ;;  %v6001_v30 = vld [vmem:[#allocation32_spill] sm:$0xff]  ;;  %v1237_v62 = vmul.f32 %v1164_v20, %v1164_v20 }
 0x2c1   :  { %v1165_v54 = vmul.f32 %v1092_v39, %v6001_v30  ;;  %v1316_v39 = vsel %vm895_vm2, %v1236_v60, 0.0  ;;  %v6007_v30 = vld [vmem:[#allocation37_spill] sm:$0xff] }
 0x2c2   :  { %v1309_v2 = vadd.f32 %v1308_v61, %v1307_v26  ;;  %v1095_v26 = vsub.f32 %v6002_v29, %v3760_v13  ;;  %v1166_v61 = vmul.f32 %v1093_v10, %v6003_v56  ;;  %v1318_v10 = vsel %vm895_vm2, %v1237_v62, 0.0  ;;  %v6009_v56 = vld [vmem:[#allocation38_spill] sm:$0xff]  ;;  %v6010_v60 = vld [vmem:[#allocation21_spill] sm:$0xff] }
 0x2c3   :  { %v1238_v0 = vmul.f32 %v1165_v54, %v1165_v54  ;;  %v6012_v62 = vld [vmem:[#allocation22_spill] sm:$0xff] }
 0x2c4   :  { %v1311_v58 = vadd.f32 %v1310_v46, %v1309_v2  ;;  %v1096_v2 = vsub.f32 %v6004_v42, %v3760_v13  ;;  %v1167_v46 = vmul.f32 %v1094_v44, %v6005_v38  ;;  %v1239_v29 = vmul.f32 %v1166_v61, %v1166_v61  ;;  %v6011_v38 = vld [vmem:[#allocation40_spill] sm:$0xff] }
 0x2c5   :  { %v1320_v44 = vsel %vm895_vm2, %v1238_v0, 0.0  ;;  %v6014_v0 = vld [vmem:[#allocation24_spill] sm:$0xff] }
 0x2c6   :  { %v1313_v52 = vadd.f32 %v1312_v50, %v1311_v58  ;;  %v1097_v58 = vsub.f32 %v6006_v8, %v3760_v13  ;;  %v1168_v50 = vmul.f32 %v1095_v26, %v6007_v30  ;;  %v1240_v42 = vmul.f32 %v1167_v46, %v1167_v46  ;;  %v6013_v30 = vld [vmem:[#allocation41_spill] sm:$0xff] }
 0x2c7   :  { %v1322_v26 = vsel %vm895_vm2, %v1239_v29, 0.0  ;;  %v6016_v29 = vld [vmem:[#allocation27_spill] sm:$0xff] }
 0x2c8   :  { %v1315_v25 = vadd.f32 %v1314_v32, %v1313_v52  ;;  %v1098_v52 = vsub.f32 %v6008_v37, %v3760_v13  ;;  %v1169_v32 = vmul.f32 %v1096_v2, %v6009_v56  ;;  %v1241_v8 = vmul.f32 %v1168_v50, %v1168_v50  ;;  %v6015_v56 = vld [vmem:[#allocation43_spill] sm:$0xff] }
 0x2c9   :  { %v1324_v2 = vsel %vm895_vm2, %v1240_v42, 0.0  ;;  %v6018_v42 = vld [vmem:[#allocation30_spill] sm:$0xff] }
 0x2ca   :  { %v1317_v12 = vadd.f32 %v1316_v39, %v1315_v25  ;;  %v1099_v25 = vsub.f32 %v6010_v60, %v3760_v13  ;;  %v1170_v39 = vmul.f32 %v1097_v58, %v6011_v38  ;;  %v1242_v37 = vmul.f32 %v1169_v32, %v1169_v32  ;;  %v6017_v38 = vld [vmem:[#allocation44_spill] sm:$0xff] }
 0x2cb   :  { %v1326_v58 = vsel %vm895_vm2, %v1241_v8, 0.0  ;;  %v6020_v8 = vld [vmem:[#allocation33_spill] sm:$0xff] }
 0x2cc   :  { %v1319_v20 = vadd.f32 %v1318_v10, %v1317_v12  ;;  %v1100_v12 = vsub.f32 %v6012_v62, %v3760_v13  ;;  %v1171_v10 = vmul.f32 %v1098_v52, %v6013_v30  ;;  %v1243_v60 = vmul.f32 %v1170_v39, %v1170_v39  ;;  %v6019_v30 = vld [vmem:[#allocation47_spill] sm:$0xff] }
 0x2cd   :  { %v1328_v52 = vsel %vm895_vm2, %v1242_v37, 0.0  ;;  %v6022_v37 = vld [vmem:[#allocation36_spill] sm:$0xff] }
 0x2ce   :  { %v1321_v54 = vadd.f32 %v1320_v44, %v1319_v20  ;;  %v1101_v20 = vsub.f32 %v6014_v0, %v3760_v13  ;;  %v1172_v44 = vmul.f32 %v1099_v25, %v6015_v56  ;;  %v1244_v62 = vmul.f32 %v1171_v10, %v1171_v10  ;;  %v6021_v56 = vld [vmem:[#allocation48_spill] sm:$0xff] }
 0x2cf   :  { %v1330_v25 = vsel %vm895_vm2, %v1243_v60, 0.0  ;;  %v6024_v60 = vld [vmem:[#allocation39_spill] sm:$0xff] }
 0x2d0   :  { %v1323_v61 = vadd.f32 %v1322_v26, %v1321_v54  ;;  %v1102_v54 = vsub.f32 %v6016_v29, %v3760_v13  ;;  %v1173_v26 = vmul.f32 %v1100_v12, %v6017_v38  ;;  %v1245_v0 = vmul.f32 %v1172_v44, %v1172_v44  ;;  %v6023_v38 = vld [vmem:[#allocation51_spill] sm:$0xff] }
 0x2d1   :  { %v1332_v12 = vsel %vm895_vm2, %v1244_v62, 0.0  ;;  %v6026_v62 = vld [vmem:[#allocation42_spill] sm:$0xff] }
 0x2d2   :  { %v1325_v46 = vadd.f32 %v1324_v2, %v1323_v61  ;;  %v1103_v61 = vsub.f32 %v6018_v42, %v3760_v13  ;;  %v1174_v2 = vmul.f32 %v1101_v20, %v6019_v30  ;;  %v1246_v29 = vmul.f32 %v1173_v26, %v1173_v26  ;;  %v6025_v30 = vld [vmem:[#allocation52_spill] sm:$0xff] }
 0x2d3   :  { %v1334_v20 = vsel %vm895_vm2, %v1245_v0, 0.0  ;;  %v6028_v0 = vld [vmem:[#allocation45_spill] sm:$0xff] }
 0x2d4   :  { %v1327_v50 = vadd.f32 %v1326_v58, %v1325_v46  ;;  %v1104_v46 = vsub.f32 %v6020_v8, %v3760_v13  ;;  %v1175_v58 = vmul.f32 %v1102_v54, %v6021_v56  ;;  %v1247_v42 = vmul.f32 %v1174_v2, %v1174_v2  ;;  %v6027_v56 = vld [vmem:[#allocation55_spill] sm:$0xff] }
 0x2d5   :  { %v1336_v54 = vsel %vm895_vm2, %v1246_v29, 0.0  ;;  %v6030_v29 = vld [vmem:[#allocation49_spill] sm:$0xff] }
 0x2d6   :  { %v1329_v32 = vadd.f32 %v1328_v52, %v1327_v50  ;;  %v1105_v50 = vsub.f32 %v6022_v37, %v3760_v13  ;;  %v1176_v52 = vmul.f32 %v1103_v61, %v6023_v38  ;;  %v1248_v8 = vmul.f32 %v1175_v58, %v1175_v58  ;;  %v6029_v38 = vld [vmem:[#allocation56_spill] sm:$0xff] }
 0x2d7   :  { %v1338_v61 = vsel %vm895_vm2, %v1247_v42, 0.0  ;;  %v6032_v42 = vld [vmem:[#allocation53_spill] sm:$0xff] }
 0x2d8   :  { %v1331_v39 = vadd.f32 %v1330_v25, %v1329_v32  ;;  %v1106_v32 = vsub.f32 %v6024_v60, %v3760_v13  ;;  %v1177_v25 = vmul.f32 %v1104_v46, %v6025_v30  ;;  %v1249_v37 = vmul.f32 %v1176_v52, %v1176_v52  ;;  %v6031_v30 = vld [vmem:[#allocation59_spill] sm:$0xff] }
 0x2d9   :  { %v1340_v46 = vsel %vm895_vm2, %v1248_v8, 0.0  ;;  %v6034_v8 = vld [vmem:[#allocation57_spill] sm:$0xff] }
 0x2da   :  { %v1333_v10 = vadd.f32 %v1332_v12, %v1331_v39  ;;  %v1107_v39 = vsub.f32 %v6026_v62, %v3760_v13  ;;  %v1178_v12 = vmul.f32 %v1105_v50, %v6027_v56  ;;  %v1250_v60 = vmul.f32 %v1177_v25, %v1177_v25  ;;  %v6033_v56 = vld [vmem:[#allocation60_spill] sm:$0xff] }
 0x2db   :  { %v1342_v50 = vsel %vm895_vm2, %v1249_v37, 0.0  ;;  %v6036_v37 = vld [vmem:[#allocation61_spill] sm:$0xff] }
 0x2dc   :  { %v1335_v44 = vadd.f32 %v1334_v20, %v1333_v10  ;;  %v1108_v10 = vsub.f32 %v6028_v0, %v3760_v13  ;;  %v1179_v20 = vmul.f32 %v1106_v32, %v6029_v38  ;;  %v1251_v62 = vmul.f32 %v1178_v12, %v1178_v12  ;;  %v6035_v38 = vld [vmem:[#allocation63_spill] sm:$0xff] }
 0x2dd   :  { %v1344_v32 = vsel %vm895_vm2, %v1250_v60, 0.0  ;;  %v6038_v60 = vld [vmem:[#allocation65_spill] sm:$0xff] }
 0x2de   :  { %v1337_v26 = vadd.f32 %v1336_v54, %v1335_v44  ;;  %v1109_v44 = vsub.f32 %v6030_v29, %v3760_v13  ;;  %v1180_v54 = vmul.f32 %v1107_v39, %v6031_v30  ;;  %v1252_v0 = vmul.f32 %v1179_v20, %v1179_v20  ;;  %v6037_v30 = vld [vmem:[#allocation64_spill] sm:$0xff] }
 0x2df   :  { %v1346_v39 = vsel %vm895_vm2, %v1251_v62, 0.0  ;;  %v6040_v62 = vld [vmem:[#allocation69_spill] sm:$0xff] }
 0x2e0   :  { %v1339_v2 = vadd.f32 %v1338_v61, %v1337_v26  ;;  %v1110_v26 = vsub.f32 %v6032_v42, %v3760_v13  ;;  %v1181_v61 = vmul.f32 %v1108_v10, %v6033_v56  ;;  %v1253_v29 = vmul.f32 %v1180_v54, %v1180_v54  ;;  %v6039_v56 = vld [vmem:[#allocation67_spill] sm:$0xff] }
 0x2e1   :  { %v1348_v10 = vsel %vm895_vm2, %v1252_v0, 0.0  ;;  %v1115_v0 = vsub.f32 %v3400_v9, %v3760_v13 }
 0x2e2   :  { %v1341_v58 = vadd.f32 %v1340_v46, %v1339_v2  ;;  %v1111_v2 = vsub.f32 %v6034_v8, %v3760_v13  ;;  %v1182_v46 = vmul.f32 %v1109_v44, %v6035_v38  ;;  %v1254_v42 = vmul.f32 %v1181_v61, %v1181_v61  ;;  %v6041_v38 = vld [vmem:[#allocation68_spill] sm:$0xff] }
 0x2e3   :  { %v1350_v44 = vsel %vm895_vm2, %v1253_v29, 0.0  ;;  %v1116_v29 = vsub.f32 %v3415_v17, %v3760_v13 }
 0x2e4   :  { %v1343_v52 = vadd.f32 %v1342_v50, %v1341_v58  ;;  %v1112_v58 = vsub.f32 %v6036_v37, %v3760_v13  ;;  %v1183_v50 = vmul.f32 %v1110_v26, %v6037_v30  ;;  %v1255_v8 = vmul.f32 %v1182_v46, %v1182_v46 }
 0x2e5   :  { %v1352_v26 = vsel %vm895_vm2, %v1254_v42, 0.0  ;;  %v1117_v42 = vsub.f32 %v3435_v1, %v3760_v13 }
 0x2e6   :  { %v1345_v25 = vadd.f32 %v1344_v32, %v1343_v52  ;;  %v1113_v52 = vsub.f32 %v6038_v60, %v3760_v13  ;;  %v1184_v32 = vmul.f32 %v1111_v2, %v6039_v56  ;;  %v1256_v37 = vmul.f32 %v1183_v50, %v1183_v50 }
 0x2e7   :  { %v1354_v2 = vsel %vm895_vm2, %v1255_v8, 0.0  ;;  %v1118_v8 = vsub.f32 %v3446_v57, %v3760_v13 }
 0x2e8   :  { %v1347_v12 = vadd.f32 %v1346_v39, %v1345_v25  ;;  %v1114_v25 = vsub.f32 %v6040_v62, %v3760_v13  ;;  %v1185_v39 = vmul.f32 %v1112_v58, %v6041_v38  ;;  %v1356_v58 = vsel %vm895_vm2, %v1256_v37, 0.0 }
 0x2e9   :  { %v1119_v37 = vsub.f32 %v3467_v36, %v3760_v13 }
 0x2ea   :  { %v1349_v20 = vadd.f32 %v1348_v10, %v1347_v12  ;;  %v6042_v12 = vld [vmem:[#allocation71_spill] sm:$0xff]  ;;  %v1257_v10 = vmul.f32 %v1184_v32, %v1184_v32 }
 0x2eb   :  { %v1186_v30 = vmul.f32 %v1113_v52, %v6042_v12 }
 0x2ec   :  { %v1351_v54 = vadd.f32 %v1350_v44, %v1349_v20  ;;  %v6043_v20 = vld [vmem:[#allocation72_spill] sm:$0xff]  ;;  %v1258_v44 = vmul.f32 %v1185_v39, %v1185_v39  ;;  %v1358_v52 = vsel %vm895_vm2, %v1257_v10, 0.0  ;;  %v6046_v10 = vld [vmem:[#allocation3_spill] sm:$0xff] }
 0x2ed   :  { %v1187_v56 = vmul.f32 %v1114_v25, %v6043_v20 }
 0x2ee   :  { %v1353_v61 = vadd.f32 %v1352_v26, %v1351_v54  ;;  %v6044_v54 = vld [vmem:[#allocation74_spill] sm:$0xff]  ;;  %v1259_v26 = vmul.f32 %v1186_v30, %v1186_v30  ;;  %v1360_v25 = vsel %vm895_vm2, %v1258_v44, 0.0  ;;  %v1121_v44 = vsub.f32 %v3018_v47, %v3760_v13 }
 0x2ef   :  { %v1188_v38 = vmul.f32 %v1115_v0, %v6044_v54 }
 0x2f0   :  { %v1355_v46 = vadd.f32 %v1354_v2, %v1353_v61  ;;  %v6045_v61 = vld [vmem:[#allocation75_spill] sm:$0xff]  ;;  %v1260_v2 = vmul.f32 %v1187_v56, %v1187_v56  ;;  %v1362_v0 = vsel %vm895_vm2, %v1259_v26, 0.0  ;;  %v6049_v26 = vld [vmem:[#allocation77_spill] sm:$0xff] }
 0x2f1   :  { %v1189_v12 = vmul.f32 %v1116_v29, %v6045_v61  ;;  %v1261_v20 = vmul.f32 %v1188_v38, %v1188_v38  ;;  %v1122_v38 = vsub.f32 %v3022_v51, %v3760_v13 }
 0x2f2   :  { %v1357_v50 = vadd.f32 %v1356_v58, %v1355_v46  ;;  %v1190_v46 = vmul.f32 %v1117_v42, %v3430_v40  ;;  %v1120_v58 = vsub.f32 %v6046_v10, %v3760_v13  ;;  %v1364_v29 = vsel %vm895_vm2, %v1260_v2, 0.0 }
 0x2f3   :  { %v1366_v40 = vsel %vm895_vm2, %v1261_v20, 0.0  ;;  %v1123_v2 = vsub.f32 %v3026_v55, %v3760_v13  ;;  %v1124_v20 = vsub.f32 %v3030_v59, %v3760_v13 }
 0x2f4   :  { %v1359_v32 = vadd.f32 %v1358_v52, %v1357_v50  ;;  %v6047_v50 = vld [vmem:[#allocation76_spill] sm:$0xff]  ;;  %v1262_v52 = vmul.f32 %v1189_v12, %v1189_v12 }
 0x2f5   :  { %v1191_v54 = vmul.f32 %v1118_v8, %v6047_v50 }
 0x2f6   :  { %v1361_v39 = vadd.f32 %v1360_v25, %v1359_v32  ;;  %v6048_v32 = vld [vmem:[#allocation78_spill] sm:$0xff]  ;;  %v1263_v25 = vmul.f32 %v1190_v46, %v1190_v46  ;;  %v1368_v8 = vsel %vm895_vm2, %v1262_v52, 0.0  ;;  %v1125_v52 = vsub.f32 %v3034_v63, %v3760_v13 }
 0x2f7   :  { %v1192_v61 = vmul.f32 %v1119_v37, %v6048_v32 }
 0x2f8   :  { %v1363_v30 = vadd.f32 %v1362_v0, %v1361_v39  ;;  %v1193_v39 = vmul.f32 %v1120_v58, %v6049_v26  ;;  %v1264_v0 = vmul.f32 %v1191_v54, %v1191_v54  ;;  %v1370_v37 = vsel %vm895_vm2, %v1263_v25, 0.0  ;;  %v6052_v25 = vld [vmem:[#allocation81_spill] sm:$0xff] }
 0x2f9   :  { %v1265_v50 = vmul.f32 %v1192_v61, %v1192_v61  ;;  %v1126_v61 = vsub.f32 %v3038_v3, %v3760_v13 }
 0x2fa   :  { %v1365_v56 = vadd.f32 %v1364_v29, %v1363_v30  ;;  %v1194_v30 = vmul.f32 %v1121_v44, %v3465_v24  ;;  %v6050_v29 = vld [vmem:[#allocation79_spill] sm:$0xff]  ;;  %v1266_v32 = vmul.f32 %v1193_v39, %v1193_v39  ;;  %v1372_v58 = vsel %vm895_vm2, %v1264_v0, 0.0 }
 0x2fb   :  { %v1374_v24 = vsel %vm895_vm2, %v1265_v50, 0.0  ;;  %v1127_v0 = vsub.f32 %v3042_v7, %v3760_v13  ;;  %v1128_v50 = vsub.f32 %v3046_v11, %v3760_v13 }
 0x2fc   :  { %v1367_v42 = vadd.f32 %v1366_v40, %v1365_v56  ;;  %v1195_v56 = vmul.f32 %v1122_v38, %v6050_v29  ;;  %v6051_v40 = vld [vmem:[#allocation80_spill] sm:$0xff]  ;;  %v1267_v26 = vmul.f32 %v1194_v30, %v1194_v30  ;;  %v1376_v38 = vsel %vm895_vm2, %v1266_v32, 0.0 }
 0x2fd   :  { %v1129_v32 = vsub.f32 %v3050_v15, %v3760_v13 }
 0x2fe   :  { %v1369_v12 = vadd.f32 %v1368_v8, %v1367_v42  ;;  %v1196_v42 = vmul.f32 %v1123_v2, %v6051_v40  ;;  %v1197_v8 = vmul.f32 %v1124_v20, %v6052_v25  ;;  %v1378_v2 = vsel %vm895_vm2, %v1267_v26, 0.0 }
 0x2ff   :  { %v1130_v26 = vsub.f32 %v3054_v19, %v3760_v13 }
 0x300   :  { %v1371_v46 = vadd.f32 %v1370_v37, %v1369_v12  ;;  %v1268_v12 = vmul.f32 %v1195_v56, %v1195_v56  ;;  %v6053_v37 = vld [vmem:[#allocation82_spill] sm:$0xff]  ;;  %v1269_v29 = vmul.f32 %v1196_v42, %v1196_v42  ;;  %v1270_v40 = vmul.f32 %v1197_v8, %v1197_v8 }
 0x302   :  { %v1373_v54 = vadd.f32 %v1372_v58, %v1371_v46  ;;  %v1198_v46 = vmul.f32 %v1125_v52, %v6053_v37  ;;  %v6054_v58 = vld [vmem:[#allocation83_spill] sm:$0xff]  ;;  %v1380_v20 = vsel %vm895_vm2, %v1268_v12, 0.0  ;;  %v1382_v52 = vsel %vm895_vm2, %v1269_v29, 0.0 }
 0x303   :  { %v1131_v12 = vsub.f32 %v3058_v23, %v3760_v13  ;;  %v1132_v29 = vsub.f32 %v3062_v27, %v3760_v13 }
 0x304   :  { %v1375_v44 = vadd.f32 %v1374_v24, %v1373_v54  ;;  %v1199_v54 = vmul.f32 %v1126_v61, %v6054_v58  ;;  %v6055_v24 = vld [vmem:[#allocation84_spill] sm:$0xff]  ;;  %v1271_v25 = vmul.f32 %v1198_v46, %v1198_v46  ;;  %v1384_v61 = vsel %vm895_vm2, %v1270_v40, 0.0 }
 0x305   :  { %v1133_v40 = vsub.f32 %v3066_v31, %v3760_v13 }
 0x306   :  { %v1377_v39 = vadd.f32 %v1376_v38, %v1375_v44  ;;  %v1200_v44 = vmul.f32 %v1127_v0, %v6055_v24  ;;  %v6056_v38 = vld [vmem:[#allocation85_spill] sm:$0xff]  ;;  %v1272_v37 = vmul.f32 %v1199_v54, %v1199_v54  ;;  %v1386_v0 = vsel %vm895_vm2, %v1271_v25, 0.0 }
 0x307   :  { %v1134_v25 = vsub.f32 %v3070_v35, %v3760_v13 }
 0x308   :  { %v1379_v30 = vadd.f32 %v1378_v2, %v1377_v39  ;;  %v1201_v39 = vmul.f32 %v1128_v50, %v6056_v38  ;;  %v6057_v2 = vld [vmem:[#allocation86_spill] sm:$0xff]  ;;  %v1273_v58 = vmul.f32 %v1200_v44, %v1200_v44  ;;  %v1388_v50 = vsel %vm895_vm2, %v1272_v37, 0.0  ;;  %v6061_v37 = vld [vmem:[#allocation19_spill] sm:$0xff] }
 0x30a   :  { %v1381_v56 = vadd.f32 %v1380_v20, %v1379_v30  ;;  %v1202_v30 = vmul.f32 %v1129_v32, %v6057_v2  ;;  %v6058_v20 = vld [vmem:[#allocation87_spill] sm:$0xff]  ;;  %v1274_v24 = vmul.f32 %v1201_v39, %v1201_v39  ;;  %v1390_v32 = vsel %vm895_vm2, %v1273_v58, 0.0 }
 0x30b   :  { %v1136_v58 = vsub.f32 %v3078_v45, %v3760_v13 }
 0x30c   :  { %v1383_v42 = vadd.f32 %v1382_v52, %v1381_v56  ;;  %v1203_v56 = vmul.f32 %v1130_v26, %v6058_v20  ;;  %v6059_v52 = vld [vmem:[#allocation88_spill] sm:$0xff]  ;;  %v1275_v38 = vmul.f32 %v1202_v30, %v1202_v30  ;;  %v1392_v26 = vsel %vm895_vm2, %v1274_v24, 0.0 }
 0x30d   :  { %v1137_v24 = vsub.f32 %v3082_v53, %v3760_v13 }
 0x30e   :  { %v1385_v8 = vadd.f32 %v1384_v61, %v1383_v42  ;;  %v1204_v42 = vmul.f32 %v1131_v12, %v6059_v52  ;;  %v6060_v61 = vld [vmem:[#allocation89_spill] sm:$0xff]  ;;  %v1276_v2 = vmul.f32 %v1203_v56, %v1203_v56  ;;  %v1394_v12 = vsel %vm895_vm2, %v1275_v38, 0.0 }
 0x30f   :  { %v1138_v38 = vsub.f32 %v3101_v4, %v3760_v13 }
 0x310   :  { %v1387_v46 = vadd.f32 %v1386_v0, %v1385_v8  ;;  %v1205_v8 = vmul.f32 %v1132_v29, %v6060_v61  ;;  %v1135_v0 = vsub.f32 %v6061_v37, %v3760_v13  ;;  %v1396_v29 = vsel %vm895_vm2, %v1276_v2, 0.0 }
 0x311   :  { %v1139_v2 = vsub.f32 %v3121_v21, %v3760_v13 }
 0x312   :  { %v1389_v54 = vadd.f32 %v1388_v50, %v1387_v46  ;;  %v6062_v46 = vld [vmem:[#allocation90_spill] sm:$0xff]  ;;  %v1277_v50 = vmul.f32 %v1204_v42, %v1204_v42 }
 0x313   :  { %v1206_v20 = vmul.f32 %v1133_v40, %v6062_v46 }
 0x314   :  { %v1391_v44 = vadd.f32 %v1390_v32, %v1389_v54  ;;  %v6063_v54 = vld [vmem:[#allocation91_spill] sm:$0xff]  ;;  %v1278_v32 = vmul.f32 %v1205_v8, %v1205_v8  ;;  %v1398_v40 = vsel %vm895_vm2, %v1277_v50, 0.0  ;;  %v1140_v50 = vsub.f32 %v3142_v49, %v3760_v13 }
 0x315   :  { %v1207_v52 = vmul.f32 %v1134_v25, %v6063_v54 }
 0x316   :  { %v1393_v39 = vadd.f32 %v1392_v26, %v1391_v44  ;;  %v6064_v44 = vld [vmem:[#allocation92_spill] sm:$0xff]  ;;  %v1279_v26 = vmul.f32 %v1206_v20, %v1206_v20  ;;  %v1400_v25 = vsel %vm895_vm2, %v1278_v32, 0.0  ;;  %v1141_v32 = vsub.f32 %v3162_v33, %v3760_v13 }
 0x317   :  { %v1208_v61 = vmul.f32 %v1135_v0, %v6064_v44 }
 0x318   :  { %v1395_v30 = vadd.f32 %v1394_v12, %v1393_v39  ;;  %v6065_v39 = vld [vmem:[#allocation93_spill] sm:$0xff]  ;;  %v1280_v12 = vmul.f32 %v1207_v52, %v1207_v52  ;;  %v1402_v0 = vsel %vm895_vm2, %v1279_v26, 0.0  ;;  %v6068_v26 = vld [vmem:[#allocation96_spill] sm:$0xff] }
 0x319   :  { %v1209_v46 = vmul.f32 %v1136_v58, %v6065_v39  ;;  %v1281_v54 = vmul.f32 %v1208_v61, %v1208_v61  ;;  %v1142_v61 = vsub.f32 %v3182_v16, %v3760_v13 }
 0x31a   :  { %v1397_v56 = vadd.f32 %v1396_v29, %v1395_v30  ;;  %v1210_v30 = vmul.f32 %v1137_v24, %v3596_v34  ;;  %v6066_v29 = vld [vmem:[#allocation94_spill] sm:$0xff]  ;;  %v1404_v58 = vsel %vm895_vm2, %v1280_v12, 0.0  ;;  %v1143_v12 = vsub.f32 %v3202_v28, %v3760_v13 }
 0x31b   :  { %v1282_v44 = vmul.f32 %v1209_v46, %v1209_v46  ;;  %v1406_v34 = vsel %vm895_vm2, %v1281_v54, 0.0  ;;  %v1144_v54 = vsub.f32 %v3222_v6, %v3760_v13 }
 0x31c   :  { %v1399_v42 = vadd.f32 %v1398_v40, %v1397_v56  ;;  %v1211_v56 = vmul.f32 %v1138_v38, %v6066_v29  ;;  %v6067_v40 = vld [vmem:[#allocation95_spill] sm:$0xff]  ;;  %v1283_v39 = vmul.f32 %v1210_v30, %v1210_v30 }
 0x31d   :  { %v1408_v38 = vsel %vm895_vm2, %v1282_v44, 0.0  ;;  %v1145_v44 = vsub.f32 %v3242_v14, %v3760_v13 }
 0x31e   :  { %v1401_v8 = vadd.f32 %v1400_v25, %v1399_v42  ;;  %v1212_v42 = vmul.f32 %v1139_v2, %v6067_v40  ;;  %v1213_v25 = vmul.f32 %v1140_v50, %v6068_v26  ;;  %v1410_v2 = vsel %vm895_vm2, %v1283_v39, 0.0 }
 0x31f   :  { %v1146_v39 = vsub.f32 %v3262_v22, %v3760_v13 }
 0x320   :  { %v1403_v20 = vadd.f32 %v1402_v0, %v1401_v8  ;;  %v1284_v8 = vmul.f32 %v1211_v56, %v1211_v56  ;;  %v6069_v0 = vld [vmem:[#allocation97_spill] sm:$0xff]  ;;  %v1285_v29 = vmul.f32 %v1212_v42, %v1212_v42  ;;  %v1286_v40 = vmul.f32 %v1213_v25, %v1213_v25 }
 0x322   :  { %v1405_v52 = vadd.f32 %v1404_v58, %v1403_v20  ;;  %v1214_v20 = vmul.f32 %v1141_v32, %v6069_v0  ;;  %v6070_v58 = vld [vmem:[#allocation98_spill] sm:$0xff]  ;;  %v1412_v50 = vsel %vm895_vm2, %v1284_v8, 0.0  ;;  %v1414_v32 = vsel %vm895_vm2, %v1285_v29, 0.0 }
 0x323   :  { %v6073_v8 = vld [vmem:[#allocation50_spill] sm:$0xff] }
 0x324   :  { %v1407_v24 = vadd.f32 %v1406_v34, %v1405_v52  ;;  %v1215_v52 = vmul.f32 %v1142_v61, %v6070_v58  ;;  %v6071_v34 = vld [vmem:[#allocation99_spill] sm:$0xff]  ;;  %v1287_v26 = vmul.f32 %v1214_v20, %v1214_v20  ;;  %v1416_v61 = vsel %vm895_vm2, %v1286_v40, 0.0  ;;  %v6075_v29 = vld [vmem:[#allocation54_spill] sm:$0xff] }
 0x325   :  { %v6077_v40 = vld [vmem:[#allocation58_spill] sm:$0xff] }
 0x326   :  { %v1409_v46 = vadd.f32 %v1408_v38, %v1407_v24  ;;  %v1216_v24 = vmul.f32 %v1143_v12, %v6071_v34  ;;  %v6072_v38 = vld [vmem:[#allocation100_spill] sm:$0xff]  ;;  %v1288_v0 = vmul.f32 %v1215_v52, %v1215_v52  ;;  %v1418_v12 = vsel %vm895_vm2, %v1287_v26, 0.0  ;;  %v6076_v34 = vld [vmem:[#allocation102_spill] sm:$0xff] }
 0x327   :  { %v6079_v26 = vld [vmem:[#allocation62_spill] sm:$0xff] }
 0x328   :  { %v1411_v30 = vadd.f32 %v1410_v2, %v1409_v46  ;;  %v1217_v46 = vmul.f32 %v1144_v54, %v6072_v38  ;;  %v1147_v2 = vsub.f32 %v6073_v8, %v3760_v13  ;;  %v1420_v54 = vsel %vm895_vm2, %v1288_v0, 0.0  ;;  %v6078_v38 = vld [vmem:[#allocation103_spill] sm:$0xff]  ;;  %v6081_v0 = vld [vmem:[#allocation66_spill] sm:$0xff] }
 0x32a   :  { %v1413_v56 = vadd.f32 %v1412_v50, %v1411_v30  ;;  %v6074_v30 = vld [vmem:[#allocation101_spill] sm:$0xff]  ;;  %v1289_v50 = vmul.f32 %v1216_v24, %v1216_v24  ;;  %v1290_v22 = vmul.f32 %v1217_v46, %v1217_v46 }
 0x32b   :  { %v1218_v58 = vmul.f32 %v1145_v44, %v6074_v30  ;;  %v6080_v30 = vld [vmem:[#allocation104_spill] sm:$0xff] }
 0x32c   :  { %v1415_v42 = vadd.f32 %v1414_v32, %v1413_v56  ;;  %v1148_v56 = vsub.f32 %v6075_v29, %v3760_v13  ;;  %v1219_v32 = vmul.f32 %v1146_v39, %v6076_v34  ;;  %v1422_v44 = vsel %vm895_vm2, %v1289_v50, 0.0  ;;  %v6082_v34 = vld [vmem:[#allocation105_spill] sm:$0xff]  ;;  %v6083_v50 = vld [vmem:[#allocation70_spill] sm:$0xff] }
 0x32d   :  { %v1291_v8 = vmul.f32 %v1218_v58, %v1218_v58  ;;  %v1424_v39 = vsel %vm895_vm2, %v1290_v22, 0.0  ;;  %v1153_v22 = vsub.f32 %v3402_v41, %v3760_v13 }
 0x32e   :  { %v1417_v25 = vadd.f32 %v1416_v61, %v1415_v42  ;;  %v1149_v42 = vsub.f32 %v6077_v40, %v3760_v13  ;;  %v1220_v61 = vmul.f32 %v1147_v2, %v6078_v38  ;;  %v1292_v29 = vmul.f32 %v1219_v32, %v1219_v32  ;;  %v6084_v38 = vld [vmem:[#allocation106_spill] sm:$0xff] }
 0x32f   :  { %v1426_v2 = vsel %vm895_vm2, %v1291_v8, 0.0  ;;  %v1154_v8 = vsub.f32 %v3422_v18, %v3760_v13 }
 0x330   :  { %v1419_v20 = vadd.f32 %v1418_v12, %v1417_v25  ;;  %v1150_v25 = vsub.f32 %v6079_v26, %v3760_v13  ;;  %v1221_v12 = vmul.f32 %v1148_v56, %v6080_v30  ;;  %v1293_v40 = vmul.f32 %v1220_v61, %v1220_v61 }
 0x331   :  { %v1428_v56 = vsel %vm895_vm2, %v1292_v29, 0.0  ;;  %v6087_v29 = vld [vmem:[#allocation109_spill] sm:$0xff] }
 0x332   :  { %v1421_v52 = vadd.f32 %v1420_v54, %v1419_v20  ;;  %v1151_v20 = vsub.f32 %v6081_v0, %v3760_v13  ;;  %v1222_v54 = vmul.f32 %v1149_v42, %v6082_v34  ;;  %v1294_v26 = vmul.f32 %v1221_v12, %v1221_v12 }
 0x333   :  { %v1430_v42 = vsel %vm895_vm2, %v1293_v40, 0.0 }
 0x334   :  { %v1423_v24 = vadd.f32 %v1422_v44, %v1421_v52  ;;  %v1152_v52 = vsub.f32 %v6083_v50, %v3760_v13  ;;  %v1223_v44 = vmul.f32 %v1150_v25, %v6084_v38  ;;  %v1432_v25 = vsel %vm895_vm2, %v1294_v26, 0.0 }
 0x336   :  { %v1425_v46 = vadd.f32 %v1424_v39, %v1423_v24  ;;  %v6085_v24 = vld [vmem:[#allocation107_spill] sm:$0xff]  ;;  %v1295_v39 = vmul.f32 %v1222_v54, %v1222_v54 }
 0x337   :  { %v1224_v30 = vmul.f32 %v1151_v20, %v6085_v24  ;;  %v1227_v20 = vmul.f32 %v1154_v8, %v3729_v5 }
 0x338   :  { %v1427_v58 = vadd.f32 %v1426_v2, %v1425_v46  ;;  %v6086_v46 = vld [vmem:[#allocation108_spill] sm:$0xff]  ;;  %v1296_v2 = vmul.f32 %v1223_v44, %v1223_v44 }
 0x339   :  { %v1225_v34 = vmul.f32 %v1152_v52, %v6086_v46  ;;  %v1297_v38 = vmul.f32 %v1224_v30, %v1224_v30  ;;  %v1300_v44 = vmul.f32 %v1227_v20, %v1227_v20 }
 0x33a   :  { %v1429_v32 = vadd.f32 %v1428_v56, %v1427_v58  ;;  %v1226_v58 = vmul.f32 %v1153_v22, %v6087_v29  ;;  %v1434_v56 = vsel %vm895_vm2, %v1295_v39, 0.0  ;;  %v1436_v40 = vsel %vm895_vm2, %v1296_v2, 0.0 }
 0x33b   :  { %v1298_v54 = vmul.f32 %v1225_v34, %v1225_v34  ;;  %v1438_v13 = vsel %vm895_vm2, %v1297_v38, 0.0  ;;  %v1444_v39 = vsel %vm1039_vm3, %v1300_v44, 0.0 }
 0x33c   :  { %v1431_v61 = vadd.f32 %v1430_v42, %v1429_v32  ;;  %v1299_v24 = vmul.f32 %v1226_v58, %v1226_v58 }
 0x33d   :  { %v1440_v26 = vsel %vm895_vm2, %v1298_v54, 0.0 }
 0x33e   :  { %v1433_v12 = vadd.f32 %v1432_v25, %v1431_v61  ;;  %v1442_v22 = vsel %vm895_vm2, %v1299_v24, 0.0 }
 0x340   :  { %v1435_v41 = vadd.f32 %v1434_v56, %v1433_v12 }
 0x342   :  { %v1437_v32 = vadd.f32 %v1436_v40, %v1435_v41  ;;  %v1466_v40 = vld [vmem:[%s5696_s3] sm:$0x1] }
 0x344   :  { %v1439_v52 = vadd.f32 %v1438_v13, %v1437_v32  ;;  %v1470_v13 = vld [vmem:[%s5697_s4] sm:$0x1] }
 0x346   :  { %v1441_v42 = vadd.f32 %v1440_v26, %v1439_v52 }
 0x348   :  { %v1443_v30 = vadd.f32 %v1442_v22, %v1441_v42 }
 0x34a   :  { %v1445_v61 = vadd.f32 %v1444_v39, %v1443_v30 }
 0x34c   :  { %v1446_v46 = vrot.slane %v1445_v61, 4 }
 0x34e   :  { %v1447_v5 = vadd.f32 %v1446_v46, %v1445_v61 }
 0x350   :  { %v1448_v8 = vrot.slane %v1447_v5, 2 }
 0x352   :  { %v1449_v34 = vadd.f32 %v1448_v8, %v1447_v5 }
 0x354   :  { %v1450_v2 = vrot.slane %v1449_v34, 1 }
 0x356   :  { %v1451_v41 = vadd.f32 %v1450_v2, %v1449_v34  ;;  %v6088_v2 = vld [vmem:[#allocation2_spill] sm:$0xff] }
 0x358   :  { %1457 = vrot.lane.b32.xlu1 %v1451_v41, %s2736_s8  ;;  %1453 = vrot.lane.b32.xlu0 %v1451_v41, %s2735_s7 }
 0x35c   :  { %1461 = vrot.lane.b32.xlu0 %v1451_v41, %s2734_s6 }
 0x3ca   :  { %v1454_v25 = vpop.permute.xlu0 %1453  ;;  %v1458_v29 = vpop.permute.xlu1 %1457 }
 0x3cb   :  { %v1456_v12 = vadd.f32 %v1454_v25, %v1451_v41  ;;  %v6089_v25 = vld [vmem:[#allocation4_spill] sm:$0xff] }
 0x3cd   :  { %v1460_v58 = vadd.f32 %v1458_v29, %v1456_v12  ;;  %v6090_v29 = vld [vmem:[#allocation5_spill] sm:$0xff] }
 0x3ce   :  { %v1462_v38 = vpop.permute.xlu0 %1461 }
 0x3cf   :  { %v1464_v56 = vadd.f32 %v1462_v38, %v1460_v58  ;;  %v6091_v38 = vld [vmem:[#allocation6_spill] sm:$0xff] }
 0x3d1   :  { %v1465_v20 = vmul.f32 0.00048828125, %v1464_v56 }
 0x3d3   :  { %v1467_v54 = vadd.f32 1e-05, %v1465_v20  ;;  %v6092_v20 = vld [vmem:[#allocation7_spill] sm:$0xff] }
 0x3d5   :  { %2657 = vrsqrt.f32 %v1467_v54 }
 0x3e2   :  { %v2658_v32 = vpop.eup %2657 }
 0x3e3   :  { %v1469_v24 = vmul.f32 %v2658_v32, %v1466_v40  ;;  %v6093_v40 = vld [vmem:[#allocation8_spill] sm:$0xff] }
 0x3e5   :  { %v1477_v52 = vrot.slane %v1469_v24, %v3756_v48  ;;  %v1471_v44 = vmul.f32 %v1469_v24, %v3745_v43 }
 0x3e7   :  { %1481 = vrot.lane.b32.xlu0 %v1477_v52, %s2737_s9  ;;  %1478 = vrot.lane.b32.xlu1 %v1477_v52, %s2738_s10  ;;  %v1472_v26 = vsub.f32 %v1470_v13, %v1471_v44 }
 0x3e9   :  { %v1571_v42 = vrot.slane %v1472_v26, %v3756_v48 }
 0x3eb   :  { %1484 = vrot.lane.b32.xlu1 %v1477_v52, %s2739_s11  ;;  %1572 = vrot.lane.b32.xlu0 %v1571_v42, %s2738_s10  ;;  %v6095_v52 = vld [vmem:[#allocation10_spill] sm:$0xff] }
 0x3ef   :  { %1575 = vrot.lane.b32.xlu1 %v1571_v42, %s2737_s9  ;;  %1578 = vrot.lane.b32.xlu0 %v1571_v42, %s2739_s11 }
 0x459   :  { %v1479_v22 = vpop.permute.xlu1 %1478  ;;  %v1482_v30 = vpop.permute.xlu0 %1481 }
 0x45a   :  { %v1487_v39 = vsel %vm1072_vm4, %v1469_v24, %v1479_v22  ;;  %v6094_v24 = vld [vmem:[#allocation9_spill] sm:$0xff]  ;;  %v6097_v22 = vld [vmem:[#allocation12_spill] sm:$0xff] }
 0x45b   :  { %v1488_v43 = vsel %vm1074_vm5, %v1487_v39, %v1482_v30  ;;  %v6098_v39 = vld [vmem:[#allocation13_spill] sm:$0xff] }
 0x45d   :  { %v1485_v61 = vpop.permute.xlu1 %1484  ;;  %v1573_v8 = vpop.permute.xlu0 %1572 }
 0x45e   :  { %v1489_v46 = vsel %vm1076_vm6, %v1488_v43, %v1485_v61  ;;  %v4079_v34 = vsel %vm1072_vm4, %v1472_v26, %v1573_v8  ;;  %v6096_v26 = vld [vmem:[#allocation11_spill] sm:$0xff]  ;;  %v6099_v61 = vld [vmem:[#allocation14_spill] sm:$0xff] }
 0x45f   :  { %v4076_v5 = vrot.slane %v1489_v46, %v3756_v48  ;;  %v6100_v8 = vld [vmem:[#allocation15_spill] sm:$0xff] }
 0x461   :  { %v4083_v41 = vmul.f32 %v4076_v5, %v6088_v2  ;;  %v4087_v12 = vmul.f32 %v4076_v5, %v6089_v25  ;;  %v4091_v58 = vmul.f32 %v4076_v5, %v6090_v29  ;;  %v4095_v56 = vmul.f32 %v4076_v5, %v6091_v38  ;;  %v6101_v25 = vld [vmem:[#allocation16_spill] sm:$0xff]  ;;  %v6102_v38 = vld [vmem:[#allocation17_spill] sm:$0xff] }
 0x462   :  { %v4099_v54 = vmul.f32 %v4076_v5, %v6092_v20  ;;  %v4103_v32 = vmul.f32 %v4076_v5, %v6093_v40  ;;  %v4107_v13 = vmul.f32 %v4076_v5, %v6094_v24  ;;  %v4111_v44 = vmul.f32 %v4076_v5, %v6095_v52  ;;  %v6104_v40 = vld [vmem:[#allocation18_spill] sm:$0xff]  ;;  %v6106_v52 = vld [vmem:[#allocation20_spill] sm:$0xff] }
 0x463   :  { %v4115_v42 = vmul.f32 %v4076_v5, %v6096_v26  ;;  %v4119_v30 = vmul.f32 %v4076_v5, %v6097_v22  ;;  %v4123_v43 = vmul.f32 %v4076_v5, %v6098_v39  ;;  %v4127_v46 = vmul.f32 %v4076_v5, %v6099_v61  ;;  %v6108_v22 = vld [vmem:[#allocation21_spill] sm:$0xff]  ;;  %v6110_v61 = vld [vmem:[#allocation22_spill] sm:$0xff] }
 0x464   :  { %v4131_v2 = vmul.f32 %v4076_v5, %v6100_v8  ;;  %v4135_v29 = vmul.f32 %v4076_v5, %v6101_v25  ;;  %v4139_v20 = vmul.f32 %v4076_v5, %v6102_v38  ;;  %v4143_v24 = vmul.f32 %v4076_v5, %v6104_v40  ;;  %v6112_v25 = vld [vmem:[#allocation24_spill] sm:$0xff] }
 0x465   :  { %v4147_v26 = vmul.f32 %v4076_v5, %v6106_v52  ;;  %v4151_v39 = vmul.f32 %v4076_v5, %v6108_v22  ;;  %v4155_v8 = vmul.f32 %v4076_v5, %v6110_v61  ;;  %v4159_v38 = vmul.f32 %v4076_v5, %v6112_v25 }
 0x466   :  { %6103 = vst [vmem:[#allocation23_spill] sm:$0xff] %v4139_v20  ;;  %6105 = vst [vmem:[#allocation25_spill] sm:$0xff] %v4143_v24  ;;  %v6114_v20 = vld [vmem:[#allocation27_spill] sm:$0xff]  ;;  %v6116_v24 = vld [vmem:[#allocation30_spill] sm:$0xff] }
 0x467   :  { %6107 = vst [vmem:[#allocation26_spill] sm:$0xff] %v4147_v26  ;;  %6109 = vst [vmem:[#allocation28_spill] sm:$0xff] %v4151_v39  ;;  %v4163_v40 = vmul.f32 %v4076_v5, %v6114_v20  ;;  %v4167_v52 = vmul.f32 %v4076_v5, %v6116_v24  ;;  %v6118_v26 = vld [vmem:[#allocation33_spill] sm:$0xff]  ;;  %v6120_v39 = vld [vmem:[#allocation36_spill] sm:$0xff] }
 0x468   :  { %6111 = vst [vmem:[#allocation29_spill] sm:$0xff] %v4155_v8  ;;  %6113 = vst [vmem:[#allocation31_spill] sm:$0xff] %v4159_v38  ;;  %v4171_v22 = vmul.f32 %v4076_v5, %v6118_v26  ;;  %v4175_v61 = vmul.f32 %v4076_v5, %v6120_v39  ;;  %v6122_v8 = vld [vmem:[#allocation39_spill] sm:$0xff]  ;;  %v6124_v38 = vld [vmem:[#allocation42_spill] sm:$0xff] }
 0x469   :  { %6115 = vst [vmem:[#allocation32_spill] sm:$0xff] %v4163_v40  ;;  %6117 = vst [vmem:[#allocation34_spill] sm:$0xff] %v4167_v52  ;;  %v4179_v25 = vmul.f32 %v4076_v5, %v6122_v8  ;;  %v4183_v20 = vmul.f32 %v4076_v5, %v6124_v38  ;;  %v6125_v40 = vld [vmem:[#allocation45_spill] sm:$0xff] }
 0x46a   :  { %6119 = vst [vmem:[#allocation35_spill] sm:$0xff] %v4171_v22  ;;  %6121 = vst [vmem:[#allocation37_spill] sm:$0xff] %v4175_v61  ;;  %v4187_v24 = vmul.f32 %v4076_v5, %v6125_v40  ;;  %v6126_v52 = vld [vmem:[#allocation49_spill] sm:$0xff]  ;;  %v4207_v40 = vmul.f32 %v4076_v5, %v6038_v60  ;;  %v4227_v60 = vmul.f32 %v4076_v5, %v3446_v57 }
 0x46b   :  { %6123 = vst [vmem:[#allocation38_spill] sm:$0xff] %v4179_v25  ;;  %v4191_v26 = vmul.f32 %v4076_v5, %v6126_v52  ;;  %v6127_v22 = vld [vmem:[#allocation53_spill] sm:$0xff]  ;;  %v4211_v52 = vmul.f32 %v4076_v5, %v6040_v62  ;;  %v4231_v62 = vmul.f32 %v4076_v5, %v3467_v36  ;;  %v4247_v57 = vmul.f32 %v4076_v5, %v3026_v55 }
 0x46c   :  { %v4195_v39 = vmul.f32 %v4076_v5, %v6127_v22  ;;  %v6128_v61 = vld [vmem:[#allocation57_spill] sm:$0xff]  ;;  %v4215_v22 = vmul.f32 %v4076_v5, %v3400_v9  ;;  %v4235_v9 = vmul.f32 %v4076_v5, %v6046_v10  ;;  %v4251_v36 = vmul.f32 %v4076_v5, %v3030_v59 }
 0x46d   :  { %v4199_v8 = vmul.f32 %v4076_v5, %v6128_v61  ;;  %v6129_v25 = vld [vmem:[#allocation61_spill] sm:$0xff]  ;;  %v4219_v61 = vmul.f32 %v4076_v5, %v3415_v17  ;;  %v4239_v17 = vmul.f32 %v4076_v5, %v3018_v47  ;;  %v4255_v10 = vmul.f32 %v4076_v5, %v3034_v63 }
 0x46e   :  { %v4203_v38 = vmul.f32 %v4076_v5, %v6129_v25  ;;  %v4223_v25 = vmul.f32 %v4076_v5, %v3435_v1  ;;  %v4243_v1 = vmul.f32 %v4076_v5, %v3022_v51  ;;  %v4259_v47 = vmul.f32 %v4076_v5, %v3038_v3 }
 0x46f   :  { %v4263_v51 = vmul.f32 %v4076_v5, %v3042_v7  ;;  %v4267_v55 = vmul.f32 %v4076_v5, %v3046_v11  ;;  %v4271_v59 = vmul.f32 %v4076_v5, %v3050_v15  ;;  %v4275_v63 = vmul.f32 %v4076_v5, %v3054_v19 }
 0x470   :  { %v4279_v3 = vmul.f32 %v4076_v5, %v3058_v23  ;;  %v4283_v7 = vmul.f32 %v4076_v5, %v3062_v27  ;;  %v4287_v11 = vmul.f32 %v4076_v5, %v3066_v31  ;;  %v4291_v15 = vmul.f32 %v4076_v5, %v3070_v35 }
 0x471   :  { %6130 = vst [vmem:[#allocation40_spill] sm:$0xff] %v4267_v55  ;;  %v1576_v55 = vpop.permute.xlu1 %1575  ;;  %v4295_v19 = vmul.f32 %v4076_v5, %v6061_v37  ;;  %v4299_v23 = vmul.f32 %v4076_v5, %v3078_v45  ;;  %v4303_v27 = vmul.f32 %v4076_v5, %v3082_v53  ;;  %v4307_v31 = vmul.f32 %v4076_v5, %v3101_v4 }
 0x472   :  { %6131 = vst [vmem:[#allocation41_spill] sm:$0xff] %v4283_v7  ;;  %v1579_v7 = vpop.permute.xlu0 %1578  ;;  %v4311_v35 = vmul.f32 %v4076_v5, %v3121_v21  ;;  %v4315_v37 = vmul.f32 %v4076_v5, %v3142_v49  ;;  %v4319_v45 = vmul.f32 %v4076_v5, %v3162_v33  ;;  %v4323_v53 = vmul.f32 %v4076_v5, %v3182_v16  ;;  %v6137_v33 = vld [vmem:[#allocation46_spill] sm:$0xff] }
 0x473   :  { %v4327_v4 = vmul.f32 %v4076_v5, %v3202_v28  ;;  %v4331_v21 = vmul.f32 %v4076_v5, %v3222_v6  ;;  %v1582_v49 = vsel %vm1074_vm5, %v4079_v34, %v1576_v55  ;;  %v6138_v16 = vld [vmem:[#allocation50_spill] sm:$0xff] }
 0x474   :  { %6132 = vst [vmem:[#allocation43_spill] sm:$0xff] %v4315_v37  ;;  %6133 = vst [vmem:[#allocation44_spill] sm:$0xff] %v4319_v45  ;;  %v4337_v37 = vmul.f32 %v4076_v5, %v3242_v14  ;;  %v4341_v45 = vmul.f32 %v4076_v5, %v6137_v33  ;;  %v1583_v28 = vsel %vm1076_vm6, %v1582_v49, %v1579_v7  ;;  %v6141_v14 = vld [vmem:[#allocation62_spill] sm:$0xff] }
 0x475   :  { %6134 = vst [vmem:[#allocation47_spill] sm:$0xff] %v4323_v53  ;;  %6135 = vst [vmem:[#allocation48_spill] sm:$0xff] %v4327_v4  ;;  %v4345_v53 = vmul.f32 %v4076_v5, %v6138_v16  ;;  %v6139_v4 = vld [vmem:[#allocation54_spill] sm:$0xff]  ;;  %v4358_v55 = vmul.f32 %v4076_v5, %v6141_v14  ;;  %v4361_v33 = vrot.slane %v1583_v28, %v3756_v48  ;;  %v6155_v14 = vld [vmem:[#allocation25_spill] sm:$0xff] }
 0x476   :  { %6136 = vst [vmem:[#allocation51_spill] sm:$0xff] %v4331_v21  ;;  %v4350_v6 = vmul.f32 %v4076_v5, %v6139_v4  ;;  %v6140_v21 = vld [vmem:[#allocation58_spill] sm:$0xff]  ;;  %v4365_v16 = vmul.f32 %v4076_v5, %v6081_v0  ;;  %v4369_v7 = vmul.f32 %v4076_v5, %v6083_v50  ;;  %v6142_v4 = vld [vmem:[#allocation73_spill] sm:$0xff] }
 0x477   :  { %v4354_v34 = vmul.f32 %v4076_v5, %v6140_v21  ;;  %v4373_v49 = vmul.f32 %v4076_v5, %v6142_v4  ;;  %v4377_v21 = vmul.f32 %v4076_v5, %v3422_v18  ;;  %v4381_v48 = vadd.f32 %v4361_v33, %v4083_v41  ;;  %v6157_v4 = vld [vmem:[#allocation26_spill] sm:$0xff] }
 0x478   :  { %v4385_v0 = vadd.f32 %v4361_v33, %v4087_v12  ;;  %v4389_v50 = vadd.f32 %v4361_v33, %v4091_v58  ;;  %v4393_v28 = vadd.f32 %v4361_v33, %v4095_v56  ;;  %v4397_v18 = vadd.f32 %v4361_v33, %v4099_v54 }
 0x479   :  { %v4401_v5 = vadd.f32 %v4361_v33, %v4103_v32  ;;  %v4405_v41 = vadd.f32 %v4361_v33, %v4107_v13  ;;  %v4409_v12 = vadd.f32 %v4361_v33, %v4111_v44  ;;  %v4413_v58 = vadd.f32 %v4361_v33, %v4115_v42  ;;  %v6153_v42 = vld [vmem:[#allocation23_spill] sm:$0xff] }
 0x47a   :  { %6143 = vst [vmem:[#allocation52_spill] sm:$0xff] %v4385_v0  ;;  %6144 = vst [vmem:[#allocation55_spill] sm:$0xff] %v4389_v50  ;;  %v4417_v56 = vadd.f32 %v4361_v33, %v4119_v30  ;;  %v4421_v54 = vadd.f32 %v4361_v33, %v4123_v43  ;;  %v4425_v32 = vadd.f32 %v4361_v33, %v4127_v46 }
 0x47b   :  { %6145 = vst [vmem:[#allocation56_spill] sm:$0xff] %v4393_v28  ;;  %6146 = vst [vmem:[#allocation59_spill] sm:$0xff] %v4397_v18  ;;  %v4429_v13 = vadd.f32 %v4361_v33, %v4131_v2  ;;  %v4433_v44 = vadd.f32 %v4361_v33, %v4135_v29  ;;  %v4437_v30 = vadd.f32 %v4361_v33, %v6153_v42 }
 0x47c   :  { %6147 = vst [vmem:[#allocation60_spill] sm:$0xff] %v4401_v5  ;;  %6148 = vst [vmem:[#allocation63_spill] sm:$0xff] %v4405_v41  ;;  %v4441_v43 = vadd.f32 %v4361_v33, %v6155_v14  ;;  %v4445_v46 = vadd.f32 %v4361_v33, %v6157_v4 }
 0x47d   :  { %6149 = vst [vmem:[#allocation64_spill] sm:$0xff] %v4409_v12  ;;  %6150 = vst [vmem:[#allocation65_spill] sm:$0xff] %v4425_v32  ;;  %v6159_v32 = vld [vmem:[#allocation28_spill] sm:$0xff] }
 0x47e   :  { %6151 = vst [vmem:[#allocation67_spill] sm:$0xff] %v4429_v13  ;;  %6152 = vst [vmem:[#allocation69_spill] sm:$0xff] %v4433_v44  ;;  %v4449_v2 = vadd.f32 %v4361_v33, %v6159_v32  ;;  %v6161_v13 = vld [vmem:[#allocation29_spill] sm:$0xff]  ;;  %v6163_v44 = vld [vmem:[#allocation31_spill] sm:$0xff] }
 0x47f   :  { %6154 = vst [vmem:[#allocation68_spill] sm:$0xff] %v4437_v30  ;;  %6156 = vst [vmem:[#allocation71_spill] sm:$0xff] %v4441_v43  ;;  %v4453_v29 = vadd.f32 %v4361_v33, %v6161_v13  ;;  %v4457_v42 = vadd.f32 %v4361_v33, %v6163_v44  ;;  %v6164_v30 = vld [vmem:[#allocation32_spill] sm:$0xff]  ;;  %v6165_v43 = vld [vmem:[#allocation34_spill] sm:$0xff] }
 0x480   :  { %6158 = vst [vmem:[#allocation72_spill] sm:$0xff] %v4445_v46  ;;  %6160 = vst [vmem:[#allocation74_spill] sm:$0xff] %v4449_v2  ;;  %v4461_v14 = vadd.f32 %v4361_v33, %v6164_v30  ;;  %v4465_v4 = vadd.f32 %v4361_v33, %v6165_v43  ;;  %v6166_v46 = vld [vmem:[#allocation35_spill] sm:$0xff]  ;;  %v6167_v2 = vld [vmem:[#allocation37_spill] sm:$0xff]  ;;  %v4481_v30 = vadd.f32 %v4361_v33, %v4183_v20 }
 0x481   :  { %6162 = vst [vmem:[#allocation75_spill] sm:$0xff] %v4453_v29  ;;  %v4469_v32 = vadd.f32 %v4361_v33, %v6166_v46  ;;  %v4473_v13 = vadd.f32 %v4361_v33, %v6167_v2  ;;  %v6168_v29 = vld [vmem:[#allocation38_spill] sm:$0xff]  ;;  %v4485_v43 = vadd.f32 %v4361_v33, %v4187_v24  ;;  %v4489_v46 = vadd.f32 %v4361_v33, %v4191_v26 }
 0x482   :  { %v4477_v44 = vadd.f32 %v4361_v33, %v6168_v29  ;;  %v4493_v2 = vadd.f32 %v4361_v33, %v4195_v39  ;;  %v4497_v29 = vadd.f32 %v4361_v33, %v4199_v8  ;;  %v4501_v20 = vadd.f32 %v4361_v33, %v4203_v38 }
 0x483   :  { %v4505_v24 = vadd.f32 %v4361_v33, %v4207_v40  ;;  %v4509_v26 = vadd.f32 %v4361_v33, %v4211_v52  ;;  %v4513_v39 = vadd.f32 %v4361_v33, %v4215_v22  ;;  %v4517_v8 = vadd.f32 %v4361_v33, %v4219_v61 }
 0x484   :  { %6169 = vst [vmem:[#allocation3_spill] sm:$0xff] %v4497_v29  ;;  %v4521_v38 = vadd.f32 %v4361_v33, %v4223_v25  ;;  %v4525_v40 = vadd.f32 %v4361_v33, %v4227_v60  ;;  %v4529_v52 = vadd.f32 %v4361_v33, %v4231_v62  ;;  %v4533_v22 = vadd.f32 %v4361_v33, %v4235_v9 }
 0x485   :  { %6170 = vst [vmem:[#allocation76_spill] sm:$0xff] %v4513_v39  ;;  %v4537_v61 = vadd.f32 %v4361_v33, %v4239_v17  ;;  %v4541_v25 = vadd.f32 %v4361_v33, %v4243_v1  ;;  %v4545_v60 = vadd.f32 %v4361_v33, %v4247_v57  ;;  %v4549_v62 = vadd.f32 %v4361_v33, %v4251_v36  ;;  %v6200_v0 = vld [vmem:[#allocation67_spill] sm:$0xff]  ;;  %v6201_v50 = vld [vmem:[#allocation69_spill] sm:$0xff] }
 0x486   :  { %v4553_v9 = vadd.f32 %v4361_v33, %v4255_v10  ;;  %v4557_v17 = vadd.f32 %v4361_v33, %v4259_v47  ;;  %v4561_v1 = vadd.f32 %v4361_v33, %v4263_v51  ;;  %v4569_v36 = vadd.f32 %v4361_v33, %v4271_v59  ;;  %v6202_v28 = vld [vmem:[#allocation68_spill] sm:$0xff]  ;;  %v6203_v18 = vld [vmem:[#allocation71_spill] sm:$0xff] }
 0x487   :  { %6171 = vst [vmem:[#allocation78_spill] sm:$0xff] %v4541_v25  ;;  %6172 = vst [vmem:[#allocation77_spill] sm:$0xff] %v4545_v60  ;;  %v6177_v25 = vld [vmem:[#allocation40_spill] sm:$0xff]  ;;  %v4573_v10 = vadd.f32 %v4361_v33, %v4275_v63  ;;  %v4577_v47 = vadd.f32 %v4361_v33, %v4279_v3  ;;  %v4589_v59 = vadd.f32 %v4361_v33, %v4291_v15  ;;  %v6205_v41 = vld [vmem:[#allocation74_spill] sm:$0xff] }
 0x488   :  { %6173 = vst [vmem:[#allocation79_spill] sm:$0xff] %v4549_v62  ;;  %6174 = vst [vmem:[#allocation80_spill] sm:$0xff] %v4553_v9  ;;  %v4565_v57 = vadd.f32 %v4361_v33, %v6177_v25  ;;  %v4585_v25 = vadd.f32 %v4361_v33, %v4287_v11  ;;  %v4593_v63 = vadd.f32 %v4361_v33, %v4295_v19  ;;  %v6204_v5 = vld [vmem:[#allocation72_spill] sm:$0xff]  ;;  %v6206_v12 = vld [vmem:[#allocation75_spill] sm:$0xff] }
 0x489   :  { %6175 = vst [vmem:[#allocation81_spill] sm:$0xff] %v4557_v17  ;;  %6176 = vst [vmem:[#allocation82_spill] sm:$0xff] %v4561_v1  ;;  %v6178_v17 = vld [vmem:[#allocation41_spill] sm:$0xff]  ;;  %v4597_v3 = vadd.f32 %v4361_v33, %v4299_v23  ;;  %v4605_v11 = vadd.f32 %v4361_v33, %v4307_v31  ;;  %v4609_v15 = vadd.f32 %v4361_v33, %v4311_v35 }
 0x48a   :  { %v4581_v51 = vadd.f32 %v4361_v33, %v6178_v17  ;;  %6179 = vst [vmem:[#allocation83_spill] sm:$0xff] %v4589_v59  ;;  %6180 = vst [vmem:[#allocation84_spill] sm:$0xff] %v4593_v63  ;;  %v4601_v17 = vadd.f32 %v4361_v33, %v4303_v27  ;;  %v6185_v59 = vld [vmem:[#allocation43_spill] sm:$0xff]  ;;  %v6187_v63 = vld [vmem:[#allocation44_spill] sm:$0xff] }
 0x48b   :  { %6181 = vst [vmem:[#allocation85_spill] sm:$0xff] %v4597_v3  ;;  %6183 = vst [vmem:[#allocation87_spill] sm:$0xff] %v4605_v11  ;;  %v4613_v19 = vadd.f32 %v4361_v33, %v6185_v59  ;;  %v4617_v23 = vadd.f32 %v4361_v33, %v6187_v63  ;;  %v6189_v3 = vld [vmem:[#allocation47_spill] sm:$0xff]  ;;  %v4633_v59 = vadd.f32 %v4361_v33, %v4337_v37 }
 0x48c   :  { %6182 = vst [vmem:[#allocation86_spill] sm:$0xff] %v4601_v17  ;;  %6184 = vst [vmem:[#allocation88_spill] sm:$0xff] %v4609_v15  ;;  %v4621_v27 = vadd.f32 %v4361_v33, %v6189_v3  ;;  %v6191_v17 = vld [vmem:[#allocation48_spill] sm:$0xff]  ;;  %v6192_v11 = vld [vmem:[#allocation51_spill] sm:$0xff]  ;;  %v4637_v63 = vadd.f32 %v4361_v33, %v4341_v45  ;;  %v4641_v3 = vadd.f32 %v4361_v33, %v4345_v53 }
 0x48d   :  { %6186 = vst [vmem:[#allocation89_spill] sm:$0xff] %v4613_v19  ;;  %6188 = vst [vmem:[#allocation19_spill] sm:$0xff] %v4617_v23  ;;  %v4625_v31 = vadd.f32 %v4361_v33, %v6191_v17  ;;  %v4629_v35 = vadd.f32 %v4361_v33, %v6192_v11  ;;  %v4645_v17 = vadd.f32 %v4361_v33, %v4350_v6 }
 0x48e   :  { %6190 = vst [vmem:[#allocation90_spill] sm:$0xff] %v4621_v27  ;;  %v4649_v11 = vadd.f32 %v4361_v33, %v4354_v34  ;;  %v4653_v37 = vadd.f32 %v4361_v33, %v4358_v55  ;;  %v4657_v45 = vadd.f32 %v4361_v33, %v4365_v16  ;;  %v4661_v53 = vadd.f32 %v4361_v33, %v4369_v7  ;;  %v6207_v29 = vld [vmem:[#allocation78_spill] sm:$0xff]  ;;  %v6224_v55 = vld [vmem:[#allocation55_spill] sm:$0xff] }
 0x48f   :  { %v4665_v6 = vadd.f32 %v4361_v33, %v4373_v49  ;;  %v4669_v34 = vadd.f32 %v4361_v33, %v4377_v21  ;;  %v6219_v7 = vmax.f32 %v4381_v48, 0.0  ;;  %v6221_v49 = vld [vmem:[#allocation52_spill] sm:$0xff]  ;;  %v6225_v21 = vmax.f32 %v6224_v55, 0.0  ;;  %v2662_v48 = vld [vmem:[%s5695_s2 + $0x18] sm:$0xff] }
 0x490   :  { %6193 = vst [vmem:[#allocation91_spill] sm:$0xff] %v4649_v11  ;;  %6194 = vst [vmem:[#allocation92_spill] sm:$0xff] %v4653_v37  ;;  %v6199_v11 = vld [vmem:[#allocation65_spill] sm:$0xff]  ;;  %v6215_v15 = vmov %v4653_v37  ;;  %v6216_v19 = vmov %v4657_v45  ;;  %v6217_v23 = vmov %v4661_v53  ;;  %v6222_v33 = vmax.f32 %v6221_v49, 0.0  ;;  %v2661_v37 = vld [vmem:[%s5695_s2 + $0x10] sm:$0xff] }
 0x491   :  { %6195 = vst [vmem:[#allocation93_spill] sm:$0xff] %v4657_v45  ;;  %6196 = vst [vmem:[#allocation94_spill] sm:$0xff] %v4661_v53  ;;  %v6209_v60 = vld [vmem:[#allocation83_spill] sm:$0xff]  ;;  %v6210_v62 = vld [vmem:[#allocation84_spill] sm:$0xff]  ;;  %v6218_v27 = vmov %v4665_v6 }
 0x492   :  { %6197 = vst [vmem:[#allocation95_spill] sm:$0xff] %v4665_v6  ;;  %6198 = vst [vmem:[#allocation96_spill] sm:$0xff] %v4669_v34  ;;  %v6211_v9 = vld [vmem:[#allocation85_spill] sm:$0xff]  ;;  %v2659_v45 = vld [vmem:[%s5695_s2] sm:$0xff]  ;;  %v4763_v34 = vmul.f32 %v2661_v37, %v6225_v21 }
 0x493   :  { %v6212_v39 = vld [vmem:[#allocation86_spill] sm:$0xff]  ;;  %v4749_v16 = vmul.f32 %v2659_v45, %v6219_v7  ;;  %v2660_v6 = vld [vmem:[%s5695_s2 + $0x8] sm:$0xff]  ;;  %v6227_v45 = vld [vmem:[#allocation56_spill] sm:$0xff] }
 0x494   :  { %v4756_v53 = vmul.f32 %v2660_v6, %v6222_v33  ;;  %6226 = vst [vmem:[#allocation99_spill] sm:$0xff] %v4763_v34  ;;  %v6228_v7 = vmax.f32 %v6227_v45, 0.0  ;;  %v2663_v6 = vld [vmem:[%s5695_s2 + $0x20] sm:$0xff]  ;;  %v6230_v49 = vld [vmem:[#allocation59_spill] sm:$0xff]  ;;  %v6233_v55 = vld [vmem:[#allocation60_spill] sm:$0xff] }
 0x495   :  { %6220 = vst [vmem:[#allocation97_spill] sm:$0xff] %v4749_v16  ;;  %v6231_v33 = vmax.f32 %v6230_v49, 0.0  ;;  %v2664_v37 = vld [vmem:[%s5695_s2 + $0x28] sm:$0xff]  ;;  %v6234_v21 = vmax.f32 %v6233_v55, 0.0  ;;  %v6237_v49 = vld [vmem:[#allocation64_spill] sm:$0xff]  ;;  %v6239_v55 = vmax.f32 %v4413_v58, 0.0 }
 0x496   :  { %6223 = vst [vmem:[#allocation98_spill] sm:$0xff] %v4756_v53  ;;  %v4770_v16 = vmul.f32 %v2662_v48, %v6228_v7  ;;  %v2665_v48 = vld [vmem:[%s5695_s2 + $0x30] sm:$0xff]  ;;  %v6235_v45 = vld [vmem:[#allocation63_spill] sm:$0xff]  ;;  %v2670_v58 = vld [vmem:[%s5695_s2 + $0x58] sm:$0xff] }
 0x497   :  { %v6214_v1 = vld [vmem:[#allocation91_spill] sm:$0xff]  ;;  %v4777_v53 = vmul.f32 %v2663_v6, %v6231_v33  ;;  %v4784_v34 = vmul.f32 %v2664_v37, %v6234_v21  ;;  %v6236_v7 = vmax.f32 %v6235_v45, 0.0  ;;  %v2666_v6 = vld [vmem:[%s5695_s2 + $0x38] sm:$0xff]  ;;  %v6238_v33 = vmax.f32 %v6237_v49, 0.0  ;;  %v2667_v37 = vld [vmem:[%s5695_s2 + $0x40] sm:$0xff] }
 0x498   :  { %6229 = vst [vmem:[#allocation100_spill] sm:$0xff] %v4770_v16  ;;  %v4805_v21 = vmul.f32 %v2667_v37, %v6239_v55  ;;  %v6240_v45 = vmax.f32 %v4417_v56, 0.0  ;;  %v6241_v49 = vmax.f32 %v4421_v54, 0.0  ;;  %v6242_v37 = vmax.f32 %v6199_v11, 0.0  ;;  %v2671_v56 = vld [vmem:[%s5695_s2 + $0x60] sm:$0xff]  ;;  %v2672_v54 = vld [vmem:[%s5695_s2 + $0x68] sm:$0xff] }
 0x499   :  { %6232 = vst [vmem:[#allocation101_spill] sm:$0xff] %v4777_v53  ;;  %v4791_v16 = vmul.f32 %v2665_v48, %v6236_v7  ;;  %v4798_v53 = vmul.f32 %v2666_v6, %v6238_v33  ;;  %v2668_v48 = vld [vmem:[%s5695_s2 + $0x48] sm:$0xff]  ;;  %v2669_v6 = vld [vmem:[%s5695_s2 + $0x50] sm:$0xff] }
 0x49a   :  { %v4812_v7 = vmul.f32 %v2668_v48, %v6240_v45  ;;  %v4819_v33 = vmul.f32 %v2669_v6, %v6241_v49  ;;  %v4826_v55 = vmul.f32 %v2670_v58, %v6242_v37  ;;  %v6243_v48 = vmax.f32 %v6200_v0, 0.0  ;;  %v2673_v11 = vld [vmem:[%s5695_s2 + $0x70] sm:$0xff]  ;;  %v2674_v0 = vld [vmem:[%s5695_s2 + $0x78] sm:$0xff] }
 0x49b   :  { %v6244_v6 = vmax.f32 %v6201_v50, 0.0  ;;  %v6245_v58 = vmax.f32 %v6202_v28, 0.0  ;;  %v2675_v50 = vld [vmem:[%s5695_s2 + $0x80] sm:$0xff]  ;;  %v2676_v28 = vld [vmem:[%s5695_s2 + $0x88] sm:$0xff] }
 0x49c   :  { %v4833_v45 = vmul.f32 %v2671_v56, %v6243_v48  ;;  %v6246_v56 = vmax.f32 %v6203_v18, 0.0  ;;  %v2677_v18 = vld [vmem:[%s5695_s2 + $0x90] sm:$0xff] }
 0x49d   :  { %v4840_v49 = vmul.f32 %v2672_v54, %v6244_v6  ;;  %v4847_v37 = vmul.f32 %v2673_v11, %v6245_v58  ;;  %v6247_v54 = vmax.f32 %v6204_v5, 0.0  ;;  %v6248_v11 = vmax.f32 %v6205_v41, 0.0  ;;  %v2678_v5 = vld [vmem:[%s5695_s2 + $0x98] sm:$0xff]  ;;  %v2679_v41 = vld [vmem:[%s5695_s2 + $0xa0] sm:$0xff] }
 0x49e   :  { %v4854_v48 = vmul.f32 %v2674_v0, %v6246_v56  ;;  %v6249_v0 = vmax.f32 %v6206_v12, 0.0  ;;  %v2680_v12 = vld [vmem:[%s5695_s2 + $0xa8] sm:$0xff] }
 0x49f   :  { %v4861_v6 = vmul.f32 %v2675_v50, %v6247_v54  ;;  %v4868_v58 = vmul.f32 %v2676_v28, %v6248_v11  ;;  %v6250_v50 = vmax.f32 %v4457_v42, 0.0  ;;  %v6251_v28 = vmax.f32 %v4461_v14, 0.0  ;;  %v2681_v42 = vld [vmem:[%s5695_s2 + $0xb0] sm:$0xff]  ;;  %v2682_v14 = vld [vmem:[%s5695_s2 + $0xb8] sm:$0xff] }
 0x4a0   :  { %v4875_v56 = vmul.f32 %v2677_v18, %v6249_v0  ;;  %v6252_v18 = vmax.f32 %v4465_v4, 0.0  ;;  %v2683_v4 = vld [vmem:[%s5695_s2 + $0xc0] sm:$0xff] }
 0x4a1   :  { %v4882_v54 = vmul.f32 %v2678_v5, %v6250_v50  ;;  %v4889_v11 = vmul.f32 %v2679_v41, %v6251_v28  ;;  %v6253_v5 = vmax.f32 %v4469_v32, 0.0  ;;  %v6254_v41 = vmax.f32 %v4473_v13, 0.0  ;;  %v2684_v32 = vld [vmem:[%s5695_s2 + $0xc8] sm:$0xff]  ;;  %v2685_v13 = vld [vmem:[%s5695_s2 + $0xd0] sm:$0xff] }
 0x4a2   :  { %v4896_v0 = vmul.f32 %v2680_v12, %v6252_v18  ;;  %v6255_v12 = vmax.f32 %v4477_v44, 0.0  ;;  %v2686_v44 = vld [vmem:[%s5695_s2 + $0xd8] sm:$0xff] }
 0x4a3   :  { %v4903_v50 = vmul.f32 %v2681_v42, %v6253_v5  ;;  %v4910_v28 = vmul.f32 %v2682_v14, %v6254_v41  ;;  %v6256_v42 = vmax.f32 %v4481_v30, 0.0  ;;  %v6257_v14 = vmax.f32 %v4485_v43, 0.0  ;;  %v2687_v30 = vld [vmem:[%s5695_s2 + $0xe0] sm:$0xff]  ;;  %v2688_v43 = vld [vmem:[%s5695_s2 + $0xe8] sm:$0xff] }
 0x4a4   :  { %v4917_v18 = vmul.f32 %v2683_v4, %v6255_v12  ;;  %v6259_v4 = vmax.f32 %v4489_v46, 0.0  ;;  %v2689_v46 = vld [vmem:[%s5695_s2 + $0xf0] sm:$0xff] }
 0x4a5   :  { %v4924_v5 = vmul.f32 %v2684_v32, %v6256_v42  ;;  %v4931_v41 = vmul.f32 %v2685_v13, %v6257_v14  ;;  %v6260_v32 = vmax.f32 %v4493_v2, 0.0  ;;  %v6261_v13 = vld [vmem:[#allocation3_spill] sm:$0xff]  ;;  %v2690_v2 = vld [vmem:[%s5695_s2 + $0xf8] sm:$0xff] }
 0x4a6   :  { %v4938_v12 = vmul.f32 %v2686_v44, %v6259_v4  ;;  %v6262_v14 = vmax.f32 %v6261_v13, 0.0  ;;  %v6263_v44 = vmax.f32 %v4501_v20, 0.0  ;;  %v6266_v13 = vmax.f32 %v4509_v26, 0.0  ;;  %v2692_v20 = vld [vmem:[%s5695_s2 + $0x108] sm:$0xff]  ;;  %v2694_v26 = vld [vmem:[%s5695_s2 + $0x118] sm:$0xff] }
 0x4a7   :  { %6258 = vst [vmem:[#allocation102_spill] sm:$0xff] %v4931_v41  ;;  %v4945_v42 = vmul.f32 %v2687_v30, %v6260_v32  ;;  %v6265_v30 = vmax.f32 %v4505_v24, 0.0  ;;  %v2693_v24 = vld [vmem:[%s5695_s2 + $0x110] sm:$0xff] }
 0x4a8   :  { %v4952_v41 = vmul.f32 %v2688_v43, %v6262_v14  ;;  %v4959_v4 = vmul.f32 %v2689_v46, %v6263_v44  ;;  %v2691_v43 = vld [vmem:[%s5695_s2 + $0x100] sm:$0xff]  ;;  %v6267_v46 = vld [vmem:[#allocation76_spill] sm:$0xff] }
 0x4a9   :  { %v4966_v32 = vmul.f32 %v2690_v2, %v6265_v30  ;;  %v4973_v14 = vmul.f32 %v2691_v43, %v6266_v13  ;;  %v6268_v44 = vmax.f32 %v6267_v46, 0.0  ;;  %v6269_v2 = vmax.f32 %v4517_v8, 0.0  ;;  %v2696_v8 = vld [vmem:[%s5695_s2 + $0x128] sm:$0xff] }
 0x4aa   :  { %6264 = vst [vmem:[#allocation103_spill] sm:$0xff] %v4959_v4  ;;  %v6270_v43 = vmax.f32 %v4521_v38, 0.0  ;;  %v6271_v46 = vmax.f32 %v4525_v40, 0.0  ;;  %v2697_v38 = vld [vmem:[%s5695_s2 + $0x130] sm:$0xff]  ;;  %v2698_v40 = vld [vmem:[%s5695_s2 + $0x138] sm:$0xff] }
 0x4ab   :  { %v4980_v4 = vmul.f32 %v2692_v20, %v6268_v44  ;;  %v4987_v30 = vmul.f32 %v2693_v24, %v6269_v2  ;;  %v2695_v20 = vld [vmem:[%s5695_s2 + $0x120] sm:$0xff]  ;;  %v6272_v24 = vmax.f32 %v4529_v52, 0.0 }
 0x4ac   :  { %v4994_v13 = vmul.f32 %v2694_v26, %v6270_v43  ;;  %v5001_v44 = vmul.f32 %v2695_v20, %v6271_v46  ;;  %v6273_v26 = vmax.f32 %v4533_v22, 0.0  ;;  %v6275_v20 = vmax.f32 %v4537_v61, 0.0  ;;  %v2699_v52 = vld [vmem:[%s5695_s2 + $0x140] sm:$0xff]  ;;  %v2700_v22 = vld [vmem:[%s5695_s2 + $0x148] sm:$0xff]  ;;  %v2701_v61 = vld [vmem:[%s5695_s2 + $0x150] sm:$0xff] }
 0x4ad   :  { %v5008_v2 = vmul.f32 %v2696_v8, %v6272_v24  ;;  %v6277_v8 = vmax.f32 %v6207_v29, 0.0  ;;  %v2702_v29 = vld [vmem:[%s5695_s2 + $0x158] sm:$0xff] }
 0x4ae   :  { %v5015_v43 = vmul.f32 %v2697_v38, %v6273_v26  ;;  %v5022_v46 = vmul.f32 %v2698_v40, %v6275_v20  ;;  %v6279_v38 = vld [vmem:[#allocation77_spill] sm:$0xff]  ;;  %v6282_v40 = vld [vmem:[#allocation79_spill] sm:$0xff] }
 0x4af   :  { %v5029_v24 = vmul.f32 %v2699_v52, %v6277_v8  ;;  %v6280_v26 = vmax.f32 %v6279_v38, 0.0  ;;  %v6283_v20 = vmax.f32 %v6282_v40, 0.0  ;;  %v6285_v52 = vld [vmem:[#allocation80_spill] sm:$0xff]  ;;  %v6287_v38 = vld [vmem:[#allocation81_spill] sm:$0xff]  ;;  %v6289_v40 = vld [vmem:[#allocation82_spill] sm:$0xff] }
 0x4b0   :  { %6274 = vst [vmem:[#allocation104_spill] sm:$0xff] %v5015_v43  ;;  %6276 = vst [vmem:[#allocation66_spill] sm:$0xff] %v5022_v46  ;;  %v6286_v8 = vmax.f32 %v6285_v52, 0.0  ;;  %v6291_v52 = vmax.f32 %v4565_v57, 0.0  ;;  %v2708_v57 = vld [vmem:[%s5695_s2 + $0x188] sm:$0xff] }
 0x4b1   :  { %6278 = vst [vmem:[#allocation105_spill] sm:$0xff] %v5029_v24  ;;  %v5036_v43 = vmul.f32 %v2700_v22, %v6280_v26  ;;  %v5043_v46 = vmul.f32 %v2701_v61, %v6283_v20  ;;  %v2703_v22 = vld [vmem:[%s5695_s2 + $0x160] sm:$0xff]  ;;  %v6288_v26 = vmax.f32 %v6287_v38, 0.0  ;;  %v2704_v61 = vld [vmem:[%s5695_s2 + $0x168] sm:$0xff]  ;;  %v6290_v20 = vmax.f32 %v6289_v40, 0.0 }
 0x4b2   :  { %v5050_v24 = vmul.f32 %v2702_v29, %v6286_v8  ;;  %v2705_v29 = vld [vmem:[%s5695_s2 + $0x170] sm:$0xff]  ;;  %v6292_v38 = vmax.f32 %v4569_v36, 0.0  ;;  %v6293_v40 = vmax.f32 %v4573_v10, 0.0  ;;  %v2710_v10 = vld [vmem:[%s5695_s2 + $0x198] sm:$0xff] }
 0x4b3   :  { %6281 = vst [vmem:[#allocation70_spill] sm:$0xff] %v5036_v43  ;;  %6284 = vst [vmem:[#allocation106_spill] sm:$0xff] %v5043_v46  ;;  %v5057_v43 = vmul.f32 %v2703_v22, %v6288_v26  ;;  %v5064_v46 = vmul.f32 %v2704_v61, %v6290_v20  ;;  %v5071_v8 = vmul.f32 %v2705_v29, %v6291_v52  ;;  %v2706_v22 = vld [vmem:[%s5695_s2 + $0x178] sm:$0xff]  ;;  %v2707_v61 = vld [vmem:[%s5695_s2 + $0x180] sm:$0xff]  ;;  %v6294_v29 = vmax.f32 %v4577_v47, 0.0 }
 0x4b4   :  { %v5078_v26 = vmul.f32 %v2706_v22, %v6292_v38  ;;  %v5085_v20 = vmul.f32 %v2707_v61, %v6293_v40  ;;  %v2709_v36 = vld [vmem:[%s5695_s2 + $0x190] sm:$0xff]  ;;  %v6295_v22 = vmax.f32 %v4581_v51, 0.0  ;;  %v6296_v61 = vmax.f32 %v4585_v25, 0.0  ;;  %v2711_v47 = vld [vmem:[%s5695_s2 + $0x1a0] sm:$0xff]  ;;  %v2712_v51 = vld [vmem:[%s5695_s2 + $0x1a8] sm:$0xff] }
 0x4b5   :  { %v5092_v52 = vmul.f32 %v2708_v57, %v6294_v29  ;;  %v6297_v57 = vmax.f32 %v6209_v60, 0.0  ;;  %v2713_v25 = vld [vmem:[%s5695_s2 + $0x1b0] sm:$0xff]  ;;  %v2714_v60 = vld [vmem:[%s5695_s2 + $0x1b8] sm:$0xff] }
 0x4b6   :  { %v5099_v38 = vmul.f32 %v2709_v36, %v6295_v22  ;;  %v5106_v40 = vmul.f32 %v2710_v10, %v6296_v61  ;;  %v6298_v36 = vmax.f32 %v6210_v62, 0.0  ;;  %v6300_v10 = vmax.f32 %v6211_v9, 0.0  ;;  %v2715_v62 = vld [vmem:[%s5695_s2 + $0x1c0] sm:$0xff]  ;;  %v2716_v9 = vld [vmem:[%s5695_s2 + $0x1c8] sm:$0xff] }
 0x4b7   :  { %v5113_v29 = vmul.f32 %v2711_v47, %v6297_v57  ;;  %v6302_v47 = vmax.f32 %v6212_v39, 0.0  ;;  %v2717_v39 = vld [vmem:[%s5695_s2 + $0x1d0] sm:$0xff] }
 0x4b8   :  { %v5120_v22 = vmul.f32 %v2712_v51, %v6298_v36  ;;  %v5127_v61 = vmul.f32 %v2713_v25, %v6300_v10  ;;  %v6304_v51 = vld [vmem:[#allocation87_spill] sm:$0xff]  ;;  %v6307_v25 = vld [vmem:[#allocation88_spill] sm:$0xff] }
 0x4b9   :  { %v5134_v57 = vmul.f32 %v2714_v60, %v6302_v47  ;;  %v6305_v36 = vmax.f32 %v6304_v51, 0.0  ;;  %v6308_v10 = vmax.f32 %v6307_v25, 0.0  ;;  %v6310_v60 = vld [vmem:[#allocation89_spill] sm:$0xff]  ;;  %v6312_v51 = vld [vmem:[#allocation19_spill] sm:$0xff]  ;;  %v6314_v25 = vld [vmem:[#allocation90_spill] sm:$0xff] }
 0x4ba   :  { %6299 = vst [vmem:[#allocation107_spill] sm:$0xff] %v5120_v22  ;;  %6301 = vst [vmem:[#allocation108_spill] sm:$0xff] %v5127_v61  ;;  %v6311_v47 = vmax.f32 %v6310_v60, 0.0  ;;  %v6316_v60 = vmax.f32 %v4625_v31, 0.0  ;;  %v2723_v31 = vld [vmem:[%s5695_s2 + $0x200] sm:$0xff] }
 0x4bb   :  { %6303 = vst [vmem:[#allocation109_spill] sm:$0xff] %v5134_v57  ;;  %v5141_v22 = vmul.f32 %v2715_v62, %v6305_v36  ;;  %v5148_v61 = vmul.f32 %v2716_v9, %v6308_v10  ;;  %v2718_v62 = vld [vmem:[%s5695_s2 + $0x1d8] sm:$0xff]  ;;  %v6313_v36 = vmax.f32 %v6312_v51, 0.0  ;;  %v2719_v9 = vld [vmem:[%s5695_s2 + $0x1e0] sm:$0xff]  ;;  %v6315_v10 = vmax.f32 %v6314_v25, 0.0 }
 0x4bc   :  { %v5155_v57 = vmul.f32 %v2717_v39, %v6311_v47  ;;  %v2720_v39 = vld [vmem:[%s5695_s2 + $0x1e8] sm:$0xff]  ;;  %v6317_v51 = vmax.f32 %v4629_v35, 0.0  ;;  %v6318_v25 = vmax.f32 %v4633_v59, 0.0  ;;  %v2725_v59 = vld [vmem:[%s5695_s2 + $0x210] sm:$0xff] }
 0x4bd   :  { %6306 = vst [vmem:[#allocation2_spill] sm:$0xff] %v5141_v22  ;;  %6309 = vst [vmem:[#allocation4_spill] sm:$0xff] %v5148_v61  ;;  %v5162_v22 = vmul.f32 %v2718_v62, %v6313_v36  ;;  %v5169_v61 = vmul.f32 %v2719_v9, %v6315_v10  ;;  %v5176_v47 = vmul.f32 %v2720_v39, %v6316_v60  ;;  %v2721_v62 = vld [vmem:[%s5695_s2 + $0x1f0] sm:$0xff]  ;;  %v2722_v9 = vld [vmem:[%s5695_s2 + $0x1f8] sm:$0xff]  ;;  %v6319_v39 = vmax.f32 %v4637_v63, 0.0 }
 0x4be   :  { %v5183_v36 = vmul.f32 %v2721_v62, %v6317_v51  ;;  %v5190_v10 = vmul.f32 %v2722_v9, %v6318_v25  ;;  %v2724_v35 = vld [vmem:[%s5695_s2 + $0x208] sm:$0xff]  ;;  %v6320_v62 = vmax.f32 %v4641_v3, 0.0  ;;  %v6321_v9 = vmax.f32 %v4645_v17, 0.0  ;;  %v2726_v63 = vld [vmem:[%s5695_s2 + $0x218] sm:$0xff]  ;;  %v2727_v3 = vld [vmem:[%s5695_s2 + $0x220] sm:$0xff] }
 0x4bf   :  { %v5197_v60 = vmul.f32 %v2723_v31, %v6319_v39  ;;  %v6322_v31 = vmax.f32 %v6214_v1, 0.0  ;;  %v2728_v17 = vld [vmem:[%s5695_s2 + $0x228] sm:$0xff]  ;;  %v2729_v1 = vld [vmem:[%s5695_s2 + $0x230] sm:$0xff] }
 0x4c0   :  { %v5204_v51 = vmul.f32 %v2724_v35, %v6320_v62  ;;  %v5211_v25 = vmul.f32 %v2725_v59, %v6321_v9  ;;  %v6324_v35 = vmax.f32 %v6215_v15, 0.0  ;;  %v6326_v59 = vmax.f32 %v6216_v19, 0.0  ;;  %v2730_v15 = vld [vmem:[%s5695_s2 + $0x238] sm:$0xff]  ;;  %v2731_v19 = vld [vmem:[%s5695_s2 + $0x240] sm:$0x3] }
 0x4c1   :  { %v5218_v39 = vmul.f32 %v2726_v63, %v6322_v31  ;;  %v6328_v63 = vmax.f32 %v6217_v23, 0.0 }
 0x4c2   :  { %v5225_v62 = vmul.f32 %v2727_v3, %v6324_v35  ;;  %v5232_v9 = vmul.f32 %v2728_v17, %v6326_v59  ;;  %v6330_v3 = vmax.f32 %v6218_v27, 0.0  ;;  %v6332_v17 = vld [vmem:[#allocation96_spill] sm:$0xff] }
 0x4c3   :  { %6323 = vst [vmem:[#allocation5_spill] sm:$0xff] %v5218_v39  ;;  %v5239_v31 = vmul.f32 %v2729_v1, %v6328_v63  ;;  %v6333_v59 = vmax.f32 %v6332_v17, 0.0  ;;  %v6335_v1 = vld [vmem:[#allocation98_spill] sm:$0xff]  ;;  %v6337_v27 = vld [vmem:[#allocation100_spill] sm:$0xff]  ;;  %v2335_v17 = vpack.c.bf16 %v4784_v34, %v4784_v34  ;;  %v2340_v34 = vpack.c.bf16 %v4819_v33, %v4819_v33 }
 0x4c4   :  { %6325 = vst [vmem:[#allocation6_spill] sm:$0xff] %v5225_v62  ;;  %6327 = vst [vmem:[#allocation7_spill] sm:$0xff] %v5232_v9  ;;  %v5246_v35 = vmul.f32 %v2730_v15, %v6330_v3  ;;  %v6334_v62 = vld [vmem:[#allocation97_spill] sm:$0xff]  ;;  %v2331_v63 = vpack.c.bf16 %v6335_v1, %v6335_v1  ;;  %v2333_v15 = vpack.c.bf16 %v6337_v27, %v6337_v27 }
 0x4c5   :  { %6329 = vst [vmem:[#allocation8_spill] sm:$0xff] %v5239_v31  ;;  %v5253_v9 = vmul.f32 %v2731_v19, %v6333_v59  ;;  %v2330_v23 = vpack.c.bf16 %v6334_v62, %v6334_v62  ;;  %v6336_v31 = vld [vmem:[#allocation99_spill] sm:$0xff]  ;;  %v6338_v3 = vld [vmem:[#allocation101_spill] sm:$0xff]  ;;  %v2336_v19 = vpack.c.bf16 %v4791_v16, %v4791_v16  ;;  %v2337_v62 = vpack.c.bf16 %v4798_v53, %v4798_v53 }
 0x4c6   :  { %6331 = vst [vmem:[#allocation9_spill] sm:$0xff] %v5246_v35  ;;  %v2332_v39 = vpack.c.bf16 %v6336_v31, %v6336_v31  ;;  %v2334_v35 = vpack.c.bf16 %v6338_v3, %v6338_v3  ;;  %v2338_v59 = vpack.c.bf16 %v4805_v21, %v4805_v21  ;;  %v2339_v31 = vpack.c.bf16 %v4812_v7, %v4812_v7  ;;  %v6345_v3 = vld [vmem:[#allocation106_spill] sm:$0xff] }
 0x4c7   :  { %2101 = vst.msk [vmem:[%s5698_s5] sm:$0xf] %vm2100_vm7, %v2330_v23  ;;  %v2341_v16 = vpack.c.bf16 %v4826_v55, %v4826_v55  ;;  %v2342_v53 = vpack.c.bf16 %v4833_v45, %v4833_v45  ;;  %2102 = vst.msk [vmem:[%s5698_s5 + $0x4] sm:$0xf] %vm2100_vm7, %v2331_v63  ;;  %v2343_v21 = vpack.c.bf16 %v4840_v49, %v4840_v49  ;;  %v6343_v63 = vld [vmem:[#allocation105_spill] sm:$0xff] }
 0x4c8   :  { %2103 = vst.msk [vmem:[%s5698_s5 + $0x8] sm:$0xf] %vm2100_vm7, %v2332_v39  ;;  %2104 = vst.msk [vmem:[%s5698_s5 + $0xc] sm:$0xf] %vm2100_vm7, %v2333_v15  ;;  %v2344_v7 = vpack.c.bf16 %v4847_v37, %v4847_v37  ;;  %v2345_v33 = vpack.c.bf16 %v4854_v48, %v4854_v48  ;;  %v2346_v55 = vpack.c.bf16 %v4861_v6, %v4861_v6 }
 0x4c9   :  { %2105 = vst.msk [vmem:[%s5698_s5 + $0x10] sm:$0xf] %vm2100_vm7, %v2334_v35  ;;  %2106 = vst.msk [vmem:[%s5698_s5 + $0x14] sm:$0xf] %vm2100_vm7, %v2335_v17  ;;  %v2347_v45 = vpack.c.bf16 %v4868_v58, %v4868_v58  ;;  %v2348_v49 = vpack.c.bf16 %v4875_v56, %v4875_v56  ;;  %v2349_v37 = vpack.c.bf16 %v4882_v54, %v4882_v54 }
 0x4ca   :  { %2107 = vst.msk [vmem:[%s5698_s5 + $0x18] sm:$0xf] %vm2100_vm7, %v2336_v19  ;;  %2108 = vst.msk [vmem:[%s5698_s5 + $0x1c] sm:$0xf] %vm2100_vm7, %v2337_v62  ;;  %v2350_v48 = vpack.c.bf16 %v4889_v11, %v4889_v11  ;;  %v2351_v6 = vpack.c.bf16 %v4896_v0, %v4896_v0  ;;  %v2352_v58 = vpack.c.bf16 %v4903_v50, %v4903_v50  ;;  %v6339_v0 = vld [vmem:[#allocation102_spill] sm:$0xff] }
 0x4cb   :  { %2109 = vst.msk [vmem:[%s5698_s5 + $0x20] sm:$0xf] %vm2100_vm7, %v2338_v59  ;;  %2110 = vst.msk [vmem:[%s5698_s5 + $0x24] sm:$0xf] %vm2100_vm7, %v2339_v31  ;;  %v2353_v56 = vpack.c.bf16 %v4910_v28, %v4910_v28  ;;  %v2354_v54 = vpack.c.bf16 %v4917_v18, %v4917_v18  ;;  %v2355_v11 = vpack.c.bf16 %v4924_v5, %v4924_v5 }
 0x4cc   :  { %2111 = vst.msk [vmem:[%s5698_s5 + $0x28] sm:$0xf] %vm2100_vm7, %v2340_v34  ;;  %2112 = vst.msk [vmem:[%s5698_s5 + $0x2c] sm:$0xf] %vm2100_vm7, %v2341_v16  ;;  %v2356_v50 = vpack.c.bf16 %v6339_v0, %v6339_v0  ;;  %v2357_v28 = vpack.c.bf16 %v4938_v12, %v4938_v12  ;;  %v2358_v18 = vpack.c.bf16 %v4945_v42, %v4945_v42  ;;  %v6340_v12 = vld [vmem:[#allocation103_spill] sm:$0xff]  ;;  %v6348_v34 = vld [vmem:[#allocation109_spill] sm:$0xff] }
 0x4cd   :  { %2113 = vst.msk [vmem:[%s5698_s5 + $0x30] sm:$0xf] %vm2100_vm7, %v2342_v53  ;;  %2114 = vst.msk [vmem:[%s5698_s5 + $0x34] sm:$0xf] %vm2100_vm7, %v2343_v21  ;;  %v2359_v5 = vpack.c.bf16 %v4952_v41, %v4952_v41  ;;  %v2360_v42 = vpack.c.bf16 %v6340_v12, %v6340_v12  ;;  %v2361_v39 = vpack.c.bf16 %v4966_v32, %v4966_v32  ;;  %v6349_v53 = vld [vmem:[#allocation2_spill] sm:$0xff] }
 0x4ce   :  { %2115 = vst.msk [vmem:[%s5698_s5 + $0x38] sm:$0xf] %vm2100_vm7, %v2344_v7  ;;  %2116 = vst.msk [vmem:[%s5698_s5 + $0x3c] sm:$0xf] %vm2100_vm7, %v2345_v33  ;;  %v2362_v35 = vpack.c.bf16 %v4973_v14, %v4973_v14  ;;  %v2363_v41 = vpack.c.bf16 %v4980_v4, %v4980_v4  ;;  %v2364_v32 = vpack.c.bf16 %v4987_v30, %v4987_v30  ;;  %v6341_v30 = vld [vmem:[#allocation104_spill] sm:$0xff] }
 0x4cf   :  { %2117 = vst.msk [vmem:[%s5698_s5 + $0x40] sm:$0xf] %vm2100_vm7, %v2346_v55  ;;  %2118 = vst.msk [vmem:[%s5698_s5 + $0x44] sm:$0xf] %vm2100_vm7, %v2347_v45  ;;  %v2365_v14 = vpack.c.bf16 %v4994_v13, %v4994_v13  ;;  %v2366_v23 = vpack.c.bf16 %v5001_v44, %v5001_v44  ;;  %v2367_v4 = vpack.c.bf16 %v5008_v2, %v5008_v2  ;;  %v6342_v44 = vld [vmem:[#allocation66_spill] sm:$0xff]  ;;  %v6350_v7 = vld [vmem:[#allocation4_spill] sm:$0xff] }
 0x4d0   :  { %2119 = vst.msk [vmem:[%s5698_s5 + $0x48] sm:$0xf] %vm2100_vm7, %v2348_v49  ;;  %2120 = vst.msk [vmem:[%s5698_s5 + $0x4c] sm:$0xf] %vm2100_vm7, %v2349_v37  ;;  %v2368_v13 = vpack.c.bf16 %v6341_v30, %v6341_v30  ;;  %v2369_v1 = vpack.c.bf16 %v6342_v44, %v6342_v44  ;;  %v2370_v27 = vpack.c.bf16 %v6343_v63, %v6343_v63  ;;  %v6344_v2 = vld [vmem:[#allocation70_spill] sm:$0xff] }
 0x4d1   :  { %2121 = vst.msk [vmem:[%s5698_s5 + $0x50] sm:$0xf] %vm2100_vm7, %v2350_v48  ;;  %2122 = vst.msk [vmem:[%s5698_s5 + $0x54] sm:$0xf] %vm2100_vm7, %v2351_v6  ;;  %v2371_v15 = vpack.c.bf16 %v6344_v2, %v6344_v2  ;;  %v2372_v17 = vpack.c.bf16 %v6345_v3, %v6345_v3  ;;  %v2373_v19 = vpack.c.bf16 %v5050_v24, %v5050_v24  ;;  %v6352_v48 = vld [vmem:[#allocation6_spill] sm:$0xff] }
 0x4d2   :  { %2123 = vst.msk [vmem:[%s5698_s5 + $0x58] sm:$0xf] %vm2100_vm7, %v2352_v58  ;;  %2124 = vst.msk [vmem:[%s5698_s5 + $0x5c] sm:$0xf] %vm2100_vm7, %v2353_v56  ;;  %v2374_v62 = vpack.c.bf16 %v5057_v43, %v5057_v43  ;;  %v2375_v43 = vpack.c.bf16 %v5064_v46, %v5064_v46  ;;  %v2376_v24 = vpack.c.bf16 %v5071_v8, %v5071_v8  ;;  %v6354_v58 = vld [vmem:[#allocation8_spill] sm:$0xff] }
 0x4d3   :  { %2125 = vst.msk [vmem:[%s5698_s5 + $0x60] sm:$0xf] %vm2100_vm7, %v2354_v54  ;;  %2126 = vst.msk [vmem:[%s5698_s5 + $0x64] sm:$0xf] %vm2100_vm7, %v2355_v11  ;;  %v2377_v59 = vpack.c.bf16 %v5078_v26, %v5078_v26  ;;  %v2378_v31 = vpack.c.bf16 %v5085_v20, %v5085_v20  ;;  %v2379_v46 = vpack.c.bf16 %v5092_v52, %v5092_v52  ;;  %v6346_v52 = vld [vmem:[#allocation107_spill] sm:$0xff]  ;;  %v6355_v54 = vld [vmem:[#allocation9_spill] sm:$0xff] }
 0x4d4   :  { %2127 = vst.msk [vmem:[%s5698_s5 + $0x68] sm:$0xf] %vm2100_vm7, %v2356_v50  ;;  %2128 = vst.msk [vmem:[%s5698_s5 + $0x6c] sm:$0xf] %vm2100_vm7, %v2357_v28  ;;  %v2380_v8 = vpack.c.bf16 %v5099_v38, %v5099_v38  ;;  %v2381_v26 = vpack.c.bf16 %v5106_v40, %v5106_v40  ;;  %v2382_v20 = vpack.c.bf16 %v5113_v29, %v5113_v29  ;;  %v6347_v40 = vld [vmem:[#allocation108_spill] sm:$0xff] }
 0x4d5   :  { %2129 = vst.msk [vmem:[%s5698_s5 + $0x70] sm:$0xf] %vm2100_vm7, %v2358_v18  ;;  %2130 = vst.msk [vmem:[%s5698_s5 + $0x74] sm:$0xf] %vm2100_vm7, %v2359_v5  ;;  %v2383_v38 = vpack.c.bf16 %v6346_v52, %v6346_v52  ;;  %v2384_v29 = vpack.c.bf16 %v6347_v40, %v6347_v40  ;;  %v2385_v16 = vpack.c.bf16 %v6348_v34, %v6348_v34 }
 0x4d6   :  { %2131 = vst.msk [vmem:[%s5698_s5 + $0x78] sm:$0xf] %vm2100_vm7, %v2360_v42  ;;  %2132 = vst.msk [vmem:[%s5698_s5 + $0x7c] sm:$0xf] %vm2100_vm7, %v2361_v39  ;;  %v2386_v21 = vpack.c.bf16 %v6349_v53, %v6349_v53  ;;  %v2387_v33 = vpack.c.bf16 %v6350_v7, %v6350_v7  ;;  %v2388_v55 = vpack.c.bf16 %v5155_v57, %v5155_v57 }
 0x4d7   :  { %2133 = vst.msk [vmem:[%s5698_s5 + $0x80] sm:$0xf] %vm2100_vm7, %v2362_v35  ;;  %2134 = vst.msk [vmem:[%s5698_s5 + $0x84] sm:$0xf] %vm2100_vm7, %v2363_v41  ;;  %v2389_v45 = vpack.c.bf16 %v5162_v22, %v5162_v22  ;;  %v2390_v49 = vpack.c.bf16 %v5169_v61, %v5169_v61  ;;  %v2391_v22 = vpack.c.bf16 %v5176_v47, %v5176_v47 }
 0x4d8   :  { %2135 = vst.msk [vmem:[%s5698_s5 + $0x88] sm:$0xf] %vm2100_vm7, %v2364_v32  ;;  %2136 = vst.msk [vmem:[%s5698_s5 + $0x8c] sm:$0xf] %vm2100_vm7, %v2365_v14  ;;  %v2392_v61 = vpack.c.bf16 %v5183_v36, %v5183_v36  ;;  %v2393_v57 = vpack.c.bf16 %v5190_v10, %v5190_v10  ;;  %v2394_v37 = vpack.c.bf16 %v5197_v60, %v5197_v60  ;;  %v6351_v10 = vld [vmem:[#allocation5_spill] sm:$0xff] }
 0x4d9   :  { %2137 = vst.msk [vmem:[%s5698_s5 + $0x90] sm:$0xf] %vm2100_vm7, %v2366_v23  ;;  %2138 = vst.msk [vmem:[%s5698_s5 + $0x94] sm:$0xf] %vm2100_vm7, %v2367_v4  ;;  %v2395_v47 = vpack.c.bf16 %v5204_v51, %v5204_v51  ;;  %v2396_v36 = vpack.c.bf16 %v5211_v25, %v5211_v25  ;;  %v2397_v60 = vpack.c.bf16 %v6351_v10, %v6351_v10  ;;  %v6353_v51 = vld [vmem:[#allocation7_spill] sm:$0xff] }
 0x4da   :  { %2139 = vst.msk [vmem:[%s5698_s5 + $0x98] sm:$0xf] %vm2100_vm7, %v2368_v13  ;;  %2140 = vst.msk [vmem:[%s5698_s5 + $0x9c] sm:$0xf] %vm2100_vm7, %v2369_v1  ;;  %v2398_v6 = vpack.c.bf16 %v6352_v48, %v6352_v48  ;;  %v2399_v25 = vpack.c.bf16 %v6353_v51, %v6353_v51  ;;  %v2400_v56 = vpack.c.bf16 %v6354_v58, %v6354_v58 }
 0x4db   :  { %2141 = vst.msk [vmem:[%s5698_s5 + $0xa0] sm:$0xf] %vm2100_vm7, %v2370_v27  ;;  %2142 = vst.msk [vmem:[%s5698_s5 + $0xa4] sm:$0xf] %vm2100_vm7, %v2371_v15  ;;  %v2401_v11 = vpack.c.bf16 %v6355_v54, %v6355_v54  ;;  %v2402_v0 = vpack.c.bf16 %v5253_v9, %v5253_v9 }
 0x4dc   :  { %2143 = vst.msk [vmem:[%s5698_s5 + $0xa8] sm:$0xf] %vm2100_vm7, %v2372_v17  ;;  %2144 = vst.msk [vmem:[%s5698_s5 + $0xac] sm:$0xf] %vm2100_vm7, %v2373_v19 }
 0x4dd   :  { %2145 = vst.msk [vmem:[%s5698_s5 + $0xb0] sm:$0xf] %vm2100_vm7, %v2374_v62  ;;  %2146 = vst.msk [vmem:[%s5698_s5 + $0xb4] sm:$0xf] %vm2100_vm7, %v2375_v43 }
 0x4de   :  { %2147 = vst.msk [vmem:[%s5698_s5 + $0xb8] sm:$0xf] %vm2100_vm7, %v2376_v24  ;;  %2148 = vst.msk [vmem:[%s5698_s5 + $0xbc] sm:$0xf] %vm2100_vm7, %v2377_v59 }
 0x4df   :  { %2149 = vst.msk [vmem:[%s5698_s5 + $0xc0] sm:$0xf] %vm2100_vm7, %v2378_v31  ;;  %2150 = vst.msk [vmem:[%s5698_s5 + $0xc4] sm:$0xf] %vm2100_vm7, %v2379_v46 }
 0x4e0   :  { %2151 = vst.msk [vmem:[%s5698_s5 + $0xc8] sm:$0xf] %vm2100_vm7, %v2380_v8  ;;  %2152 = vst.msk [vmem:[%s5698_s5 + $0xcc] sm:$0xf] %vm2100_vm7, %v2381_v26 }
 0x4e1   :  { %2153 = vst.msk [vmem:[%s5698_s5 + $0xd0] sm:$0xf] %vm2100_vm7, %v2382_v20  ;;  %2154 = vst.msk [vmem:[%s5698_s5 + $0xd4] sm:$0xf] %vm2100_vm7, %v2383_v38 }
 0x4e2   :  { %2155 = vst.msk [vmem:[%s5698_s5 + $0xd8] sm:$0xf] %vm2100_vm7, %v2384_v29  ;;  %2156 = vst.msk [vmem:[%s5698_s5 + $0xdc] sm:$0xf] %vm2100_vm7, %v2385_v16 }
 0x4e3   :  { %2157 = vst.msk [vmem:[%s5698_s5 + $0xe0] sm:$0xf] %vm2100_vm7, %v2386_v21  ;;  %2158 = vst.msk [vmem:[%s5698_s5 + $0xe4] sm:$0xf] %vm2100_vm7, %v2387_v33 }
 0x4e4   :  { %2159 = vst.msk [vmem:[%s5698_s5 + $0xe8] sm:$0xf] %vm2100_vm7, %v2388_v55  ;;  %2160 = vst.msk [vmem:[%s5698_s5 + $0xec] sm:$0xf] %vm2100_vm7, %v2389_v45 }
 0x4e5   :  { %2161 = vst.msk [vmem:[%s5698_s5 + $0xf0] sm:$0xf] %vm2100_vm7, %v2390_v49  ;;  %2162 = vst.msk [vmem:[%s5698_s5 + $0xf4] sm:$0xf] %vm2100_vm7, %v2391_v22 }
 0x4e6   :  { %2163 = vst.msk [vmem:[%s5698_s5 + $0xf8] sm:$0xf] %vm2100_vm7, %v2392_v61  ;;  %2164 = vst.msk [vmem:[%s5698_s5 + $0xfc] sm:$0xf] %vm2100_vm7, %v2393_v57 }
 0x4e7   :  { %2165 = vst.msk [vmem:[%s5698_s5 + $0x100] sm:$0xf] %vm2100_vm7, %v2394_v37  ;;  %2166 = vst.msk [vmem:[%s5698_s5 + $0x104] sm:$0xf] %vm2100_vm7, %v2395_v47 }
 0x4e8   :  { %2167 = vst.msk [vmem:[%s5698_s5 + $0x108] sm:$0xf] %vm2100_vm7, %v2396_v36  ;;  %2168 = vst.msk [vmem:[%s5698_s5 + $0x10c] sm:$0xf] %vm2100_vm7, %v2397_v60 }
 0x4e9   :  { %2169 = vst.msk [vmem:[%s5698_s5 + $0x110] sm:$0xf] %vm2100_vm7, %v2398_v6  ;;  %2170 = vst.msk [vmem:[%s5698_s5 + $0x114] sm:$0xf] %vm2100_vm7, %v2399_v25 }
 0x4ea   :  { %2171 = vst.msk [vmem:[%s5698_s5 + $0x118] sm:$0xf] %vm2100_vm7, %v2400_v56  ;;  %2172 = vst.msk [vmem:[%s5698_s5 + $0x11c] sm:$0xf] %vm2100_vm7, %v2401_v11 }
 0x4eb   :  { %2174 = vst.msk [vmem:[%s5698_s5 + $0x120] sm:$0x1] %vm2173_vm8, %v2402_v0 }

// kernel: generator_forward.9
= control target key start
LH: loop header
LB: loop body
LE: loop exit
PB: predicated region body
PF: predicated region fallthrough
CT: control target
= control target key end

     0   :  { %v4734_v0 = vmov 0.0   ;;  %vm4735_vm0 = vmmov 0   ;;  %vm984_vm1 = vcmask 261120   ;;  %vm2797_vm2 = vcmask 97280   ;;  %s6674_s1 = inlined_call_operand.vmem [shape: bf16[32,12], index: 1, kind: input, shape index: {}]   ;;  %s6675_s0 = inlined_call_operand.vmem [shape: bf16[2178,32], index: 0, kind: input, shape index: {}]   ;;  %s6676_s2 = inlined_call_operand.vmem [shape: f32[2178,12], index: 2, kind: output, shape index: {}]  }
   0x1   :  { %3491 = vmatprep.subr.bf16.mxu0 %v4734_v0  ;;  %v4049_v1 = vld [vmem:[%s6674_s1 + $0x8] sm:$0xff]   ;;  %4043 = vmatprep.subr.bf16.mxu1 %v4734_v0  ;;  %v4050_v2 = vld [vmem:[%s6674_s1] sm:$0xff]   ;;  %v4054_v6 = vld [vmem:[%s6675_s0 + $0x230] sm:$0xff]   ;;  %vm3070_vm3 = vcmask 91136  }
   0x2   :  { %3495 = vmatprep.mubr.msk.bf16.mxu0 %vm4735_vm0, %v4734_v0  ;;  %3771 = vmatprep.mubr.msk.bf16.mxu1 %vm4735_vm0, %v4734_v0  ;;  %v4051_v3 = vld [vmem:[%s6675_s0] sm:$0xff]   ;;  %v4052_v4 = vld [vmem:[%s6675_s0 + $0x228] sm:$0xff]   ;;  %v4055_v7 = vld [vmem:[%s6675_s0 + $0x10] sm:$0xff]  }
   0x3   :  { %3492 = vmatpush3.bf16.msra.mxu0 %v4049_v1  ;;  %4045 = vmatpush3.bf16.msra.mxu1 %v4049_v1  ;;  %v4053_v5 = vld [vmem:[%s6675_s0 + $0x8] sm:$0xff]   ;;  %v4056_v8 = vld [vmem:[%s6675_s0 + $0x238] sm:$0xff]   ;;  %v4058_v10 = vld [vmem:[%s6675_s0 + $0x240] sm:$0xff]  }
   0x4   :  { %3493 = vmatprep.subr.bf16.mxu0 %v4734_v0  ;;  %4044 = vmatprep.subr.bf16.mxu1 %v4734_v0  ;;  %v4057_v9 = vld [vmem:[%s6675_s0 + $0x18] sm:$0xff]   ;;  %v4059_v11 = vld [vmem:[%s6675_s0 + $0x20] sm:$0xff]   ;;  %v4060_v12 = vld [vmem:[%s6675_s0 + $0x248] sm:$0xff]  }
   0x5   :  { %v4061_v13 = vld [vmem:[%s6675_s0 + $0x28] sm:$0xff]   ;;  %v4062_v14 = vld [vmem:[%s6675_s0 + $0x250] sm:$0xff]   ;;  %v4064_v16 = vld [vmem:[%s6675_s0 + $0x258] sm:$0xff]  }
   0x6   :  { %v4063_v15 = vld [vmem:[%s6675_s0 + $0x30] sm:$0xff]   ;;  %v4065_v17 = vld [vmem:[%s6675_s0 + $0x38] sm:$0xff]   ;;  %v4066_v18 = vld [vmem:[%s6675_s0 + $0x260] sm:$0xff]  }
   0x7   :  { %3494 = vmatpush3.bf16.msra.mxu0 %v4050_v2  ;;  %4046 = vmatpush3.bf16.msra.mxu1 %v4050_v2  ;;  %v4067_v19 = vld [vmem:[%s6675_s0 + $0x40] sm:$0xff]   ;;  %v4068_v20 = vld [vmem:[%s6675_s0 + $0x268] sm:$0xff]   ;;  %v4070_v22 = vld [vmem:[%s6675_s0 + $0x270] sm:$0xff]  }
   0x8   :  { %v4069_v21 = vld [vmem:[%s6675_s0 + $0x48] sm:$0xff]   ;;  %v4071_v23 = vld [vmem:[%s6675_s0 + $0x50] sm:$0xff]   ;;  %v4072_v24 = vld [vmem:[%s6675_s0 + $0x278] sm:$0xff]  }
   0x9   :  { %v4073_v25 = vld [vmem:[%s6675_s0 + $0x58] sm:$0xff]   ;;  %v4074_v26 = vld [vmem:[%s6675_s0 + $0x280] sm:$0xff]   ;;  %v4076_v28 = vld [vmem:[%s6675_s0 + $0x288] sm:$0xff]  }
   0xa   :  { %3496 = vmatmul.mubr.msk.bf16.vlgmr.msra.gmra.mxu0 %vm984_vm1, %v4051_v3  ;;  %3772 = vmatmul.mubr.msk.bf16.vlgmr.msra.gmra.mxu1 %vm984_vm1, %v4052_v4  ;;  %v4075_v27 = vld [vmem:[%s6675_s0 + $0x60] sm:$0xff]   ;;  %v4077_v29 = vld [vmem:[%s6675_s0 + $0x68] sm:$0xff]   ;;  %v4078_v30 = vld [vmem:[%s6675_s0 + $0x290] sm:$0xff]  }
   0xb   :  { %3499 = vmatprep.mubr.msk.bf16.mxu0 %vm4735_vm0, %v4734_v0  ;;  %3775 = vmatprep.mubr.msk.bf16.mxu1 %vm4735_vm0, %v4734_v0  ;;  %v4079_v31 = vld [vmem:[%s6675_s0 + $0x70] sm:$0xff]   ;;  %v4080_v32 = vld [vmem:[%s6675_s0 + $0x298] sm:$0xff]   ;;  %v4082_v34 = vld [vmem:[%s6675_s0 + $0x2a0] sm:$0xff]  }
   0xc   :  { %v4081_v33 = vld [vmem:[%s6675_s0 + $0x78] sm:$0xff]   ;;  %v4083_v35 = vld [vmem:[%s6675_s0 + $0x80] sm:$0xff]   ;;  %v4084_v36 = vld [vmem:[%s6675_s0 + $0x2a8] sm:$0xff]  }
   0xd   :  { %v4085_v37 = vld [vmem:[%s6675_s0 + $0x88] sm:$0xff]   ;;  %v4086_v38 = vld [vmem:[%s6675_s0 + $0x2b0] sm:$0xff]   ;;  %v4088_v40 = vld [vmem:[%s6675_s0 + $0x2b8] sm:$0xff]  }
   0xe   :  { %v4087_v39 = vld [vmem:[%s6675_s0 + $0x90] sm:$0xff]   ;;  %v4089_v41 = vld [vmem:[%s6675_s0 + $0x98] sm:$0xff]   ;;  %v4090_v42 = vld [vmem:[%s6675_s0 + $0x2c0] sm:$0xff]  }
   0xf   :  { %v4091_v43 = vld [vmem:[%s6675_s0 + $0xa0] sm:$0xff]   ;;  %v4092_v44 = vld [vmem:[%s6675_s0 + $0x2c8] sm:$0xff]   ;;  %v4094_v46 = vld [vmem:[%s6675_s0 + $0x2d0] sm:$0xff]  }
  0x10   :  { %v4093_v45 = vld [vmem:[%s6675_s0 + $0xa8] sm:$0xff]   ;;  %v4095_v47 = vld [vmem:[%s6675_s0 + $0xb0] sm:$0xff]   ;;  %v4096_v48 = vld [vmem:[%s6675_s0 + $0x2d8] sm:$0xff]  }
  0x11   :  { %v4097_v49 = vld [vmem:[%s6675_s0 + $0xb8] sm:$0xff]   ;;  %v4098_v50 = vld [vmem:[%s6675_s0 + $0x2e0] sm:$0xff]   ;;  %v4100_v52 = vld [vmem:[%s6675_s0 + $0x2e8] sm:$0xff]  }
  0x12   :  { %3500 = vmatmul.mubr.msk.bf16.gmra.mxu0 %vm984_vm1, %v4053_v5  ;;  %3776 = vmatmul.mubr.msk.bf16.gmra.mxu1 %vm984_vm1, %v4054_v6  ;;  %v4099_v51 = vld [vmem:[%s6675_s0 + $0xc0] sm:$0xff]   ;;  %v4101_v58 = vld [vmem:[%s6675_s0 + $0xc8] sm:$0xff]   ;;  %v4102_v60 = vld [vmem:[%s6675_s0 + $0x2f0] sm:$0xff]  }
  0x13   :  { %3503 = vmatprep.mubr.msk.bf16.mxu0 %vm4735_vm0, %v4734_v0  ;;  %3779 = vmatprep.mubr.msk.bf16.mxu1 %vm4735_vm0, %v4734_v0  ;;  %v4103_v5 = vld [vmem:[%s6675_s0 + $0xd0] sm:$0xff]  }
  0x1a   :  { %3504 = vmatmul.mubr.msk.bf16.gmra.mxu0 %vm984_vm1, %v4055_v7  ;;  %3780 = vmatmul.mubr.msk.bf16.gmra.mxu1 %vm984_vm1, %v4056_v8  ;;  %v4104_v7 = vld [vmem:[%s6675_s0 + $0x2f8] sm:$0xff]  }
  0x1b   :  { %3507 = vmatprep.mubr.msk.bf16.mxu0 %vm4735_vm0, %v4734_v0  ;;  %3783 = vmatprep.mubr.msk.bf16.mxu1 %vm4735_vm0, %v4734_v0 }
  0x22   :  { %3508 = vmatmul.mubr.msk.bf16.gmra.mxu0 %vm984_vm1, %v4057_v9  ;;  %3784 = vmatmul.mubr.msk.bf16.gmra.mxu1 %vm984_vm1, %v4058_v10 }
  0x23   :  { %3511 = vmatprep.mubr.msk.bf16.mxu0 %vm4735_vm0, %v4734_v0  ;;  %3787 = vmatprep.mubr.msk.bf16.mxu1 %vm4735_vm0, %v4734_v0 }
  0x2a   :  { %3512 = vmatmul.mubr.msk.bf16.gmra.mxu0 %vm984_vm1, %v4059_v11  ;;  %3788 = vmatmul.mubr.msk.bf16.gmra.mxu1 %vm984_vm1, %v4060_v12 }
  0x2b   :  { %3515 = vmatprep.mubr.msk.bf16.mxu0 %vm4735_vm0, %v4734_v0  ;;  %3791 = vmatprep.mubr.msk.bf16.mxu1 %vm4735_vm0, %v4734_v0 }
  0x32   :  { %3516 = vmatmul.mubr.msk.bf16.gmra.mxu0 %vm984_vm1, %v4061_v13  ;;  %3792 = vmatmul.mubr.msk.bf16.gmra.mxu1 %vm984_vm1, %v4062_v14 }
  0x33   :  { %3519 = vmatprep.mubr.msk.bf16.mxu0 %vm4735_vm0, %v4734_v0  ;;  %3795 = vmatprep.mubr.msk.bf16.mxu1 %vm4735_vm0, %v4734_v0 }
  0x3a   :  { %3520 = vmatmul.mubr.msk.bf16.gmra.mxu0 %vm984_vm1, %v4063_v15  ;;  %3796 = vmatmul.mubr.msk.bf16.gmra.mxu1 %vm984_vm1, %v4064_v16 }
  0x3b   :  { %3523 = vmatprep.mubr.msk.bf16.mxu0 %vm4735_vm0, %v4734_v0  ;;  %3799 = vmatprep.mubr.msk.bf16.mxu1 %vm4735_vm0, %v4734_v0 }
  0x42   :  { %3524 = vmatmul.mubr.msk.bf16.gmra.mxu0 %vm984_vm1, %v4065_v17  ;;  %3800 = vmatmul.mubr.msk.bf16.gmra.mxu1 %vm984_vm1, %v4066_v18 }
  0x43   :  { %3527 = vmatprep.mubr.msk.bf16.mxu0 %vm4735_vm0, %v4734_v0  ;;  %3803 = vmatprep.mubr.msk.bf16.mxu1 %vm4735_vm0, %v4734_v0 }
  0x4a   :  { %3528 = vmatmul.mubr.msk.bf16.gmra.mxu0 %vm984_vm1, %v4067_v19  ;;  %3804 = vmatmul.mubr.msk.bf16.gmra.mxu1 %vm984_vm1, %v4068_v20  ;;  %v4105_v19 = vld [vmem:[%s6675_s0 + $0xd8] sm:$0xff]  }
  0x4b   :  { %3531 = vmatprep.mubr.msk.bf16.mxu0 %vm4735_vm0, %v4734_v0  ;;  %3807 = vmatprep.mubr.msk.bf16.mxu1 %vm4735_vm0, %v4734_v0 }
  0x52   :  { %3532 = vmatmul.mubr.msk.bf16.gmra.mxu0 %vm984_vm1, %v4069_v21  ;;  %3808 = vmatmul.mubr.msk.bf16.gmra.mxu1 %vm984_vm1, %v4070_v22  ;;  %v4106_v21 = vld [vmem:[%s6675_s0 + $0x300] sm:$0xff]  }
  0x53   :  { %3535 = vmatprep.mubr.msk.bf16.mxu0 %vm4735_vm0, %v4734_v0  ;;  %3811 = vmatprep.mubr.msk.bf16.mxu1 %vm4735_vm0, %v4734_v0 }
  0x5a   :  { %3536 = vmatmul.mubr.msk.bf16.gmra.mxu0 %vm984_vm1, %v4071_v23  ;;  %3812 = vmatmul.mubr.msk.bf16.gmra.mxu1 %vm984_vm1, %v4072_v24 }
  0x5b   :  { %3539 = vmatprep.mubr.msk.bf16.mxu0 %vm4735_vm0, %v4734_v0  ;;  %3815 = vmatprep.mubr.msk.bf16.mxu1 %vm4735_vm0, %v4734_v0 }
  0x62   :  { %3540 = vmatmul.mubr.msk.bf16.gmra.mxu0 %vm984_vm1, %v4073_v25  ;;  %3816 = vmatmul.mubr.msk.bf16.gmra.mxu1 %vm984_vm1, %v4074_v26 }
  0x63   :  { %3543 = vmatprep.mubr.msk.bf16.mxu0 %vm4735_vm0, %v4734_v0  ;;  %3819 = vmatprep.mubr.msk.bf16.mxu1 %vm4735_vm0, %v4734_v0 }
  0x6a   :  { %3544 = vmatmul.mubr.msk.bf16.gmra.mxu0 %vm984_vm1, %v4075_v27  ;;  %3820 = vmatmul.mubr.msk.bf16.gmra.mxu1 %vm984_vm1, %v4076_v28 }
  0x6b   :  { %3547 = vmatprep.mubr.msk.bf16.mxu0 %vm4735_vm0, %v4734_v0  ;;  %3823 = vmatprep.mubr.msk.bf16.mxu1 %vm4735_vm0, %v4734_v0 }
  0x72   :  { %3548 = vmatmul.mubr.msk.bf16.gmra.mxu0 %vm984_vm1, %v4077_v29  ;;  %3824 = vmatmul.mubr.msk.bf16.gmra.mxu1 %vm984_vm1, %v4078_v30 }
  0x73   :  { %3551 = vmatprep.mubr.msk.bf16.mxu0 %vm4735_vm0, %v4734_v0  ;;  %3827 = vmatprep.mubr.msk.bf16.mxu1 %vm4735_vm0, %v4734_v0 }
  0x7a   :  { %3552 = vmatmul.mubr.msk.bf16.gmra.mxu0 %vm984_vm1, %v4079_v31  ;;  %3828 = vmatmul.mubr.msk.bf16.gmra.mxu1 %vm984_vm1, %v4080_v32 }
  0x7b   :  { %3555 = vmatprep.mubr.msk.bf16.mxu0 %vm4735_vm0, %v4734_v0  ;;  %3831 = vmatprep.mubr.msk.bf16.mxu1 %vm4735_vm0, %v4734_v0 }
  0x82   :  { %3556 = vmatmul.mubr.msk.bf16.gmra.mxu0 %vm984_vm1, %v4081_v33  ;;  %3832 = vmatmul.mubr.msk.bf16.gmra.mxu1 %vm984_vm1, %v4082_v34  ;;  %v4107_v33 = vld [vmem:[%s6675_s0 + $0xe0] sm:$0xff]  }
  0x83   :  { %3559 = vmatprep.mubr.msk.bf16.mxu0 %vm4735_vm0, %v4734_v0  ;;  %3835 = vmatprep.mubr.msk.bf16.mxu1 %vm4735_vm0, %v4734_v0 }
  0x8a   :  { %3560 = vmatmul.mubr.msk.bf16.gmra.mxu0 %vm984_vm1, %v4083_v35  ;;  %3836 = vmatmul.mubr.msk.bf16.gmra.mxu1 %vm984_vm1, %v4084_v36  ;;  %v4108_v35 = vld [vmem:[%s6675_s0 + $0x308] sm:$0xff]  }
  0x8b   :  { %3563 = vmatprep.mubr.msk.bf16.mxu0 %vm4735_vm0, %v4734_v0  ;;  %3839 = vmatprep.mubr.msk.bf16.mxu1 %vm4735_vm0, %v4734_v0 }
  0x92   :  { %3564 = vmatmul.mubr.msk.bf16.gmra.mxu0 %vm984_vm1, %v4085_v37  ;;  %3840 = vmatmul.mubr.msk.bf16.gmra.mxu1 %vm984_vm1, %v4086_v38 }
  0x93   :  { %3567 = vmatprep.mubr.msk.bf16.mxu0 %vm4735_vm0, %v4734_v0  ;;  %3843 = vmatprep.mubr.msk.bf16.mxu1 %vm4735_vm0, %v4734_v0 }
  0x9a   :  { %3568 = vmatmul.mubr.msk.bf16.gmra.mxu0 %vm984_vm1, %v4087_v39  ;;  %3844 = vmatmul.mubr.msk.bf16.gmra.mxu1 %vm984_vm1, %v4088_v40 }
  0x9b   :  { %3571 = vmatprep.mubr.msk.bf16.mxu0 %vm4735_vm0, %v4734_v0  ;;  %3847 = vmatprep.mubr.msk.bf16.mxu1 %vm4735_vm0, %v4734_v0 }
  0xa2   :  { %3572 = vmatmul.mubr.msk.bf16.gmra.mxu0 %vm984_vm1, %v4089_v41  ;;  %3848 = vmatmul.mubr.msk.bf16.gmra.mxu1 %vm984_vm1, %v4090_v42 }
  0xa3   :  { %3575 = vmatprep.mubr.msk.bf16.mxu0 %vm4735_vm0, %v4734_v0  ;;  %3851 = vmatprep.mubr.msk.bf16.mxu1 %vm4735_vm0, %v4734_v0 }
  0xaa   :  { %3576 = vmatmul.mubr.msk.bf16.gmra.mxu0 %vm984_vm1, %v4091_v43  ;;  %3852 = vmatmul.mubr.msk.bf16.gmra.mxu1 %vm984_vm1, %v4092_v44 }
  0xab   :  { %3579 = vmatprep.mubr.msk.bf16.mxu0 %vm4735_vm0, %v4734_v0  ;;  %3855 = vmatprep.mubr.msk.bf16.mxu1 %vm4735_vm0, %v4734_v0 }
  0xb2   :  { %3580 = vmatmul.mubr.msk.bf16.gmra.mxu0 %vm984_vm1, %v4093_v45  ;;  %3856 = vmatmul.mubr.msk.bf16.gmra.mxu1 %vm984_vm1, %v4094_v46 }
  0xb3   :  { %3583 = vmatprep.mubr.msk.bf16.mxu0 %vm4735_vm0, %v4734_v0  ;;  %3859 = vmatprep.mubr.msk.bf16.mxu1 %vm4735_vm0, %v4734_v0 }
  0xba   :  { %3584 = vmatmul.mubr.msk.bf16.gmra.mxu0 %vm984_vm1, %v4095_v47  ;;  %3860 = vmatmul.mubr.msk.bf16.gmra.mxu1 %vm984_vm1, %v4096_v48  ;;  %v4109_v47 = vld [vmem:[%s6675_s0 + $0xe8] sm:$0xff]  }
  0xbb   :  { %3587 = vmatprep.mubr.msk.bf16.mxu0 %vm4735_vm0, %v4734_v0  ;;  %3863 = vmatprep.mubr.msk.bf16.mxu1 %vm4735_vm0, %v4734_v0 }
  0xc2   :  { %3588 = vmatmul.mubr.msk.bf16.gmra.mxu0 %vm984_vm1, %v4097_v49  ;;  %3864 = vmatmul.mubr.msk.bf16.gmra.mxu1 %vm984_vm1, %v4098_v50  ;;  %v4110_v49 = vld [vmem:[%s6675_s0 + $0x310] sm:$0xff]  }
  0xc3   :  { %3591 = vmatprep.mubr.msk.bf16.mxu0 %vm4735_vm0, %v4734_v0  ;;  %3867 = vmatprep.mubr.msk.bf16.mxu1 %vm4735_vm0, %v4734_v0 }
  0xca   :  { %v1430_v53 = vpop.f32.mrf.mxu0  ;;  %3592 = vmatmul.mubr.msk.bf16.gmra.mxu0 %vm984_vm1, %v4099_v51  ;;  %v1982_v54 = vpop.f32.mrf.mxu1  ;;  %3868 = vmatmul.mubr.msk.bf16.gmra.mxu1 %vm984_vm1, %v4100_v52 }
  0xcb   :  { %4188 = vtanh.f32 %v1430_v53  ;;  %3595 = vmatprep.mubr.msk.bf16.mxu0 %vm4735_vm0, %v4734_v0  ;;  %3871 = vmatprep.mubr.msk.bf16.mxu1 %vm4735_vm0, %v4734_v0 }
  0xcc   :  { %v3497_v55 = vpop.f32.mrf.mxu0  ;;  %4190 = vtanh.f32 %v1982_v54  ;;  %v3773_v56 = vpop.f32.mrf.mxu1 }
  0xce   :  { %v1433_v57 = vpop.f32.mrf.mxu0  ;;  %v1985_v59 = vpop.f32.mrf.mxu1 }
  0xcf   :  { %4192 = vtanh.f32 %v1433_v57 }
  0xd0   :  { %v3498_v61 = vpop.f32.mrf.mxu0  ;;  %4194 = vtanh.f32 %v1985_v59  ;;  %v3774_v62 = vpop.f32.mrf.mxu1 }
  0xd1   :  { %v4111_v61 = vld [vmem:[%s6675_s0 + $0xf0] sm:$0xff]  }
  0xd2   :  { %v1438_v63 = vpop.f32.mrf.mxu0  ;;  %3596 = vmatmul.mubr.msk.bf16.gmra.mxu0 %vm984_vm1, %v4101_v58  ;;  %v1990_v1 = vpop.f32.mrf.mxu1  ;;  %3872 = vmatmul.mubr.msk.bf16.gmra.mxu1 %vm984_vm1, %v4102_v60 }
  0xd3   :  { %4196 = vtanh.f32 %v1438_v63  ;;  %3599 = vmatprep.mubr.msk.bf16.mxu0 %vm4735_vm0, %v4734_v0  ;;  %3875 = vmatprep.mubr.msk.bf16.mxu1 %vm4735_vm0, %v4734_v0  ;;  %v4112_v63 = vld [vmem:[%s6675_s0 + $0x318] sm:$0xff]  }
  0xd4   :  { %v3501_v2 = vpop.f32.mrf.mxu0  ;;  %4198 = vtanh.f32 %v1990_v1  ;;  %v3777_v3 = vpop.f32.mrf.mxu1 }
  0xd6   :  { %v1441_v4 = vpop.f32.mrf.mxu0  ;;  %v1993_v6 = vpop.f32.mrf.mxu1 }
  0xd7   :  { %4200 = vtanh.f32 %v1441_v4 }
  0xd8   :  { %v4189_v8 = vpop.eup %4188  ;;  %v3502_v9 = vpop.f32.mrf.mxu0  ;;  %4202 = vtanh.f32 %v1993_v6 }
  0xd9   :  { %v3778_v10 = vpop.f32.mrf.mxu1  ;;  %v4191_v11 = vpop.eup %4190  ;;  %2798 = vst.msk [vmem:[%s6676_s2] sm:$0xff] %vm2797_vm2, %v4189_v8 }
  0xda   :  { %2936 = vst.msk [vmem:[%s6676_s2 + $0x450] sm:$0xff] %vm2797_vm2, %v4191_v11  ;;  %v1446_v12 = vpop.f32.mrf.mxu0  ;;  %3600 = vmatmul.mubr.msk.bf16.gmra.mxu0 %vm984_vm1, %v4103_v5  ;;  %3876 = vmatmul.mubr.msk.bf16.gmra.mxu1 %vm984_vm1, %v4104_v7 }
  0xdb   :  { %v1998_v13 = vpop.f32.mrf.mxu1  ;;  %4204 = vtanh.f32 %v1446_v12  ;;  %3603 = vmatprep.mubr.msk.bf16.mxu0 %vm4735_vm0, %v4734_v0  ;;  %3879 = vmatprep.mubr.msk.bf16.mxu1 %vm4735_vm0, %v4734_v0  ;;  %v4113_v12 = vld [vmem:[%s6675_s0 + $0xf8] sm:$0xff]  }
  0xdc   :  { %v4193_v14 = vpop.eup %4192  ;;  %v3505_v15 = vpop.f32.mrf.mxu0  ;;  %4206 = vtanh.f32 %v1998_v13 }
  0xdd   :  { %v3781_v16 = vpop.f32.mrf.mxu1  ;;  %v4195_v17 = vpop.eup %4194  ;;  %2799 = vst.msk [vmem:[%s6676_s2 + $0x8] sm:$0xff] %vm2797_vm2, %v4193_v14  ;;  %v4114_v14 = vld [vmem:[%s6675_s0 + $0x320] sm:$0xff]  }
  0xde   :  { %2937 = vst.msk [vmem:[%s6676_s2 + $0x458] sm:$0xff] %vm2797_vm2, %v4195_v17  ;;  %v1449_v18 = vpop.f32.mrf.mxu0 }
  0xdf   :  { %v2001_v20 = vpop.f32.mrf.mxu1  ;;  %4208 = vtanh.f32 %v1449_v18 }
  0xe0   :  { %v4197_v22 = vpop.eup %4196  ;;  %v3506_v23 = vpop.f32.mrf.mxu0  ;;  %4210 = vtanh.f32 %v2001_v20 }
  0xe1   :  { %v3782_v24 = vpop.f32.mrf.mxu1  ;;  %v4199_v25 = vpop.eup %4198  ;;  %2800 = vst.msk [vmem:[%s6676_s2 + $0x10] sm:$0xff] %vm2797_vm2, %v4197_v22 }
  0xe2   :  { %2938 = vst.msk [vmem:[%s6676_s2 + $0x460] sm:$0xff] %vm2797_vm2, %v4199_v25  ;;  %v1454_v26 = vpop.f32.mrf.mxu0  ;;  %3604 = vmatmul.mubr.msk.bf16.gmra.mxu0 %vm984_vm1, %v4105_v19  ;;  %3880 = vmatmul.mubr.msk.bf16.gmra.mxu1 %vm984_vm1, %v4106_v21 }
  0xe3   :  { %v2006_v27 = vpop.f32.mrf.mxu1  ;;  %4212 = vtanh.f32 %v1454_v26  ;;  %3607 = vmatprep.mubr.msk.bf16.mxu0 %vm4735_vm0, %v4734_v0  ;;  %3883 = vmatprep.mubr.msk.bf16.mxu1 %vm4735_vm0, %v4734_v0  ;;  %v4115_v26 = vld [vmem:[%s6675_s0 + $0x100] sm:$0xff]  }
  0xe4   :  { %v4201_v28 = vpop.eup %4200  ;;  %v3509_v29 = vpop.f32.mrf.mxu0  ;;  %4214 = vtanh.f32 %v2006_v27 }
  0xe5   :  { %v3785_v30 = vpop.f32.mrf.mxu1  ;;  %v4203_v31 = vpop.eup %4202  ;;  %2801 = vst.msk [vmem:[%s6676_s2 + $0x18] sm:$0xff] %vm2797_vm2, %v4201_v28  ;;  %v4116_v28 = vld [vmem:[%s6675_s0 + $0x328] sm:$0xff]  }
  0xe6   :  { %2939 = vst.msk [vmem:[%s6676_s2 + $0x468] sm:$0xff] %vm2797_vm2, %v4203_v31  ;;  %v1457_v32 = vpop.f32.mrf.mxu0 }
  0xe7   :  { %v2009_v34 = vpop.f32.mrf.mxu1  ;;  %4216 = vtanh.f32 %v1457_v32 }
  0xe8   :  { %v4205_v36 = vpop.eup %4204  ;;  %v3510_v37 = vpop.f32.mrf.mxu0  ;;  %4218 = vtanh.f32 %v2009_v34 }
  0xe9   :  { %v3786_v38 = vpop.f32.mrf.mxu1  ;;  %v4207_v39 = vpop.eup %4206  ;;  %2802 = vst.msk [vmem:[%s6676_s2 + $0x20] sm:$0xff] %vm2797_vm2, %v4205_v36 }
  0xea   :  { %2940 = vst.msk [vmem:[%s6676_s2 + $0x470] sm:$0xff] %vm2797_vm2, %v4207_v39  ;;  %v1462_v40 = vpop.f32.mrf.mxu0  ;;  %3608 = vmatmul.mubr.msk.bf16.gmra.mxu0 %vm984_vm1, %v4107_v33  ;;  %3884 = vmatmul.mubr.msk.bf16.gmra.mxu1 %vm984_vm1, %v4108_v35 }
  0xeb   :  { %v2014_v41 = vpop.f32.mrf.mxu1  ;;  %4220 = vtanh.f32 %v1462_v40  ;;  %3611 = vmatprep.mubr.msk.bf16.mxu0 %vm4735_vm0, %v4734_v0  ;;  %3887 = vmatprep.mubr.msk.bf16.mxu1 %vm4735_vm0, %v4734_v0  ;;  %v4117_v40 = vld [vmem:[%s6675_s0 + $0x108] sm:$0xff]  }
  0xec   :  { %v4209_v42 = vpop.eup %4208  ;;  %v3513_v43 = vpop.f32.mrf.mxu0  ;;  %4222 = vtanh.f32 %v2014_v41 }
  0xed   :  { %v3789_v44 = vpop.f32.mrf.mxu1  ;;  %v4211_v45 = vpop.eup %4210  ;;  %2803 = vst.msk [vmem:[%s6676_s2 + $0x28] sm:$0xff] %vm2797_vm2, %v4209_v42  ;;  %v4118_v42 = vld [vmem:[%s6675_s0 + $0x330] sm:$0xff]  }
  0xee   :  { %2941 = vst.msk [vmem:[%s6676_s2 + $0x478] sm:$0xff] %vm2797_vm2, %v4211_v45  ;;  %v1465_v46 = vpop.f32.mrf.mxu0 }
  0xef   :  { %v2017_v48 = vpop.f32.mrf.mxu1  ;;  %4224 = vtanh.f32 %v1465_v46 }
  0xf0   :  { %v4213_v50 = vpop.eup %4212  ;;  %v3514_v51 = vpop.f32.mrf.mxu0  ;;  %4226 = vtanh.f32 %v2017_v48 }
  0xf1   :  { %v3790_v52 = vpop.f32.mrf.mxu1  ;;  %v4215_v53 = vpop.eup %4214  ;;  %2804 = vst.msk [vmem:[%s6676_s2 + $0x30] sm:$0xff] %vm2797_vm2, %v4213_v50 }
  0xf2   :  { %2942 = vst.msk [vmem:[%s6676_s2 + $0x480] sm:$0xff] %vm2797_vm2, %v4215_v53  ;;  %v1470_v54 = vpop.f32.mrf.mxu0  ;;  %3612 = vmatmul.mubr.msk.bf16.gmra.mxu0 %vm984_vm1, %v4109_v47  ;;  %3888 = vmatmul.mubr.msk.bf16.gmra.mxu1 %vm984_vm1, %v4110_v49 }
  0xf3   :  { %v2022_v55 = vpop.f32.mrf.mxu1  ;;  %4228 = vtanh.f32 %v1470_v54  ;;  %3615 = vmatprep.mubr.msk.bf16.mxu0 %vm4735_vm0, %v4734_v0  ;;  %3891 = vmatprep.mubr.msk.bf16.mxu1 %vm4735_vm0, %v4734_v0  ;;  %v4119_v54 = vld [vmem:[%s6675_s0 + $0x110] sm:$0xff]  }
  0xf4   :  { %v4217_v56 = vpop.eup %4216  ;;  %v3517_v57 = vpop.f32.mrf.mxu0  ;;  %4230 = vtanh.f32 %v2022_v55 }
  0xf5   :  { %v3793_v58 = vpop.f32.mrf.mxu1  ;;  %v4219_v59 = vpop.eup %4218  ;;  %2805 = vst.msk [vmem:[%s6676_s2 + $0x38] sm:$0xff] %vm2797_vm2, %v4217_v56  ;;  %v4120_v56 = vld [vmem:[%s6675_s0 + $0x338] sm:$0xff]  }
  0xf6   :  { %2943 = vst.msk [vmem:[%s6676_s2 + $0x488] sm:$0xff] %vm2797_vm2, %v4219_v59  ;;  %v1473_v60 = vpop.f32.mrf.mxu0 }
  0xf7   :  { %v2025_v62 = vpop.f32.mrf.mxu1  ;;  %4232 = vtanh.f32 %v1473_v60 }
  0xf8   :  { %v4221_v1 = vpop.eup %4220  ;;  %v3518_v2 = vpop.f32.mrf.mxu0  ;;  %4234 = vtanh.f32 %v2025_v62 }
  0xf9   :  { %v3794_v3 = vpop.f32.mrf.mxu1  ;;  %v4223_v4 = vpop.eup %4222  ;;  %2806 = vst.msk [vmem:[%s6676_s2 + $0x40] sm:$0xff] %vm2797_vm2, %v4221_v1 }
  0xfa   :  { %2944 = vst.msk [vmem:[%s6676_s2 + $0x490] sm:$0xff] %vm2797_vm2, %v4223_v4  ;;  %v1478_v5 = vpop.f32.mrf.mxu0  ;;  %3616 = vmatmul.mubr.msk.bf16.gmra.mxu0 %vm984_vm1, %v4111_v61  ;;  %3892 = vmatmul.mubr.msk.bf16.gmra.mxu1 %vm984_vm1, %v4112_v63 }
  0xfb   :  { %v2030_v6 = vpop.f32.mrf.mxu1  ;;  %4236 = vtanh.f32 %v1478_v5  ;;  %3619 = vmatprep.mubr.msk.bf16.mxu0 %vm4735_vm0, %v4734_v0  ;;  %3895 = vmatprep.mubr.msk.bf16.mxu1 %vm4735_vm0, %v4734_v0  ;;  %v4121_v5 = vld [vmem:[%s6675_s0 + $0x118] sm:$0xff]  }
  0xfc   :  { %v4225_v7 = vpop.eup %4224  ;;  %v3521_v8 = vpop.f32.mrf.mxu0  ;;  %4238 = vtanh.f32 %v2030_v6 }
  0xfd   :  { %v3797_v9 = vpop.f32.mrf.mxu1  ;;  %v4227_v10 = vpop.eup %4226  ;;  %2807 = vst.msk [vmem:[%s6676_s2 + $0x48] sm:$0xff] %vm2797_vm2, %v4225_v7  ;;  %v4122_v7 = vld [vmem:[%s6675_s0 + $0x340] sm:$0xff]  }
  0xfe   :  { %2945 = vst.msk [vmem:[%s6676_s2 + $0x498] sm:$0xff] %vm2797_vm2, %v4227_v10  ;;  %v1481_v11 = vpop.f32.mrf.mxu0 }
  0xff   :  { %v2033_v13 = vpop.f32.mrf.mxu1  ;;  %4240 = vtanh.f32 %v1481_v11 }
 0x100   :  { %v4229_v15 = vpop.eup %4228  ;;  %v3522_v16 = vpop.f32.mrf.mxu0  ;;  %4242 = vtanh.f32 %v2033_v13 }
 0x101   :  { %v3798_v17 = vpop.f32.mrf.mxu1  ;;  %v4231_v18 = vpop.eup %4230  ;;  %2808 = vst.msk [vmem:[%s6676_s2 + $0x50] sm:$0xff] %vm2797_vm2, %v4229_v15 }
 0x102   :  { %2946 = vst.msk [vmem:[%s6676_s2 + $0x4a0] sm:$0xff] %vm2797_vm2, %v4231_v18  ;;  %v1486_v19 = vpop.f32.mrf.mxu0  ;;  %3620 = vmatmul.mubr.msk.bf16.gmra.mxu0 %vm984_vm1, %v4113_v12  ;;  %3896 = vmatmul.mubr.msk.bf16.gmra.mxu1 %vm984_vm1, %v4114_v14 }
 0x103   :  { %v2038_v20 = vpop.f32.mrf.mxu1  ;;  %4244 = vtanh.f32 %v1486_v19  ;;  %3623 = vmatprep.mubr.msk.bf16.mxu0 %vm4735_vm0, %v4734_v0  ;;  %3899 = vmatprep.mubr.msk.bf16.mxu1 %vm4735_vm0, %v4734_v0  ;;  %v4123_v19 = vld [vmem:[%s6675_s0 + $0x120] sm:$0xff]  }
 0x104   :  { %v4233_v21 = vpop.eup %4232  ;;  %v3525_v22 = vpop.f32.mrf.mxu0  ;;  %4246 = vtanh.f32 %v2038_v20 }
 0x105   :  { %v3801_v23 = vpop.f32.mrf.mxu1  ;;  %v4235_v24 = vpop.eup %4234  ;;  %2809 = vst.msk [vmem:[%s6676_s2 + $0x58] sm:$0xff] %vm2797_vm2, %v4233_v21  ;;  %v4124_v21 = vld [vmem:[%s6675_s0 + $0x348] sm:$0xff]  }
 0x106   :  { %2947 = vst.msk [vmem:[%s6676_s2 + $0x4a8] sm:$0xff] %vm2797_vm2, %v4235_v24  ;;  %v1489_v25 = vpop.f32.mrf.mxu0 }
 0x107   :  { %v2041_v27 = vpop.f32.mrf.mxu1  ;;  %4248 = vtanh.f32 %v1489_v25 }
 0x108   :  { %v4237_v29 = vpop.eup %4236  ;;  %v3526_v30 = vpop.f32.mrf.mxu0  ;;  %4250 = vtanh.f32 %v2041_v27 }
 0x109   :  { %v3802_v31 = vpop.f32.mrf.mxu1  ;;  %v4239_v32 = vpop.eup %4238  ;;  %2810 = vst.msk [vmem:[%s6676_s2 + $0x60] sm:$0xff] %vm2797_vm2, %v4237_v29 }
 0x10a   :  { %2948 = vst.msk [vmem:[%s6676_s2 + $0x4b0] sm:$0xff] %vm2797_vm2, %v4239_v32  ;;  %v1494_v33 = vpop.f32.mrf.mxu0  ;;  %3624 = vmatmul.mubr.msk.bf16.gmra.mxu0 %vm984_vm1, %v4115_v26  ;;  %3900 = vmatmul.mubr.msk.bf16.gmra.mxu1 %vm984_vm1, %v4116_v28 }
 0x10b   :  { %v2046_v34 = vpop.f32.mrf.mxu1  ;;  %4252 = vtanh.f32 %v1494_v33  ;;  %3627 = vmatprep.mubr.msk.bf16.mxu0 %vm4735_vm0, %v4734_v0  ;;  %3903 = vmatprep.mubr.msk.bf16.mxu1 %vm4735_vm0, %v4734_v0  ;;  %v4125_v33 = vld [vmem:[%s6675_s0 + $0x128] sm:$0xff]  }
 0x10c   :  { %v4241_v35 = vpop.eup %4240  ;;  %v3529_v36 = vpop.f32.mrf.mxu0  ;;  %4254 = vtanh.f32 %v2046_v34 }
 0x10d   :  { %v3805_v37 = vpop.f32.mrf.mxu1  ;;  %v4243_v38 = vpop.eup %4242  ;;  %2811 = vst.msk [vmem:[%s6676_s2 + $0x68] sm:$0xff] %vm2797_vm2, %v4241_v35  ;;  %v4126_v35 = vld [vmem:[%s6675_s0 + $0x350] sm:$0xff]  }
 0x10e   :  { %2949 = vst.msk [vmem:[%s6676_s2 + $0x4b8] sm:$0xff] %vm2797_vm2, %v4243_v38  ;;  %v1497_v39 = vpop.f32.mrf.mxu0 }
 0x10f   :  { %v2049_v41 = vpop.f32.mrf.mxu1  ;;  %4256 = vtanh.f32 %v1497_v39 }
 0x110   :  { %v4245_v43 = vpop.eup %4244  ;;  %v3530_v44 = vpop.f32.mrf.mxu0  ;;  %4258 = vtanh.f32 %v2049_v41 }
 0x111   :  { %v3806_v45 = vpop.f32.mrf.mxu1  ;;  %v4247_v46 = vpop.eup %4246  ;;  %2812 = vst.msk [vmem:[%s6676_s2 + $0x70] sm:$0xff] %vm2797_vm2, %v4245_v43 }
 0x112   :  { %2950 = vst.msk [vmem:[%s6676_s2 + $0x4c0] sm:$0xff] %vm2797_vm2, %v4247_v46  ;;  %v1502_v47 = vpop.f32.mrf.mxu0  ;;  %3628 = vmatmul.mubr.msk.bf16.gmra.mxu0 %vm984_vm1, %v4117_v40  ;;  %3904 = vmatmul.mubr.msk.bf16.gmra.mxu1 %vm984_vm1, %v4118_v42 }
 0x113   :  { %v2054_v48 = vpop.f32.mrf.mxu1  ;;  %4260 = vtanh.f32 %v1502_v47  ;;  %3631 = vmatprep.mubr.msk.bf16.mxu0 %vm4735_vm0, %v4734_v0  ;;  %3907 = vmatprep.mubr.msk.bf16.mxu1 %vm4735_vm0, %v4734_v0  ;;  %v4127_v47 = vld [vmem:[%s6675_s0 + $0x130] sm:$0xff]  }
 0x114   :  { %v4249_v49 = vpop.eup %4248  ;;  %v3533_v50 = vpop.f32.mrf.mxu0  ;;  %4262 = vtanh.f32 %v2054_v48 }
 0x115   :  { %v3809_v51 = vpop.f32.mrf.mxu1  ;;  %v4251_v52 = vpop.eup %4250  ;;  %2813 = vst.msk [vmem:[%s6676_s2 + $0x78] sm:$0xff] %vm2797_vm2, %v4249_v49  ;;  %v4128_v49 = vld [vmem:[%s6675_s0 + $0x358] sm:$0xff]  }
 0x116   :  { %2951 = vst.msk [vmem:[%s6676_s2 + $0x4c8] sm:$0xff] %vm2797_vm2, %v4251_v52  ;;  %v1505_v53 = vpop.f32.mrf.mxu0 }
 0x117   :  { %v2057_v55 = vpop.f32.mrf.mxu1  ;;  %4264 = vtanh.f32 %v1505_v53 }
 0x118   :  { %v4253_v57 = vpop.eup %4252  ;;  %v3534_v58 = vpop.f32.mrf.mxu0  ;;  %4266 = vtanh.f32 %v2057_v55 }
 0x119   :  { %v3810_v59 = vpop.f32.mrf.mxu1  ;;  %v4255_v60 = vpop.eup %4254  ;;  %2814 = vst.msk [vmem:[%s6676_s2 + $0x80] sm:$0xff] %vm2797_vm2, %v4253_v57 }
 0x11a   :  { %2952 = vst.msk [vmem:[%s6676_s2 + $0x4d0] sm:$0xff] %vm2797_vm2, %v4255_v60  ;;  %v1510_v61 = vpop.f32.mrf.mxu0  ;;  %3632 = vmatmul.mubr.msk.bf16.gmra.mxu0 %vm984_vm1, %v4119_v54  ;;  %3908 = vmatmul.mubr.msk.bf16.gmra.mxu1 %vm984_vm1, %v4120_v56 }
 0x11b   :  { %v2062_v62 = vpop.f32.mrf.mxu1  ;;  %4268 = vtanh.f32 %v1510_v61  ;;  %3635 = vmatprep.mubr.msk.bf16.mxu0 %vm4735_vm0, %v4734_v0  ;;  %3911 = vmatprep.mubr.msk.bf16.mxu1 %vm4735_vm0, %v4734_v0  ;;  %v4129_v61 = vld [vmem:[%s6675_s0 + $0x138] sm:$0xff]  }
 0x11c   :  { %v4257_v63 = vpop.eup %4256  ;;  %v3537_v1 = vpop.f32.mrf.mxu0  ;;  %4270 = vtanh.f32 %v2062_v62 }
 0x11d   :  { %v3813_v2 = vpop.f32.mrf.mxu1  ;;  %v4259_v3 = vpop.eup %4258  ;;  %2815 = vst.msk [vmem:[%s6676_s2 + $0x88] sm:$0xff] %vm2797_vm2, %v4257_v63  ;;  %v4130_v63 = vld [vmem:[%s6675_s0 + $0x360] sm:$0xff]  }
 0x11e   :  { %2953 = vst.msk [vmem:[%s6676_s2 + $0x4d8] sm:$0xff] %vm2797_vm2, %v4259_v3  ;;  %v1513_v4 = vpop.f32.mrf.mxu0 }
 0x11f   :  { %v2065_v6 = vpop.f32.mrf.mxu1  ;;  %4272 = vtanh.f32 %v1513_v4 }
 0x120   :  { %v4261_v8 = vpop.eup %4260  ;;  %v3538_v9 = vpop.f32.mrf.mxu0  ;;  %4274 = vtanh.f32 %v2065_v6 }
 0x121   :  { %v3814_v10 = vpop.f32.mrf.mxu1  ;;  %v4263_v11 = vpop.eup %4262  ;;  %2816 = vst.msk [vmem:[%s6676_s2 + $0x90] sm:$0xff] %vm2797_vm2, %v4261_v8 }
 0x122   :  { %2954 = vst.msk [vmem:[%s6676_s2 + $0x4e0] sm:$0xff] %vm2797_vm2, %v4263_v11  ;;  %v1518_v12 = vpop.f32.mrf.mxu0  ;;  %3636 = vmatmul.mubr.msk.bf16.gmra.mxu0 %vm984_vm1, %v4121_v5  ;;  %3912 = vmatmul.mubr.msk.bf16.gmra.mxu1 %vm984_vm1, %v4122_v7 }
 0x123   :  { %v2070_v13 = vpop.f32.mrf.mxu1  ;;  %4276 = vtanh.f32 %v1518_v12  ;;  %3639 = vmatprep.mubr.msk.bf16.mxu0 %vm4735_vm0, %v4734_v0  ;;  %3915 = vmatprep.mubr.msk.bf16.mxu1 %vm4735_vm0, %v4734_v0  ;;  %v4131_v12 = vld [vmem:[%s6675_s0 + $0x140] sm:$0xff]  }
 0x124   :  { %v4265_v14 = vpop.eup %4264  ;;  %v3541_v15 = vpop.f32.mrf.mxu0  ;;  %4278 = vtanh.f32 %v2070_v13 }
 0x125   :  { %v3817_v16 = vpop.f32.mrf.mxu1  ;;  %v4267_v17 = vpop.eup %4266  ;;  %2817 = vst.msk [vmem:[%s6676_s2 + $0x98] sm:$0xff] %vm2797_vm2, %v4265_v14  ;;  %v4132_v14 = vld [vmem:[%s6675_s0 + $0x368] sm:$0xff]  }
 0x126   :  { %2955 = vst.msk [vmem:[%s6676_s2 + $0x4e8] sm:$0xff] %vm2797_vm2, %v4267_v17  ;;  %v1521_v18 = vpop.f32.mrf.mxu0 }
 0x127   :  { %v2073_v20 = vpop.f32.mrf.mxu1  ;;  %4280 = vtanh.f32 %v1521_v18 }
 0x128   :  { %v4269_v22 = vpop.eup %4268  ;;  %v3542_v23 = vpop.f32.mrf.mxu0  ;;  %4282 = vtanh.f32 %v2073_v20 }
 0x129   :  { %v3818_v24 = vpop.f32.mrf.mxu1  ;;  %v4271_v25 = vpop.eup %4270  ;;  %2818 = vst.msk [vmem:[%s6676_s2 + $0xa0] sm:$0xff] %vm2797_vm2, %v4269_v22 }
 0x12a   :  { %2956 = vst.msk [vmem:[%s6676_s2 + $0x4f0] sm:$0xff] %vm2797_vm2, %v4271_v25  ;;  %v1526_v26 = vpop.f32.mrf.mxu0  ;;  %3640 = vmatmul.mubr.msk.bf16.gmra.mxu0 %vm984_vm1, %v4123_v19  ;;  %3916 = vmatmul.mubr.msk.bf16.gmra.mxu1 %vm984_vm1, %v4124_v21 }
 0x12b   :  { %v2078_v27 = vpop.f32.mrf.mxu1  ;;  %4284 = vtanh.f32 %v1526_v26  ;;  %3643 = vmatprep.mubr.msk.bf16.mxu0 %vm4735_vm0, %v4734_v0  ;;  %3919 = vmatprep.mubr.msk.bf16.mxu1 %vm4735_vm0, %v4734_v0  ;;  %v4133_v26 = vld [vmem:[%s6675_s0 + $0x148] sm:$0xff]  }
 0x12c   :  { %v4273_v28 = vpop.eup %4272  ;;  %v3545_v29 = vpop.f32.mrf.mxu0  ;;  %4286 = vtanh.f32 %v2078_v27 }
 0x12d   :  { %v3821_v30 = vpop.f32.mrf.mxu1  ;;  %v4275_v31 = vpop.eup %4274  ;;  %2819 = vst.msk [vmem:[%s6676_s2 + $0xa8] sm:$0xff] %vm2797_vm2, %v4273_v28  ;;  %v4134_v28 = vld [vmem:[%s6675_s0 + $0x370] sm:$0xff]  }
 0x12e   :  { %2957 = vst.msk [vmem:[%s6676_s2 + $0x4f8] sm:$0xff] %vm2797_vm2, %v4275_v31  ;;  %v1529_v32 = vpop.f32.mrf.mxu0 }
 0x12f   :  { %v2081_v34 = vpop.f32.mrf.mxu1  ;;  %4288 = vtanh.f32 %v1529_v32 }
 0x130   :  { %v4277_v36 = vpop.eup %4276  ;;  %v3546_v37 = vpop.f32.mrf.mxu0  ;;  %4290 = vtanh.f32 %v2081_v34 }
 0x131   :  { %v3822_v38 = vpop.f32.mrf.mxu1  ;;  %v4279_v39 = vpop.eup %4278  ;;  %2820 = vst.msk [vmem:[%s6676_s2 + $0xb0] sm:$0xff] %vm2797_vm2, %v4277_v36 }
 0x132   :  { %2958 = vst.msk [vmem:[%s6676_s2 + $0x500] sm:$0xff] %vm2797_vm2, %v4279_v39  ;;  %v1534_v40 = vpop.f32.mrf.mxu0  ;;  %3644 = vmatmul.mubr.msk.bf16.gmra.mxu0 %vm984_vm1, %v4125_v33  ;;  %3920 = vmatmul.mubr.msk.bf16.gmra.mxu1 %vm984_vm1, %v4126_v35 }
 0x133   :  { %v2086_v41 = vpop.f32.mrf.mxu1  ;;  %4292 = vtanh.f32 %v1534_v40  ;;  %3647 = vmatprep.mubr.msk.bf16.mxu0 %vm4735_vm0, %v4734_v0  ;;  %3923 = vmatprep.mubr.msk.bf16.mxu1 %vm4735_vm0, %v4734_v0  ;;  %v4135_v40 = vld [vmem:[%s6675_s0 + $0x150] sm:$0xff]  }
 0x134   :  { %v4281_v42 = vpop.eup %4280  ;;  %v3549_v43 = vpop.f32.mrf.mxu0  ;;  %4294 = vtanh.f32 %v2086_v41 }
 0x135   :  { %v3825_v44 = vpop.f32.mrf.mxu1  ;;  %v4283_v45 = vpop.eup %4282  ;;  %2821 = vst.msk [vmem:[%s6676_s2 + $0xb8] sm:$0xff] %vm2797_vm2, %v4281_v42  ;;  %v4136_v42 = vld [vmem:[%s6675_s0 + $0x378] sm:$0xff]  }
 0x136   :  { %2959 = vst.msk [vmem:[%s6676_s2 + $0x508] sm:$0xff] %vm2797_vm2, %v4283_v45  ;;  %v1537_v46 = vpop.f32.mrf.mxu0 }
 0x137   :  { %v2089_v48 = vpop.f32.mrf.mxu1  ;;  %4296 = vtanh.f32 %v1537_v46 }
 0x138   :  { %v4285_v50 = vpop.eup %4284  ;;  %v3550_v51 = vpop.f32.mrf.mxu0  ;;  %4298 = vtanh.f32 %v2089_v48 }
 0x139   :  { %v3826_v52 = vpop.f32.mrf.mxu1  ;;  %v4287_v53 = vpop.eup %4286  ;;  %2822 = vst.msk [vmem:[%s6676_s2 + $0xc0] sm:$0xff] %vm2797_vm2, %v4285_v50 }
 0x13a   :  { %2960 = vst.msk [vmem:[%s6676_s2 + $0x510] sm:$0xff] %vm2797_vm2, %v4287_v53  ;;  %v1542_v54 = vpop.f32.mrf.mxu0  ;;  %3648 = vmatmul.mubr.msk.bf16.gmra.mxu0 %vm984_vm1, %v4127_v47  ;;  %3924 = vmatmul.mubr.msk.bf16.gmra.mxu1 %vm984_vm1, %v4128_v49 }
 0x13b   :  { %v2094_v55 = vpop.f32.mrf.mxu1  ;;  %4300 = vtanh.f32 %v1542_v54  ;;  %3651 = vmatprep.mubr.msk.bf16.mxu0 %vm4735_vm0, %v4734_v0  ;;  %3927 = vmatprep.mubr.msk.bf16.mxu1 %vm4735_vm0, %v4734_v0  ;;  %v4137_v54 = vld [vmem:[%s6675_s0 + $0x158] sm:$0xff]  }
 0x13c   :  { %v4289_v56 = vpop.eup %4288  ;;  %v3553_v57 = vpop.f32.mrf.mxu0  ;;  %4302 = vtanh.f32 %v2094_v55 }
 0x13d   :  { %v3829_v58 = vpop.f32.mrf.mxu1  ;;  %v4291_v59 = vpop.eup %4290  ;;  %2823 = vst.msk [vmem:[%s6676_s2 + $0xc8] sm:$0xff] %vm2797_vm2, %v4289_v56  ;;  %v4138_v56 = vld [vmem:[%s6675_s0 + $0x380] sm:$0xff]  }
 0x13e   :  { %2961 = vst.msk [vmem:[%s6676_s2 + $0x518] sm:$0xff] %vm2797_vm2, %v4291_v59  ;;  %v1545_v60 = vpop.f32.mrf.mxu0 }
 0x13f   :  { %v2097_v62 = vpop.f32.mrf.mxu1  ;;  %4304 = vtanh.f32 %v1545_v60 }
 0x140   :  { %v4293_v1 = vpop.eup %4292  ;;  %v3554_v2 = vpop.f32.mrf.mxu0  ;;  %4306 = vtanh.f32 %v2097_v62 }
 0x141   :  { %v3830_v3 = vpop.f32.mrf.mxu1  ;;  %v4295_v4 = vpop.eup %4294  ;;  %2824 = vst.msk [vmem:[%s6676_s2 + $0xd0] sm:$0xff] %vm2797_vm2, %v4293_v1 }
 0x142   :  { %2962 = vst.msk [vmem:[%s6676_s2 + $0x520] sm:$0xff] %vm2797_vm2, %v4295_v4  ;;  %v1550_v5 = vpop.f32.mrf.mxu0  ;;  %3652 = vmatmul.mubr.msk.bf16.gmra.mxu0 %vm984_vm1, %v4129_v61  ;;  %3928 = vmatmul.mubr.msk.bf16.gmra.mxu1 %vm984_vm1, %v4130_v63 }
 0x143   :  { %v2102_v6 = vpop.f32.mrf.mxu1  ;;  %4308 = vtanh.f32 %v1550_v5  ;;  %3655 = vmatprep.mubr.msk.bf16.mxu0 %vm4735_vm0, %v4734_v0  ;;  %3931 = vmatprep.mubr.msk.bf16.mxu1 %vm4735_vm0, %v4734_v0  ;;  %v4139_v5 = vld [vmem:[%s6675_s0 + $0x160] sm:$0xff]  }
 0x144   :  { %v4297_v7 = vpop.eup %4296  ;;  %v3557_v8 = vpop.f32.mrf.mxu0  ;;  %4310 = vtanh.f32 %v2102_v6 }
 0x145   :  { %v3833_v9 = vpop.f32.mrf.mxu1  ;;  %v4299_v10 = vpop.eup %4298  ;;  %2825 = vst.msk [vmem:[%s6676_s2 + $0xd8] sm:$0xff] %vm2797_vm2, %v4297_v7  ;;  %v4140_v7 = vld [vmem:[%s6675_s0 + $0x388] sm:$0xff]  }
 0x146   :  { %2963 = vst.msk [vmem:[%s6676_s2 + $0x528] sm:$0xff] %vm2797_vm2, %v4299_v10  ;;  %v1553_v11 = vpop.f32.mrf.mxu0 }
 0x147   :  { %v2105_v13 = vpop.f32.mrf.mxu1  ;;  %4312 = vtanh.f32 %v1553_v11 }
 0x148   :  { %v4301_v15 = vpop.eup %4300  ;;  %v3558_v16 = vpop.f32.mrf.mxu0  ;;  %4314 = vtanh.f32 %v2105_v13 }
 0x149   :  { %v3834_v17 = vpop.f32.mrf.mxu1  ;;  %v4303_v18 = vpop.eup %4302  ;;  %2826 = vst.msk [vmem:[%s6676_s2 + $0xe0] sm:$0xff] %vm2797_vm2, %v4301_v15 }
 0x14a   :  { %2964 = vst.msk [vmem:[%s6676_s2 + $0x530] sm:$0xff] %vm2797_vm2, %v4303_v18  ;;  %v1558_v19 = vpop.f32.mrf.mxu0  ;;  %3656 = vmatmul.mubr.msk.bf16.gmra.mxu0 %vm984_vm1, %v4131_v12  ;;  %3932 = vmatmul.mubr.msk.bf16.gmra.mxu1 %vm984_vm1, %v4132_v14 }
 0x14b   :  { %v2110_v20 = vpop.f32.mrf.mxu1  ;;  %4316 = vtanh.f32 %v1558_v19  ;;  %3659 = vmatprep.mubr.msk.bf16.mxu0 %vm4735_vm0, %v4734_v0  ;;  %3935 = vmatprep.mubr.msk.bf16.mxu1 %vm4735_vm0, %v4734_v0  ;;  %v4141_v19 = vld [vmem:[%s6675_s0 + $0x168] sm:$0xff]  }
 0x14c   :  { %v4305_v21 = vpop.eup %4304  ;;  %v3561_v22 = vpop.f32.mrf.mxu0  ;;  %4318 = vtanh.f32 %v2110_v20 }
 0x14d   :  { %v3837_v23 = vpop.f32.mrf.mxu1  ;;  %v4307_v24 = vpop.eup %4306  ;;  %2827 = vst.msk [vmem:[%s6676_s2 + $0xe8] sm:$0xff] %vm2797_vm2, %v4305_v21  ;;  %v4142_v21 = vld [vmem:[%s6675_s0 + $0x390] sm:$0xff]  }
 0x14e   :  { %2965 = vst.msk [vmem:[%s6676_s2 + $0x538] sm:$0xff] %vm2797_vm2, %v4307_v24  ;;  %v1561_v25 = vpop.f32.mrf.mxu0 }
 0x14f   :  { %v2113_v27 = vpop.f32.mrf.mxu1  ;;  %4320 = vtanh.f32 %v1561_v25 }
 0x150   :  { %v4309_v29 = vpop.eup %4308  ;;  %v3562_v30 = vpop.f32.mrf.mxu0  ;;  %4322 = vtanh.f32 %v2113_v27 }
 0x151   :  { %v3838_v31 = vpop.f32.mrf.mxu1  ;;  %v4311_v32 = vpop.eup %4310  ;;  %2828 = vst.msk [vmem:[%s6676_s2 + $0xf0] sm:$0xff] %vm2797_vm2, %v4309_v29 }
 0x152   :  { %2966 = vst.msk [vmem:[%s6676_s2 + $0x540] sm:$0xff] %vm2797_vm2, %v4311_v32  ;;  %v1566_v33 = vpop.f32.mrf.mxu0  ;;  %3660 = vmatmul.mubr.msk.bf16.gmra.mxu0 %vm984_vm1, %v4133_v26  ;;  %3936 = vmatmul.mubr.msk.bf16.gmra.mxu1 %vm984_vm1, %v4134_v28 }
 0x153   :  { %v2118_v34 = vpop.f32.mrf.mxu1  ;;  %4324 = vtanh.f32 %v1566_v33  ;;  %3663 = vmatprep.mubr.msk.bf16.mxu0 %vm4735_vm0, %v4734_v0  ;;  %3939 = vmatprep.mubr.msk.bf16.mxu1 %vm4735_vm0, %v4734_v0  ;;  %v4143_v33 = vld [vmem:[%s6675_s0 + $0x170] sm:$0xff]  }
 0x154   :  { %v4313_v35 = vpop.eup %4312  ;;  %v3565_v36 = vpop.f32.mrf.mxu0  ;;  %4326 = vtanh.f32 %v2118_v34 }
 0x155   :  { %v3841_v37 = vpop.f32.mrf.mxu1  ;;  %v4315_v38 = vpop.eup %4314  ;;  %2829 = vst.msk [vmem:[%s6676_s2 + $0xf8] sm:$0xff] %vm2797_vm2, %v4313_v35  ;;  %v4144_v35 = vld [vmem:[%s6675_s0 + $0x398] sm:$0xff]  }
 0x156   :  { %2967 = vst.msk [vmem:[%s6676_s2 + $0x548] sm:$0xff] %vm2797_vm2, %v4315_v38  ;;  %v1569_v39 = vpop.f32.mrf.mxu0 }
 0x157   :  { %v2121_v41 = vpop.f32.mrf.mxu1  ;;  %4328 = vtanh.f32 %v1569_v39 }
 0x158   :  { %v4317_v43 = vpop.eup %4316  ;;  %v3566_v44 = vpop.f32.mrf.mxu0  ;;  %4330 = vtanh.f32 %v2121_v41 }
 0x159   :  { %v3842_v45 = vpop.f32.mrf.mxu1  ;;  %v4319_v46 = vpop.eup %4318  ;;  %2830 = vst.msk [vmem:[%s6676_s2 + $0x100] sm:$0xff] %vm2797_vm2, %v4317_v43 }
 0x15a   :  { %2968 = vst.msk [vmem:[%s6676_s2 + $0x550] sm:$0xff] %vm2797_vm2, %v4319_v46  ;;  %v1574_v47 = vpop.f32.mrf.mxu0  ;;  %3664 = vmatmul.mubr.msk.bf16.gmra.mxu0 %vm984_vm1, %v4135_v40  ;;  %3940 = vmatmul.mubr.msk.bf16.gmra.mxu1 %vm984_vm1, %v4136_v42 }
 0x15b   :  { %v2126_v48 = vpop.f32.mrf.mxu1  ;;  %4332 = vtanh.f32 %v1574_v47  ;;  %3667 = vmatprep.mubr.msk.bf16.mxu0 %vm4735_vm0, %v4734_v0  ;;  %3943 = vmatprep.mubr.msk.bf16.mxu1 %vm4735_vm0, %v4734_v0  ;;  %v4145_v47 = vld [vmem:[%s6675_s0 + $0x178] sm:$0xff]  }
 0x15c   :  { %v4321_v49 = vpop.eup %4320  ;;  %v3569_v50 = vpop.f32.mrf.mxu0  ;;  %4334 = vtanh.f32 %v2126_v48 }
 0x15d   :  { %v3845_v51 = vpop.f32.mrf.mxu1  ;;  %v4323_v52 = vpop.eup %4322  ;;  %2831 = vst.msk [vmem:[%s6676_s2 + $0x108] sm:$0xff] %vm2797_vm2, %v4321_v49  ;;  %v4146_v49 = vld [vmem:[%s6675_s0 + $0x3a0] sm:$0xff]  }
 0x15e   :  { %2969 = vst.msk [vmem:[%s6676_s2 + $0x558] sm:$0xff] %vm2797_vm2, %v4323_v52  ;;  %v1577_v53 = vpop.f32.mrf.mxu0 }
 0x15f   :  { %v2129_v55 = vpop.f32.mrf.mxu1  ;;  %4336 = vtanh.f32 %v1577_v53 }
 0x160   :  { %v4325_v57 = vpop.eup %4324  ;;  %v3570_v58 = vpop.f32.mrf.mxu0  ;;  %4338 = vtanh.f32 %v2129_v55 }
 0x161   :  { %v3846_v59 = vpop.f32.mrf.mxu1  ;;  %v4327_v60 = vpop.eup %4326  ;;  %2832 = vst.msk [vmem:[%s6676_s2 + $0x110] sm:$0xff] %vm2797_vm2, %v4325_v57 }
 0x162   :  { %2970 = vst.msk [vmem:[%s6676_s2 + $0x560] sm:$0xff] %vm2797_vm2, %v4327_v60  ;;  %v1582_v61 = vpop.f32.mrf.mxu0  ;;  %3668 = vmatmul.mubr.msk.bf16.gmra.mxu0 %vm984_vm1, %v4137_v54  ;;  %3944 = vmatmul.mubr.msk.bf16.gmra.mxu1 %vm984_vm1, %v4138_v56 }
 0x163   :  { %v2134_v62 = vpop.f32.mrf.mxu1  ;;  %4340 = vtanh.f32 %v1582_v61  ;;  %3671 = vmatprep.mubr.msk.bf16.mxu0 %vm4735_vm0, %v4734_v0  ;;  %3947 = vmatprep.mubr.msk.bf16.mxu1 %vm4735_vm0, %v4734_v0  ;;  %v4147_v61 = vld [vmem:[%s6675_s0 + $0x180] sm:$0xff]  }
 0x164   :  { %v4329_v63 = vpop.eup %4328  ;;  %v3573_v1 = vpop.f32.mrf.mxu0  ;;  %4342 = vtanh.f32 %v2134_v62 }
 0x165   :  { %v3849_v2 = vpop.f32.mrf.mxu1  ;;  %v4331_v3 = vpop.eup %4330  ;;  %2833 = vst.msk [vmem:[%s6676_s2 + $0x118] sm:$0xff] %vm2797_vm2, %v4329_v63  ;;  %v4148_v63 = vld [vmem:[%s6675_s0 + $0x3a8] sm:$0xff]  }
 0x166   :  { %2971 = vst.msk [vmem:[%s6676_s2 + $0x568] sm:$0xff] %vm2797_vm2, %v4331_v3  ;;  %v1585_v4 = vpop.f32.mrf.mxu0 }
 0x167   :  { %v2137_v6 = vpop.f32.mrf.mxu1  ;;  %4344 = vtanh.f32 %v1585_v4 }
 0x168   :  { %v4333_v8 = vpop.eup %4332  ;;  %v3574_v9 = vpop.f32.mrf.mxu0  ;;  %4346 = vtanh.f32 %v2137_v6 }
 0x169   :  { %v3850_v10 = vpop.f32.mrf.mxu1  ;;  %v4335_v11 = vpop.eup %4334  ;;  %2834 = vst.msk [vmem:[%s6676_s2 + $0x120] sm:$0xff] %vm2797_vm2, %v4333_v8 }
 0x16a   :  { %2972 = vst.msk [vmem:[%s6676_s2 + $0x570] sm:$0xff] %vm2797_vm2, %v4335_v11  ;;  %v1590_v12 = vpop.f32.mrf.mxu0  ;;  %3672 = vmatmul.mubr.msk.bf16.gmra.mxu0 %vm984_vm1, %v4139_v5  ;;  %3948 = vmatmul.mubr.msk.bf16.gmra.mxu1 %vm984_vm1, %v4140_v7 }
 0x16b   :  { %v2142_v13 = vpop.f32.mrf.mxu1  ;;  %4348 = vtanh.f32 %v1590_v12  ;;  %3675 = vmatprep.mubr.msk.bf16.mxu0 %vm4735_vm0, %v4734_v0  ;;  %3951 = vmatprep.mubr.msk.bf16.mxu1 %vm4735_vm0, %v4734_v0  ;;  %v4149_v12 = vld [vmem:[%s6675_s0 + $0x188] sm:$0xff]  }
 0x16c   :  { %v4337_v14 = vpop.eup %4336  ;;  %v3577_v15 = vpop.f32.mrf.mxu0  ;;  %4350 = vtanh.f32 %v2142_v13 }
 0x16d   :  { %v3853_v16 = vpop.f32.mrf.mxu1  ;;  %v4339_v17 = vpop.eup %4338  ;;  %2835 = vst.msk [vmem:[%s6676_s2 + $0x128] sm:$0xff] %vm2797_vm2, %v4337_v14  ;;  %v4150_v14 = vld [vmem:[%s6675_s0 + $0x3b0] sm:$0xff]  }
 0x16e   :  { %2973 = vst.msk [vmem:[%s6676_s2 + $0x578] sm:$0xff] %vm2797_vm2, %v4339_v17  ;;  %v1593_v18 = vpop.f32.mrf.mxu0 }
 0x16f   :  { %v2145_v20 = vpop.f32.mrf.mxu1  ;;  %4352 = vtanh.f32 %v1593_v18 }
 0x170   :  { %v4341_v22 = vpop.eup %4340  ;;  %v3578_v23 = vpop.f32.mrf.mxu0  ;;  %4354 = vtanh.f32 %v2145_v20 }
 0x171   :  { %v3854_v24 = vpop.f32.mrf.mxu1  ;;  %v4343_v25 = vpop.eup %4342  ;;  %2836 = vst.msk [vmem:[%s6676_s2 + $0x130] sm:$0xff] %vm2797_vm2, %v4341_v22 }
 0x172   :  { %2974 = vst.msk [vmem:[%s6676_s2 + $0x580] sm:$0xff] %vm2797_vm2, %v4343_v25  ;;  %v1598_v26 = vpop.f32.mrf.mxu0  ;;  %3676 = vmatmul.mubr.msk.bf16.gmra.mxu0 %vm984_vm1, %v4141_v19  ;;  %3952 = vmatmul.mubr.msk.bf16.gmra.mxu1 %vm984_vm1, %v4142_v21 }
 0x173   :  { %v2150_v27 = vpop.f32.mrf.mxu1  ;;  %4356 = vtanh.f32 %v1598_v26  ;;  %3679 = vmatprep.mubr.msk.bf16.mxu0 %vm4735_vm0, %v4734_v0  ;;  %3955 = vmatprep.mubr.msk.bf16.mxu1 %vm4735_vm0, %v4734_v0  ;;  %v4151_v26 = vld [vmem:[%s6675_s0 + $0x190] sm:$0xff]  }
 0x174   :  { %v4345_v28 = vpop.eup %4344  ;;  %v3581_v29 = vpop.f32.mrf.mxu0  ;;  %4358 = vtanh.f32 %v2150_v27 }
 0x175   :  { %v3857_v30 = vpop.f32.mrf.mxu1  ;;  %v4347_v31 = vpop.eup %4346  ;;  %2837 = vst.msk [vmem:[%s6676_s2 + $0x138] sm:$0xff] %vm2797_vm2, %v4345_v28  ;;  %v4152_v28 = vld [vmem:[%s6675_s0 + $0x3b8] sm:$0xff]  }
 0x176   :  { %2975 = vst.msk [vmem:[%s6676_s2 + $0x588] sm:$0xff] %vm2797_vm2, %v4347_v31  ;;  %v1601_v32 = vpop.f32.mrf.mxu0 }
 0x177   :  { %v2153_v34 = vpop.f32.mrf.mxu1  ;;  %4360 = vtanh.f32 %v1601_v32 }
 0x178   :  { %v4349_v36 = vpop.eup %4348  ;;  %v3582_v37 = vpop.f32.mrf.mxu0  ;;  %4362 = vtanh.f32 %v2153_v34 }
 0x179   :  { %v3858_v38 = vpop.f32.mrf.mxu1  ;;  %v4351_v39 = vpop.eup %4350  ;;  %2838 = vst.msk [vmem:[%s6676_s2 + $0x140] sm:$0xff] %vm2797_vm2, %v4349_v36 }
 0x17a   :  { %2976 = vst.msk [vmem:[%s6676_s2 + $0x590] sm:$0xff] %vm2797_vm2, %v4351_v39  ;;  %v1606_v40 = vpop.f32.mrf.mxu0  ;;  %3680 = vmatmul.mubr.msk.bf16.gmra.mxu0 %vm984_vm1, %v4143_v33  ;;  %3956 = vmatmul.mubr.msk.bf16.gmra.mxu1 %vm984_vm1, %v4144_v35 }
 0x17b   :  { %v2158_v41 = vpop.f32.mrf.mxu1  ;;  %4364 = vtanh.f32 %v1606_v40  ;;  %3683 = vmatprep.mubr.msk.bf16.mxu0 %vm4735_vm0, %v4734_v0  ;;  %3959 = vmatprep.mubr.msk.bf16.mxu1 %vm4735_vm0, %v4734_v0  ;;  %v4153_v40 = vld [vmem:[%s6675_s0 + $0x198] sm:$0xff]  }
 0x17c   :  { %v4353_v42 = vpop.eup %4352  ;;  %v3585_v43 = vpop.f32.mrf.mxu0  ;;  %4366 = vtanh.f32 %v2158_v41 }
 0x17d   :  { %v3861_v44 = vpop.f32.mrf.mxu1  ;;  %v4355_v45 = vpop.eup %4354  ;;  %2839 = vst.msk [vmem:[%s6676_s2 + $0x148] sm:$0xff] %vm2797_vm2, %v4353_v42  ;;  %v4154_v42 = vld [vmem:[%s6675_s0 + $0x3c0] sm:$0xff]  }
 0x17e   :  { %2977 = vst.msk [vmem:[%s6676_s2 + $0x598] sm:$0xff] %vm2797_vm2, %v4355_v45  ;;  %v1609_v46 = vpop.f32.mrf.mxu0 }
 0x17f   :  { %v2161_v48 = vpop.f32.mrf.mxu1  ;;  %4368 = vtanh.f32 %v1609_v46 }
 0x180   :  { %v4357_v50 = vpop.eup %4356  ;;  %v3586_v51 = vpop.f32.mrf.mxu0  ;;  %4370 = vtanh.f32 %v2161_v48 }
 0x181   :  { %v3862_v52 = vpop.f32.mrf.mxu1  ;;  %v4359_v53 = vpop.eup %4358  ;;  %2840 = vst.msk [vmem:[%s6676_s2 + $0x150] sm:$0xff] %vm2797_vm2, %v4357_v50 }
 0x182   :  { %2978 = vst.msk [vmem:[%s6676_s2 + $0x5a0] sm:$0xff] %vm2797_vm2, %v4359_v53  ;;  %v1614_v54 = vpop.f32.mrf.mxu0  ;;  %3684 = vmatmul.mubr.msk.bf16.gmra.mxu0 %vm984_vm1, %v4145_v47  ;;  %3960 = vmatmul.mubr.msk.bf16.gmra.mxu1 %vm984_vm1, %v4146_v49 }
 0x183   :  { %v2166_v55 = vpop.f32.mrf.mxu1  ;;  %4372 = vtanh.f32 %v1614_v54  ;;  %3687 = vmatprep.mubr.msk.bf16.mxu0 %vm4735_vm0, %v4734_v0  ;;  %3963 = vmatprep.mubr.msk.bf16.mxu1 %vm4735_vm0, %v4734_v0  ;;  %v4155_v54 = vld [vmem:[%s6675_s0 + $0x1a0] sm:$0xff]  }
 0x184   :  { %v4361_v56 = vpop.eup %4360  ;;  %v3589_v57 = vpop.f32.mrf.mxu0  ;;  %4374 = vtanh.f32 %v2166_v55 }
 0x185   :  { %v3865_v58 = vpop.f32.mrf.mxu1  ;;  %v4363_v59 = vpop.eup %4362  ;;  %2841 = vst.msk [vmem:[%s6676_s2 + $0x158] sm:$0xff] %vm2797_vm2, %v4361_v56  ;;  %v4156_v56 = vld [vmem:[%s6675_s0 + $0x3c8] sm:$0xff]  }
 0x186   :  { %2979 = vst.msk [vmem:[%s6676_s2 + $0x5a8] sm:$0xff] %vm2797_vm2, %v4363_v59  ;;  %v1617_v60 = vpop.f32.mrf.mxu0 }
 0x187   :  { %v2169_v62 = vpop.f32.mrf.mxu1  ;;  %4376 = vtanh.f32 %v1617_v60 }
 0x188   :  { %v4365_v1 = vpop.eup %4364  ;;  %v3590_v2 = vpop.f32.mrf.mxu0  ;;  %4378 = vtanh.f32 %v2169_v62 }
 0x189   :  { %v3866_v3 = vpop.f32.mrf.mxu1  ;;  %v4367_v4 = vpop.eup %4366  ;;  %2842 = vst.msk [vmem:[%s6676_s2 + $0x160] sm:$0xff] %vm2797_vm2, %v4365_v1 }
 0x18a   :  { %2980 = vst.msk [vmem:[%s6676_s2 + $0x5b0] sm:$0xff] %vm2797_vm2, %v4367_v4  ;;  %v1622_v5 = vpop.f32.mrf.mxu0  ;;  %3688 = vmatmul.mubr.msk.bf16.gmra.mxu0 %vm984_vm1, %v4147_v61  ;;  %3964 = vmatmul.mubr.msk.bf16.gmra.mxu1 %vm984_vm1, %v4148_v63 }
 0x18b   :  { %v2174_v6 = vpop.f32.mrf.mxu1  ;;  %4380 = vtanh.f32 %v1622_v5  ;;  %3691 = vmatprep.mubr.msk.bf16.mxu0 %vm4735_vm0, %v4734_v0  ;;  %3967 = vmatprep.mubr.msk.bf16.mxu1 %vm4735_vm0, %v4734_v0  ;;  %v4157_v5 = vld [vmem:[%s6675_s0 + $0x1a8] sm:$0xff]  }
 0x18c   :  { %v4369_v7 = vpop.eup %4368  ;;  %v3593_v8 = vpop.f32.mrf.mxu0  ;;  %4382 = vtanh.f32 %v2174_v6 }
 0x18d   :  { %v3869_v9 = vpop.f32.mrf.mxu1  ;;  %v4371_v10 = vpop.eup %4370  ;;  %2843 = vst.msk [vmem:[%s6676_s2 + $0x168] sm:$0xff] %vm2797_vm2, %v4369_v7  ;;  %v4158_v7 = vld [vmem:[%s6675_s0 + $0x3d0] sm:$0xff]  }
 0x18e   :  { %2981 = vst.msk [vmem:[%s6676_s2 + $0x5b8] sm:$0xff] %vm2797_vm2, %v4371_v10  ;;  %v1625_v11 = vpop.f32.mrf.mxu0 }
 0x18f   :  { %v2177_v13 = vpop.f32.mrf.mxu1  ;;  %4384 = vtanh.f32 %v1625_v11 }
 0x190   :  { %v4373_v15 = vpop.eup %4372  ;;  %v3594_v16 = vpop.f32.mrf.mxu0  ;;  %4386 = vtanh.f32 %v2177_v13 }
 0x191   :  { %v3870_v17 = vpop.f32.mrf.mxu1  ;;  %v4375_v18 = vpop.eup %4374  ;;  %2844 = vst.msk [vmem:[%s6676_s2 + $0x170] sm:$0xff] %vm2797_vm2, %v4373_v15 }
 0x192   :  { %2982 = vst.msk [vmem:[%s6676_s2 + $0x5c0] sm:$0xff] %vm2797_vm2, %v4375_v18  ;;  %v1630_v19 = vpop.f32.mrf.mxu0  ;;  %3692 = vmatmul.mubr.msk.bf16.gmra.mxu0 %vm984_vm1, %v4149_v12  ;;  %3968 = vmatmul.mubr.msk.bf16.gmra.mxu1 %vm984_vm1, %v4150_v14 }
 0x193   :  { %v2182_v20 = vpop.f32.mrf.mxu1  ;;  %4388 = vtanh.f32 %v1630_v19  ;;  %3695 = vmatprep.mubr.msk.bf16.mxu0 %vm4735_vm0, %v4734_v0  ;;  %3971 = vmatprep.mubr.msk.bf16.mxu1 %vm4735_vm0, %v4734_v0  ;;  %v4159_v19 = vld [vmem:[%s6675_s0 + $0x1b0] sm:$0xff]  }
 0x194   :  { %v4377_v21 = vpop.eup %4376  ;;  %v3597_v22 = vpop.f32.mrf.mxu0  ;;  %4390 = vtanh.f32 %v2182_v20 }
 0x195   :  { %v3873_v23 = vpop.f32.mrf.mxu1  ;;  %v4379_v24 = vpop.eup %4378  ;;  %2845 = vst.msk [vmem:[%s6676_s2 + $0x178] sm:$0xff] %vm2797_vm2, %v4377_v21  ;;  %v4160_v21 = vld [vmem:[%s6675_s0 + $0x3d8] sm:$0xff]  }
 0x196   :  { %2983 = vst.msk [vmem:[%s6676_s2 + $0x5c8] sm:$0xff] %vm2797_vm2, %v4379_v24  ;;  %v1633_v25 = vpop.f32.mrf.mxu0 }
 0x197   :  { %v2185_v27 = vpop.f32.mrf.mxu1  ;;  %4392 = vtanh.f32 %v1633_v25 }
 0x198   :  { %v4381_v29 = vpop.eup %4380  ;;  %v3598_v30 = vpop.f32.mrf.mxu0  ;;  %4394 = vtanh.f32 %v2185_v27 }
 0x199   :  { %v3874_v31 = vpop.f32.mrf.mxu1  ;;  %v4383_v32 = vpop.eup %4382  ;;  %2846 = vst.msk [vmem:[%s6676_s2 + $0x180] sm:$0xff] %vm2797_vm2, %v4381_v29 }
 0x19a   :  { %2984 = vst.msk [vmem:[%s6676_s2 + $0x5d0] sm:$0xff] %vm2797_vm2, %v4383_v32  ;;  %v1638_v33 = vpop.f32.mrf.mxu0  ;;  %3696 = vmatmul.mubr.msk.bf16.gmra.mxu0 %vm984_vm1, %v4151_v26  ;;  %3972 = vmatmul.mubr.msk.bf16.gmra.mxu1 %vm984_vm1, %v4152_v28 }
 0x19b   :  { %v2190_v34 = vpop.f32.mrf.mxu1  ;;  %4396 = vtanh.f32 %v1638_v33  ;;  %3699 = vmatprep.mubr.msk.bf16.mxu0 %vm4735_vm0, %v4734_v0  ;;  %3975 = vmatprep.mubr.msk.bf16.mxu1 %vm4735_vm0, %v4734_v0  ;;  %v4161_v33 = vld [vmem:[%s6675_s0 + $0x1b8] sm:$0xff]  }
 0x19c   :  { %v4385_v35 = vpop.eup %4384  ;;  %v3601_v36 = vpop.f32.mrf.mxu0  ;;  %4398 = vtanh.f32 %v2190_v34 }
 0x19d   :  { %v3877_v37 = vpop.f32.mrf.mxu1  ;;  %v4387_v38 = vpop.eup %4386  ;;  %2847 = vst.msk [vmem:[%s6676_s2 + $0x188] sm:$0xff] %vm2797_vm2, %v4385_v35  ;;  %v4162_v35 = vld [vmem:[%s6675_s0 + $0x3e0] sm:$0xff]  }
 0x19e   :  { %2985 = vst.msk [vmem:[%s6676_s2 + $0x5d8] sm:$0xff] %vm2797_vm2, %v4387_v38  ;;  %v1641_v39 = vpop.f32.mrf.mxu0 }
 0x19f   :  { %v2193_v41 = vpop.f32.mrf.mxu1  ;;  %4400 = vtanh.f32 %v1641_v39 }
 0x1a0   :  { %v4389_v43 = vpop.eup %4388  ;;  %v3602_v44 = vpop.f32.mrf.mxu0  ;;  %4402 = vtanh.f32 %v2193_v41 }
 0x1a1   :  { %v3878_v45 = vpop.f32.mrf.mxu1  ;;  %v4391_v46 = vpop.eup %4390  ;;  %2848 = vst.msk [vmem:[%s6676_s2 + $0x190] sm:$0xff] %vm2797_vm2, %v4389_v43 }
 0x1a2   :  { %2986 = vst.msk [vmem:[%s6676_s2 + $0x5e0] sm:$0xff] %vm2797_vm2, %v4391_v46  ;;  %v1646_v47 = vpop.f32.mrf.mxu0  ;;  %3700 = vmatmul.mubr.msk.bf16.gmra.mxu0 %vm984_vm1, %v4153_v40  ;;  %3976 = vmatmul.mubr.msk.bf16.gmra.mxu1 %vm984_vm1, %v4154_v42 }
 0x1a3   :  { %v2198_v48 = vpop.f32.mrf.mxu1  ;;  %4404 = vtanh.f32 %v1646_v47  ;;  %3703 = vmatprep.mubr.msk.bf16.mxu0 %vm4735_vm0, %v4734_v0  ;;  %3979 = vmatprep.mubr.msk.bf16.mxu1 %vm4735_vm0, %v4734_v0  ;;  %v4163_v47 = vld [vmem:[%s6675_s0 + $0x1c0] sm:$0xff]  }
 0x1a4   :  { %v4393_v49 = vpop.eup %4392  ;;  %v3605_v50 = vpop.f32.mrf.mxu0  ;;  %4406 = vtanh.f32 %v2198_v48 }
 0x1a5   :  { %v3881_v51 = vpop.f32.mrf.mxu1  ;;  %v4395_v52 = vpop.eup %4394  ;;  %2849 = vst.msk [vmem:[%s6676_s2 + $0x198] sm:$0xff] %vm2797_vm2, %v4393_v49  ;;  %v4164_v49 = vld [vmem:[%s6675_s0 + $0x3e8] sm:$0xff]  }
 0x1a6   :  { %2987 = vst.msk [vmem:[%s6676_s2 + $0x5e8] sm:$0xff] %vm2797_vm2, %v4395_v52  ;;  %v1649_v53 = vpop.f32.mrf.mxu0 }
 0x1a7   :  { %v2201_v55 = vpop.f32.mrf.mxu1  ;;  %4408 = vtanh.f32 %v1649_v53 }
 0x1a8   :  { %v4397_v57 = vpop.eup %4396  ;;  %v3606_v58 = vpop.f32.mrf.mxu0  ;;  %4410 = vtanh.f32 %v2201_v55 }
 0x1a9   :  { %v3882_v59 = vpop.f32.mrf.mxu1  ;;  %v4399_v60 = vpop.eup %4398  ;;  %2850 = vst.msk [vmem:[%s6676_s2 + $0x1a0] sm:$0xff] %vm2797_vm2, %v4397_v57 }
 0x1aa   :  { %2988 = vst.msk [vmem:[%s6676_s2 + $0x5f0] sm:$0xff] %vm2797_vm2, %v4399_v60  ;;  %v1654_v61 = vpop.f32.mrf.mxu0  ;;  %3704 = vmatmul.mubr.msk.bf16.gmra.mxu0 %vm984_vm1, %v4155_v54  ;;  %3980 = vmatmul.mubr.msk.bf16.gmra.mxu1 %vm984_vm1, %v4156_v56 }
 0x1ab   :  { %v2206_v62 = vpop.f32.mrf.mxu1  ;;  %4412 = vtanh.f32 %v1654_v61  ;;  %3707 = vmatprep.mubr.msk.bf16.mxu0 %vm4735_vm0, %v4734_v0  ;;  %3983 = vmatprep.mubr.msk.bf16.mxu1 %vm4735_vm0, %v4734_v0  ;;  %v4165_v61 = vld [vmem:[%s6675_s0 + $0x1c8] sm:$0xff]  }
 0x1ac   :  { %v4401_v63 = vpop.eup %4400  ;;  %v3609_v1 = vpop.f32.mrf.mxu0  ;;  %4414 = vtanh.f32 %v2206_v62 }
 0x1ad   :  { %v3885_v2 = vpop.f32.mrf.mxu1  ;;  %v4403_v3 = vpop.eup %4402  ;;  %2851 = vst.msk [vmem:[%s6676_s2 + $0x1a8] sm:$0xff] %vm2797_vm2, %v4401_v63  ;;  %v4166_v63 = vld [vmem:[%s6675_s0 + $0x3f0] sm:$0xff]  }
 0x1ae   :  { %2989 = vst.msk [vmem:[%s6676_s2 + $0x5f8] sm:$0xff] %vm2797_vm2, %v4403_v3  ;;  %v1657_v4 = vpop.f32.mrf.mxu0 }
 0x1af   :  { %v2209_v6 = vpop.f32.mrf.mxu1  ;;  %4416 = vtanh.f32 %v1657_v4 }
 0x1b0   :  { %v4405_v8 = vpop.eup %4404  ;;  %v3610_v9 = vpop.f32.mrf.mxu0  ;;  %4418 = vtanh.f32 %v2209_v6 }
 0x1b1   :  { %v3886_v10 = vpop.f32.mrf.mxu1  ;;  %v4407_v11 = vpop.eup %4406  ;;  %2852 = vst.msk [vmem:[%s6676_s2 + $0x1b0] sm:$0xff] %vm2797_vm2, %v4405_v8 }
 0x1b2   :  { %2990 = vst.msk [vmem:[%s6676_s2 + $0x600] sm:$0xff] %vm2797_vm2, %v4407_v11  ;;  %v1662_v12 = vpop.f32.mrf.mxu0  ;;  %3708 = vmatmul.mubr.msk.bf16.gmra.mxu0 %vm984_vm1, %v4157_v5  ;;  %3984 = vmatmul.mubr.msk.bf16.gmra.mxu1 %vm984_vm1, %v4158_v7 }
 0x1b3   :  { %v2214_v13 = vpop.f32.mrf.mxu1  ;;  %4420 = vtanh.f32 %v1662_v12  ;;  %3711 = vmatprep.mubr.msk.bf16.mxu0 %vm4735_vm0, %v4734_v0  ;;  %3987 = vmatprep.mubr.msk.bf16.mxu1 %vm4735_vm0, %v4734_v0  ;;  %v4167_v12 = vld [vmem:[%s6675_s0 + $0x1d0] sm:$0xff]  }
 0x1b4   :  { %v4409_v14 = vpop.eup %4408  ;;  %v3613_v15 = vpop.f32.mrf.mxu0  ;;  %4422 = vtanh.f32 %v2214_v13 }
 0x1b5   :  { %v3889_v16 = vpop.f32.mrf.mxu1  ;;  %v4411_v17 = vpop.eup %4410  ;;  %2853 = vst.msk [vmem:[%s6676_s2 + $0x1b8] sm:$0xff] %vm2797_vm2, %v4409_v14  ;;  %v4168_v14 = vld [vmem:[%s6675_s0 + $0x3f8] sm:$0xff]  }
 0x1b6   :  { %2991 = vst.msk [vmem:[%s6676_s2 + $0x608] sm:$0xff] %vm2797_vm2, %v4411_v17  ;;  %v1665_v18 = vpop.f32.mrf.mxu0 }
 0x1b7   :  { %v2217_v20 = vpop.f32.mrf.mxu1  ;;  %4424 = vtanh.f32 %v1665_v18 }
 0x1b8   :  { %v4413_v22 = vpop.eup %4412  ;;  %v3614_v23 = vpop.f32.mrf.mxu0  ;;  %4426 = vtanh.f32 %v2217_v20 }
 0x1b9   :  { %v3890_v24 = vpop.f32.mrf.mxu1  ;;  %v4415_v25 = vpop.eup %4414  ;;  %2854 = vst.msk [vmem:[%s6676_s2 + $0x1c0] sm:$0xff] %vm2797_vm2, %v4413_v22 }
 0x1ba   :  { %2992 = vst.msk [vmem:[%s6676_s2 + $0x610] sm:$0xff] %vm2797_vm2, %v4415_v25  ;;  %v1670_v26 = vpop.f32.mrf.mxu0  ;;  %3712 = vmatmul.mubr.msk.bf16.gmra.mxu0 %vm984_vm1, %v4159_v19  ;;  %3988 = vmatmul.mubr.msk.bf16.gmra.mxu1 %vm984_vm1, %v4160_v21 }
 0x1bb   :  { %v2222_v27 = vpop.f32.mrf.mxu1  ;;  %4428 = vtanh.f32 %v1670_v26  ;;  %3715 = vmatprep.mubr.msk.bf16.mxu0 %vm4735_vm0, %v4734_v0  ;;  %3991 = vmatprep.mubr.msk.bf16.mxu1 %vm4735_vm0, %v4734_v0  ;;  %v4169_v26 = vld [vmem:[%s6675_s0 + $0x1d8] sm:$0xff]  }
 0x1bc   :  { %v4417_v28 = vpop.eup %4416  ;;  %v3617_v29 = vpop.f32.mrf.mxu0  ;;  %4430 = vtanh.f32 %v2222_v27 }
 0x1bd   :  { %v3893_v30 = vpop.f32.mrf.mxu1  ;;  %v4419_v31 = vpop.eup %4418  ;;  %2855 = vst.msk [vmem:[%s6676_s2 + $0x1c8] sm:$0xff] %vm2797_vm2, %v4417_v28  ;;  %v4170_v28 = vld [vmem:[%s6675_s0 + $0x400] sm:$0xff]  }
 0x1be   :  { %2993 = vst.msk [vmem:[%s6676_s2 + $0x618] sm:$0xff] %vm2797_vm2, %v4419_v31  ;;  %v1673_v32 = vpop.f32.mrf.mxu0 }
 0x1bf   :  { %v2225_v34 = vpop.f32.mrf.mxu1  ;;  %4432 = vtanh.f32 %v1673_v32 }
 0x1c0   :  { %v4421_v36 = vpop.eup %4420  ;;  %v3618_v37 = vpop.f32.mrf.mxu0  ;;  %4434 = vtanh.f32 %v2225_v34 }
 0x1c1   :  { %v3894_v38 = vpop.f32.mrf.mxu1  ;;  %v4423_v39 = vpop.eup %4422  ;;  %2856 = vst.msk [vmem:[%s6676_s2 + $0x1d0] sm:$0xff] %vm2797_vm2, %v4421_v36 }
 0x1c2   :  { %2994 = vst.msk [vmem:[%s6676_s2 + $0x620] sm:$0xff] %vm2797_vm2, %v4423_v39  ;;  %v1678_v40 = vpop.f32.mrf.mxu0  ;;  %3716 = vmatmul.mubr.msk.bf16.gmra.mxu0 %vm984_vm1, %v4161_v33  ;;  %3992 = vmatmul.mubr.msk.bf16.gmra.mxu1 %vm984_vm1, %v4162_v35 }
 0x1c3   :  { %v2230_v41 = vpop.f32.mrf.mxu1  ;;  %4436 = vtanh.f32 %v1678_v40  ;;  %3719 = vmatprep.mubr.msk.bf16.mxu0 %vm4735_vm0, %v4734_v0  ;;  %3995 = vmatprep.mubr.msk.bf16.mxu1 %vm4735_vm0, %v4734_v0  ;;  %v4171_v40 = vld [vmem:[%s6675_s0 + $0x1e0] sm:$0xff]  }
 0x1c4   :  { %v4425_v42 = vpop.eup %4424  ;;  %v3621_v43 = vpop.f32.mrf.mxu0  ;;  %4438 = vtanh.f32 %v2230_v41 }
 0x1c5   :  { %v3897_v44 = vpop.f32.mrf.mxu1  ;;  %v4427_v45 = vpop.eup %4426  ;;  %2857 = vst.msk [vmem:[%s6676_s2 + $0x1d8] sm:$0xff] %vm2797_vm2, %v4425_v42  ;;  %v4172_v42 = vld [vmem:[%s6675_s0 + $0x408] sm:$0xff]  }
 0x1c6   :  { %2995 = vst.msk [vmem:[%s6676_s2 + $0x628] sm:$0xff] %vm2797_vm2, %v4427_v45  ;;  %v1681_v46 = vpop.f32.mrf.mxu0 }
 0x1c7   :  { %v2233_v48 = vpop.f32.mrf.mxu1  ;;  %4440 = vtanh.f32 %v1681_v46 }
 0x1c8   :  { %v4429_v50 = vpop.eup %4428  ;;  %v3622_v51 = vpop.f32.mrf.mxu0  ;;  %4442 = vtanh.f32 %v2233_v48 }
 0x1c9   :  { %v3898_v52 = vpop.f32.mrf.mxu1  ;;  %v4431_v53 = vpop.eup %4430  ;;  %2858 = vst.msk [vmem:[%s6676_s2 + $0x1e0] sm:$0xff] %vm2797_vm2, %v4429_v50 }
 0x1ca   :  { %2996 = vst.msk [vmem:[%s6676_s2 + $0x630] sm:$0xff] %vm2797_vm2, %v4431_v53  ;;  %v1686_v54 = vpop.f32.mrf.mxu0  ;;  %3720 = vmatmul.mubr.msk.bf16.gmra.mxu0 %vm984_vm1, %v4163_v47  ;;  %3996 = vmatmul.mubr.msk.bf16.gmra.mxu1 %vm984_vm1, %v4164_v49 }
 0x1cb   :  { %v2238_v55 = vpop.f32.mrf.mxu1  ;;  %4444 = vtanh.f32 %v1686_v54  ;;  %3723 = vmatprep.mubr.msk.bf16.mxu0 %vm4735_vm0, %v4734_v0  ;;  %3999 = vmatprep.mubr.msk.bf16.mxu1 %vm4735_vm0, %v4734_v0  ;;  %v4173_v54 = vld [vmem:[%s6675_s0 + $0x1e8] sm:$0xff]  }
 0x1cc   :  { %v4433_v56 = vpop.eup %4432  ;;  %v3625_v57 = vpop.f32.mrf.mxu0  ;;  %4446 = vtanh.f32 %v2238_v55 }
 0x1cd   :  { %v3901_v58 = vpop.f32.mrf.mxu1  ;;  %v4435_v59 = vpop.eup %4434  ;;  %2859 = vst.msk [vmem:[%s6676_s2 + $0x1e8] sm:$0xff] %vm2797_vm2, %v4433_v56  ;;  %v4174_v56 = vld [vmem:[%s6675_s0 + $0x410] sm:$0xff]  }
 0x1ce   :  { %2997 = vst.msk [vmem:[%s6676_s2 + $0x638] sm:$0xff] %vm2797_vm2, %v4435_v59  ;;  %v1689_v60 = vpop.f32.mrf.mxu0 }
 0x1cf   :  { %v2241_v62 = vpop.f32.mrf.mxu1  ;;  %4448 = vtanh.f32 %v1689_v60 }
 0x1d0   :  { %v4437_v1 = vpop.eup %4436  ;;  %v3626_v2 = vpop.f32.mrf.mxu0  ;;  %4450 = vtanh.f32 %v2241_v62 }
 0x1d1   :  { %v3902_v3 = vpop.f32.mrf.mxu1  ;;  %v4439_v4 = vpop.eup %4438  ;;  %2860 = vst.msk [vmem:[%s6676_s2 + $0x1f0] sm:$0xff] %vm2797_vm2, %v4437_v1 }
 0x1d2   :  { %2998 = vst.msk [vmem:[%s6676_s2 + $0x640] sm:$0xff] %vm2797_vm2, %v4439_v4  ;;  %v1694_v5 = vpop.f32.mrf.mxu0  ;;  %3724 = vmatmul.mubr.msk.bf16.gmra.mxu0 %vm984_vm1, %v4165_v61  ;;  %4000 = vmatmul.mubr.msk.bf16.gmra.mxu1 %vm984_vm1, %v4166_v63 }
 0x1d3   :  { %v2246_v6 = vpop.f32.mrf.mxu1  ;;  %4452 = vtanh.f32 %v1694_v5  ;;  %3727 = vmatprep.mubr.msk.bf16.mxu0 %vm4735_vm0, %v4734_v0  ;;  %4003 = vmatprep.mubr.msk.bf16.mxu1 %vm4735_vm0, %v4734_v0  ;;  %v4175_v5 = vld [vmem:[%s6675_s0 + $0x1f0] sm:$0xff]  }
 0x1d4   :  { %v4441_v7 = vpop.eup %4440  ;;  %v3629_v8 = vpop.f32.mrf.mxu0  ;;  %4454 = vtanh.f32 %v2246_v6 }
 0x1d5   :  { %v3905_v9 = vpop.f32.mrf.mxu1  ;;  %v4443_v10 = vpop.eup %4442  ;;  %2861 = vst.msk [vmem:[%s6676_s2 + $0x1f8] sm:$0xff] %vm2797_vm2, %v4441_v7  ;;  %v4176_v7 = vld [vmem:[%s6675_s0 + $0x418] sm:$0xff]  }
 0x1d6   :  { %2999 = vst.msk [vmem:[%s6676_s2 + $0x648] sm:$0xff] %vm2797_vm2, %v4443_v10  ;;  %v1697_v11 = vpop.f32.mrf.mxu0 }
 0x1d7   :  { %v2249_v13 = vpop.f32.mrf.mxu1  ;;  %4456 = vtanh.f32 %v1697_v11 }
 0x1d8   :  { %v4445_v15 = vpop.eup %4444  ;;  %v3630_v16 = vpop.f32.mrf.mxu0  ;;  %4458 = vtanh.f32 %v2249_v13 }
 0x1d9   :  { %v3906_v17 = vpop.f32.mrf.mxu1  ;;  %v4447_v18 = vpop.eup %4446  ;;  %2862 = vst.msk [vmem:[%s6676_s2 + $0x200] sm:$0xff] %vm2797_vm2, %v4445_v15 }
 0x1da   :  { %3000 = vst.msk [vmem:[%s6676_s2 + $0x650] sm:$0xff] %vm2797_vm2, %v4447_v18  ;;  %v1702_v19 = vpop.f32.mrf.mxu0  ;;  %3728 = vmatmul.mubr.msk.bf16.gmra.mxu0 %vm984_vm1, %v4167_v12  ;;  %4004 = vmatmul.mubr.msk.bf16.gmra.mxu1 %vm984_vm1, %v4168_v14 }
 0x1db   :  { %v2254_v20 = vpop.f32.mrf.mxu1  ;;  %4460 = vtanh.f32 %v1702_v19  ;;  %3731 = vmatprep.mubr.msk.bf16.mxu0 %vm4735_vm0, %v4734_v0  ;;  %4007 = vmatprep.mubr.msk.bf16.mxu1 %vm4735_vm0, %v4734_v0  ;;  %v4177_v19 = vld [vmem:[%s6675_s0 + $0x1f8] sm:$0xff]  }
 0x1dc   :  { %v4449_v21 = vpop.eup %4448  ;;  %v3633_v22 = vpop.f32.mrf.mxu0  ;;  %4462 = vtanh.f32 %v2254_v20 }
 0x1dd   :  { %v3909_v23 = vpop.f32.mrf.mxu1  ;;  %v4451_v24 = vpop.eup %4450  ;;  %2863 = vst.msk [vmem:[%s6676_s2 + $0x208] sm:$0xff] %vm2797_vm2, %v4449_v21  ;;  %v4178_v21 = vld [vmem:[%s6675_s0 + $0x420] sm:$0xff]  }
 0x1de   :  { %3001 = vst.msk [vmem:[%s6676_s2 + $0x658] sm:$0xff] %vm2797_vm2, %v4451_v24  ;;  %v1705_v25 = vpop.f32.mrf.mxu0 }
 0x1df   :  { %v2257_v27 = vpop.f32.mrf.mxu1  ;;  %4464 = vtanh.f32 %v1705_v25 }
 0x1e0   :  { %v4453_v29 = vpop.eup %4452  ;;  %v3634_v30 = vpop.f32.mrf.mxu0  ;;  %4466 = vtanh.f32 %v2257_v27 }
 0x1e1   :  { %v3910_v31 = vpop.f32.mrf.mxu1  ;;  %v4455_v32 = vpop.eup %4454  ;;  %2864 = vst.msk [vmem:[%s6676_s2 + $0x210] sm:$0xff] %vm2797_vm2, %v4453_v29 }
 0x1e2   :  { %3002 = vst.msk [vmem:[%s6676_s2 + $0x660] sm:$0xff] %vm2797_vm2, %v4455_v32  ;;  %v1710_v33 = vpop.f32.mrf.mxu0  ;;  %3732 = vmatmul.mubr.msk.bf16.gmra.mxu0 %vm984_vm1, %v4169_v26  ;;  %4008 = vmatmul.mubr.msk.bf16.gmra.mxu1 %vm984_vm1, %v4170_v28 }
 0x1e3   :  { %v2262_v34 = vpop.f32.mrf.mxu1  ;;  %4468 = vtanh.f32 %v1710_v33  ;;  %3735 = vmatprep.mubr.msk.bf16.mxu0 %vm4735_vm0, %v4734_v0  ;;  %4011 = vmatprep.mubr.msk.bf16.mxu1 %vm4735_vm0, %v4734_v0  ;;  %v4179_v33 = vld [vmem:[%s6675_s0 + $0x200] sm:$0xff]  }
 0x1e4   :  { %v4457_v35 = vpop.eup %4456  ;;  %v3637_v36 = vpop.f32.mrf.mxu0  ;;  %4470 = vtanh.f32 %v2262_v34 }
 0x1e5   :  { %v3913_v37 = vpop.f32.mrf.mxu1  ;;  %v4459_v38 = vpop.eup %4458  ;;  %2865 = vst.msk [vmem:[%s6676_s2 + $0x218] sm:$0xff] %vm2797_vm2, %v4457_v35  ;;  %v4180_v35 = vld [vmem:[%s6675_s0 + $0x428] sm:$0xff]  }
 0x1e6   :  { %3003 = vst.msk [vmem:[%s6676_s2 + $0x668] sm:$0xff] %vm2797_vm2, %v4459_v38  ;;  %v1713_v39 = vpop.f32.mrf.mxu0 }
 0x1e7   :  { %v2265_v41 = vpop.f32.mrf.mxu1  ;;  %4472 = vtanh.f32 %v1713_v39 }
 0x1e8   :  { %v4461_v43 = vpop.eup %4460  ;;  %v3638_v44 = vpop.f32.mrf.mxu0  ;;  %4474 = vtanh.f32 %v2265_v41 }
 0x1e9   :  { %v3914_v45 = vpop.f32.mrf.mxu1  ;;  %v4463_v46 = vpop.eup %4462  ;;  %2866 = vst.msk [vmem:[%s6676_s2 + $0x220] sm:$0xff] %vm2797_vm2, %v4461_v43 }
 0x1ea   :  { %3004 = vst.msk [vmem:[%s6676_s2 + $0x670] sm:$0xff] %vm2797_vm2, %v4463_v46  ;;  %v1718_v47 = vpop.f32.mrf.mxu0  ;;  %3736 = vmatmul.mubr.msk.bf16.gmra.mxu0 %vm984_vm1, %v4171_v40  ;;  %4012 = vmatmul.mubr.msk.bf16.gmra.mxu1 %vm984_vm1, %v4172_v42 }
 0x1eb   :  { %v2270_v48 = vpop.f32.mrf.mxu1  ;;  %4476 = vtanh.f32 %v1718_v47  ;;  %3739 = vmatprep.mubr.msk.bf16.mxu0 %vm4735_vm0, %v4734_v0  ;;  %4015 = vmatprep.mubr.msk.bf16.mxu1 %vm4735_vm0, %v4734_v0  ;;  %v4181_v47 = vld [vmem:[%s6675_s0 + $0x208] sm:$0xff]  }
 0x1ec   :  { %v4465_v49 = vpop.eup %4464  ;;  %v3641_v50 = vpop.f32.mrf.mxu0  ;;  %4478 = vtanh.f32 %v2270_v48 }
 0x1ed   :  { %v3917_v51 = vpop.f32.mrf.mxu1  ;;  %v4467_v52 = vpop.eup %4466  ;;  %2867 = vst.msk [vmem:[%s6676_s2 + $0x228] sm:$0xff] %vm2797_vm2, %v4465_v49  ;;  %v4182_v49 = vld [vmem:[%s6675_s0 + $0x430] sm:$0xff]  }
 0x1ee   :  { %3005 = vst.msk [vmem:[%s6676_s2 + $0x678] sm:$0xff] %vm2797_vm2, %v4467_v52  ;;  %v1721_v53 = vpop.f32.mrf.mxu0 }
 0x1ef   :  { %v2273_v55 = vpop.f32.mrf.mxu1  ;;  %4480 = vtanh.f32 %v1721_v53 }
 0x1f0   :  { %v4469_v57 = vpop.eup %4468  ;;  %v3642_v58 = vpop.f32.mrf.mxu0  ;;  %4482 = vtanh.f32 %v2273_v55 }
 0x1f1   :  { %v3918_v59 = vpop.f32.mrf.mxu1  ;;  %v4471_v60 = vpop.eup %4470  ;;  %2868 = vst.msk [vmem:[%s6676_s2 + $0x230] sm:$0xff] %vm2797_vm2, %v4469_v57 }
 0x1f2   :  { %3006 = vst.msk [vmem:[%s6676_s2 + $0x680] sm:$0xff] %vm2797_vm2, %v4471_v60  ;;  %v1726_v61 = vpop.f32.mrf.mxu0  ;;  %3740 = vmatmul.mubr.msk.bf16.gmra.mxu0 %vm984_vm1, %v4173_v54  ;;  %4016 = vmatmul.mubr.msk.bf16.gmra.mxu1 %vm984_vm1, %v4174_v56 }
 0x1f3   :  { %v2278_v62 = vpop.f32.mrf.mxu1  ;;  %4484 = vtanh.f32 %v1726_v61  ;;  %3743 = vmatprep.mubr.msk.bf16.mxu0 %vm4735_vm0, %v4734_v0  ;;  %4019 = vmatprep.mubr.msk.bf16.mxu1 %vm4735_vm0, %v4734_v0  ;;  %v4183_v61 = vld [vmem:[%s6675_s0 + $0x210] sm:$0xff]  }
 0x1f4   :  { %v4473_v63 = vpop.eup %4472  ;;  %v3645_v1 = vpop.f32.mrf.mxu0  ;;  %4486 = vtanh.f32 %v2278_v62 }
 0x1f5   :  { %v3921_v2 = vpop.f32.mrf.mxu1  ;;  %v4475_v3 = vpop.eup %4474  ;;  %2869 = vst.msk [vmem:[%s6676_s2 + $0x238] sm:$0xff] %vm2797_vm2, %v4473_v63  ;;  %v4184_v63 = vld [vmem:[%s6675_s0 + $0x438] sm:$0xff]  }
 0x1f6   :  { %3007 = vst.msk [vmem:[%s6676_s2 + $0x688] sm:$0xff] %vm2797_vm2, %v4475_v3  ;;  %v1729_v4 = vpop.f32.mrf.mxu0 }
 0x1f7   :  { %v2281_v6 = vpop.f32.mrf.mxu1  ;;  %4488 = vtanh.f32 %v1729_v4 }
 0x1f8   :  { %v4477_v8 = vpop.eup %4476  ;;  %v3646_v9 = vpop.f32.mrf.mxu0  ;;  %4490 = vtanh.f32 %v2281_v6 }
 0x1f9   :  { %v3922_v10 = vpop.f32.mrf.mxu1  ;;  %v4479_v11 = vpop.eup %4478  ;;  %2870 = vst.msk [vmem:[%s6676_s2 + $0x240] sm:$0xff] %vm2797_vm2, %v4477_v8 }
 0x1fa   :  { %3008 = vst.msk [vmem:[%s6676_s2 + $0x690] sm:$0xff] %vm2797_vm2, %v4479_v11  ;;  %v1734_v12 = vpop.f32.mrf.mxu0  ;;  %3744 = vmatmul.mubr.msk.bf16.gmra.mxu0 %vm984_vm1, %v4175_v5  ;;  %4020 = vmatmul.mubr.msk.bf16.gmra.mxu1 %vm984_vm1, %v4176_v7 }
 0x1fb   :  { %v2286_v13 = vpop.f32.mrf.mxu1  ;;  %4492 = vtanh.f32 %v1734_v12  ;;  %3747 = vmatprep.mubr.msk.bf16.mxu0 %vm4735_vm0, %v4734_v0  ;;  %4023 = vmatprep.mubr.msk.bf16.mxu1 %vm4735_vm0, %v4734_v0  ;;  %v4185_v12 = vld [vmem:[%s6675_s0 + $0x218] sm:$0xff]  }
 0x1fc   :  { %v4481_v14 = vpop.eup %4480  ;;  %v3649_v15 = vpop.f32.mrf.mxu0  ;;  %4494 = vtanh.f32 %v2286_v13 }
 0x1fd   :  { %v3925_v16 = vpop.f32.mrf.mxu1  ;;  %v4483_v17 = vpop.eup %4482  ;;  %2871 = vst.msk [vmem:[%s6676_s2 + $0x248] sm:$0xff] %vm2797_vm2, %v4481_v14  ;;  %v4186_v14 = vld [vmem:[%s6675_s0 + $0x440] ss:$0 sps:$4 sm:$0x11]  }
 0x1fe   :  { %3009 = vst.msk [vmem:[%s6676_s2 + $0x698] sm:$0xff] %vm2797_vm2, %v4483_v17  ;;  %v1737_v18 = vpop.f32.mrf.mxu0 }
 0x1ff   :  { %v2289_v20 = vpop.f32.mrf.mxu1  ;;  %4496 = vtanh.f32 %v1737_v18 }
 0x200   :  { %v4485_v22 = vpop.eup %4484  ;;  %v3650_v23 = vpop.f32.mrf.mxu0  ;;  %4498 = vtanh.f32 %v2289_v20 }
 0x201   :  { %v3926_v24 = vpop.f32.mrf.mxu1  ;;  %v4487_v25 = vpop.eup %4486  ;;  %2872 = vst.msk [vmem:[%s6676_s2 + $0x250] sm:$0xff] %vm2797_vm2, %v4485_v22 }
 0x202   :  { %3010 = vst.msk [vmem:[%s6676_s2 + $0x6a0] sm:$0xff] %vm2797_vm2, %v4487_v25  ;;  %v1742_v26 = vpop.f32.mrf.mxu0  ;;  %3748 = vmatmul.mubr.msk.bf16.gmra.mxu0 %vm984_vm1, %v4177_v19  ;;  %4024 = vmatmul.mubr.msk.bf16.gmra.mxu1 %vm984_vm1, %v4178_v21 }
 0x203   :  { %v2294_v27 = vpop.f32.mrf.mxu1  ;;  %4500 = vtanh.f32 %v1742_v26  ;;  %3751 = vmatprep.mubr.msk.bf16.mxu0 %vm4735_vm0, %v4734_v0  ;;  %4027 = vmatprep.mubr.msk.bf16.mxu1 %vm4735_vm0, %v4734_v0 }
 0x204   :  { %v4489_v28 = vpop.eup %4488  ;;  %v3653_v29 = vpop.f32.mrf.mxu0  ;;  %4502 = vtanh.f32 %v2294_v27 }
 0x205   :  { %v3929_v30 = vpop.f32.mrf.mxu1  ;;  %v4491_v31 = vpop.eup %4490  ;;  %2873 = vst.msk [vmem:[%s6676_s2 + $0x258] sm:$0xff] %vm2797_vm2, %v4489_v28 }
 0x206   :  { %3011 = vst.msk [vmem:[%s6676_s2 + $0x6a8] sm:$0xff] %vm2797_vm2, %v4491_v31  ;;  %v1745_v32 = vpop.f32.mrf.mxu0 }
 0x207   :  { %v2297_v34 = vpop.f32.mrf.mxu1  ;;  %4504 = vtanh.f32 %v1745_v32 }
 0x208   :  { %v4493_v36 = vpop.eup %4492  ;;  %v3654_v37 = vpop.f32.mrf.mxu0  ;;  %4506 = vtanh.f32 %v2297_v34 }
 0x209   :  { %v3930_v38 = vpop.f32.mrf.mxu1  ;;  %v4495_v39 = vpop.eup %4494  ;;  %2874 = vst.msk [vmem:[%s6676_s2 + $0x260] sm:$0xff] %vm2797_vm2, %v4493_v36 }
 0x20a   :  { %3012 = vst.msk [vmem:[%s6676_s2 + $0x6b0] sm:$0xff] %vm2797_vm2, %v4495_v39  ;;  %v1750_v40 = vpop.f32.mrf.mxu0  ;;  %3752 = vmatmul.mubr.msk.bf16.gmra.mxu0 %vm984_vm1, %v4179_v33  ;;  %4028 = vmatmul.mubr.msk.bf16.gmra.mxu1 %vm984_vm1, %v4180_v35 }
 0x20b   :  { %v2302_v41 = vpop.f32.mrf.mxu1  ;;  %4508 = vtanh.f32 %v1750_v40  ;;  %3755 = vmatprep.mubr.msk.bf16.mxu0 %vm4735_vm0, %v4734_v0  ;;  %4031 = vmatprep.mubr.msk.bf16.mxu1 %vm4735_vm0, %v4734_v0 }
 0x20c   :  { %v4497_v42 = vpop.eup %4496  ;;  %v3657_v43 = vpop.f32.mrf.mxu0  ;;  %4510 = vtanh.f32 %v2302_v41 }
 0x20d   :  { %v3933_v44 = vpop.f32.mrf.mxu1  ;;  %v4499_v45 = vpop.eup %4498  ;;  %2875 = vst.msk [vmem:[%s6676_s2 + $0x268] sm:$0xff] %vm2797_vm2, %v4497_v42 }
 0x20e   :  { %3013 = vst.msk [vmem:[%s6676_s2 + $0x6b8] sm:$0xff] %vm2797_vm2, %v4499_v45  ;;  %v1753_v46 = vpop.f32.mrf.mxu0 }
 0x20f   :  { %v2305_v48 = vpop.f32.mrf.mxu1  ;;  %4512 = vtanh.f32 %v1753_v46 }
 0x210   :  { %v4501_v50 = vpop.eup %4500  ;;  %v3658_v51 = vpop.f32.mrf.mxu0  ;;  %4514 = vtanh.f32 %v2305_v48 }
 0x211   :  { %v3934_v52 = vpop.f32.mrf.mxu1  ;;  %v4503_v53 = vpop.eup %4502  ;;  %2876 = vst.msk [vmem:[%s6676_s2 + $0x270] sm:$0xff] %vm2797_vm2, %v4501_v50 }
 0x212   :  { %3014 = vst.msk [vmem:[%s6676_s2 + $0x6c0] sm:$0xff] %vm2797_vm2, %v4503_v53  ;;  %v1758_v54 = vpop.f32.mrf.mxu0  ;;  %3756 = vmatmul.mubr.msk.bf16.gmra.mxu0 %vm984_vm1, %v4181_v47  ;;  %4032 = vmatmul.mubr.msk.bf16.gmra.mxu1 %vm984_vm1, %v4182_v49 }
 0x213   :  { %v2310_v55 = vpop.f32.mrf.mxu1  ;;  %4516 = vtanh.f32 %v1758_v54  ;;  %3759 = vmatprep.mubr.msk.bf16.mxu0 %vm4735_vm0, %v4734_v0  ;;  %4035 = vmatprep.mubr.msk.bf16.mxu1 %vm4735_vm0, %v4734_v0 }
 0x214   :  { %v4505_v56 = vpop.eup %4504  ;;  %v3661_v57 = vpop.f32.mrf.mxu0  ;;  %4518 = vtanh.f32 %v2310_v55 }
 0x215   :  { %v3937_v58 = vpop.f32.mrf.mxu1  ;;  %v4507_v59 = vpop.eup %4506  ;;  %2877 = vst.msk [vmem:[%s6676_s2 + $0x278] sm:$0xff] %vm2797_vm2, %v4505_v56 }
 0x216   :  { %3015 = vst.msk [vmem:[%s6676_s2 + $0x6c8] sm:$0xff] %vm2797_vm2, %v4507_v59  ;;  %v1761_v60 = vpop.f32.mrf.mxu0 }
 0x217   :  { %v2313_v62 = vpop.f32.mrf.mxu1  ;;  %4520 = vtanh.f32 %v1761_v60 }
 0x218   :  { %v4509_v1 = vpop.eup %4508  ;;  %v3662_v2 = vpop.f32.mrf.mxu0  ;;  %4522 = vtanh.f32 %v2313_v62 }
 0x219   :  { %v3938_v3 = vpop.f32.mrf.mxu1  ;;  %v4511_v4 = vpop.eup %4510  ;;  %2878 = vst.msk [vmem:[%s6676_s2 + $0x280] sm:$0xff] %vm2797_vm2, %v4509_v1 }
 0x21a   :  { %3016 = vst.msk [vmem:[%s6676_s2 + $0x6d0] sm:$0xff] %vm2797_vm2, %v4511_v4  ;;  %v1766_v5 = vpop.f32.mrf.mxu0  ;;  %3760 = vmatmul.mubr.msk.bf16.gmra.mxu0 %vm984_vm1, %v4183_v61  ;;  %4036 = vmatmul.mubr.msk.bf16.gmra.mxu1 %vm984_vm1, %v4184_v63 }
 0x21b   :  { %v2318_v6 = vpop.f32.mrf.mxu1  ;;  %4524 = vtanh.f32 %v1766_v5  ;;  %3763 = vmatprep.mubr.msk.bf16.mxu0 %vm4735_vm0, %v4734_v0  ;;  %4039 = vmatprep.mubr.msk.bf16.mxu1 %vm4735_vm0, %v4734_v0 }
 0x21c   :  { %v4513_v7 = vpop.eup %4512  ;;  %v3665_v8 = vpop.f32.mrf.mxu0  ;;  %4526 = vtanh.f32 %v2318_v6 }
 0x21d   :  { %v3941_v9 = vpop.f32.mrf.mxu1  ;;  %v4515_v10 = vpop.eup %4514  ;;  %2879 = vst.msk [vmem:[%s6676_s2 + $0x288] sm:$0xff] %vm2797_vm2, %v4513_v7 }
 0x21e   :  { %3017 = vst.msk [vmem:[%s6676_s2 + $0x6d8] sm:$0xff] %vm2797_vm2, %v4515_v10  ;;  %v1769_v11 = vpop.f32.mrf.mxu0 }
 0x21f   :  { %v2321_v13 = vpop.f32.mrf.mxu1  ;;  %4528 = vtanh.f32 %v1769_v11 }
 0x220   :  { %v4517_v15 = vpop.eup %4516  ;;  %v3666_v16 = vpop.f32.mrf.mxu0  ;;  %4530 = vtanh.f32 %v2321_v13 }
 0x221   :  { %v3942_v17 = vpop.f32.mrf.mxu1  ;;  %v4519_v18 = vpop.eup %4518  ;;  %2880 = vst.msk [vmem:[%s6676_s2 + $0x290] sm:$0xff] %vm2797_vm2, %v4517_v15 }
 0x222   :  { %3018 = vst.msk [vmem:[%s6676_s2 + $0x6e0] sm:$0xff] %vm2797_vm2, %v4519_v18  ;;  %v1774_v19 = vpop.f32.mrf.mxu0  ;;  %3764 = vmatmul.mubr.msk.bf16.gmra.mxu0 %vm984_vm1, %v4185_v12  ;;  %4040 = vmatmul.mubr.msk.bf16.gmra.mxu1 %vm984_vm1, %v4186_v14 }
 0x223   :  { %v2326_v20 = vpop.f32.mrf.mxu1  ;;  %4532 = vtanh.f32 %v1774_v19  ;;  %3767 = vmatprep.mubr.msk.bf16.mxu0 %vm4735_vm0, %v4734_v0  ;;  %v4187_v0 = vld [vmem:[%s6675_s0 + $0x220] sm:$0xff]  }
 0x224   :  { %v4521_v21 = vpop.eup %4520  ;;  %v3669_v22 = vpop.f32.mrf.mxu0  ;;  %4534 = vtanh.f32 %v2326_v20 }
 0x225   :  { %v3945_v23 = vpop.f32.mrf.mxu1  ;;  %v4523_v24 = vpop.eup %4522  ;;  %2881 = vst.msk [vmem:[%s6676_s2 + $0x298] sm:$0xff] %vm2797_vm2, %v4521_v21 }
 0x226   :  { %3019 = vst.msk [vmem:[%s6676_s2 + $0x6e8] sm:$0xff] %vm2797_vm2, %v4523_v24  ;;  %v1777_v25 = vpop.f32.mrf.mxu0 }
 0x227   :  { %v2329_v26 = vpop.f32.mrf.mxu1  ;;  %4536 = vtanh.f32 %v1777_v25 }
 0x228   :  { %v4525_v27 = vpop.eup %4524  ;;  %v3670_v28 = vpop.f32.mrf.mxu0  ;;  %4538 = vtanh.f32 %v2329_v26 }
 0x229   :  { %v3946_v29 = vpop.f32.mrf.mxu1  ;;  %v4527_v30 = vpop.eup %4526  ;;  %2882 = vst.msk [vmem:[%s6676_s2 + $0x2a0] sm:$0xff] %vm2797_vm2, %v4525_v27 }
 0x22a   :  { %3020 = vst.msk [vmem:[%s6676_s2 + $0x6f0] sm:$0xff] %vm2797_vm2, %v4527_v30  ;;  %v1782_v31 = vpop.f32.mrf.mxu0  ;;  %3768 = vmatmul.mubr.msk.bf16.gmra.mxu0 %vm984_vm1, %v4187_v0 }
 0x22b   :  { %v2334_v32 = vpop.f32.mrf.mxu1  ;;  %4540 = vtanh.f32 %v1782_v31 }
 0x22c   :  { %v4529_v33 = vpop.eup %4528  ;;  %v3673_v34 = vpop.f32.mrf.mxu0  ;;  %4542 = vtanh.f32 %v2334_v32 }
 0x22d   :  { %v3949_v35 = vpop.f32.mrf.mxu1  ;;  %v4531_v36 = vpop.eup %4530  ;;  %2883 = vst.msk [vmem:[%s6676_s2 + $0x2a8] sm:$0xff] %vm2797_vm2, %v4529_v33 }
 0x22e   :  { %3021 = vst.msk [vmem:[%s6676_s2 + $0x6f8] sm:$0xff] %vm2797_vm2, %v4531_v36  ;;  %v1785_v37 = vpop.f32.mrf.mxu0 }
 0x22f   :  { %v2337_v38 = vpop.f32.mrf.mxu1  ;;  %4544 = vtanh.f32 %v1785_v37 }
 0x230   :  { %v4533_v39 = vpop.eup %4532  ;;  %v3674_v40 = vpop.f32.mrf.mxu0  ;;  %4546 = vtanh.f32 %v2337_v38 }
 0x231   :  { %v3950_v41 = vpop.f32.mrf.mxu1  ;;  %v4535_v42 = vpop.eup %4534  ;;  %2884 = vst.msk [vmem:[%s6676_s2 + $0x2b0] sm:$0xff] %vm2797_vm2, %v4533_v39 }
 0x232   :  { %3022 = vst.msk [vmem:[%s6676_s2 + $0x700] sm:$0xff] %vm2797_vm2, %v4535_v42  ;;  %v1790_v43 = vpop.f32.mrf.mxu0 }
 0x233   :  { %v2342_v44 = vpop.f32.mrf.mxu1  ;;  %4548 = vtanh.f32 %v1790_v43 }
 0x234   :  { %v4537_v45 = vpop.eup %4536  ;;  %v3677_v46 = vpop.f32.mrf.mxu0  ;;  %4550 = vtanh.f32 %v2342_v44 }
 0x235   :  { %v3953_v47 = vpop.f32.mrf.mxu1  ;;  %v4539_v48 = vpop.eup %4538  ;;  %2885 = vst.msk [vmem:[%s6676_s2 + $0x2b8] sm:$0xff] %vm2797_vm2, %v4537_v45 }
 0x236   :  { %3023 = vst.msk [vmem:[%s6676_s2 + $0x708] sm:$0xff] %vm2797_vm2, %v4539_v48  ;;  %v1793_v49 = vpop.f32.mrf.mxu0 }
 0x237   :  { %v2345_v50 = vpop.f32.mrf.mxu1  ;;  %4552 = vtanh.f32 %v1793_v49 }
 0x238   :  { %v4541_v51 = vpop.eup %4540  ;;  %v3678_v52 = vpop.f32.mrf.mxu0  ;;  %4554 = vtanh.f32 %v2345_v50 }
 0x239   :  { %v3954_v53 = vpop.f32.mrf.mxu1  ;;  %v4543_v54 = vpop.eup %4542  ;;  %2886 = vst.msk [vmem:[%s6676_s2 + $0x2c0] sm:$0xff] %vm2797_vm2, %v4541_v51 }
 0x23a   :  { %3024 = vst.msk [vmem:[%s6676_s2 + $0x710] sm:$0xff] %vm2797_vm2, %v4543_v54  ;;  %v1798_v55 = vpop.f32.mrf.mxu0 }
 0x23b   :  { %v2350_v56 = vpop.f32.mrf.mxu1  ;;  %4556 = vtanh.f32 %v1798_v55 }
 0x23c   :  { %v4545_v57 = vpop.eup %4544  ;;  %v3681_v58 = vpop.f32.mrf.mxu0  ;;  %4558 = vtanh.f32 %v2350_v56 }
 0x23d   :  { %v3957_v59 = vpop.f32.mrf.mxu1  ;;  %v4547_v60 = vpop.eup %4546  ;;  %2887 = vst.msk [vmem:[%s6676_s2 + $0x2c8] sm:$0xff] %vm2797_vm2, %v4545_v57 }
 0x23e   :  { %3025 = vst.msk [vmem:[%s6676_s2 + $0x718] sm:$0xff] %vm2797_vm2, %v4547_v60  ;;  %v1801_v61 = vpop.f32.mrf.mxu0 }
 0x23f   :  { %v2353_v62 = vpop.f32.mrf.mxu1  ;;  %4560 = vtanh.f32 %v1801_v61 }
 0x240   :  { %v4549_v63 = vpop.eup %4548  ;;  %v3682_v1 = vpop.f32.mrf.mxu0  ;;  %4562 = vtanh.f32 %v2353_v62 }
 0x241   :  { %v3958_v2 = vpop.f32.mrf.mxu1  ;;  %v4551_v3 = vpop.eup %4550  ;;  %2888 = vst.msk [vmem:[%s6676_s2 + $0x2d0] sm:$0xff] %vm2797_vm2, %v4549_v63 }
 0x242   :  { %3026 = vst.msk [vmem:[%s6676_s2 + $0x720] sm:$0xff] %vm2797_vm2, %v4551_v3  ;;  %v1806_v4 = vpop.f32.mrf.mxu0 }
 0x243   :  { %v2358_v5 = vpop.f32.mrf.mxu1  ;;  %4564 = vtanh.f32 %v1806_v4 }
 0x244   :  { %v4553_v6 = vpop.eup %4552  ;;  %v3685_v7 = vpop.f32.mrf.mxu0  ;;  %4566 = vtanh.f32 %v2358_v5 }
 0x245   :  { %v3961_v8 = vpop.f32.mrf.mxu1  ;;  %v4555_v9 = vpop.eup %4554  ;;  %2889 = vst.msk [vmem:[%s6676_s2 + $0x2d8] sm:$0xff] %vm2797_vm2, %v4553_v6 }
 0x246   :  { %3027 = vst.msk [vmem:[%s6676_s2 + $0x728] sm:$0xff] %vm2797_vm2, %v4555_v9  ;;  %v1809_v10 = vpop.f32.mrf.mxu0 }
 0x247   :  { %v2361_v11 = vpop.f32.mrf.mxu1  ;;  %4568 = vtanh.f32 %v1809_v10 }
 0x248   :  { %v4557_v12 = vpop.eup %4556  ;;  %v3686_v13 = vpop.f32.mrf.mxu0  ;;  %4570 = vtanh.f32 %v2361_v11 }
 0x249   :  { %v3962_v14 = vpop.f32.mrf.mxu1  ;;  %v4559_v15 = vpop.eup %4558  ;;  %2890 = vst.msk [vmem:[%s6676_s2 + $0x2e0] sm:$0xff] %vm2797_vm2, %v4557_v12 }
 0x24a   :  { %3028 = vst.msk [vmem:[%s6676_s2 + $0x730] sm:$0xff] %vm2797_vm2, %v4559_v15  ;;  %v1814_v16 = vpop.f32.mrf.mxu0 }
 0x24b   :  { %v2366_v17 = vpop.f32.mrf.mxu1  ;;  %4572 = vtanh.f32 %v1814_v16 }
 0x24c   :  { %v4561_v18 = vpop.eup %4560  ;;  %v3689_v19 = vpop.f32.mrf.mxu0  ;;  %4574 = vtanh.f32 %v2366_v17 }
 0x24d   :  { %v3965_v20 = vpop.f32.mrf.mxu1  ;;  %v4563_v21 = vpop.eup %4562  ;;  %2891 = vst.msk [vmem:[%s6676_s2 + $0x2e8] sm:$0xff] %vm2797_vm2, %v4561_v18 }
 0x24e   :  { %3029 = vst.msk [vmem:[%s6676_s2 + $0x738] sm:$0xff] %vm2797_vm2, %v4563_v21  ;;  %v1817_v22 = vpop.f32.mrf.mxu0 }
 0x24f   :  { %v2369_v23 = vpop.f32.mrf.mxu1  ;;  %4576 = vtanh.f32 %v1817_v22 }
 0x250   :  { %v4565_v24 = vpop.eup %4564  ;;  %v3690_v25 = vpop.f32.mrf.mxu0  ;;  %4578 = vtanh.f32 %v2369_v23 }
 0x251   :  { %v3966_v0 = vpop.f32.mrf.mxu1  ;;  %v4567_v26 = vpop.eup %4566  ;;  %2892 = vst.msk [vmem:[%s6676_s2 + $0x2f0] sm:$0xff] %vm2797_vm2, %v4565_v24 }
 0x252   :  { %3030 = vst.msk [vmem:[%s6676_s2 + $0x740] sm:$0xff] %vm2797_vm2, %v4567_v26  ;;  %v1822_v27 = vpop.f32.mrf.mxu0 }
 0x253   :  { %v2374_v28 = vpop.f32.mrf.mxu1  ;;  %4580 = vtanh.f32 %v1822_v27 }
 0x254   :  { %v4569_v29 = vpop.eup %4568  ;;  %v3693_v30 = vpop.f32.mrf.mxu0  ;;  %4582 = vtanh.f32 %v2374_v28 }
 0x255   :  { %v3969_v31 = vpop.f32.mrf.mxu1  ;;  %v4571_v32 = vpop.eup %4570  ;;  %2893 = vst.msk [vmem:[%s6676_s2 + $0x2f8] sm:$0xff] %vm2797_vm2, %v4569_v29 }
 0x256   :  { %3031 = vst.msk [vmem:[%s6676_s2 + $0x748] sm:$0xff] %vm2797_vm2, %v4571_v32  ;;  %v1825_v33 = vpop.f32.mrf.mxu0 }
 0x257   :  { %v2377_v34 = vpop.f32.mrf.mxu1  ;;  %4584 = vtanh.f32 %v1825_v33 }
 0x258   :  { %v4573_v35 = vpop.eup %4572  ;;  %v3694_v36 = vpop.f32.mrf.mxu0  ;;  %4586 = vtanh.f32 %v2377_v34 }
 0x259   :  { %v3970_v37 = vpop.f32.mrf.mxu1  ;;  %v4575_v38 = vpop.eup %4574  ;;  %2894 = vst.msk [vmem:[%s6676_s2 + $0x300] sm:$0xff] %vm2797_vm2, %v4573_v35 }
 0x25a   :  { %3032 = vst.msk [vmem:[%s6676_s2 + $0x750] sm:$0xff] %vm2797_vm2, %v4575_v38  ;;  %v1830_v39 = vpop.f32.mrf.mxu0 }
 0x25b   :  { %v2382_v40 = vpop.f32.mrf.mxu1  ;;  %4588 = vtanh.f32 %v1830_v39 }
 0x25c   :  { %v4577_v41 = vpop.eup %4576  ;;  %v3697_v42 = vpop.f32.mrf.mxu0  ;;  %4590 = vtanh.f32 %v2382_v40 }
 0x25d   :  { %v3973_v43 = vpop.f32.mrf.mxu1  ;;  %v4579_v44 = vpop.eup %4578  ;;  %2895 = vst.msk [vmem:[%s6676_s2 + $0x308] sm:$0xff] %vm2797_vm2, %v4577_v41 }
 0x25e   :  { %3033 = vst.msk [vmem:[%s6676_s2 + $0x758] sm:$0xff] %vm2797_vm2, %v4579_v44  ;;  %v1833_v45 = vpop.f32.mrf.mxu0 }
 0x25f   :  { %v2385_v46 = vpop.f32.mrf.mxu1  ;;  %4592 = vtanh.f32 %v1833_v45 }
 0x260   :  { %v4581_v47 = vpop.eup %4580  ;;  %v3698_v48 = vpop.f32.mrf.mxu0  ;;  %4594 = vtanh.f32 %v2385_v46 }
 0x261   :  { %v3974_v49 = vpop.f32.mrf.mxu1  ;;  %v4583_v50 = vpop.eup %4582  ;;  %2896 = vst.msk [vmem:[%s6676_s2 + $0x310] sm:$0xff] %vm2797_vm2, %v4581_v47 }
 0x262   :  { %3034 = vst.msk [vmem:[%s6676_s2 + $0x760] sm:$0xff] %vm2797_vm2, %v4583_v50  ;;  %v1838_v51 = vpop.f32.mrf.mxu0 }
 0x263   :  { %v2390_v52 = vpop.f32.mrf.mxu1  ;;  %4596 = vtanh.f32 %v1838_v51 }
 0x264   :  { %v4585_v53 = vpop.eup %4584  ;;  %v3701_v54 = vpop.f32.mrf.mxu0  ;;  %4598 = vtanh.f32 %v2390_v52 }
 0x265   :  { %v3977_v55 = vpop.f32.mrf.mxu1  ;;  %v4587_v56 = vpop.eup %4586  ;;  %2897 = vst.msk [vmem:[%s6676_s2 + $0x318] sm:$0xff] %vm2797_vm2, %v4585_v53 }
 0x266   :  { %3035 = vst.msk [vmem:[%s6676_s2 + $0x768] sm:$0xff] %vm2797_vm2, %v4587_v56  ;;  %v1841_v57 = vpop.f32.mrf.mxu0 }
 0x267   :  { %v2393_v58 = vpop.f32.mrf.mxu1  ;;  %4600 = vtanh.f32 %v1841_v57 }
 0x268   :  { %v4589_v59 = vpop.eup %4588  ;;  %v3702_v60 = vpop.f32.mrf.mxu0  ;;  %4602 = vtanh.f32 %v2393_v58 }
 0x269   :  { %v3978_v61 = vpop.f32.mrf.mxu1  ;;  %v4591_v62 = vpop.eup %4590  ;;  %2898 = vst.msk [vmem:[%s6676_s2 + $0x320] sm:$0xff] %vm2797_vm2, %v4589_v59 }
 0x26a   :  { %3036 = vst.msk [vmem:[%s6676_s2 + $0x770] sm:$0xff] %vm2797_vm2, %v4591_v62  ;;  %v1846_v63 = vpop.f32.mrf.mxu0 }
 0x26b   :  { %v2398_v1 = vpop.f32.mrf.mxu1  ;;  %4604 = vtanh.f32 %v1846_v63 }
 0x26c   :  { %v4593_v2 = vpop.eup %4592  ;;  %v3705_v3 = vpop.f32.mrf.mxu0  ;;  %4606 = vtanh.f32 %v2398_v1 }
 0x26d   :  { %v3981_v4 = vpop.f32.mrf.mxu1  ;;  %v4595_v5 = vpop.eup %4594  ;;  %2899 = vst.msk [vmem:[%s6676_s2 + $0x328] sm:$0xff] %vm2797_vm2, %v4593_v2 }
 0x26e   :  { %3037 = vst.msk [vmem:[%s6676_s2 + $0x778] sm:$0xff] %vm2797_vm2, %v4595_v5  ;;  %v1849_v6 = vpop.f32.mrf.mxu0 }
 0x26f   :  { %v2401_v7 = vpop.f32.mrf.mxu1  ;;  %4608 = vtanh.f32 %v1849_v6 }
 0x270   :  { %v4597_v8 = vpop.eup %4596  ;;  %v3706_v9 = vpop.f32.mrf.mxu0  ;;  %4610 = vtanh.f32 %v2401_v7 }
 0x271   :  { %v3982_v10 = vpop.f32.mrf.mxu1  ;;  %v4599_v11 = vpop.eup %4598  ;;  %2900 = vst.msk [vmem:[%s6676_s2 + $0x330] sm:$0xff] %vm2797_vm2, %v4597_v8 }
 0x272   :  { %3038 = vst.msk [vmem:[%s6676_s2 + $0x780] sm:$0xff] %vm2797_vm2, %v4599_v11  ;;  %v1854_v12 = vpop.f32.mrf.mxu0 }
 0x273   :  { %v2406_v13 = vpop.f32.mrf.mxu1  ;;  %4612 = vtanh.f32 %v1854_v12 }
 0x274   :  { %v4601_v14 = vpop.eup %4600  ;;  %v3709_v15 = vpop.f32.mrf.mxu0  ;;  %4614 = vtanh.f32 %v2406_v13 }
 0x275   :  { %v3985_v16 = vpop.f32.mrf.mxu1  ;;  %v4603_v17 = vpop.eup %4602  ;;  %2901 = vst.msk [vmem:[%s6676_s2 + $0x338] sm:$0xff] %vm2797_vm2, %v4601_v14 }
 0x276   :  { %3039 = vst.msk [vmem:[%s6676_s2 + $0x788] sm:$0xff] %vm2797_vm2, %v4603_v17  ;;  %v1857_v18 = vpop.f32.mrf.mxu0 }
 0x277   :  { %v2409_v19 = vpop.f32.mrf.mxu1  ;;  %4616 = vtanh.f32 %v1857_v18 }
 0x278   :  { %v4605_v20 = vpop.eup %4604  ;;  %v3710_v21 = vpop.f32.mrf.mxu0  ;;  %4618 = vtanh.f32 %v2409_v19 }
 0x279   :  { %v3986_v22 = vpop.f32.mrf.mxu1  ;;  %v4607_v23 = vpop.eup %4606  ;;  %2902 = vst.msk [vmem:[%s6676_s2 + $0x340] sm:$0xff] %vm2797_vm2, %v4605_v20 }
 0x27a   :  { %3040 = vst.msk [vmem:[%s6676_s2 + $0x790] sm:$0xff] %vm2797_vm2, %v4607_v23  ;;  %v1862_v24 = vpop.f32.mrf.mxu0 }
 0x27b   :  { %v2414_v25 = vpop.f32.mrf.mxu1  ;;  %4620 = vtanh.f32 %v1862_v24 }
 0x27c   :  { %v4609_v0 = vpop.eup %4608  ;;  %v3713_v26 = vpop.f32.mrf.mxu0  ;;  %4622 = vtanh.f32 %v2414_v25 }
 0x27d   :  { %v3989_v27 = vpop.f32.mrf.mxu1  ;;  %v4611_v28 = vpop.eup %4610  ;;  %2903 = vst.msk [vmem:[%s6676_s2 + $0x348] sm:$0xff] %vm2797_vm2, %v4609_v0 }
 0x27e   :  { %3041 = vst.msk [vmem:[%s6676_s2 + $0x798] sm:$0xff] %vm2797_vm2, %v4611_v28  ;;  %v1865_v29 = vpop.f32.mrf.mxu0 }
 0x27f   :  { %v2417_v30 = vpop.f32.mrf.mxu1  ;;  %4624 = vtanh.f32 %v1865_v29 }
 0x280   :  { %v4613_v31 = vpop.eup %4612  ;;  %v3714_v32 = vpop.f32.mrf.mxu0  ;;  %4626 = vtanh.f32 %v2417_v30 }
 0x281   :  { %v3990_v33 = vpop.f32.mrf.mxu1  ;;  %v4615_v34 = vpop.eup %4614  ;;  %2904 = vst.msk [vmem:[%s6676_s2 + $0x350] sm:$0xff] %vm2797_vm2, %v4613_v31 }
 0x282   :  { %3042 = vst.msk [vmem:[%s6676_s2 + $0x7a0] sm:$0xff] %vm2797_vm2, %v4615_v34  ;;  %v1870_v35 = vpop.f32.mrf.mxu0 }
 0x283   :  { %v2422_v36 = vpop.f32.mrf.mxu1  ;;  %4628 = vtanh.f32 %v1870_v35 }
 0x284   :  { %v4617_v37 = vpop.eup %4616  ;;  %v3717_v38 = vpop.f32.mrf.mxu0  ;;  %4630 = vtanh.f32 %v2422_v36 }
 0x285   :  { %v3993_v39 = vpop.f32.mrf.mxu1  ;;  %v4619_v40 = vpop.eup %4618  ;;  %2905 = vst.msk [vmem:[%s6676_s2 + $0x358] sm:$0xff] %vm2797_vm2, %v4617_v37 }
 0x286   :  { %3043 = vst.msk [vmem:[%s6676_s2 + $0x7a8] sm:$0xff] %vm2797_vm2, %v4619_v40  ;;  %v1873_v41 = vpop.f32.mrf.mxu0 }
 0x287   :  { %v2425_v42 = vpop.f32.mrf.mxu1  ;;  %4632 = vtanh.f32 %v1873_v41 }
 0x288   :  { %v4621_v43 = vpop.eup %4620  ;;  %v3718_v44 = vpop.f32.mrf.mxu0  ;;  %4634 = vtanh.f32 %v2425_v42 }
 0x289   :  { %v3994_v45 = vpop.f32.mrf.mxu1  ;;  %v4623_v46 = vpop.eup %4622  ;;  %2906 = vst.msk [vmem:[%s6676_s2 + $0x360] sm:$0xff] %vm2797_vm2, %v4621_v43 }
 0x28a   :  { %3044 = vst.msk [vmem:[%s6676_s2 + $0x7b0] sm:$0xff] %vm2797_vm2, %v4623_v46  ;;  %v1878_v47 = vpop.f32.mrf.mxu0 }
 0x28b   :  { %v2430_v48 = vpop.f32.mrf.mxu1  ;;  %4636 = vtanh.f32 %v1878_v47 }
 0x28c   :  { %v4625_v49 = vpop.eup %4624  ;;  %v3721_v50 = vpop.f32.mrf.mxu0  ;;  %4638 = vtanh.f32 %v2430_v48 }
 0x28d   :  { %v3997_v51 = vpop.f32.mrf.mxu1  ;;  %v4627_v52 = vpop.eup %4626  ;;  %2907 = vst.msk [vmem:[%s6676_s2 + $0x368] sm:$0xff] %vm2797_vm2, %v4625_v49 }
 0x28e   :  { %3045 = vst.msk [vmem:[%s6676_s2 + $0x7b8] sm:$0xff] %vm2797_vm2, %v4627_v52  ;;  %v1881_v53 = vpop.f32.mrf.mxu0 }
 0x28f   :  { %v2433_v54 = vpop.f32.mrf.mxu1  ;;  %4640 = vtanh.f32 %v1881_v53 }
 0x290   :  { %v4629_v55 = vpop.eup %4628  ;;  %v3722_v56 = vpop.f32.mrf.mxu0  ;;  %4642 = vtanh.f32 %v2433_v54 }
 0x291   :  { %v3998_v57 = vpop.f32.mrf.mxu1  ;;  %v4631_v58 = vpop.eup %4630  ;;  %2908 = vst.msk [vmem:[%s6676_s2 + $0x370] sm:$0xff] %vm2797_vm2, %v4629_v55 }
 0x292   :  { %3046 = vst.msk [vmem:[%s6676_s2 + $0x7c0] sm:$0xff] %vm2797_vm2, %v4631_v58  ;;  %v1886_v59 = vpop.f32.mrf.mxu0 }
 0x293   :  { %v2438_v60 = vpop.f32.mrf.mxu1  ;;  %4644 = vtanh.f32 %v1886_v59 }
 0x294   :  { %v4633_v61 = vpop.eup %4632  ;;  %v3725_v62 = vpop.f32.mrf.mxu0  ;;  %4646 = vtanh.f32 %v2438_v60 }
 0x295   :  { %v4001_v63 = vpop.f32.mrf.mxu1  ;;  %v4635_v1 = vpop.eup %4634  ;;  %2909 = vst.msk [vmem:[%s6676_s2 + $0x378] sm:$0xff] %vm2797_vm2, %v4633_v61 }
 0x296   :  { %3047 = vst.msk [vmem:[%s6676_s2 + $0x7c8] sm:$0xff] %vm2797_vm2, %v4635_v1  ;;  %v1889_v2 = vpop.f32.mrf.mxu0 }
 0x297   :  { %v2441_v3 = vpop.f32.mrf.mxu1  ;;  %4648 = vtanh.f32 %v1889_v2 }
 0x298   :  { %v4637_v4 = vpop.eup %4636  ;;  %v3726_v5 = vpop.f32.mrf.mxu0  ;;  %4650 = vtanh.f32 %v2441_v3 }
 0x299   :  { %v4002_v6 = vpop.f32.mrf.mxu1  ;;  %v4639_v7 = vpop.eup %4638  ;;  %2910 = vst.msk [vmem:[%s6676_s2 + $0x380] sm:$0xff] %vm2797_vm2, %v4637_v4 }
 0x29a   :  { %3048 = vst.msk [vmem:[%s6676_s2 + $0x7d0] sm:$0xff] %vm2797_vm2, %v4639_v7  ;;  %v1894_v8 = vpop.f32.mrf.mxu0 }
 0x29b   :  { %v2446_v9 = vpop.f32.mrf.mxu1  ;;  %4652 = vtanh.f32 %v1894_v8 }
 0x29c   :  { %v4641_v10 = vpop.eup %4640  ;;  %v3729_v11 = vpop.f32.mrf.mxu0  ;;  %4654 = vtanh.f32 %v2446_v9 }
 0x29d   :  { %v4005_v12 = vpop.f32.mrf.mxu1  ;;  %v4643_v13 = vpop.eup %4642  ;;  %2911 = vst.msk [vmem:[%s6676_s2 + $0x388] sm:$0xff] %vm2797_vm2, %v4641_v10 }
 0x29e   :  { %3049 = vst.msk [vmem:[%s6676_s2 + $0x7d8] sm:$0xff] %vm2797_vm2, %v4643_v13  ;;  %v1897_v14 = vpop.f32.mrf.mxu0 }
 0x29f   :  { %v2449_v15 = vpop.f32.mrf.mxu1  ;;  %4656 = vtanh.f32 %v1897_v14 }
 0x2a0   :  { %v4645_v16 = vpop.eup %4644  ;;  %v3730_v17 = vpop.f32.mrf.mxu0  ;;  %4658 = vtanh.f32 %v2449_v15 }
 0x2a1   :  { %v4006_v18 = vpop.f32.mrf.mxu1  ;;  %v4647_v19 = vpop.eup %4646  ;;  %2912 = vst.msk [vmem:[%s6676_s2 + $0x390] sm:$0xff] %vm2797_vm2, %v4645_v16 }
 0x2a2   :  { %3050 = vst.msk [vmem:[%s6676_s2 + $0x7e0] sm:$0xff] %vm2797_vm2, %v4647_v19  ;;  %v1902_v20 = vpop.f32.mrf.mxu0 }
 0x2a3   :  { %v2454_v21 = vpop.f32.mrf.mxu1  ;;  %4660 = vtanh.f32 %v1902_v20 }
 0x2a4   :  { %v4649_v22 = vpop.eup %4648  ;;  %v3733_v23 = vpop.f32.mrf.mxu0  ;;  %4662 = vtanh.f32 %v2454_v21 }
 0x2a5   :  { %v4009_v24 = vpop.f32.mrf.mxu1  ;;  %v4651_v25 = vpop.eup %4650  ;;  %2913 = vst.msk [vmem:[%s6676_s2 + $0x398] sm:$0xff] %vm2797_vm2, %v4649_v22 }
 0x2a6   :  { %3051 = vst.msk [vmem:[%s6676_s2 + $0x7e8] sm:$0xff] %vm2797_vm2, %v4651_v25  ;;  %v1905_v0 = vpop.f32.mrf.mxu0 }
 0x2a7   :  { %v2457_v26 = vpop.f32.mrf.mxu1  ;;  %4664 = vtanh.f32 %v1905_v0 }
 0x2a8   :  { %v4653_v27 = vpop.eup %4652  ;;  %v3734_v28 = vpop.f32.mrf.mxu0  ;;  %4666 = vtanh.f32 %v2457_v26 }
 0x2a9   :  { %v4010_v29 = vpop.f32.mrf.mxu1  ;;  %v4655_v30 = vpop.eup %4654  ;;  %2914 = vst.msk [vmem:[%s6676_s2 + $0x3a0] sm:$0xff] %vm2797_vm2, %v4653_v27 }
 0x2aa   :  { %3052 = vst.msk [vmem:[%s6676_s2 + $0x7f0] sm:$0xff] %vm2797_vm2, %v4655_v30  ;;  %v1910_v31 = vpop.f32.mrf.mxu0 }
 0x2ab   :  { %v2462_v32 = vpop.f32.mrf.mxu1  ;;  %4668 = vtanh.f32 %v1910_v31 }
 0x2ac   :  { %v4657_v33 = vpop.eup %4656  ;;  %v3737_v34 = vpop.f32.mrf.mxu0  ;;  %4670 = vtanh.f32 %v2462_v32 }
 0x2ad   :  { %v4013_v35 = vpop.f32.mrf.mxu1  ;;  %v4659_v36 = vpop.eup %4658  ;;  %2915 = vst.msk [vmem:[%s6676_s2 + $0x3a8] sm:$0xff] %vm2797_vm2, %v4657_v33 }
 0x2ae   :  { %3053 = vst.msk [vmem:[%s6676_s2 + $0x7f8] sm:$0xff] %vm2797_vm2, %v4659_v36  ;;  %v1913_v37 = vpop.f32.mrf.mxu0 }
 0x2af   :  { %v2465_v38 = vpop.f32.mrf.mxu1  ;;  %4672 = vtanh.f32 %v1913_v37 }
 0x2b0   :  { %v4661_v39 = vpop.eup %4660  ;;  %v3738_v40 = vpop.f32.mrf.mxu0  ;;  %4674 = vtanh.f32 %v2465_v38 }
 0x2b1   :  { %v4014_v41 = vpop.f32.mrf.mxu1  ;;  %v4663_v42 = vpop.eup %4662  ;;  %2916 = vst.msk [vmem:[%s6676_s2 + $0x3b0] sm:$0xff] %vm2797_vm2, %v4661_v39 }
 0x2b2   :  { %3054 = vst.msk [vmem:[%s6676_s2 + $0x800] sm:$0xff] %vm2797_vm2, %v4663_v42  ;;  %v1918_v43 = vpop.f32.mrf.mxu0 }
 0x2b3   :  { %v2470_v44 = vpop.f32.mrf.mxu1  ;;  %4676 = vtanh.f32 %v1918_v43 }
 0x2b4   :  { %v4665_v45 = vpop.eup %4664  ;;  %v3741_v46 = vpop.f32.mrf.mxu0  ;;  %4678 = vtanh.f32 %v2470_v44 }
 0x2b5   :  { %v4017_v47 = vpop.f32.mrf.mxu1  ;;  %v4667_v48 = vpop.eup %4666  ;;  %2917 = vst.msk [vmem:[%s6676_s2 + $0x3b8] sm:$0xff] %vm2797_vm2, %v4665_v45 }
 0x2b6   :  { %3055 = vst.msk [vmem:[%s6676_s2 + $0x808] sm:$0xff] %vm2797_vm2, %v4667_v48  ;;  %v1921_v49 = vpop.f32.mrf.mxu0 }
 0x2b7   :  { %v2473_v50 = vpop.f32.mrf.mxu1  ;;  %4680 = vtanh.f32 %v1921_v49 }
 0x2b8   :  { %v4669_v51 = vpop.eup %4668  ;;  %v3742_v52 = vpop.f32.mrf.mxu0  ;;  %4682 = vtanh.f32 %v2473_v50 }
 0x2b9   :  { %v4018_v53 = vpop.f32.mrf.mxu1  ;;  %v4671_v54 = vpop.eup %4670  ;;  %2918 = vst.msk [vmem:[%s6676_s2 + $0x3c0] sm:$0xff] %vm2797_vm2, %v4669_v51 }
 0x2ba   :  { %3056 = vst.msk [vmem:[%s6676_s2 + $0x810] sm:$0xff] %vm2797_vm2, %v4671_v54  ;;  %v1926_v55 = vpop.f32.mrf.mxu0 }
 0x2bb   :  { %v2478_v56 = vpop.f32.mrf.mxu1  ;;  %4684 = vtanh.f32 %v1926_v55 }
 0x2bc   :  { %v4673_v57 = vpop.eup %4672  ;;  %v3745_v58 = vpop.f32.mrf.mxu0  ;;  %4686 = vtanh.f32 %v2478_v56 }
 0x2bd   :  { %v4021_v59 = vpop.f32.mrf.mxu1  ;;  %v4675_v60 = vpop.eup %4674  ;;  %2919 = vst.msk [vmem:[%s6676_s2 + $0x3c8] sm:$0xff] %vm2797_vm2, %v4673_v57 }
 0x2be   :  { %3057 = vst.msk [vmem:[%s6676_s2 + $0x818] sm:$0xff] %vm2797_vm2, %v4675_v60  ;;  %v1929_v61 = vpop.f32.mrf.mxu0 }
 0x2bf   :  { %v2481_v62 = vpop.f32.mrf.mxu1  ;;  %4688 = vtanh.f32 %v1929_v61 }
 0x2c0   :  { %v4677_v63 = vpop.eup %4676  ;;  %v3746_v1 = vpop.f32.mrf.mxu0  ;;  %4690 = vtanh.f32 %v2481_v62 }
 0x2c1   :  { %v4022_v2 = vpop.f32.mrf.mxu1  ;;  %v4679_v3 = vpop.eup %4678  ;;  %2920 = vst.msk [vmem:[%s6676_s2 + $0x3d0] sm:$0xff] %vm2797_vm2, %v4677_v63 }
 0x2c2   :  { %3058 = vst.msk [vmem:[%s6676_s2 + $0x820] sm:$0xff] %vm2797_vm2, %v4679_v3  ;;  %v1934_v4 = vpop.f32.mrf.mxu0 }
 0x2c3   :  { %v2486_v5 = vpop.f32.mrf.mxu1  ;;  %4692 = vtanh.f32 %v1934_v4 }
 0x2c4   :  { %v4681_v6 = vpop.eup %4680  ;;  %v3749_v7 = vpop.f32.mrf.mxu0  ;;  %4694 = vtanh.f32 %v2486_v5 }
 0x2c5   :  { %v4025_v8 = vpop.f32.mrf.mxu1  ;;  %v4683_v9 = vpop.eup %4682  ;;  %2921 = vst.msk [vmem:[%s6676_s2 + $0x3d8] sm:$0xff] %vm2797_vm2, %v4681_v6 }
 0x2c6   :  { %3059 = vst.msk [vmem:[%s6676_s2 + $0x828] sm:$0xff] %vm2797_vm2, %v4683_v9  ;;  %v1937_v10 = vpop.f32.mrf.mxu0 }
 0x2c7   :  { %v2489_v11 = vpop.f32.mrf.mxu1  ;;  %4696 = vtanh.f32 %v1937_v10 }
 0x2c8   :  { %v4685_v12 = vpop.eup %4684  ;;  %v3750_v13 = vpop.f32.mrf.mxu0  ;;  %4698 = vtanh.f32 %v2489_v11 }
 0x2c9   :  { %v4026_v14 = vpop.f32.mrf.mxu1  ;;  %v4687_v15 = vpop.eup %4686  ;;  %2922 = vst.msk [vmem:[%s6676_s2 + $0x3e0] sm:$0xff] %vm2797_vm2, %v4685_v12 }
 0x2ca   :  { %3060 = vst.msk [vmem:[%s6676_s2 + $0x830] sm:$0xff] %vm2797_vm2, %v4687_v15  ;;  %v1942_v16 = vpop.f32.mrf.mxu0 }
 0x2cb   :  { %v2494_v17 = vpop.f32.mrf.mxu1  ;;  %4700 = vtanh.f32 %v1942_v16 }
 0x2cc   :  { %v4689_v18 = vpop.eup %4688  ;;  %v3753_v19 = vpop.f32.mrf.mxu0  ;;  %4702 = vtanh.f32 %v2494_v17 }
 0x2cd   :  { %v4029_v20 = vpop.f32.mrf.mxu1  ;;  %v4691_v21 = vpop.eup %4690  ;;  %2923 = vst.msk [vmem:[%s6676_s2 + $0x3e8] sm:$0xff] %vm2797_vm2, %v4689_v18 }
 0x2ce   :  { %3061 = vst.msk [vmem:[%s6676_s2 + $0x838] sm:$0xff] %vm2797_vm2, %v4691_v21  ;;  %v1945_v22 = vpop.f32.mrf.mxu0 }
 0x2cf   :  { %v2497_v23 = vpop.f32.mrf.mxu1  ;;  %4704 = vtanh.f32 %v1945_v22 }
 0x2d0   :  { %v4693_v24 = vpop.eup %4692  ;;  %v3754_v25 = vpop.f32.mrf.mxu0  ;;  %4706 = vtanh.f32 %v2497_v23 }
 0x2d1   :  { %v4030_v0 = vpop.f32.mrf.mxu1  ;;  %v4695_v26 = vpop.eup %4694  ;;  %2924 = vst.msk [vmem:[%s6676_s2 + $0x3f0] sm:$0xff] %vm2797_vm2, %v4693_v24 }
 0x2d2   :  { %3062 = vst.msk [vmem:[%s6676_s2 + $0x840] sm:$0xff] %vm2797_vm2, %v4695_v26  ;;  %v1950_v27 = vpop.f32.mrf.mxu0 }
 0x2d3   :  { %v2502_v28 = vpop.f32.mrf.mxu1  ;;  %4708 = vtanh.f32 %v1950_v27 }
 0x2d4   :  { %v4697_v29 = vpop.eup %4696  ;;  %v3757_v30 = vpop.f32.mrf.mxu0  ;;  %4710 = vtanh.f32 %v2502_v28 }
 0x2d5   :  { %v4033_v31 = vpop.f32.mrf.mxu1  ;;  %v4699_v32 = vpop.eup %4698  ;;  %2925 = vst.msk [vmem:[%s6676_s2 + $0x3f8] sm:$0xff] %vm2797_vm2, %v4697_v29 }
 0x2d6   :  { %3063 = vst.msk [vmem:[%s6676_s2 + $0x848] sm:$0xff] %vm2797_vm2, %v4699_v32  ;;  %v1953_v33 = vpop.f32.mrf.mxu0 }
 0x2d7   :  { %v2505_v34 = vpop.f32.mrf.mxu1  ;;  %4712 = vtanh.f32 %v1953_v33 }
 0x2d8   :  { %v4701_v35 = vpop.eup %4700  ;;  %v3758_v36 = vpop.f32.mrf.mxu0  ;;  %4714 = vtanh.f32 %v2505_v34 }
 0x2d9   :  { %v4034_v37 = vpop.f32.mrf.mxu1  ;;  %v4703_v38 = vpop.eup %4702  ;;  %2926 = vst.msk [vmem:[%s6676_s2 + $0x400] sm:$0xff] %vm2797_vm2, %v4701_v35 }
 0x2da   :  { %3064 = vst.msk [vmem:[%s6676_s2 + $0x850] sm:$0xff] %vm2797_vm2, %v4703_v38  ;;  %v1958_v39 = vpop.f32.mrf.mxu0 }
 0x2db   :  { %v2510_v40 = vpop.f32.mrf.mxu1  ;;  %4716 = vtanh.f32 %v1958_v39 }
 0x2dc   :  { %v4705_v41 = vpop.eup %4704  ;;  %v3761_v42 = vpop.f32.mrf.mxu0  ;;  %4718 = vtanh.f32 %v2510_v40 }
 0x2dd   :  { %v4037_v43 = vpop.f32.mrf.mxu1  ;;  %v4707_v44 = vpop.eup %4706  ;;  %2927 = vst.msk [vmem:[%s6676_s2 + $0x408] sm:$0xff] %vm2797_vm2, %v4705_v41 }
 0x2de   :  { %3065 = vst.msk [vmem:[%s6676_s2 + $0x858] sm:$0xff] %vm2797_vm2, %v4707_v44  ;;  %v1961_v45 = vpop.f32.mrf.mxu0 }
 0x2df   :  { %v2513_v46 = vpop.f32.mrf.mxu1  ;;  %4720 = vtanh.f32 %v1961_v45 }
 0x2e0   :  { %v4709_v47 = vpop.eup %4708  ;;  %v3762_v48 = vpop.f32.mrf.mxu0  ;;  %4722 = vtanh.f32 %v2513_v46 }
 0x2e1   :  { %v4038_v49 = vpop.f32.mrf.mxu1  ;;  %v4711_v50 = vpop.eup %4710  ;;  %2928 = vst.msk [vmem:[%s6676_s2 + $0x410] sm:$0xff] %vm2797_vm2, %v4709_v47 }
 0x2e2   :  { %3066 = vst.msk [vmem:[%s6676_s2 + $0x860] sm:$0xff] %vm2797_vm2, %v4711_v50  ;;  %v1966_v51 = vpop.f32.mrf.mxu0 }
 0x2e3   :  { %v2518_v52 = vpop.f32.mrf.mxu1  ;;  %4724 = vtanh.f32 %v1966_v51 }
 0x2e4   :  { %v4713_v53 = vpop.eup %4712  ;;  %v3765_v54 = vpop.f32.mrf.mxu0  ;;  %4726 = vtanh.f32 %v2518_v52 }
 0x2e5   :  { %v4041_v55 = vpop.f32.mrf.mxu1  ;;  %v4715_v56 = vpop.eup %4714  ;;  %2929 = vst.msk [vmem:[%s6676_s2 + $0x418] sm:$0xff] %vm2797_vm2, %v4713_v53 }
 0x2e6   :  { %3067 = vst.msk [vmem:[%s6676_s2 + $0x868] sm:$0xff] %vm2797_vm2, %v4715_v56  ;;  %v1969_v57 = vpop.f32.mrf.mxu0 }
 0x2e7   :  { %v2521_v58 = vpop.f32.mrf.mxu1  ;;  %4728 = vtanh.f32 %v1969_v57 }
 0x2e8   :  { %v4717_v59 = vpop.eup %4716  ;;  %v3766_v60 = vpop.f32.mrf.mxu0 }
 0x2e9   :  { %v4042_v61 = vpop.f32.mrf.mxu1  ;;  %v4719_v62 = vpop.eup %4718  ;;  %2930 = vst.msk [vmem:[%s6676_s2 + $0x420] sm:$0xff] %vm2797_vm2, %v4717_v59 }
 0x2ea   :  { %3068 = vst.msk [vmem:[%s6676_s2 + $0x870] sm:$0xff] %vm2797_vm2, %v4719_v62  ;;  %v1974_v63 = vpop.f32.mrf.mxu0 }
 0x2eb   :  { %4730 = vtanh.f32 %v1974_v63 }
 0x2ec   :  { %v4721_v1 = vpop.eup %4720  ;;  %v3769_v2 = vpop.f32.mrf.mxu0 }
 0x2ed   :  { %v4723_v3 = vpop.eup %4722  ;;  %2931 = vst.msk [vmem:[%s6676_s2 + $0x428] sm:$0xff] %vm2797_vm2, %v4721_v1 }
 0x2ee   :  { %3069 = vst.msk [vmem:[%s6676_s2 + $0x878] sm:$0xff] %vm2797_vm2, %v4723_v3  ;;  %v1977_v4 = vpop.f32.mrf.mxu0 }
 0x2ef   :  { %4732 = vtanh.f32 %v1977_v4 }
 0x2f0   :  { %v4725_v5 = vpop.eup %4724  ;;  %v3770_v6 = vpop.f32.mrf.mxu0 }
 0x2f1   :  { %v4727_v7 = vpop.eup %4726  ;;  %2932 = vst.msk [vmem:[%s6676_s2 + $0x430] sm:$0xff] %vm2797_vm2, %v4725_v5 }
 0x2f2   :  { %3071 = vst.msk [vmem:[%s6676_s2 + $0x880] sm:$0x3] %vm3070_vm3, %v4727_v7 }
 0x2f4   :  { %v4729_v8 = vpop.eup %4728 }
 0x2f5   :  { %2933 = vst.msk [vmem:[%s6676_s2 + $0x438] sm:$0xff] %vm2797_vm2, %v4729_v8 }
 0x2f8   :  { %v4731_v9 = vpop.eup %4730 }
 0x2f9   :  { %2934 = vst.msk [vmem:[%s6676_s2 + $0x440] sm:$0xff] %vm2797_vm2, %v4731_v9 }
 0x2fc   :  { %v4733_v10 = vpop.eup %4732 }
 0x2fd   :  { %2935 = vst.msk [vmem:[%s6676_s2 + $0x448] sm:$0xff] %vm2797_vm2, %v4733_v10 }

</bundles_post_ra>
